<compile_context>
chip_gen: v7x
topology: tpu7x:2x2x1
jax: 0.10.0
libtpu: 0.0.40
codegen_flags: <defaults>
</compile_context>

<pallas_src>
import functools

import jax
import jax.numpy as jnp
from jax import lax
from jax.experimental import pallas as pl
from jax.experimental.pallas import tpu as pltpu

_HP = 8                    # head rows padded to one sublane group (lane-dense layout)
_NEG = -1e30               # finite "-inf" (avoids 0 * -inf = NaN in one-hot matmuls)
_VMEM_LIMIT = 32 * 1024 * 1024


def _round_up(x, m):
    return ((x + m - 1) // m) * m


def _choose_tile(dim, pref, align):
    t = min(pref, _round_up(dim, align))
    return t, _round_up(dim, t)


# ----------------------------------------------------------------------------
# Tiled dense projection kernel  (y = x @ w + b)
# ----------------------------------------------------------------------------
def _matmul_kernel(x_ref, w_ref, b_ref, o_ref, acc_ref):
    @pl.when(pl.program_id(2) == 0)
    def _():
        acc_ref[...] = jnp.zeros_like(acc_ref)

    acc_ref[...] += jnp.dot(x_ref[...], w_ref[...],
                            preferred_element_type=jnp.float32)

    @pl.when(pl.program_id(2) == pl.num_programs(2) - 1)
    def _():
        o_ref[...] = acc_ref[...] + b_ref[...]


def linear(x, w, b=None):
    """Tiled MXU projection.  x: (M, K), w: (K, N), b: (N,) or None."""
    x = x.astype(jnp.float32)
    w = w.astype(jnp.float32)
    M, K = x.shape
    Nout = w.shape[1]
    tm, Mp = _choose_tile(M, 256, 8)
    tk, Kp = _choose_tile(K, 256, 128)
    tn, Npad = _choose_tile(Nout, 256, 128)
    xp = jnp.pad(x, ((0, Mp - M), (0, Kp - K)))
    wp = jnp.pad(w, ((0, Kp - K), (0, Npad - Nout)))
    if b is None:
        bp = jnp.zeros((1, Npad), jnp.float32)
    else:
        bp = jnp.pad(b.reshape(1, Nout).astype(jnp.float32),
                     ((0, 0), (0, Npad - Nout)))
    out = pl.pallas_call(
        _matmul_kernel,
        grid_spec=pltpu.PrefetchScalarGridSpec(
            num_scalar_prefetch=0,
            grid=(Mp // tm, Npad // tn, Kp // tk),
            in_specs=[
                pl.BlockSpec((tm, tk), lambda i, j, k: (i, k)),
                pl.BlockSpec((tk, tn), lambda i, j, k: (k, j)),
                pl.BlockSpec((1, tn), lambda i, j, k: (0, j)),
            ],
            out_specs=pl.BlockSpec((tm, tn), lambda i, j, k: (i, j)),
            scratch_shapes=[pltpu.VMEM((tm, tn), jnp.float32)],
        ),
        out_shape=jax.ShapeDtypeStruct((Mp, Npad), jnp.float32),
        compiler_params=pltpu.CompilerParams(
            dimension_semantics=("parallel", "parallel", "arbitrary"),
            vmem_limit_bytes=_VMEM_LIMIT),
    )(xp, wp, bp)
    return out[:M, :Nout]


# ----------------------------------------------------------------------------
# Fused GAT graph kernel: edge logits + per-dst softmax + aggregation
# ----------------------------------------------------------------------------
def _gat_fused_kernel(elT_ref, erT_ref, eeT_ref, feat2T_ref,
                      srcR_ref, dstR_ref, dstC_ref, resT_ref,
                      aT_ref, rstT_ref, m_acc, l_acc,
                      *, H, Hout, F, neg_slope, alpha):
    ph = pl.program_id(0)          # 0: online max/denominator, 1: normalize+aggregate
    j = pl.program_id(1)           # edge tile
    Np = elT_ref.shape[1]
    TE = eeT_ref.shape[1]

    @pl.when(jnp.logical_and(ph == 0, j == 0))
    def _init():
        m_acc[...] = jnp.full_like(m_acc, _NEG)
        l_acc[...] = jnp.zeros_like(l_acc)
        rstT_ref[...] = jnp.zeros_like(rstT_ref)

    # On-the-fly one-hot gather/scatter tiles from the int32 edge indices.
    # (Never materialized in HBM; padded edges carry an out-of-range sentinel
    # so their one-hot columns/rows are all-zero.)
    src_row = srcR_ref[...]                                        # (1, TE)
    dst_row = dstR_ref[...]                                        # (1, TE)
    dst_col = dstC_ref[...]                                        # (TE, 1)
    node_iota = lax.broadcasted_iota(jnp.int32, (Np, TE), 0)
    node_iota_t = lax.broadcasted_iota(jnp.int32, (TE, Np), 1)
    oh_src = (node_iota == src_row).astype(jnp.float32)            # (Np, TE)
    oh_dst = (node_iota == dst_row).astype(jnp.float32)            # (Np, TE)
    oh_dstT_b = node_iota_t == dst_col                             # (TE, Np) bool
    oh_dstT = oh_dstT_b.astype(jnp.float32)

    # e = LeakyReLU(el[src] + er[dst] + ee)   (gathers as one-hot matmuls)
    el_g = jnp.dot(elT_ref[...], oh_src, preferred_element_type=jnp.float32)
    er_g = jnp.dot(erT_ref[...], oh_dst, preferred_element_type=jnp.float32)
    logits = el_g + er_g + eeT_ref[...]
    logits = jnp.where(logits > 0, logits, neg_slope * logits)     # (_HP, TE)

    @pl.when(ph == 0)
    def _stats():
        # Online per-destination max and softmax denominator (flash-style).
        masked = jnp.where(oh_dstT_b[None, :, :], logits[:H, :, None],
                           jnp.float32(_NEG))                      # (H, TE, Np)
        m_tile = jnp.max(masked, axis=1)                           # (H, Np)
        if H < _HP:
            m_tile = jnp.concatenate(
                [m_tile, jnp.zeros((_HP - H, Np), jnp.float32)], axis=0)
        m_old = m_acc[...]
        m_new = jnp.maximum(m_old, m_tile)
        m_g = jnp.dot(m_new, oh_dst, preferred_element_type=jnp.float32)
        p = jnp.exp(logits - m_g)                                  # (_HP, TE)
        l_add = jnp.dot(p, oh_dstT, preferred_element_type=jnp.float32)
        l_acc[...] = l_acc[...] * jnp.exp(m_old - m_new) + l_add
        m_acc[...] = m_new
        aT_ref[...] = p            # placeholder; overwritten with final a in phase 1

    @pl.when(ph == 1)
    def _normalize_and_aggregate():
        m_g = jnp.dot(m_acc[...], oh_dst, preferred_element_type=jnp.float32)
        d_g = jnp.dot(l_acc[...], oh_dst, preferred_element_type=jnp.float32)
        p = jnp.exp(logits - m_g)
        a = p * pl.reciprocal(d_g + 1e-12, approx=True)            # (_HP, TE)
        if H == Hout:
            a_eff = a
        else:  # fewer heads than res_attn -> broadcast (PyTorch semantics)
            a_eff = jnp.concatenate([a[0:1]] * Hout + [a[Hout:]], axis=0)
        a_mix = a_eff * (1.0 - alpha) + resT_ref[...] * alpha
        aT_ref[...] = a_mix

        # message = a * feat[src]; scatter-add to destination (bf16 MXU matmuls)
        oh_src_bf = (node_iota == src_row).astype(jnp.bfloat16)
        oh_dstT_bf = oh_dstT_b.astype(jnp.bfloat16)
        ft_src = jnp.dot(feat2T_ref[...], oh_src_bf,
                         preferred_element_type=jnp.float32)       # (H*F, TE)
        blocks = []
        for ho in range(Hout):
            hs = ho if H == Hout else 0
            blocks.append(ft_src[hs * F:(hs + 1) * F, :] * a_mix[ho:ho + 1, :])
        msgs = blocks[0] if Hout == 1 else jnp.concatenate(blocks, axis=0)
        rstT_ref[...] += jnp.dot(msgs.astype(jnp.bfloat16), oh_dstT_bf,
                                 preferred_element_type=jnp.float32)


def gat_graph(elT, erT, eeT, feat2T, srcR, dstR, dstC, resT,
              *, H, Hout, F, neg_slope, alpha, edge_tile):
    HP, Npad = elT.shape
    Ep = eeT.shape[1]
    HF = feat2T.shape[0]
    TE = edge_tile
    kern = functools.partial(_gat_fused_kernel, H=H, Hout=Hout, F=F,
                             neg_slope=neg_slope, alpha=alpha)
    aT, rstT = pl.pallas_call(
        kern,
        grid_spec=pltpu.PrefetchScalarGridSpec(
            num_scalar_prefetch=0,
            grid=(2, Ep // TE),
            in_specs=[
                pl.BlockSpec((HP, Npad), lambda p, j: (0, 0)),        # elT (resident)
                pl.BlockSpec((HP, Npad), lambda p, j: (0, 0)),        # erT (resident)
                pl.BlockSpec((HP, TE), lambda p, j: (0, j)),          # eeT (edge tiled)
                pl.BlockSpec((HF, Npad), lambda p, j: (0, 0)),        # feat2T (bf16, resident)
                pl.BlockSpec((1, TE), lambda p, j: (0, j)),           # src (row)
                pl.BlockSpec((1, TE), lambda p, j: (0, j)),           # dst (row)
                pl.BlockSpec((TE, 1), lambda p, j: (j, 0)),           # dst (col)
                pl.BlockSpec((HP, TE), lambda p, j: (0, j)),          # res_attn
            ],
            out_specs=[
                pl.BlockSpec((HP, TE), lambda p, j: (0, j)),          # attention a
                pl.BlockSpec((Hout * F, Npad), lambda p, j: (0, 0)),  # rst accumulator
            ],
            scratch_shapes=[pltpu.VMEM((HP, Npad), jnp.float32),      # running per-dst max
                            pltpu.VMEM((HP, Npad), jnp.float32)],     # running denominator
        ),
        out_shape=(jax.ShapeDtypeStruct((HP, Ep), jnp.float32),
                   jax.ShapeDtypeStruct((Hout * F, Npad), jnp.float32)),
        compiler_params=pltpu.CompilerParams(
            dimension_semantics=("arbitrary", "arbitrary"),
            vmem_limit_bytes=_VMEM_LIMIT),
    )(elT, erT, eeT, feat2T, srcR, dstR, dstC, resT)
    return aT, rstT


# ----------------------------------------------------------------------------
# myGATConv / myGAT glue (parameter setup, layer sequencing)
# ----------------------------------------------------------------------------
def init_conv_params(key, edge_feats, num_etypes, in_feats, out_feats, num_heads, residual):
    ks = jax.random.split(key, 7)

    def nrm(k, shape, scale):
        return scale * jax.random.normal(k, shape, dtype=jnp.float32)

    gain = 1.414  # relu gain, as in reset_parameters
    p = {
        "num_heads": num_heads,
        "out_feats": out_feats,
        "edge_feats": edge_feats,
        "edge_emb": nrm(ks[0], (num_etypes, edge_feats), 0.1),
        "fc_w": nrm(ks[1], (in_feats, num_heads * out_feats),
                    gain * (2.0 / (in_feats + num_heads * out_feats)) ** 0.5),
        "fc_e_w": nrm(ks[2], (edge_feats, num_heads * edge_feats),
                      gain * (2.0 / (edge_feats + num_heads * edge_feats)) ** 0.5),
        "attn_l": nrm(ks[3], (num_heads, out_feats), 0.1),
        "attn_r": nrm(ks[4], (num_heads, out_feats), 0.1),
        "attn_e": nrm(ks[5], (num_heads, edge_feats), 0.1),
        "res_fc_w": None,
        "res_identity": False,
    }
    if residual:
        if in_feats != out_feats:
            p["res_fc_w"] = nrm(ks[6], (in_feats, num_heads * out_feats),
                                gain * (2.0 / (in_feats + num_heads * out_feats)) ** 0.5)
        else:
            p["res_identity"] = True
    return p


def my_gat_conv(p, feat, e_type_ids, srcR, dstR, dstC, N, E, Npad, Ep, TE,
                res_attn, activation, alpha, negative_slope):
    H, F, De = p["num_heads"], p["out_feats"], p["edge_feats"]
    assert H <= _HP
    HF = H * F
    Din = feat.shape[1]

    # feat_drop / attn_drop are identity (p = 0, eval mode).
    # Fold attn_l / attn_r into the fc projection -> one fused matmul.
    wl = (p["fc_w"].reshape(Din, H, F) * p["attn_l"][None]).sum(-1)       # (Din, H)
    wr = (p["fc_w"].reshape(Din, H, F) * p["attn_r"][None]).sum(-1)       # (Din, H)
    wcat = jnp.concatenate([p["fc_w"], wl, wr], axis=1)                   # (Din, HF+2H)
    proj = linear(feat, wcat)                                             # (N, HF+2H)
    feat2 = proj[:, :HF]
    el = proj[:, HF:HF + H]
    er = proj[:, HF + H:HF + 2 * H]

    # Fold attn_e into fc_e; edge-type embedding lookup stays as tiny XLA glue.
    we = (p["fc_e_w"].reshape(De, H, De) * p["attn_e"][None]).sum(-1)     # (De, H)
    e_emb = p["edge_emb"][e_type_ids]                                     # (E, De)
    ee = linear(e_emb, we)                                                # (E, H)

    # Lane-dense, padded layouts for the fused graph kernel.
    elT = jnp.pad(el.T, ((0, _HP - H), (0, Npad - N)))
    erT = jnp.pad(er.T, ((0, _HP - H), (0, Npad - N)))
    eeT = jnp.pad(ee.T, ((0, _HP - H), (0, Ep - E)))
    feat2T = jnp.pad(feat2, ((0, Npad - N), (0, 0))).T.astype(jnp.bfloat16)

    if res_attn is None:
        Hout = H
        resT = jnp.zeros((_HP, Ep), jnp.float32)
        alpha_eff = 0.0
    else:
        resT, res_heads = res_attn
        Hout = max(H, res_heads)
        if res_heads == 1 and Hout > 1:
            resT = jnp.concatenate([resT[0:1]] * Hout + [resT[Hout:]], axis=0)
        alpha_eff = alpha

    aT, rstT = gat_graph(elT, erT, eeT, feat2T, srcR, dstR, dstC, resT,
                         H=H, Hout=Hout, F=F, neg_slope=negative_slope,
                         alpha=alpha_eff, edge_tile=TE)

    rst = rstT[:, :N].T.reshape(N, Hout, F)
    if p["res_fc_w"] is not None:
        resval = linear(feat, p["res_fc_w"]).reshape(N, -1, F)
        rst = rst + resval
    elif p["res_identity"]:
        rst = rst + feat.reshape(N, -1, F)
    # bias=False in myGAT's conv layers
    if activation is not None:
        rst = activation(rst)
    return rst, aT, Hout


def init_mygat_params(key, edge_dim, num_etypes, in_dims, num_hidden, num_layers, heads, residual):
    keys = jax.random.split(key, len(in_dims) + num_layers)
    fc_list = []
    for i, d in enumerate(in_dims):
        kw, kb = jax.random.split(keys[i])
        w = 1.414 * (2.0 / (d + num_hidden)) ** 0.5 * jax.random.normal(
            kw, (d, num_hidden), jnp.float32)
        b = 0.01 * jax.random.normal(kb, (num_hidden,), jnp.float32)
        fc_list.append((w, b))
    layers = []
    layers.append(init_conv_params(keys[len(in_dims)], edge_dim, num_etypes,
                                   num_hidden, num_hidden, heads[0], False))
    for l in range(1, num_layers - 1):
        layers.append(init_conv_params(keys[len(in_dims) + l], edge_dim, num_etypes,
                                       num_hidden * heads[l - 1], num_hidden, heads[l], residual))
    layers.append(init_conv_params(keys[len(in_dims) + num_layers - 1], edge_dim, num_etypes,
                                   num_hidden * heads[-2], num_hidden, heads[-1], residual))
    return {"fc_list": fc_list, "layers": layers}


def mygat_forward(params, features_list, e_type_ids, src, dst, num_nodes,
                  alpha, negative_slope, activation=jax.nn.elu):
    N = num_nodes
    E = src.shape[0]
    Npad = _round_up(N, 128)                    # nodes on the lane axis
    TE = 256 if E > 256 else 128                # edge tile (lane axis)
    Ep = _round_up(E, TE)

    # Edge indices as int32 rows/columns; padded edges use the sentinel `Npad`
    # (out of iota range) so their one-hot columns are all-zero in the kernel.
    srcR = jnp.pad(src.astype(jnp.int32).reshape(1, E),
                   ((0, 0), (0, Ep - E)), constant_values=Npad)
    dstR = jnp.pad(dst.astype(jnp.int32).reshape(1, E),
                   ((0, 0), (0, Ep - E)), constant_values=Npad)
    dstC = dstR.reshape(Ep, 1)

    # per-node-type input projections, then concat along node axis
    h = jnp.concatenate(
        [linear(f, w, b) for (w, b), f in zip(params["fc_list"], features_list)],
        axis=0)

    res = None
    num_layers = len(params["layers"])
    for l in range(num_layers):
        act = activation if l < num_layers - 1 else None
        rst, aT, Hout = my_gat_conv(params["layers"][l], h, e_type_ids,
                                    srcR, dstR, dstC, N, E, Npad, Ep, TE,
                                    res, act, alpha, negative_slope)
        h = rst.reshape(N, -1)
        res = (aT, Hout)
    # The reference forward re-applies the last GAT layer with res_attn=None.
    rst, aT, Hout = my_gat_conv(params["layers"][-1], h, e_type_ids,
                                srcR, dstR, dstC, N, E, Npad, Ep, TE,
                                None, None, alpha, negative_slope)
    h = rst.reshape(N, -1)
    res_attn = aT[0, :E]        # heads[-1] == 1 in the reference (reshape to (E,))
    return h, res_attn


# ----------------------------------------------------------------------------
if __name__ == "__main__":
    key = jax.random.PRNGKey(0)

    # small config consistent with the module (heads[-1] must be 1 so the
    # final res_attn.reshape(E) is valid, as in the reference forward)
    edge_dim = 16
    num_etypes = 4
    in_dims = [16, 24]
    num_hidden = 32
    num_layers = 3
    heads = [2, 2, 1]
    negative_slope = 0.2
    alpha = 0.05
    residual = True
    node_counts = [6, 10]
    N = sum(node_counts)
    E = 40

    k_feat, k_edge, k_param = jax.random.split(key, 3)
    feat_keys = jax.random.split(k_feat, len(in_dims))
    features_list = [
        jax.random.normal(fk, (n, d), jnp.float32)
        for fk, n, d in zip(feat_keys, node_counts, in_dims)
    ]
    k_s, k_d, k_t = jax.random.split(k_edge, 3)
    src = jax.random.randint(k_s, (E,), 0, N)
    dst = jax.random.randint(k_d, (E,), 0, N)
    e_type_ids = jax.random.randint(k_t, (E,), 0, num_etypes)

    params = init_mygat_params(k_param, edge_dim, num_etypes, in_dims,
                               num_hidden, num_layers, heads, residual)

    @jax.jit
    def fwd(features_list, e_type_ids, src, dst):
        return mygat_forward(params, features_list, e_type_ids, src, dst, N,
                             alpha, negative_slope)

    h, res_attn = fwd(features_list, e_type_ids, src, dst)
    jax.block_until_ready((h, res_attn))

    assert h.shape == (N, num_hidden * heads[-1])
    assert res_attn.shape == (E,)
    assert bool(jnp.all(jnp.isfinite(h))) and bool(jnp.all(jnp.isfinite(res_attn)))
    print("KERNEL_OK")
</pallas_src>

<mosaic_0001>
module attributes {stable_mosaic.version = 11 : i64} {
  func.func @_matmul_kernel(%arg0: i32, %arg1: i32, %arg2: i32, %arg3: memref<16x128xf32, #tpu.memory_space<vmem>>, %arg4: memref<128x128xf32, #tpu.memory_space<vmem>>, %arg5: memref<1x128xf32, #tpu.memory_space<vmem>>, %arg6: memref<16x128xf32, #tpu.memory_space<vmem>>, %arg7: memref<16x128xf32, #tpu.memory_space<vmem>>) attributes {dimension_semantics = [#tpu.dimension_semantics<parallel>, #tpu.dimension_semantics<parallel>, #tpu.dimension_semantics<arbitrary>], iteration_bounds = array<i64: 1, 1, 1>, scalar_prefetch = 0 : i64, scratch_operands = 1 : i64, tpu.core_type = #tpu.core_type<tc>, window_params = [{transform_indices = @transform_0, window_bounds = array<i64: 16, 128>}, {transform_indices = @transform_1, window_bounds = array<i64: 128, 128>}, {transform_indices = @transform_2, window_bounds = array<i64: 1, 128>}, {transform_indices = @transform_3, window_bounds = array<i64: 16, 128>}]} {
    %c0_i32 = arith.constant 0 : i32
    %0 = arith.cmpi eq, %arg2, %c0_i32 : i32
    %1 = arith.extui %0 : i1 to i32
    %c0_i32_0 = arith.constant 0 : i32
    %2 = arith.cmpi ne, %1, %c0_i32_0 : i32
    scf.if %2 {
      %cst_10 = arith.constant 0.000000e+00 : f32
      %12 = vector.broadcast %cst_10 : f32 to vector<16x128xf32>
      %c0_11 = arith.constant 0 : index
      %c0_12 = arith.constant 0 : index
      %13 = vector.load %arg7[%c0_11, %c0_12] : memref<16x128xf32, #tpu.memory_space<vmem>>, vector<16x128xf32>
      tpu.vector_store %arg7[%c0_11, %c0_12], %12 {strides = array<i32>} : memref<16x128xf32, #tpu.memory_space<vmem>>, vector<16x128xf32>,
    } else {
    }
    %c0 = arith.constant 0 : index
    %c0_1 = arith.constant 0 : index
    %3 = vector.load %arg7[%c0, %c0_1] : memref<16x128xf32, #tpu.memory_space<vmem>>, vector<16x128xf32>
    %c0_2 = arith.constant 0 : index
    %c0_3 = arith.constant 0 : index
    %4 = vector.load %arg3[%c0_2, %c0_3] : memref<16x128xf32, #tpu.memory_space<vmem>>, vector<16x128xf32>
    %c0_4 = arith.constant 0 : index
    %c0_5 = arith.constant 0 : index
    %5 = vector.load %arg4[%c0_4, %c0_5] : memref<128x128xf32, #tpu.memory_space<vmem>>, vector<128x128xf32>
    %cst = arith.constant dense<0.000000e+00> : vector<16x128xf32>
    %6 = tpu.matmul %4, %5, %cst {dimension_numbers = #tpu.dot_dimension_numbers<[1], [0], [0], [1], [0, 0, 1, 1], [], []>} : vector<16x128xf32>, vector<128x128xf32>, vector<16x128xf32> -> vector<16x128xf32>
    %7 = arith.addf %3, %6 : vector<16x128xf32>
    %c0_6 = arith.constant 0 : index
    %c0_7 = arith.constant 0 : index
    %8 = vector.load %arg7[%c0_6, %c0_7] : memref<16x128xf32, #tpu.memory_space<vmem>>, vector<16x128xf32>
    tpu.vector_store %arg7[%c0_6, %c0_7], %7 {strides = array<i32>} : memref<16x128xf32, #tpu.memory_space<vmem>>, vector<16x128xf32>,
    %c0_i32_8 = arith.constant 0 : i32
    %9 = arith.cmpi eq, %arg2, %c0_i32_8 : i32
    %10 = arith.extui %9 : i1 to i32
    %c0_i32_9 = arith.constant 0 : i32
    %11 = arith.cmpi ne, %10, %c0_i32_9 : i32
    scf.if %11 {
      %c0_10 = arith.constant 0 : index
      %c0_11 = arith.constant 0 : index
      %12 = vector.load %arg7[%c0_10, %c0_11] : memref<16x128xf32, #tpu.memory_space<vmem>>, vector<16x128xf32>
      %c0_12 = arith.constant 0 : index
      %c0_13 = arith.constant 0 : index
      %13 = vector.load %arg5[%c0_12, %c0_13] : memref<1x128xf32, #tpu.memory_space<vmem>>, vector<1x128xf32>
      %14 = vector.broadcast %13 : vector<1x128xf32> to vector<16x128xf32>
      %15 = arith.addf %12, %14 : vector<16x128xf32>
      %c0_14 = arith.constant 0 : index
      %c0_15 = arith.constant 0 : index
      %16 = vector.load %arg6[%c0_14, %c0_15] : memref<16x128xf32, #tpu.memory_space<vmem>>, vector<16x128xf32>
      tpu.vector_store %arg6[%c0_14, %c0_15], %15 {strides = array<i32>} : memref<16x128xf32, #tpu.memory_space<vmem>>, vector<16x128xf32>,
    } else {
    }
    return
  }
  func.func @transform_0(%arg0: i32, %arg1: i32, %arg2: i32) -> (i32, i32) {
    %c0_i32 = arith.constant 0 : i32
    return %arg0, %arg2 : i32, i32
  }
  func.func @transform_1(%arg0: i32, %arg1: i32, %arg2: i32) -> (i32, i32) {
    %c0_i32 = arith.constant 0 : i32
    return %arg2, %arg1 : i32, i32
  }
  func.func @transform_2(%arg0: i32, %arg1: i32, %arg2: i32) -> (i32, i32) {
    %c0_i32 = arith.constant 0 : i32
    %c0_i32_0 = arith.constant 0 : i32
    return %c0_i32, %arg1 : i32, i32
  }
  func.func @transform_3(%arg0: i32, %arg1: i32, %arg2: i32) -> (i32, i32) {
    %c0_i32 = arith.constant 0 : i32
    return %arg0, %arg1 : i32, i32
  }
}

module attributes {stable_mosaic.version = 11 : i64} {
  func.func @_matmul_kernel(%arg0: i32, %arg1: i32, %arg2: i32, %arg3: memref<8x128xf32, #tpu.memory_space<vmem>>, %arg4: memref<128x128xf32, #tpu.memory_space<vmem>>, %arg5: memref<1x128xf32, #tpu.memory_space<vmem>>, %arg6: memref<8x128xf32, #tpu.memory_space<vmem>>, %arg7: memref<8x128xf32, #tpu.memory_space<vmem>>) attributes {dimension_semantics = [#tpu.dimension_semantics<parallel>, #tpu.dimension_semantics<parallel>, #tpu.dimension_semantics<arbitrary>], iteration_bounds = array<i64: 1, 1, 1>, scalar_prefetch = 0 : i64, scratch_operands = 1 : i64, tpu.core_type = #tpu.core_type<tc>, window_params = [{transform_indices = @transform_0, window_bounds = array<i64: 8, 128>}, {transform_indices = @transform_1, window_bounds = array<i64: 128, 128>}, {transform_indices = @transform_2, window_bounds = array<i64: 1, 128>}, {transform_indices = @transform_3, window_bounds = array<i64: 8, 128>}]} {
    %c0_i32 = arith.constant 0 : i32
    %0 = arith.cmpi eq, %arg2, %c0_i32 : i32
    %1 = arith.extui %0 : i1 to i32
    %c0_i32_0 = arith.constant 0 : i32
    %2 = arith.cmpi ne, %1, %c0_i32_0 : i32
    scf.if %2 {
      %cst_10 = arith.constant 0.000000e+00 : f32
      %12 = vector.broadcast %cst_10 : f32 to vector<8x128xf32>
      %c0_11 = arith.constant 0 : index
      %c0_12 = arith.constant 0 : index
      %13 = vector.load %arg7[%c0_11, %c0_12] : memref<8x128xf32, #tpu.memory_space<vmem>>, vector<8x128xf32>
      tpu.vector_store %arg7[%c0_11, %c0_12], %12 {strides = array<i32>} : memref<8x128xf32, #tpu.memory_space<vmem>>, vector<8x128xf32>,
    } else {
    }
    %c0 = arith.constant 0 : index
    %c0_1 = arith.constant 0 : index
    %3 = vector.load %arg7[%c0, %c0_1] : memref<8x128xf32, #tpu.memory_space<vmem>>, vector<8x128xf32>
    %c0_2 = arith.constant 0 : index
    %c0_3 = arith.constant 0 : index
    %4 = vector.load %arg3[%c0_2, %c0_3] : memref<8x128xf32, #tpu.memory_space<vmem>>, vector<8x128xf32>
    %c0_4 = arith.constant 0 : index
    %c0_5 = arith.constant 0 : index
    %5 = vector.load %arg4[%c0_4, %c0_5] : memref<128x128xf32, #tpu.memory_space<vmem>>, vector<128x128xf32>
    %cst = arith.constant dense<0.000000e+00> : vector<8x128xf32>
    %6 = tpu.matmul %4, %5, %cst {dimension_numbers = #tpu.dot_dimension_numbers<[1], [0], [0], [1], [0, 0, 1, 1], [], []>} : vector<8x128xf32>, vector<128x128xf32>, vector<8x128xf32> -> vector<8x128xf32>
    %7 = arith.addf %3, %6 : vector<8x128xf32>
    %c0_6 = arith.constant 0 : index
    %c0_7 = arith.constant 0 : index
    %8 = vector.load %arg7[%c0_6, %c0_7] : memref<8x128xf32, #tpu.memory_space<vmem>>, vector<8x128xf32>
    tpu.vector_store %arg7[%c0_6, %c0_7], %7 {strides = array<i32>} : memref<8x128xf32, #tpu.memory_space<vmem>>, vector<8x128xf32>,
    %c0_i32_8 = arith.constant 0 : i32
    %9 = arith.cmpi eq, %arg2, %c0_i32_8 : i32
    %10 = arith.extui %9 : i1 to i32
    %c0_i32_9 = arith.constant 0 : i32
    %11 = arith.cmpi ne, %10, %c0_i32_9 : i32
    scf.if %11 {
      %c0_10 = arith.constant 0 : index
      %c0_11 = arith.constant 0 : index
      %12 = vector.load %arg7[%c0_10, %c0_11] : memref<8x128xf32, #tpu.memory_space<vmem>>, vector<8x128xf32>
      %c0_12 = arith.constant 0 : index
      %c0_13 = arith.constant 0 : index
      %13 = vector.load %arg5[%c0_12, %c0_13] : memref<1x128xf32, #tpu.memory_space<vmem>>, vector<1x128xf32>
      %14 = vector.broadcast %13 : vector<1x128xf32> to vector<8x128xf32>
      %15 = arith.addf %12, %14 : vector<8x128xf32>
      %c0_14 = arith.constant 0 : index
      %c0_15 = arith.constant 0 : index
      %16 = vector.load %arg6[%c0_14, %c0_15] : memref<8x128xf32, #tpu.memory_space<vmem>>, vector<8x128xf32>
      tpu.vector_store %arg6[%c0_14, %c0_15], %15 {strides = array<i32>} : memref<8x128xf32, #tpu.memory_space<vmem>>, vector<8x128xf32>,
    } else {
    }
    return
  }
  func.func @transform_0(%arg0: i32, %arg1: i32, %arg2: i32) -> (i32, i32) {
    %c0_i32 = arith.constant 0 : i32
    return %arg0, %arg2 : i32, i32
  }
  func.func @transform_1(%arg0: i32, %arg1: i32, %arg2: i32) -> (i32, i32) {
    %c0_i32 = arith.constant 0 : i32
    return %arg2, %arg1 : i32, i32
  }
  func.func @transform_2(%arg0: i32, %arg1: i32, %arg2: i32) -> (i32, i32) {
    %c0_i32 = arith.constant 0 : i32
    %c0_i32_0 = arith.constant 0 : i32
    return %c0_i32, %arg1 : i32, i32
  }
  func.func @transform_3(%arg0: i32, %arg1: i32, %arg2: i32) -> (i32, i32) {
    %c0_i32 = arith.constant 0 : i32
    return %arg0, %arg1 : i32, i32
  }
}

module attributes {stable_mosaic.version = 11 : i64} {
  func.func @_matmul_kernel(%arg0: i32, %arg1: i32, %arg2: i32, %arg3: memref<40x128xf32, #tpu.memory_space<vmem>>, %arg4: memref<128x128xf32, #tpu.memory_space<vmem>>, %arg5: memref<1x128xf32, #tpu.memory_space<vmem>>, %arg6: memref<40x128xf32, #tpu.memory_space<vmem>>, %arg7: memref<40x128xf32, #tpu.memory_space<vmem>>) attributes {dimension_semantics = [#tpu.dimension_semantics<parallel>, #tpu.dimension_semantics<parallel>, #tpu.dimension_semantics<arbitrary>], iteration_bounds = array<i64: 1, 1, 1>, scalar_prefetch = 0 : i64, scratch_operands = 1 : i64, tpu.core_type = #tpu.core_type<tc>, window_params = [{transform_indices = @transform_0, window_bounds = array<i64: 40, 128>}, {transform_indices = @transform_1, window_bounds = array<i64: 128, 128>}, {transform_indices = @transform_2, window_bounds = array<i64: 1, 128>}, {transform_indices = @transform_3, window_bounds = array<i64: 40, 128>}]} {
    %c0_i32 = arith.constant 0 : i32
    %0 = arith.cmpi eq, %arg2, %c0_i32 : i32
    %1 = arith.extui %0 : i1 to i32
    %c0_i32_0 = arith.constant 0 : i32
    %2 = arith.cmpi ne, %1, %c0_i32_0 : i32
    scf.if %2 {
      %cst_10 = arith.constant 0.000000e+00 : f32
      %12 = vector.broadcast %cst_10 : f32 to vector<40x128xf32>
      %c0_11 = arith.constant 0 : index
      %c0_12 = arith.constant 0 : index
      %13 = vector.load %arg7[%c0_11, %c0_12] : memref<40x128xf32, #tpu.memory_space<vmem>>, vector<40x128xf32>
      tpu.vector_store %arg7[%c0_11, %c0_12], %12 {strides = array<i32>} : memref<40x128xf32, #tpu.memory_space<vmem>>, vector<40x128xf32>,
    } else {
    }
    %c0 = arith.constant 0 : index
    %c0_1 = arith.constant 0 : index
    %3 = vector.load %arg7[%c0, %c0_1] : memref<40x128xf32, #tpu.memory_space<vmem>>, vector<40x128xf32>
    %c0_2 = arith.constant 0 : index
    %c0_3 = arith.constant 0 : index
    %4 = vector.load %arg3[%c0_2, %c0_3] : memref<40x128xf32, #tpu.memory_space<vmem>>, vector<40x128xf32>
    %c0_4 = arith.constant 0 : index
    %c0_5 = arith.constant 0 : index
    %5 = vector.load %arg4[%c0_4, %c0_5] : memref<128x128xf32, #tpu.memory_space<vmem>>, vector<128x128xf32>
    %cst = arith.constant dense<0.000000e+00> : vector<40x128xf32>
    %6 = tpu.matmul %4, %5, %cst {dimension_numbers = #tpu.dot_dimension_numbers<[1], [0], [0], [1], [0, 0, 1, 1], [], []>} : vector<40x128xf32>, vector<128x128xf32>, vector<40x128xf32> -> vector<40x128xf32>
    %7 = arith.addf %3, %6 : vector<40x128xf32>
    %c0_6 = arith.constant 0 : index
    %c0_7 = arith.constant 0 : index
    %8 = vector.load %arg7[%c0_6, %c0_7] : memref<40x128xf32, #tpu.memory_space<vmem>>, vector<40x128xf32>
    tpu.vector_store %arg7[%c0_6, %c0_7], %7 {strides = array<i32>} : memref<40x128xf32, #tpu.memory_space<vmem>>, vector<40x128xf32>,
    %c0_i32_8 = arith.constant 0 : i32
    %9 = arith.cmpi eq, %arg2, %c0_i32_8 : i32
    %10 = arith.extui %9 : i1 to i32
    %c0_i32_9 = arith.constant 0 : i32
    %11 = arith.cmpi ne, %10, %c0_i32_9 : i32
    scf.if %11 {
      %c0_10 = arith.constant 0 : index
      %c0_11 = arith.constant 0 : index
      %12 = vector.load %arg7[%c0_10, %c0_11] : memref<40x128xf32, #tpu.memory_space<vmem>>, vector<40x128xf32>
      %c0_12 = arith.constant 0 : index
      %c0_13 = arith.constant 0 : index
      %13 = vector.load %arg5[%c0_12, %c0_13] : memref<1x128xf32, #tpu.memory_space<vmem>>, vector<1x128xf32>
      %14 = vector.broadcast %13 : vector<1x128xf32> to vector<40x128xf32>
      %15 = arith.addf %12, %14 : vector<40x128xf32>
      %c0_14 = arith.constant 0 : index
      %c0_15 = arith.constant 0 : index
      %16 = vector.load %arg6[%c0_14, %c0_15] : memref<40x128xf32, #tpu.memory_space<vmem>>, vector<40x128xf32>
      tpu.vector_store %arg6[%c0_14, %c0_15], %15 {strides = array<i32>} : memref<40x128xf32, #tpu.memory_space<vmem>>, vector<40x128xf32>,
    } else {
    }
    return
  }
  func.func @transform_0(%arg0: i32, %arg1: i32, %arg2: i32) -> (i32, i32) {
    %c0_i32 = arith.constant 0 : i32
    return %arg0, %arg2 : i32, i32
  }
  func.func @transform_1(%arg0: i32, %arg1: i32, %arg2: i32) -> (i32, i32) {
    %c0_i32 = arith.constant 0 : i32
    return %arg2, %arg1 : i32, i32
  }
  func.func @transform_2(%arg0: i32, %arg1: i32, %arg2: i32) -> (i32, i32) {
    %c0_i32 = arith.constant 0 : i32
    %c0_i32_0 = arith.constant 0 : i32
    return %c0_i32, %arg1 : i32, i32
  }
  func.func @transform_3(%arg0: i32, %arg1: i32, %arg2: i32) -> (i32, i32) {
    %c0_i32 = arith.constant 0 : i32
    return %arg0, %arg1 : i32, i32
  }
}

module attributes {stable_mosaic.version = 11 : i64} {
  func.func @_gat_fused_kernel(%arg0: i32, %arg1: i32, %arg2: memref<8x128xf32, #tpu.memory_space<vmem>>, %arg3: memref<8x128xf32, #tpu.memory_space<vmem>>, %arg4: memref<8x128xf32, #tpu.memory_space<vmem>>, %arg5: memref<64x128xbf16, #tpu.memory_space<vmem>>, %arg6: memref<1x128xi32, #tpu.memory_space<vmem>>, %arg7: memref<1x128xi32, #tpu.memory_space<vmem>>, %arg8: memref<128x1xi32, #tpu.memory_space<vmem>>, %arg9: memref<8x128xf32, #tpu.memory_space<vmem>>, %arg10: memref<8x128xf32, #tpu.memory_space<vmem>>, %arg11: memref<64x128xf32, #tpu.memory_space<vmem>>, %arg12: memref<8x128xf32, #tpu.memory_space<vmem>>, %arg13: memref<8x128xf32, #tpu.memory_space<vmem>>) attributes {dimension_semantics = [#tpu.dimension_semantics<arbitrary>, #tpu.dimension_semantics<arbitrary>], iteration_bounds = array<i64: 2, 1>, scalar_prefetch = 0 : i64, scratch_operands = 2 : i64, tpu.core_type = #tpu.core_type<tc>, window_params = [{pipeline_mode = #tpu.pipeline_mode<synchronous>, transform_indices = @transform_0, window_bounds = array<i64: 8, 128>}, {pipeline_mode = #tpu.pipeline_mode<synchronous>, transform_indices = @transform_1, window_bounds = array<i64: 8, 128>}, {transform_indices = @transform_2, window_bounds = array<i64: 8, 128>}, {pipeline_mode = #tpu.pipeline_mode<synchronous>, transform_indices = @transform_3, window_bounds = array<i64: 64, 128>}, {transform_indices = @transform_4, window_bounds = array<i64: 1, 128>}, {transform_indices = @transform_5, window_bounds = array<i64: 1, 128>}, {transform_indices = @transform_6, window_bounds = array<i64: 128, 1>}, {transform_indices = @transform_7, window_bounds = array<i64: 8, 128>}, {transform_indices = @transform_8, window_bounds = array<i64: 8, 128>}, {pipeline_mode = #tpu.pipeline_mode<synchronous>, transform_indices = @transform_9, window_bounds = array<i64: 64, 128>}]} {
    %c0_i32 = arith.constant 0 : i32
    %0 = arith.cmpi eq, %arg0, %c0_i32 : i32
    %c0_i32_0 = arith.constant 0 : i32
    %1 = arith.cmpi eq, %arg1, %c0_i32_0 : i32
    %2 = arith.andi %0, %1 : i1
    %3 = arith.extui %2 : i1 to i32
    %c0_i32_1 = arith.constant 0 : i32
    %4 = arith.cmpi ne, %3, %c0_i32_1 : i32
    scf.if %4 {
      %cst_19 = arith.constant -1.000000e+30 : f32
      %40 = vector.broadcast %cst_19 : f32 to vector<8x128xf32>
      %c0_20 = arith.constant 0 : index
      %c0_21 = arith.constant 0 : index
      %41 = vector.load %arg12[%c0_20, %c0_21] : memref<8x128xf32, #tpu.memory_space<vmem>>, vector<8x128xf32>
      tpu.vector_store %arg12[%c0_20, %c0_21], %40 {strides = array<i32>} : memref<8x128xf32, #tpu.memory_space<vmem>>, vector<8x128xf32>,
      %cst_22 = arith.constant 0.000000e+00 : f32
      %42 = vector.broadcast %cst_22 : f32 to vector<8x128xf32>
      %c0_23 = arith.constant 0 : index
      %c0_24 = arith.constant 0 : index
      %43 = vector.load %arg13[%c0_23, %c0_24] : memref<8x128xf32, #tpu.memory_space<vmem>>, vector<8x128xf32>
      tpu.vector_store %arg13[%c0_23, %c0_24], %42 {strides = array<i32>} : memref<8x128xf32, #tpu.memory_space<vmem>>, vector<8x128xf32>,
      %cst_25 = arith.constant 0.000000e+00 : f32
      %44 = vector.broadcast %cst_25 : f32 to vector<64x128xf32>
      %c0_26 = arith.constant 0 : index
      %c0_27 = arith.constant 0 : index
      %45 = vector.load %arg11[%c0_26, %c0_27] : memref<64x128xf32, #tpu.memory_space<vmem>>, vector<64x128xf32>
      tpu.vector_store %arg11[%c0_26, %c0_27], %44 {strides = array<i32>} : memref<64x128xf32, #tpu.memory_space<vmem>>, vector<64x128xf32>,
    } else {
    }
    %c0 = arith.constant 0 : index
    %c0_2 = arith.constant 0 : index
    %5 = vector.load %arg6[%c0, %c0_2] : memref<1x128xi32, #tpu.memory_space<vmem>>, vector<1x128xi32>
    %c0_3 = arith.constant 0 : index
    %c0_4 = arith.constant 0 : index
    %6 = vector.load %arg7[%c0_3, %c0_4] : memref<1x128xi32, #tpu.memory_space<vmem>>, vector<1x128xi32>
    %c0_5 = arith.constant 0 : index
    %c0_6 = arith.constant 0 : index
    %7 = vector.load %arg8[%c0_5, %c0_6] : memref<128x1xi32, #tpu.memory_space<vmem>>, vector<128x1xi32>
    %8 = tpu.iota {dimensions = array<i32: 0>} : vector<128x128xi32>
    %9 = tpu.iota {dimensions = array<i32: 1>} : vector<128x128xi32>
    %10 = vector.broadcast %5 : vector<1x128xi32> to vector<128x128xi32>
    %11 = arith.cmpi eq, %8, %10 : vector<128x128xi32>
    %12 = arith.extui %11 : vector<128x128xi1> to vector<128x128xi32>
    %13 = arith.sitofp %12 : vector<128x128xi32> to vector<128x128xf32>
    %14 = vector.broadcast %6 : vector<1x128xi32> to vector<128x128xi32>
    %15 = arith.cmpi eq, %8, %14 : vector<128x128xi32>
    %16 = arith.extui %15 : vector<128x128xi1> to vector<128x128xi32>
    %17 = arith.sitofp %16 : vector<128x128xi32> to vector<128x128xf32>
    %18 = vector.broadcast %7 : vector<128x1xi32> to vector<128x128xi32>
    %19 = arith.cmpi eq, %9, %18 : vector<128x128xi32>
    %20 = arith.extui %19 : vector<128x128xi1> to vector<128x128xi32>
    %21 = arith.sitofp %20 : vector<128x128xi32> to vector<128x128xf32>
    %c0_7 = arith.constant 0 : index
    %c0_8 = arith.constant 0 : index
    %22 = vector.load %arg2[%c0_7, %c0_8] : memref<8x128xf32, #tpu.memory_space<vmem>>, vector<8x128xf32>
    %cst = arith.constant dense<0.000000e+00> : vector<8x128xf32>
    %23 = tpu.matmul %22, %13, %cst {dimension_numbers = #tpu.dot_dimension_numbers<[1], [0], [0], [1], [0, 0, 1, 1], [], []>} : vector<8x128xf32>, vector<128x128xf32>, vector<8x128xf32> -> vector<8x128xf32>
    %c0_9 = arith.constant 0 : index
    %c0_10 = arith.constant 0 : index
    %24 = vector.load %arg3[%c0_9, %c0_10] : memref<8x128xf32, #tpu.memory_space<vmem>>, vector<8x128xf32>
    %cst_11 = arith.constant dense<0.000000e+00> : vector<8x128xf32>
    %25 = tpu.matmul %24, %17, %cst_11 {dimension_numbers = #tpu.dot_dimension_numbers<[1], [0], [0], [1], [0, 0, 1, 1], [], []>} : vector<8x128xf32>, vector<128x128xf32>, vector<8x128xf32> -> vector<8x128xf32>
    %26 = arith.addf %23, %25 : vector<8x128xf32>
    %c0_12 = arith.constant 0 : index
    %c0_13 = arith.constant 0 : index
    %27 = vector.load %arg4[%c0_12, %c0_13] : memref<8x128xf32, #tpu.memory_space<vmem>>, vector<8x128xf32>
    %28 = arith.addf %26, %27 : vector<8x128xf32>
    %cst_14 = arith.constant 0.000000e+00 : f32
    %29 = vector.broadcast %cst_14 : f32 to vector<8x128xf32>
    %30 = arith.cmpf ogt, %28, %29 : vector<8x128xf32>
    %cst_15 = arith.constant 2.000000e-01 : f32
    %31 = vector.broadcast %cst_15 : f32 to vector<8x128xf32>
    %32 = arith.mulf %31, %28 : vector<8x128xf32>
    %33 = arith.select %30, %28, %32 : vector<8x128xi1>, vector<8x128xf32>
    %c0_i32_16 = arith.constant 0 : i32
    %34 = arith.cmpi eq, %arg0, %c0_i32_16 : i32
    %35 = arith.extui %34 : i1 to i32
    %c0_i32_17 = arith.constant 0 : i32
    %36 = arith.cmpi ne, %35, %c0_i32_17 : i32
    scf.if %36 {
      %40 = vector.shape_cast %19 : vector<128x128xi1> to vector<1x128x128xi1>
      %41 = vector.extract_strided_slice %33 {offsets = [0, 0], sizes = [2, 128], strides = [1, 1]} : vector<8x128xf32> to vector<2x128xf32>
      %42 = vector.shape_cast %41 : vector<2x128xf32> to vector<2x128x1xf32>
      %cst_19 = arith.constant -1.000000e+30 : f32
      %43 = vector.shape_cast %40 : vector<1x128x128xi1> to vector<1x128x128xi1>
      %44 = vector.broadcast %43 : vector<1x128x128xi1> to vector<2x128x128xi1>
      %45 = vector.shape_cast %42 : vector<2x128x1xf32> to vector<2x128x1xf32>
      %46 = vector.broadcast %45 : vector<2x128x1xf32> to vector<2x128x128xf32>
      %47 = vector.broadcast %cst_19 : f32 to vector<2x128x128xf32>
      %48 = arith.select %44, %46, %47 : vector<2x128x128xi1>, vector<2x128x128xf32>
      %cst_20 = arith.constant dense<0xFF800000> : vector<2x128xf32>
      %49 = vector.multi_reduction <maximumf>, %48, %cst_20 [1] : vector<2x128x128xf32> to vector<2x128xf32>
      %cst_21 = arith.constant 0.000000e+00 : f32
      %50 = vector.broadcast %cst_21 : f32 to vector<6x128xf32>
      %51 = tpu.concatenate %49, %50 in 0 : vector<2x128xf32>, vector<6x128xf32> -> vector<8x128xf32>
      %c0_22 = arith.constant 0 : index
      %c0_23 = arith.constant 0 : index
      %52 = vector.load %arg12[%c0_22, %c0_23] : memref<8x128xf32, #tpu.memory_space<vmem>>, vector<8x128xf32>
      %53 = arith.maximumf %52, %51 : vector<8x128xf32>
      %cst_24 = arith.constant dense<0.000000e+00> : vector<8x128xf32>
      %54 = tpu.matmul %53, %17, %cst_24 {dimension_numbers = #tpu.dot_dimension_numbers<[1], [0], [0], [1], [0, 0, 1, 1], [], []>} : vector<8x128xf32>, vector<128x128xf32>, vector<8x128xf32> -> vector<8x128xf32>
      %55 = arith.subf %33, %54 : vector<8x128xf32>
      %56 = math.exp %55 : vector<8x128xf32>
      %cst_25 = arith.constant dense<0.000000e+00> : vector<8x128xf32>
      %57 = tpu.matmul %56, %21, %cst_25 {dimension_numbers = #tpu.dot_dimension_numbers<[1], [0], [0], [1], [0, 0, 1, 1], [], []>} : vector<8x128xf32>, vector<128x128xf32>, vector<8x128xf32> -> vector<8x128xf32>
      %c0_26 = arith.constant 0 : index
      %c0_27 = arith.constant 0 : index
      %58 = vector.load %arg13[%c0_26, %c0_27] : memref<8x128xf32, #tpu.memory_space<vmem>>, vector<8x128xf32>
      %59 = arith.subf %52, %53 : vector<8x128xf32>
      %60 = math.exp %59 : vector<8x128xf32>
      %61 = arith.mulf %58, %60 : vector<8x128xf32>
      %62 = arith.addf %61, %57 : vector<8x128xf32>
      %c0_28 = arith.constant 0 : index
      %c0_29 = arith.constant 0 : index
      %63 = vector.load %arg13[%c0_28, %c0_29] : memref<8x128xf32, #tpu.memory_space<vmem>>, vector<8x128xf32>
      tpu.vector_store %arg13[%c0_28, %c0_29], %62 {strides = array<i32>} : memref<8x128xf32, #tpu.memory_space<vmem>>, vector<8x128xf32>,
      %c0_30 = arith.constant 0 : index
      %c0_31 = arith.constant 0 : index
      %64 = vector.load %arg12[%c0_30, %c0_31] : memref<8x128xf32, #tpu.memory_space<vmem>>, vector<8x128xf32>
      tpu.vector_store %arg12[%c0_30, %c0_31], %53 {strides = array<i32>} : memref<8x128xf32, #tpu.memory_space<vmem>>, vector<8x128xf32>,
      %c0_32 = arith.constant 0 : index
      %c0_33 = arith.constant 0 : index
      %65 = vector.load %arg10[%c0_32, %c0_33] : memref<8x128xf32, #tpu.memory_space<vmem>>, vector<8x128xf32>
      tpu.vector_store %arg10[%c0_32, %c0_33], %56 {strides = array<i32>} : memref<8x128xf32, #tpu.memory_space<vmem>>, vector<8x128xf32>,
    } else {
    }
    %c1_i32 = arith.constant 1 : i32
    %37 = arith.cmpi eq, %arg0, %c1_i32 : i32
    %38 = arith.extui %37 : i1 to i32
    %c0_i32_18 = arith.constant 0 : i32
    %39 = arith.cmpi ne, %38, %c0_i32_18 : i32
    scf.if %39 {
      %c0_19 = arith.constant 0 : index
      %c0_20 = arith.constant 0 : index
      %40 = vector.load %arg12[%c0_19, %c0_20] : memref<8x128xf32, #tpu.memory_space<vmem>>, vector<8x128xf32>
      %cst_21 = arith.constant dense<0.000000e+00> : vector<8x128xf32>
      %41 = tpu.matmul %40, %17, %cst_21 {dimension_numbers = #tpu.dot_dimension_numbers<[1], [0], [0], [1], [0, 0, 1, 1], [], []>} : vector<8x128xf32>, vector<128x128xf32>, vector<8x128xf32> -> vector<8x128xf32>
      %c0_22 = arith.constant 0 : index
      %c0_23 = arith.constant 0 : index
      %42 = vector.load %arg13[%c0_22, %c0_23] : memref<8x128xf32, #tpu.memory_space<vmem>>, vector<8x128xf32>
      %cst_24 = arith.constant dense<0.000000e+00> : vector<8x128xf32>
      %43 = tpu.matmul %42, %17, %cst_24 {dimension_numbers = #tpu.dot_dimension_numbers<[1], [0], [0], [1], [0, 0, 1, 1], [], []>} : vector<8x128xf32>, vector<128x128xf32>, vector<8x128xf32> -> vector<8x128xf32>
      %44 = arith.subf %33, %41 : vector<8x128xf32>
      %45 = math.exp %44 : vector<8x128xf32>
      %cst_25 = arith.constant 9.99999996E-13 : f32
      %46 = vector.broadcast %cst_25 : f32 to vector<8x128xf32>
      %47 = arith.addf %43, %46 : vector<8x128xf32>
      %48 = tpu.reciprocal %47 {approx = true} : vector<8x128xf32> -> vector<8x128xf32>
      %49 = arith.mulf %45, %48 : vector<8x128xf32>
      %cst_26 = arith.constant 1.000000e+00 : f32
      %50 = vector.broadcast %cst_26 : f32 to vector<8x128xf32>
      %51 = arith.mulf %49, %50 : vector<8x128xf32>
      %c0_27 = arith.constant 0 : index
      %c0_28 = arith.constant 0 : index
      %52 = vector.load %arg9[%c0_27, %c0_28] : memref<8x128xf32, #tpu.memory_space<vmem>>, vector<8x128xf32>
      %cst_29 = arith.constant 0.000000e+00 : f32
      %53 = vector.broadcast %cst_29 : f32 to vector<8x128xf32>
      %54 = arith.mulf %52, %53 : vector<8x128xf32>
      %55 = arith.addf %51, %54 : vector<8x128xf32>
      %c0_30 = arith.constant 0 : index
      %c0_31 = arith.constant 0 : index
      %56 = vector.load %arg10[%c0_30, %c0_31] : memref<8x128xf32, #tpu.memory_space<vmem>>, vector<8x128xf32>
      tpu.vector_store %arg10[%c0_30, %c0_31], %55 {strides = array<i32>} : memref<8x128xf32, #tpu.memory_space<vmem>>, vector<8x128xf32>,
      %57 = vector.broadcast %5 : vector<1x128xi32> to vector<128x128xi32>
      %58 = arith.cmpi eq, %8, %57 : vector<128x128xi32>
      %59 = arith.extui %58 : vector<128x128xi1> to vector<128x128xi32>
      %60 = arith.sitofp %59 : vector<128x128xi32> to vector<128x128xf32>
      %61 = arith.truncf %60 : vector<128x128xf32> to vector<128x128xbf16>
      %62 = arith.extui %19 : vector<128x128xi1> to vector<128x128xi32>
      %63 = arith.sitofp %62 : vector<128x128xi32> to vector<128x128xf32>
      %64 = arith.truncf %63 : vector<128x128xf32> to vector<128x128xbf16>
      %c0_32 = arith.constant 0 : index
      %c0_33 = arith.constant 0 : index
      %65 = vector.load %arg5[%c0_32, %c0_33] : memref<64x128xbf16, #tpu.memory_space<vmem>>, vector<64x128xbf16>
      %cst_34 = arith.constant dense<0.000000e+00> : vector<64x128xf32>
      %66 = tpu.matmul %65, %61, %cst_34 {dimension_numbers = #tpu.dot_dimension_numbers<[1], [0], [0], [1], [0, 0, 1, 1], [], []>} : vector<64x128xbf16>, vector<128x128xbf16>, vector<64x128xf32> -> vector<64x128xf32>
      %67 = vector.extract_strided_slice %66 {offsets = [0, 0], sizes = [32, 128], strides = [1, 1]} : vector<64x128xf32> to vector<32x128xf32>
      %68 = vector.extract_strided_slice %55 {offsets = [0, 0], sizes = [1, 128], strides = [1, 1]} : vector<8x128xf32> to vector<1x128xf32>
      %69 = vector.broadcast %68 : vector<1x128xf32> to vector<32x128xf32>
      %70 = arith.mulf %67, %69 : vector<32x128xf32>
      %71 = vector.extract_strided_slice %66 {offsets = [32, 0], sizes = [32, 128], strides = [1, 1]} : vector<64x128xf32> to vector<32x128xf32>
      %72 = vector.extract_strided_slice %55 {offsets = [1, 0], sizes = [1, 128], strides = [1, 1]} : vector<8x128xf32> to vector<1x128xf32>
      %73 = vector.broadcast %72 : vector<1x128xf32> to vector<32x128xf32>
      %74 = arith.mulf %71, %73 : vector<32x128xf32>
      %75 = tpu.concatenate %70, %74 in 0 : vector<32x128xf32>, vector<32x128xf32> -> vector<64x128xf32>
      %c0_35 = arith.constant 0 : index
      %c0_36 = arith.constant 0 : index
      %76 = vector.load %arg11[%c0_35, %c0_36] : memref<64x128xf32, #tpu.memory_space<vmem>>, vector<64x128xf32>
      %77 = arith.truncf %75 : vector<64x128xf32> to vector<64x128xbf16>
      %cst_37 = arith.constant dense<0.000000e+00> : vector<64x128xf32>
      %78 = tpu.matmul %77, %64, %cst_37 {dimension_numbers = #tpu.dot_dimension_numbers<[1], [0], [0], [1], [0, 0, 1, 1], [], []>} : vector<64x128xbf16>, vector<128x128xbf16>, vector<64x128xf32> -> vector<64x128xf32>
      %79 = arith.addf %76, %78 : vector<64x128xf32>
      %c0_38 = arith.constant 0 : index
      %c0_39 = arith.constant 0 : index
      %80 = vector.load %arg11[%c0_38, %c0_39] : memref<64x128xf32, #tpu.memory_space<vmem>>, vector<64x128xf32>
      tpu.vector_store %arg11[%c0_38, %c0_39], %79 {strides = array<i32>} : memref<64x128xf32, #tpu.memory_space<vmem>>, vector<64x128xf32>,
    } else {
    }
    return
  }
  func.func @transform_0(%arg0: i32, %arg1: i32) -> (i32, i32) {
    %c0_i32 = arith.constant 0 : i32
    %c0_i32_0 = arith.constant 0 : i32
    %c0_i32_1 = arith.constant 0 : i32
    return %c0_i32, %c0_i32_0 : i32, i32
  }
  func.func @transform_1(%arg0: i32, %arg1: i32) -> (i32, i32) {
    %c0_i32 = arith.constant 0 : i32
    %c0_i32_0 = arith.constant 0 : i32
    %c0_i32_1 = arith.constant 0 : i32
    return %c0_i32, %c0_i32_0 : i32, i32
  }
  func.func @transform_2(%arg0: i32, %arg1: i32) -> (i32, i32) {
    %c0_i32 = arith.constant 0 : i32
    %c0_i32_0 = arith.constant 0 : i32
    return %c0_i32, %arg1 : i32, i32
  }
  func.func @transform_3(%arg0: i32, %arg1: i32) -> (i32, i32) {
    %c0_i32 = arith.constant 0 : i32
    %c0_i32_0 = arith.constant 0 : i32
    %c0_i32_1 = arith.constant 0 : i32
    return %c0_i32, %c0_i32_0 : i32, i32
  }
  func.func @transform_4(%arg0: i32, %arg1: i32) -> (i32, i32) {
    %c0_i32 = arith.constant 0 : i32
    %c0_i32_0 = arith.constant 0 : i32
    return %c0_i32, %arg1 : i32, i32
  }
  func.func @transform_5(%arg0: i32, %arg1: i32) -> (i32, i32) {
    %c0_i32 = arith.constant 0 : i32
    %c0_i32_0 = arith.constant 0 : i32
    return %c0_i32, %arg1 : i32, i32
  }
  func.func @transform_6(%arg0: i32, %arg1: i32) -> (i32, i32) {
    %c0_i32 = arith.constant 0 : i32
    %c0_i32_0 = arith.constant 0 : i32
    return %arg1, %c0_i32 : i32, i32
  }
  func.func @transform_7(%arg0: i32, %arg1: i32) -> (i32, i32) {
    %c0_i32 = arith.constant 0 : i32
    %c0_i32_0 = arith.constant 0 : i32
    return %c0_i32, %arg1 : i32, i32
  }
  func.func @transform_8(%arg0: i32, %arg1: i32) -> (i32, i32) {
    %c0_i32 = arith.constant 0 : i32
    %c0_i32_0 = arith.constant 0 : i32
    return %c0_i32, %arg1 : i32, i32
  }
  func.func @transform_9(%arg0: i32, %arg1: i32) -> (i32, i32) {
    %c0_i32 = arith.constant 0 : i32
    %c0_i32_0 = arith.constant 0 : i32
    %c0_i32_1 = arith.constant 0 : i32
    return %c0_i32, %c0_i32_0 : i32, i32
  }
}

module attributes {stable_mosaic.version = 11 : i64} {
  func.func @_gat_fused_kernel(%arg0: i32, %arg1: i32, %arg2: memref<8x128xf32, #tpu.memory_space<vmem>>, %arg3: memref<8x128xf32, #tpu.memory_space<vmem>>, %arg4: memref<8x128xf32, #tpu.memory_space<vmem>>, %arg5: memref<64x128xbf16, #tpu.memory_space<vmem>>, %arg6: memref<1x128xi32, #tpu.memory_space<vmem>>, %arg7: memref<1x128xi32, #tpu.memory_space<vmem>>, %arg8: memref<128x1xi32, #tpu.memory_space<vmem>>, %arg9: memref<8x128xf32, #tpu.memory_space<vmem>>, %arg10: memref<8x128xf32, #tpu.memory_space<vmem>>, %arg11: memref<64x128xf32, #tpu.memory_space<vmem>>, %arg12: memref<8x128xf32, #tpu.memory_space<vmem>>, %arg13: memref<8x128xf32, #tpu.memory_space<vmem>>) attributes {dimension_semantics = [#tpu.dimension_semantics<arbitrary>, #tpu.dimension_semantics<arbitrary>], iteration_bounds = array<i64: 2, 1>, scalar_prefetch = 0 : i64, scratch_operands = 2 : i64, tpu.core_type = #tpu.core_type<tc>, window_params = [{pipeline_mode = #tpu.pipeline_mode<synchronous>, transform_indices = @transform_0, window_bounds = array<i64: 8, 128>}, {pipeline_mode = #tpu.pipeline_mode<synchronous>, transform_indices = @transform_1, window_bounds = array<i64: 8, 128>}, {transform_indices = @transform_2, window_bounds = array<i64: 8, 128>}, {pipeline_mode = #tpu.pipeline_mode<synchronous>, transform_indices = @transform_3, window_bounds = array<i64: 64, 128>}, {transform_indices = @transform_4, window_bounds = array<i64: 1, 128>}, {transform_indices = @transform_5, window_bounds = array<i64: 1, 128>}, {transform_indices = @transform_6, window_bounds = array<i64: 128, 1>}, {transform_indices = @transform_7, window_bounds = array<i64: 8, 128>}, {transform_indices = @transform_8, window_bounds = array<i64: 8, 128>}, {pipeline_mode = #tpu.pipeline_mode<synchronous>, transform_indices = @transform_9, window_bounds = array<i64: 64, 128>}]} {
    %c0_i32 = arith.constant 0 : i32
    %0 = arith.cmpi eq, %arg0, %c0_i32 : i32
    %c0_i32_0 = arith.constant 0 : i32
    %1 = arith.cmpi eq, %arg1, %c0_i32_0 : i32
    %2 = arith.andi %0, %1 : i1
    %3 = arith.extui %2 : i1 to i32
    %c0_i32_1 = arith.constant 0 : i32
    %4 = arith.cmpi ne, %3, %c0_i32_1 : i32
    scf.if %4 {
      %cst_19 = arith.constant -1.000000e+30 : f32
      %40 = vector.broadcast %cst_19 : f32 to vector<8x128xf32>
      %c0_20 = arith.constant 0 : index
      %c0_21 = arith.constant 0 : index
      %41 = vector.load %arg12[%c0_20, %c0_21] : memref<8x128xf32, #tpu.memory_space<vmem>>, vector<8x128xf32>
      tpu.vector_store %arg12[%c0_20, %c0_21], %40 {strides = array<i32>} : memref<8x128xf32, #tpu.memory_space<vmem>>, vector<8x128xf32>,
      %cst_22 = arith.constant 0.000000e+00 : f32
      %42 = vector.broadcast %cst_22 : f32 to vector<8x128xf32>
      %c0_23 = arith.constant 0 : index
      %c0_24 = arith.constant 0 : index
      %43 = vector.load %arg13[%c0_23, %c0_24] : memref<8x128xf32, #tpu.memory_space<vmem>>, vector<8x128xf32>
      tpu.vector_store %arg13[%c0_23, %c0_24], %42 {strides = array<i32>} : memref<8x128xf32, #tpu.memory_space<vmem>>, vector<8x128xf32>,
      %cst_25 = arith.constant 0.000000e+00 : f32
      %44 = vector.broadcast %cst_25 : f32 to vector<64x128xf32>
      %c0_26 = arith.constant 0 : index
      %c0_27 = arith.constant 0 : index
      %45 = vector.load %arg11[%c0_26, %c0_27] : memref<64x128xf32, #tpu.memory_space<vmem>>, vector<64x128xf32>
      tpu.vector_store %arg11[%c0_26, %c0_27], %44 {strides = array<i32>} : memref<64x128xf32, #tpu.memory_space<vmem>>, vector<64x128xf32>,
    } else {
    }
    %c0 = arith.constant 0 : index
    %c0_2 = arith.constant 0 : index
    %5 = vector.load %arg6[%c0, %c0_2] : memref<1x128xi32, #tpu.memory_space<vmem>>, vector<1x128xi32>
    %c0_3 = arith.constant 0 : index
    %c0_4 = arith.constant 0 : index
    %6 = vector.load %arg7[%c0_3, %c0_4] : memref<1x128xi32, #tpu.memory_space<vmem>>, vector<1x128xi32>
    %c0_5 = arith.constant 0 : index
    %c0_6 = arith.constant 0 : index
    %7 = vector.load %arg8[%c0_5, %c0_6] : memref<128x1xi32, #tpu.memory_space<vmem>>, vector<128x1xi32>
    %8 = tpu.iota {dimensions = array<i32: 0>} : vector<128x128xi32>
    %9 = tpu.iota {dimensions = array<i32: 1>} : vector<128x128xi32>
    %10 = vector.broadcast %5 : vector<1x128xi32> to vector<128x128xi32>
    %11 = arith.cmpi eq, %8, %10 : vector<128x128xi32>
    %12 = arith.extui %11 : vector<128x128xi1> to vector<128x128xi32>
    %13 = arith.sitofp %12 : vector<128x128xi32> to vector<128x128xf32>
    %14 = vector.broadcast %6 : vector<1x128xi32> to vector<128x128xi32>
    %15 = arith.cmpi eq, %8, %14 : vector<128x128xi32>
    %16 = arith.extui %15 : vector<128x128xi1> to vector<128x128xi32>
    %17 = arith.sitofp %16 : vector<128x128xi32> to vector<128x128xf32>
    %18 = vector.broadcast %7 : vector<128x1xi32> to vector<128x128xi32>
    %19 = arith.cmpi eq, %9, %18 : vector<128x128xi32>
    %20 = arith.extui %19 : vector<128x128xi1> to vector<128x128xi32>
    %21 = arith.sitofp %20 : vector<128x128xi32> to vector<128x128xf32>
    %c0_7 = arith.constant 0 : index
    %c0_8 = arith.constant 0 : index
    %22 = vector.load %arg2[%c0_7, %c0_8] : memref<8x128xf32, #tpu.memory_space<vmem>>, vector<8x128xf32>
    %cst = arith.constant dense<0.000000e+00> : vector<8x128xf32>
    %23 = tpu.matmul %22, %13, %cst {dimension_numbers = #tpu.dot_dimension_numbers<[1], [0], [0], [1], [0, 0, 1, 1], [], []>} : vector<8x128xf32>, vector<128x128xf32>, vector<8x128xf32> -> vector<8x128xf32>
    %c0_9 = arith.constant 0 : index
    %c0_10 = arith.constant 0 : index
    %24 = vector.load %arg3[%c0_9, %c0_10] : memref<8x128xf32, #tpu.memory_space<vmem>>, vector<8x128xf32>
    %cst_11 = arith.constant dense<0.000000e+00> : vector<8x128xf32>
    %25 = tpu.matmul %24, %17, %cst_11 {dimension_numbers = #tpu.dot_dimension_numbers<[1], [0], [0], [1], [0, 0, 1, 1], [], []>} : vector<8x128xf32>, vector<128x128xf32>, vector<8x128xf32> -> vector<8x128xf32>
    %26 = arith.addf %23, %25 : vector<8x128xf32>
    %c0_12 = arith.constant 0 : index
    %c0_13 = arith.constant 0 : index
    %27 = vector.load %arg4[%c0_12, %c0_13] : memref<8x128xf32, #tpu.memory_space<vmem>>, vector<8x128xf32>
    %28 = arith.addf %26, %27 : vector<8x128xf32>
    %cst_14 = arith.constant 0.000000e+00 : f32
    %29 = vector.broadcast %cst_14 : f32 to vector<8x128xf32>
    %30 = arith.cmpf ogt, %28, %29 : vector<8x128xf32>
    %cst_15 = arith.constant 2.000000e-01 : f32
    %31 = vector.broadcast %cst_15 : f32 to vector<8x128xf32>
    %32 = arith.mulf %31, %28 : vector<8x128xf32>
    %33 = arith.select %30, %28, %32 : vector<8x128xi1>, vector<8x128xf32>
    %c0_i32_16 = arith.constant 0 : i32
    %34 = arith.cmpi eq, %arg0, %c0_i32_16 : i32
    %35 = arith.extui %34 : i1 to i32
    %c0_i32_17 = arith.constant 0 : i32
    %36 = arith.cmpi ne, %35, %c0_i32_17 : i32
    scf.if %36 {
      %40 = vector.shape_cast %19 : vector<128x128xi1> to vector<1x128x128xi1>
      %41 = vector.extract_strided_slice %33 {offsets = [0, 0], sizes = [2, 128], strides = [1, 1]} : vector<8x128xf32> to vector<2x128xf32>
      %42 = vector.shape_cast %41 : vector<2x128xf32> to vector<2x128x1xf32>
      %cst_19 = arith.constant -1.000000e+30 : f32
      %43 = vector.shape_cast %40 : vector<1x128x128xi1> to vector<1x128x128xi1>
      %44 = vector.broadcast %43 : vector<1x128x128xi1> to vector<2x128x128xi1>
      %45 = vector.shape_cast %42 : vector<2x128x1xf32> to vector<2x128x1xf32>
      %46 = vector.broadcast %45 : vector<2x128x1xf32> to vector<2x128x128xf32>
      %47 = vector.broadcast %cst_19 : f32 to vector<2x128x128xf32>
      %48 = arith.select %44, %46, %47 : vector<2x128x128xi1>, vector<2x128x128xf32>
      %cst_20 = arith.constant dense<0xFF800000> : vector<2x128xf32>
      %49 = vector.multi_reduction <maximumf>, %48, %cst_20 [1] : vector<2x128x128xf32> to vector<2x128xf32>
      %cst_21 = arith.constant 0.000000e+00 : f32
      %50 = vector.broadcast %cst_21 : f32 to vector<6x128xf32>
      %51 = tpu.concatenate %49, %50 in 0 : vector<2x128xf32>, vector<6x128xf32> -> vector<8x128xf32>
      %c0_22 = arith.constant 0 : index
      %c0_23 = arith.constant 0 : index
      %52 = vector.load %arg12[%c0_22, %c0_23] : memref<8x128xf32, #tpu.memory_space<vmem>>, vector<8x128xf32>
      %53 = arith.maximumf %52, %51 : vector<8x128xf32>
      %cst_24 = arith.constant dense<0.000000e+00> : vector<8x128xf32>
      %54 = tpu.matmul %53, %17, %cst_24 {dimension_numbers = #tpu.dot_dimension_numbers<[1], [0], [0], [1], [0, 0, 1, 1], [], []>} : vector<8x128xf32>, vector<128x128xf32>, vector<8x128xf32> -> vector<8x128xf32>
      %55 = arith.subf %33, %54 : vector<8x128xf32>
      %56 = math.exp %55 : vector<8x128xf32>
      %cst_25 = arith.constant dense<0.000000e+00> : vector<8x128xf32>
      %57 = tpu.matmul %56, %21, %cst_25 {dimension_numbers = #tpu.dot_dimension_numbers<[1], [0], [0], [1], [0, 0, 1, 1], [], []>} : vector<8x128xf32>, vector<128x128xf32>, vector<8x128xf32> -> vector<8x128xf32>
      %c0_26 = arith.constant 0 : index
      %c0_27 = arith.constant 0 : index
      %58 = vector.load %arg13[%c0_26, %c0_27] : memref<8x128xf32, #tpu.memory_space<vmem>>, vector<8x128xf32>
      %59 = arith.subf %52, %53 : vector<8x128xf32>
      %60 = math.exp %59 : vector<8x128xf32>
      %61 = arith.mulf %58, %60 : vector<8x128xf32>
      %62 = arith.addf %61, %57 : vector<8x128xf32>
      %c0_28 = arith.constant 0 : index
      %c0_29 = arith.constant 0 : index
      %63 = vector.load %arg13[%c0_28, %c0_29] : memref<8x128xf32, #tpu.memory_space<vmem>>, vector<8x128xf32>
      tpu.vector_store %arg13[%c0_28, %c0_29], %62 {strides = array<i32>} : memref<8x128xf32, #tpu.memory_space<vmem>>, vector<8x128xf32>,
      %c0_30 = arith.constant 0 : index
      %c0_31 = arith.constant 0 : index
      %64 = vector.load %arg12[%c0_30, %c0_31] : memref<8x128xf32, #tpu.memory_space<vmem>>, vector<8x128xf32>
      tpu.vector_store %arg12[%c0_30, %c0_31], %53 {strides = array<i32>} : memref<8x128xf32, #tpu.memory_space<vmem>>, vector<8x128xf32>,
      %c0_32 = arith.constant 0 : index
      %c0_33 = arith.constant 0 : index
      %65 = vector.load %arg10[%c0_32, %c0_33] : memref<8x128xf32, #tpu.memory_space<vmem>>, vector<8x128xf32>
      tpu.vector_store %arg10[%c0_32, %c0_33], %56 {strides = array<i32>} : memref<8x128xf32, #tpu.memory_space<vmem>>, vector<8x128xf32>,
    } else {
    }
    %c1_i32 = arith.constant 1 : i32
    %37 = arith.cmpi eq, %arg0, %c1_i32 : i32
    %38 = arith.extui %37 : i1 to i32
    %c0_i32_18 = arith.constant 0 : i32
    %39 = arith.cmpi ne, %38, %c0_i32_18 : i32
    scf.if %39 {
      %c0_19 = arith.constant 0 : index
      %c0_20 = arith.constant 0 : index
      %40 = vector.load %arg12[%c0_19, %c0_20] : memref<8x128xf32, #tpu.memory_space<vmem>>, vector<8x128xf32>
      %cst_21 = arith.constant dense<0.000000e+00> : vector<8x128xf32>
      %41 = tpu.matmul %40, %17, %cst_21 {dimension_numbers = #tpu.dot_dimension_numbers<[1], [0], [0], [1], [0, 0, 1, 1], [], []>} : vector<8x128xf32>, vector<128x128xf32>, vector<8x128xf32> -> vector<8x128xf32>
      %c0_22 = arith.constant 0 : index
      %c0_23 = arith.constant 0 : index
      %42 = vector.load %arg13[%c0_22, %c0_23] : memref<8x128xf32, #tpu.memory_space<vmem>>, vector<8x128xf32>
      %cst_24 = arith.constant dense<0.000000e+00> : vector<8x128xf32>
      %43 = tpu.matmul %42, %17, %cst_24 {dimension_numbers = #tpu.dot_dimension_numbers<[1], [0], [0], [1], [0, 0, 1, 1], [], []>} : vector<8x128xf32>, vector<128x128xf32>, vector<8x128xf32> -> vector<8x128xf32>
      %44 = arith.subf %33, %41 : vector<8x128xf32>
      %45 = math.exp %44 : vector<8x128xf32>
      %cst_25 = arith.constant 9.99999996E-13 : f32
      %46 = vector.broadcast %cst_25 : f32 to vector<8x128xf32>
      %47 = arith.addf %43, %46 : vector<8x128xf32>
      %48 = tpu.reciprocal %47 {approx = true} : vector<8x128xf32> -> vector<8x128xf32>
      %49 = arith.mulf %45, %48 : vector<8x128xf32>
      %cst_26 = arith.constant 0.949999988 : f32
      %50 = vector.broadcast %cst_26 : f32 to vector<8x128xf32>
      %51 = arith.mulf %49, %50 : vector<8x128xf32>
      %c0_27 = arith.constant 0 : index
      %c0_28 = arith.constant 0 : index
      %52 = vector.load %arg9[%c0_27, %c0_28] : memref<8x128xf32, #tpu.memory_space<vmem>>, vector<8x128xf32>
      %cst_29 = arith.constant 5.000000e-02 : f32
      %53 = vector.broadcast %cst_29 : f32 to vector<8x128xf32>
      %54 = arith.mulf %52, %53 : vector<8x128xf32>
      %55 = arith.addf %51, %54 : vector<8x128xf32>
      %c0_30 = arith.constant 0 : index
      %c0_31 = arith.constant 0 : index
      %56 = vector.load %arg10[%c0_30, %c0_31] : memref<8x128xf32, #tpu.memory_space<vmem>>, vector<8x128xf32>
      tpu.vector_store %arg10[%c0_30, %c0_31], %55 {strides = array<i32>} : memref<8x128xf32, #tpu.memory_space<vmem>>, vector<8x128xf32>,
      %57 = vector.broadcast %5 : vector<1x128xi32> to vector<128x128xi32>
      %58 = arith.cmpi eq, %8, %57 : vector<128x128xi32>
      %59 = arith.extui %58 : vector<128x128xi1> to vector<128x128xi32>
      %60 = arith.sitofp %59 : vector<128x128xi32> to vector<128x128xf32>
      %61 = arith.truncf %60 : vector<128x128xf32> to vector<128x128xbf16>
      %62 = arith.extui %19 : vector<128x128xi1> to vector<128x128xi32>
      %63 = arith.sitofp %62 : vector<128x128xi32> to vector<128x128xf32>
      %64 = arith.truncf %63 : vector<128x128xf32> to vector<128x128xbf16>
      %c0_32 = arith.constant 0 : index
      %c0_33 = arith.constant 0 : index
      %65 = vector.load %arg5[%c0_32, %c0_33] : memref<64x128xbf16, #tpu.memory_space<vmem>>, vector<64x128xbf16>
      %cst_34 = arith.constant dense<0.000000e+00> : vector<64x128xf32>
      %66 = tpu.matmul %65, %61, %cst_34 {dimension_numbers = #tpu.dot_dimension_numbers<[1], [0], [0], [1], [0, 0, 1, 1], [], []>} : vector<64x128xbf16>, vector<128x128xbf16>, vector<64x128xf32> -> vector<64x128xf32>
      %67 = vector.extract_strided_slice %66 {offsets = [0, 0], sizes = [32, 128], strides = [1, 1]} : vector<64x128xf32> to vector<32x128xf32>
      %68 = vector.extract_strided_slice %55 {offsets = [0, 0], sizes = [1, 128], strides = [1, 1]} : vector<8x128xf32> to vector<1x128xf32>
      %69 = vector.broadcast %68 : vector<1x128xf32> to vector<32x128xf32>
      %70 = arith.mulf %67, %69 : vector<32x128xf32>
      %71 = vector.extract_strided_slice %66 {offsets = [32, 0], sizes = [32, 128], strides = [1, 1]} : vector<64x128xf32> to vector<32x128xf32>
      %72 = vector.extract_strided_slice %55 {offsets = [1, 0], sizes = [1, 128], strides = [1, 1]} : vector<8x128xf32> to vector<1x128xf32>
      %73 = vector.broadcast %72 : vector<1x128xf32> to vector<32x128xf32>
      %74 = arith.mulf %71, %73 : vector<32x128xf32>
      %75 = tpu.concatenate %70, %74 in 0 : vector<32x128xf32>, vector<32x128xf32> -> vector<64x128xf32>
      %c0_35 = arith.constant 0 : index
      %c0_36 = arith.constant 0 : index
      %76 = vector.load %arg11[%c0_35, %c0_36] : memref<64x128xf32, #tpu.memory_space<vmem>>, vector<64x128xf32>
      %77 = arith.truncf %75 : vector<64x128xf32> to vector<64x128xbf16>
      %cst_37 = arith.constant dense<0.000000e+00> : vector<64x128xf32>
      %78 = tpu.matmul %77, %64, %cst_37 {dimension_numbers = #tpu.dot_dimension_numbers<[1], [0], [0], [1], [0, 0, 1, 1], [], []>} : vector<64x128xbf16>, vector<128x128xbf16>, vector<64x128xf32> -> vector<64x128xf32>
      %79 = arith.addf %76, %78 : vector<64x128xf32>
      %c0_38 = arith.constant 0 : index
      %c0_39 = arith.constant 0 : index
      %80 = vector.load %arg11[%c0_38, %c0_39] : memref<64x128xf32, #tpu.memory_space<vmem>>, vector<64x128xf32>
      tpu.vector_store %arg11[%c0_38, %c0_39], %79 {strides = array<i32>} : memref<64x128xf32, #tpu.memory_space<vmem>>, vector<64x128xf32>,
    } else {
    }
    return
  }
  func.func @transform_0(%arg0: i32, %arg1: i32) -> (i32, i32) {
    %c0_i32 = arith.constant 0 : i32
    %c0_i32_0 = arith.constant 0 : i32
    %c0_i32_1 = arith.constant 0 : i32
    return %c0_i32, %c0_i32_0 : i32, i32
  }
  func.func @transform_1(%arg0: i32, %arg1: i32) -> (i32, i32) {
    %c0_i32 = arith.constant 0 : i32
    %c0_i32_0 = arith.constant 0 : i32
    %c0_i32_1 = arith.constant 0 : i32
    return %c0_i32, %c0_i32_0 : i32, i32
  }
  func.func @transform_2(%arg0: i32, %arg1: i32) -> (i32, i32) {
    %c0_i32 = arith.constant 0 : i32
    %c0_i32_0 = arith.constant 0 : i32
    return %c0_i32, %arg1 : i32, i32
  }
  func.func @transform_3(%arg0: i32, %arg1: i32) -> (i32, i32) {
    %c0_i32 = arith.constant 0 : i32
    %c0_i32_0 = arith.constant 0 : i32
    %c0_i32_1 = arith.constant 0 : i32
    return %c0_i32, %c0_i32_0 : i32, i32
  }
  func.func @transform_4(%arg0: i32, %arg1: i32) -> (i32, i32) {
    %c0_i32 = arith.constant 0 : i32
    %c0_i32_0 = arith.constant 0 : i32
    return %c0_i32, %arg1 : i32, i32
  }
  func.func @transform_5(%arg0: i32, %arg1: i32) -> (i32, i32) {
    %c0_i32 = arith.constant 0 : i32
    %c0_i32_0 = arith.constant 0 : i32
    return %c0_i32, %arg1 : i32, i32
  }
  func.func @transform_6(%arg0: i32, %arg1: i32) -> (i32, i32) {
    %c0_i32 = arith.constant 0 : i32
    %c0_i32_0 = arith.constant 0 : i32
    return %arg1, %c0_i32 : i32, i32
  }
  func.func @transform_7(%arg0: i32, %arg1: i32) -> (i32, i32) {
    %c0_i32 = arith.constant 0 : i32
    %c0_i32_0 = arith.constant 0 : i32
    return %c0_i32, %arg1 : i32, i32
  }
  func.func @transform_8(%arg0: i32, %arg1: i32) -> (i32, i32) {
    %c0_i32 = arith.constant 0 : i32
    %c0_i32_0 = arith.constant 0 : i32
    return %c0_i32, %arg1 : i32, i32
  }
  func.func @transform_9(%arg0: i32, %arg1: i32) -> (i32, i32) {
    %c0_i32 = arith.constant 0 : i32
    %c0_i32_0 = arith.constant 0 : i32
    %c0_i32_1 = arith.constant 0 : i32
    return %c0_i32, %c0_i32_0 : i32, i32
  }
}

module attributes {stable_mosaic.version = 11 : i64} {
  func.func @_gat_fused_kernel(%arg0: i32, %arg1: i32, %arg2: memref<8x128xf32, #tpu.memory_space<vmem>>, %arg3: memref<8x128xf32, #tpu.memory_space<vmem>>, %arg4: memref<8x128xf32, #tpu.memory_space<vmem>>, %arg5: memref<32x128xbf16, #tpu.memory_space<vmem>>, %arg6: memref<1x128xi32, #tpu.memory_space<vmem>>, %arg7: memref<1x128xi32, #tpu.memory_space<vmem>>, %arg8: memref<128x1xi32, #tpu.memory_space<vmem>>, %arg9: memref<8x128xf32, #tpu.memory_space<vmem>>, %arg10: memref<8x128xf32, #tpu.memory_space<vmem>>, %arg11: memref<64x128xf32, #tpu.memory_space<vmem>>, %arg12: memref<8x128xf32, #tpu.memory_space<vmem>>, %arg13: memref<8x128xf32, #tpu.memory_space<vmem>>) attributes {dimension_semantics = [#tpu.dimension_semantics<arbitrary>, #tpu.dimension_semantics<arbitrary>], iteration_bounds = array<i64: 2, 1>, scalar_prefetch = 0 : i64, scratch_operands = 2 : i64, tpu.core_type = #tpu.core_type<tc>, window_params = [{pipeline_mode = #tpu.pipeline_mode<synchronous>, transform_indices = @transform_0, window_bounds = array<i64: 8, 128>}, {pipeline_mode = #tpu.pipeline_mode<synchronous>, transform_indices = @transform_1, window_bounds = array<i64: 8, 128>}, {transform_indices = @transform_2, window_bounds = array<i64: 8, 128>}, {pipeline_mode = #tpu.pipeline_mode<synchronous>, transform_indices = @transform_3, window_bounds = array<i64: 32, 128>}, {transform_indices = @transform_4, window_bounds = array<i64: 1, 128>}, {transform_indices = @transform_5, window_bounds = array<i64: 1, 128>}, {transform_indices = @transform_6, window_bounds = array<i64: 128, 1>}, {transform_indices = @transform_7, window_bounds = array<i64: 8, 128>}, {transform_indices = @transform_8, window_bounds = array<i64: 8, 128>}, {pipeline_mode = #tpu.pipeline_mode<synchronous>, transform_indices = @transform_9, window_bounds = array<i64: 64, 128>}]} {
    %c0_i32 = arith.constant 0 : i32
    %0 = arith.cmpi eq, %arg0, %c0_i32 : i32
    %c0_i32_0 = arith.constant 0 : i32
    %1 = arith.cmpi eq, %arg1, %c0_i32_0 : i32
    %2 = arith.andi %0, %1 : i1
    %3 = arith.extui %2 : i1 to i32
    %c0_i32_1 = arith.constant 0 : i32
    %4 = arith.cmpi ne, %3, %c0_i32_1 : i32
    scf.if %4 {
      %cst_19 = arith.constant -1.000000e+30 : f32
      %40 = vector.broadcast %cst_19 : f32 to vector<8x128xf32>
      %c0_20 = arith.constant 0 : index
      %c0_21 = arith.constant 0 : index
      %41 = vector.load %arg12[%c0_20, %c0_21] : memref<8x128xf32, #tpu.memory_space<vmem>>, vector<8x128xf32>
      tpu.vector_store %arg12[%c0_20, %c0_21], %40 {strides = array<i32>} : memref<8x128xf32, #tpu.memory_space<vmem>>, vector<8x128xf32>,
      %cst_22 = arith.constant 0.000000e+00 : f32
      %42 = vector.broadcast %cst_22 : f32 to vector<8x128xf32>
      %c0_23 = arith.constant 0 : index
      %c0_24 = arith.constant 0 : index
      %43 = vector.load %arg13[%c0_23, %c0_24] : memref<8x128xf32, #tpu.memory_space<vmem>>, vector<8x128xf32>
      tpu.vector_store %arg13[%c0_23, %c0_24], %42 {strides = array<i32>} : memref<8x128xf32, #tpu.memory_space<vmem>>, vector<8x128xf32>,
      %cst_25 = arith.constant 0.000000e+00 : f32
      %44 = vector.broadcast %cst_25 : f32 to vector<64x128xf32>
      %c0_26 = arith.constant 0 : index
      %c0_27 = arith.constant 0 : index
      %45 = vector.load %arg11[%c0_26, %c0_27] : memref<64x128xf32, #tpu.memory_space<vmem>>, vector<64x128xf32>
      tpu.vector_store %arg11[%c0_26, %c0_27], %44 {strides = array<i32>} : memref<64x128xf32, #tpu.memory_space<vmem>>, vector<64x128xf32>,
    } else {
    }
    %c0 = arith.constant 0 : index
    %c0_2 = arith.constant 0 : index
    %5 = vector.load %arg6[%c0, %c0_2] : memref<1x128xi32, #tpu.memory_space<vmem>>, vector<1x128xi32>
    %c0_3 = arith.constant 0 : index
    %c0_4 = arith.constant 0 : index
    %6 = vector.load %arg7[%c0_3, %c0_4] : memref<1x128xi32, #tpu.memory_space<vmem>>, vector<1x128xi32>
    %c0_5 = arith.constant 0 : index
    %c0_6 = arith.constant 0 : index
    %7 = vector.load %arg8[%c0_5, %c0_6] : memref<128x1xi32, #tpu.memory_space<vmem>>, vector<128x1xi32>
    %8 = tpu.iota {dimensions = array<i32: 0>} : vector<128x128xi32>
    %9 = tpu.iota {dimensions = array<i32: 1>} : vector<128x128xi32>
    %10 = vector.broadcast %5 : vector<1x128xi32> to vector<128x128xi32>
    %11 = arith.cmpi eq, %8, %10 : vector<128x128xi32>
    %12 = arith.extui %11 : vector<128x128xi1> to vector<128x128xi32>
    %13 = arith.sitofp %12 : vector<128x128xi32> to vector<128x128xf32>
    %14 = vector.broadcast %6 : vector<1x128xi32> to vector<128x128xi32>
    %15 = arith.cmpi eq, %8, %14 : vector<128x128xi32>
    %16 = arith.extui %15 : vector<128x128xi1> to vector<128x128xi32>
    %17 = arith.sitofp %16 : vector<128x128xi32> to vector<128x128xf32>
    %18 = vector.broadcast %7 : vector<128x1xi32> to vector<128x128xi32>
    %19 = arith.cmpi eq, %9, %18 : vector<128x128xi32>
    %20 = arith.extui %19 : vector<128x128xi1> to vector<128x128xi32>
    %21 = arith.sitofp %20 : vector<128x128xi32> to vector<128x128xf32>
    %c0_7 = arith.constant 0 : index
    %c0_8 = arith.constant 0 : index
    %22 = vector.load %arg2[%c0_7, %c0_8] : memref<8x128xf32, #tpu.memory_space<vmem>>, vector<8x128xf32>
    %cst = arith.constant dense<0.000000e+00> : vector<8x128xf32>
    %23 = tpu.matmul %22, %13, %cst {dimension_numbers = #tpu.dot_dimension_numbers<[1], [0], [0], [1], [0, 0, 1, 1], [], []>} : vector<8x128xf32>, vector<128x128xf32>, vector<8x128xf32> -> vector<8x128xf32>
    %c0_9 = arith.constant 0 : index
    %c0_10 = arith.constant 0 : index
    %24 = vector.load %arg3[%c0_9, %c0_10] : memref<8x128xf32, #tpu.memory_space<vmem>>, vector<8x128xf32>
    %cst_11 = arith.constant dense<0.000000e+00> : vector<8x128xf32>
    %25 = tpu.matmul %24, %17, %cst_11 {dimension_numbers = #tpu.dot_dimension_numbers<[1], [0], [0], [1], [0, 0, 1, 1], [], []>} : vector<8x128xf32>, vector<128x128xf32>, vector<8x128xf32> -> vector<8x128xf32>
    %26 = arith.addf %23, %25 : vector<8x128xf32>
    %c0_12 = arith.constant 0 : index
    %c0_13 = arith.constant 0 : index
    %27 = vector.load %arg4[%c0_12, %c0_13] : memref<8x128xf32, #tpu.memory_space<vmem>>, vector<8x128xf32>
    %28 = arith.addf %26, %27 : vector<8x128xf32>
    %cst_14 = arith.constant 0.000000e+00 : f32
    %29 = vector.broadcast %cst_14 : f32 to vector<8x128xf32>
    %30 = arith.cmpf ogt, %28, %29 : vector<8x128xf32>
    %cst_15 = arith.constant 2.000000e-01 : f32
    %31 = vector.broadcast %cst_15 : f32 to vector<8x128xf32>
    %32 = arith.mulf %31, %28 : vector<8x128xf32>
    %33 = arith.select %30, %28, %32 : vector<8x128xi1>, vector<8x128xf32>
    %c0_i32_16 = arith.constant 0 : i32
    %34 = arith.cmpi eq, %arg0, %c0_i32_16 : i32
    %35 = arith.extui %34 : i1 to i32
    %c0_i32_17 = arith.constant 0 : i32
    %36 = arith.cmpi ne, %35, %c0_i32_17 : i32
    scf.if %36 {
      %40 = vector.shape_cast %19 : vector<128x128xi1> to vector<1x128x128xi1>
      %41 = vector.extract_strided_slice %33 {offsets = [0, 0], sizes = [1, 128], strides = [1, 1]} : vector<8x128xf32> to vector<1x128xf32>
      %42 = vector.shape_cast %41 : vector<1x128xf32> to vector<1x128x1xf32>
      %cst_19 = arith.constant -1.000000e+30 : f32
      %43 = vector.shape_cast %42 : vector<1x128x1xf32> to vector<1x128x1xf32>
      %44 = vector.broadcast %43 : vector<1x128x1xf32> to vector<1x128x128xf32>
      %45 = vector.broadcast %cst_19 : f32 to vector<1x128x128xf32>
      %46 = arith.select %40, %44, %45 : vector<1x128x128xi1>, vector<1x128x128xf32>
      %cst_20 = arith.constant dense<0xFF800000> : vector<1x128xf32>
      %47 = vector.multi_reduction <maximumf>, %46, %cst_20 [1] : vector<1x128x128xf32> to vector<1x128xf32>
      %cst_21 = arith.constant 0.000000e+00 : f32
      %48 = vector.broadcast %cst_21 : f32 to vector<7x128xf32>
      %49 = tpu.concatenate %47, %48 in 0 : vector<1x128xf32>, vector<7x128xf32> -> vector<8x128xf32>
      %c0_22 = arith.constant 0 : index
      %c0_23 = arith.constant 0 : index
      %50 = vector.load %arg12[%c0_22, %c0_23] : memref<8x128xf32, #tpu.memory_space<vmem>>, vector<8x128xf32>
      %51 = arith.maximumf %50, %49 : vector<8x128xf32>
      %cst_24 = arith.constant dense<0.000000e+00> : vector<8x128xf32>
      %52 = tpu.matmul %51, %17, %cst_24 {dimension_numbers = #tpu.dot_dimension_numbers<[1], [0], [0], [1], [0, 0, 1, 1], [], []>} : vector<8x128xf32>, vector<128x128xf32>, vector<8x128xf32> -> vector<8x128xf32>
      %53 = arith.subf %33, %52 : vector<8x128xf32>
      %54 = math.exp %53 : vector<8x128xf32>
      %cst_25 = arith.constant dense<0.000000e+00> : vector<8x128xf32>
      %55 = tpu.matmul %54, %21, %cst_25 {dimension_numbers = #tpu.dot_dimension_numbers<[1], [0], [0], [1], [0, 0, 1, 1], [], []>} : vector<8x128xf32>, vector<128x128xf32>, vector<8x128xf32> -> vector<8x128xf32>
      %c0_26 = arith.constant 0 : index
      %c0_27 = arith.constant 0 : index
      %56 = vector.load %arg13[%c0_26, %c0_27] : memref<8x128xf32, #tpu.memory_space<vmem>>, vector<8x128xf32>
      %57 = arith.subf %50, %51 : vector<8x128xf32>
      %58 = math.exp %57 : vector<8x128xf32>
      %59 = arith.mulf %56, %58 : vector<8x128xf32>
      %60 = arith.addf %59, %55 : vector<8x128xf32>
      %c0_28 = arith.constant 0 : index
      %c0_29 = arith.constant 0 : index
      %61 = vector.load %arg13[%c0_28, %c0_29] : memref<8x128xf32, #tpu.memory_space<vmem>>, vector<8x128xf32>
      tpu.vector_store %arg13[%c0_28, %c0_29], %60 {strides = array<i32>} : memref<8x128xf32, #tpu.memory_space<vmem>>, vector<8x128xf32>,
      %c0_30 = arith.constant 0 : index
      %c0_31 = arith.constant 0 : index
      %62 = vector.load %arg12[%c0_30, %c0_31] : memref<8x128xf32, #tpu.memory_space<vmem>>, vector<8x128xf32>
      tpu.vector_store %arg12[%c0_30, %c0_31], %51 {strides = array<i32>} : memref<8x128xf32, #tpu.memory_space<vmem>>, vector<8x128xf32>,
      %c0_32 = arith.constant 0 : index
      %c0_33 = arith.constant 0 : index
      %63 = vector.load %arg10[%c0_32, %c0_33] : memref<8x128xf32, #tpu.memory_space<vmem>>, vector<8x128xf32>
      tpu.vector_store %arg10[%c0_32, %c0_33], %54 {strides = array<i32>} : memref<8x128xf32, #tpu.memory_space<vmem>>, vector<8x128xf32>,
    } else {
    }
    %c1_i32 = arith.constant 1 : i32
    %37 = arith.cmpi eq, %arg0, %c1_i32 : i32
    %38 = arith.extui %37 : i1 to i32
    %c0_i32_18 = arith.constant 0 : i32
    %39 = arith.cmpi ne, %38, %c0_i32_18 : i32
    scf.if %39 {
      %c0_19 = arith.constant 0 : index
      %c0_20 = arith.constant 0 : index
      %40 = vector.load %arg12[%c0_19, %c0_20] : memref<8x128xf32, #tpu.memory_space<vmem>>, vector<8x128xf32>
      %cst_21 = arith.constant dense<0.000000e+00> : vector<8x128xf32>
      %41 = tpu.matmul %40, %17, %cst_21 {dimension_numbers = #tpu.dot_dimension_numbers<[1], [0], [0], [1], [0, 0, 1, 1], [], []>} : vector<8x128xf32>, vector<128x128xf32>, vector<8x128xf32> -> vector<8x128xf32>
      %c0_22 = arith.constant 0 : index
      %c0_23 = arith.constant 0 : index
      %42 = vector.load %arg13[%c0_22, %c0_23] : memref<8x128xf32, #tpu.memory_space<vmem>>, vector<8x128xf32>
      %cst_24 = arith.constant dense<0.000000e+00> : vector<8x128xf32>
      %43 = tpu.matmul %42, %17, %cst_24 {dimension_numbers = #tpu.dot_dimension_numbers<[1], [0], [0], [1], [0, 0, 1, 1], [], []>} : vector<8x128xf32>, vector<128x128xf32>, vector<8x128xf32> -> vector<8x128xf32>
      %44 = arith.subf %33, %41 : vector<8x128xf32>
      %45 = math.exp %44 : vector<8x128xf32>
      %cst_25 = arith.constant 9.99999996E-13 : f32
      %46 = vector.broadcast %cst_25 : f32 to vector<8x128xf32>
      %47 = arith.addf %43, %46 : vector<8x128xf32>
      %48 = tpu.reciprocal %47 {approx = true} : vector<8x128xf32> -> vector<8x128xf32>
      %49 = arith.mulf %45, %48 : vector<8x128xf32>
      %50 = vector.extract_strided_slice %49 {offsets = [0, 0], sizes = [1, 128], strides = [1, 1]} : vector<8x128xf32> to vector<1x128xf32>
      %51 = vector.extract_strided_slice %49 {offsets = [2, 0], sizes = [6, 128], strides = [1, 1]} : vector<8x128xf32> to vector<6x128xf32>
      %52 = tpu.concatenate %50, %50, %51 in 0 : vector<1x128xf32>, vector<1x128xf32>, vector<6x128xf32> -> vector<8x128xf32>
      %cst_26 = arith.constant 0.949999988 : f32
      %53 = vector.broadcast %cst_26 : f32 to vector<8x128xf32>
      %54 = arith.mulf %52, %53 : vector<8x128xf32>
      %c0_27 = arith.constant 0 : index
      %c0_28 = arith.constant 0 : index
      %55 = vector.load %arg9[%c0_27, %c0_28] : memref<8x128xf32, #tpu.memory_space<vmem>>, vector<8x128xf32>
      %cst_29 = arith.constant 5.000000e-02 : f32
      %56 = vector.broadcast %cst_29 : f32 to vector<8x128xf32>
      %57 = arith.mulf %55, %56 : vector<8x128xf32>
      %58 = arith.addf %54, %57 : vector<8x128xf32>
      %c0_30 = arith.constant 0 : index
      %c0_31 = arith.constant 0 : index
      %59 = vector.load %arg10[%c0_30, %c0_31] : memref<8x128xf32, #tpu.memory_space<vmem>>, vector<8x128xf32>
      tpu.vector_store %arg10[%c0_30, %c0_31], %58 {strides = array<i32>} : memref<8x128xf32, #tpu.memory_space<vmem>>, vector<8x128xf32>,
      %60 = vector.broadcast %5 : vector<1x128xi32> to vector<128x128xi32>
      %61 = arith.cmpi eq, %8, %60 : vector<128x128xi32>
      %62 = arith.extui %61 : vector<128x128xi1> to vector<128x128xi32>
      %63 = arith.sitofp %62 : vector<128x128xi32> to vector<128x128xf32>
      %64 = arith.truncf %63 : vector<128x128xf32> to vector<128x128xbf16>
      %65 = arith.extui %19 : vector<128x128xi1> to vector<128x128xi32>
      %66 = arith.sitofp %65 : vector<128x128xi32> to vector<128x128xf32>
      %67 = arith.truncf %66 : vector<128x128xf32> to vector<128x128xbf16>
      %c0_32 = arith.constant 0 : index
      %c0_33 = arith.constant 0 : index
      %68 = vector.load %arg5[%c0_32, %c0_33] : memref<32x128xbf16, #tpu.memory_space<vmem>>, vector<32x128xbf16>
      %cst_34 = arith.constant dense<0.000000e+00> : vector<32x128xf32>
      %69 = tpu.matmul %68, %64, %cst_34 {dimension_numbers = #tpu.dot_dimension_numbers<[1], [0], [0], [1], [0, 0, 1, 1], [], []>} : vector<32x128xbf16>, vector<128x128xbf16>, vector<32x128xf32> -> vector<32x128xf32>
      %70 = vector.extract_strided_slice %58 {offsets = [0, 0], sizes = [1, 128], strides = [1, 1]} : vector<8x128xf32> to vector<1x128xf32>
      %71 = vector.broadcast %70 : vector<1x128xf32> to vector<32x128xf32>
      %72 = arith.mulf %69, %71 : vector<32x128xf32>
      %73 = vector.extract_strided_slice %58 {offsets = [1, 0], sizes = [1, 128], strides = [1, 1]} : vector<8x128xf32> to vector<1x128xf32>
      %74 = vector.broadcast %73 : vector<1x128xf32> to vector<32x128xf32>
      %75 = arith.mulf %69, %74 : vector<32x128xf32>
      %76 = tpu.concatenate %72, %75 in 0 : vector<32x128xf32>, vector<32x128xf32> -> vector<64x128xf32>
      %c0_35 = arith.constant 0 : index
      %c0_36 = arith.constant 0 : index
      %77 = vector.load %arg11[%c0_35, %c0_36] : memref<64x128xf32, #tpu.memory_space<vmem>>, vector<64x128xf32>
      %78 = arith.truncf %76 : vector<64x128xf32> to vector<64x128xbf16>
      %cst_37 = arith.constant dense<0.000000e+00> : vector<64x128xf32>
      %79 = tpu.matmul %78, %67, %cst_37 {dimension_numbers = #tpu.dot_dimension_numbers<[1], [0], [0], [1], [0, 0, 1, 1], [], []>} : vector<64x128xbf16>, vector<128x128xbf16>, vector<64x128xf32> -> vector<64x128xf32>
      %80 = arith.addf %77, %79 : vector<64x128xf32>
      %c0_38 = arith.constant 0 : index
      %c0_39 = arith.constant 0 : index
      %81 = vector.load %arg11[%c0_38, %c0_39] : memref<64x128xf32, #tpu.memory_space<vmem>>, vector<64x128xf32>
      tpu.vector_store %arg11[%c0_38, %c0_39], %80 {strides = array<i32>} : memref<64x128xf32, #tpu.memory_space<vmem>>, vector<64x128xf32>,
    } else {
    }
    return
  }
  func.func @transform_0(%arg0: i32, %arg1: i32) -> (i32, i32) {
    %c0_i32 = arith.constant 0 : i32
    %c0_i32_0 = arith.constant 0 : i32
    %c0_i32_1 = arith.constant 0 : i32
    return %c0_i32, %c0_i32_0 : i32, i32
  }
  func.func @transform_1(%arg0: i32, %arg1: i32) -> (i32, i32) {
    %c0_i32 = arith.constant 0 : i32
    %c0_i32_0 = arith.constant 0 : i32
    %c0_i32_1 = arith.constant 0 : i32
    return %c0_i32, %c0_i32_0 : i32, i32
  }
  func.func @transform_2(%arg0: i32, %arg1: i32) -> (i32, i32) {
    %c0_i32 = arith.constant 0 : i32
    %c0_i32_0 = arith.constant 0 : i32
    return %c0_i32, %arg1 : i32, i32
  }
  func.func @transform_3(%arg0: i32, %arg1: i32) -> (i32, i32) {
    %c0_i32 = arith.constant 0 : i32
    %c0_i32_0 = arith.constant 0 : i32
    %c0_i32_1 = arith.constant 0 : i32
    return %c0_i32, %c0_i32_0 : i32, i32
  }
  func.func @transform_4(%arg0: i32, %arg1: i32) -> (i32, i32) {
    %c0_i32 = arith.constant 0 : i32
    %c0_i32_0 = arith.constant 0 : i32
    return %c0_i32, %arg1 : i32, i32
  }
  func.func @transform_5(%arg0: i32, %arg1: i32) -> (i32, i32) {
    %c0_i32 = arith.constant 0 : i32
    %c0_i32_0 = arith.constant 0 : i32
    return %c0_i32, %arg1 : i32, i32
  }
  func.func @transform_6(%arg0: i32, %arg1: i32) -> (i32, i32) {
    %c0_i32 = arith.constant 0 : i32
    %c0_i32_0 = arith.constant 0 : i32
    return %arg1, %c0_i32 : i32, i32
  }
  func.func @transform_7(%arg0: i32, %arg1: i32) -> (i32, i32) {
    %c0_i32 = arith.constant 0 : i32
    %c0_i32_0 = arith.constant 0 : i32
    return %c0_i32, %arg1 : i32, i32
  }
  func.func @transform_8(%arg0: i32, %arg1: i32) -> (i32, i32) {
    %c0_i32 = arith.constant 0 : i32
    %c0_i32_0 = arith.constant 0 : i32
    return %c0_i32, %arg1 : i32, i32
  }
  func.func @transform_9(%arg0: i32, %arg1: i32) -> (i32, i32) {
    %c0_i32 = arith.constant 0 : i32
    %c0_i32_0 = arith.constant 0 : i32
    %c0_i32_1 = arith.constant 0 : i32
    return %c0_i32, %c0_i32_0 : i32, i32
  }
}

module attributes {stable_mosaic.version = 11 : i64} {
  func.func @_gat_fused_kernel(%arg0: i32, %arg1: i32, %arg2: memref<8x128xf32, #tpu.memory_space<vmem>>, %arg3: memref<8x128xf32, #tpu.memory_space<vmem>>, %arg4: memref<8x128xf32, #tpu.memory_space<vmem>>, %arg5: memref<32x128xbf16, #tpu.memory_space<vmem>>, %arg6: memref<1x128xi32, #tpu.memory_space<vmem>>, %arg7: memref<1x128xi32, #tpu.memory_space<vmem>>, %arg8: memref<128x1xi32, #tpu.memory_space<vmem>>, %arg9: memref<8x128xf32, #tpu.memory_space<vmem>>, %arg10: memref<8x128xf32, #tpu.memory_space<vmem>>, %arg11: memref<32x128xf32, #tpu.memory_space<vmem>>, %arg12: memref<8x128xf32, #tpu.memory_space<vmem>>, %arg13: memref<8x128xf32, #tpu.memory_space<vmem>>) attributes {dimension_semantics = [#tpu.dimension_semantics<arbitrary>, #tpu.dimension_semantics<arbitrary>], iteration_bounds = array<i64: 2, 1>, scalar_prefetch = 0 : i64, scratch_operands = 2 : i64, tpu.core_type = #tpu.core_type<tc>, window_params = [{pipeline_mode = #tpu.pipeline_mode<synchronous>, transform_indices = @transform_0, window_bounds = array<i64: 8, 128>}, {pipeline_mode = #tpu.pipeline_mode<synchronous>, transform_indices = @transform_1, window_bounds = array<i64: 8, 128>}, {transform_indices = @transform_2, window_bounds = array<i64: 8, 128>}, {pipeline_mode = #tpu.pipeline_mode<synchronous>, transform_indices = @transform_3, window_bounds = array<i64: 32, 128>}, {transform_indices = @transform_4, window_bounds = array<i64: 1, 128>}, {transform_indices = @transform_5, window_bounds = array<i64: 1, 128>}, {transform_indices = @transform_6, window_bounds = array<i64: 128, 1>}, {transform_indices = @transform_7, window_bounds = array<i64: 8, 128>}, {transform_indices = @transform_8, window_bounds = array<i64: 8, 128>}, {pipeline_mode = #tpu.pipeline_mode<synchronous>, transform_indices = @transform_9, window_bounds = array<i64: 32, 128>}]} {
    %c0_i32 = arith.constant 0 : i32
    %0 = arith.cmpi eq, %arg0, %c0_i32 : i32
    %c0_i32_0 = arith.constant 0 : i32
    %1 = arith.cmpi eq, %arg1, %c0_i32_0 : i32
    %2 = arith.andi %0, %1 : i1
    %3 = arith.extui %2 : i1 to i32
    %c0_i32_1 = arith.constant 0 : i32
    %4 = arith.cmpi ne, %3, %c0_i32_1 : i32
    scf.if %4 {
      %cst_19 = arith.constant -1.000000e+30 : f32
      %40 = vector.broadcast %cst_19 : f32 to vector<8x128xf32>
      %c0_20 = arith.constant 0 : index
      %c0_21 = arith.constant 0 : index
      %41 = vector.load %arg12[%c0_20, %c0_21] : memref<8x128xf32, #tpu.memory_space<vmem>>, vector<8x128xf32>
      tpu.vector_store %arg12[%c0_20, %c0_21], %40 {strides = array<i32>} : memref<8x128xf32, #tpu.memory_space<vmem>>, vector<8x128xf32>,
      %cst_22 = arith.constant 0.000000e+00 : f32
      %42 = vector.broadcast %cst_22 : f32 to vector<8x128xf32>
      %c0_23 = arith.constant 0 : index
      %c0_24 = arith.constant 0 : index
      %43 = vector.load %arg13[%c0_23, %c0_24] : memref<8x128xf32, #tpu.memory_space<vmem>>, vector<8x128xf32>
      tpu.vector_store %arg13[%c0_23, %c0_24], %42 {strides = array<i32>} : memref<8x128xf32, #tpu.memory_space<vmem>>, vector<8x128xf32>,
      %cst_25 = arith.constant 0.000000e+00 : f32
      %44 = vector.broadcast %cst_25 : f32 to vector<32x128xf32>
      %c0_26 = arith.constant 0 : index
      %c0_27 = arith.constant 0 : index
      %45 = vector.load %arg11[%c0_26, %c0_27] : memref<32x128xf32, #tpu.memory_space<vmem>>, vector<32x128xf32>
      tpu.vector_store %arg11[%c0_26, %c0_27], %44 {strides = array<i32>} : memref<32x128xf32, #tpu.memory_space<vmem>>, vector<32x128xf32>,
    } else {
    }
    %c0 = arith.constant 0 : index
    %c0_2 = arith.constant 0 : index
    %5 = vector.load %arg6[%c0, %c0_2] : memref<1x128xi32, #tpu.memory_space<vmem>>, vector<1x128xi32>
    %c0_3 = arith.constant 0 : index
    %c0_4 = arith.constant 0 : index
    %6 = vector.load %arg7[%c0_3, %c0_4] : memref<1x128xi32, #tpu.memory_space<vmem>>, vector<1x128xi32>
    %c0_5 = arith.constant 0 : index
    %c0_6 = arith.constant 0 : index
    %7 = vector.load %arg8[%c0_5, %c0_6] : memref<128x1xi32, #tpu.memory_space<vmem>>, vector<128x1xi32>
    %8 = tpu.iota {dimensions = array<i32: 0>} : vector<128x128xi32>
    %9 = tpu.iota {dimensions = array<i32: 1>} : vector<128x128xi32>
    %10 = vector.broadcast %5 : vector<1x128xi32> to vector<128x128xi32>
    %11 = arith.cmpi eq, %8, %10 : vector<128x128xi32>
    %12 = arith.extui %11 : vector<128x128xi1> to vector<128x128xi32>
    %13 = arith.sitofp %12 : vector<128x128xi32> to vector<128x128xf32>
    %14 = vector.broadcast %6 : vector<1x128xi32> to vector<128x128xi32>
    %15 = arith.cmpi eq, %8, %14 : vector<128x128xi32>
    %16 = arith.extui %15 : vector<128x128xi1> to vector<128x128xi32>
    %17 = arith.sitofp %16 : vector<128x128xi32> to vector<128x128xf32>
    %18 = vector.broadcast %7 : vector<128x1xi32> to vector<128x128xi32>
    %19 = arith.cmpi eq, %9, %18 : vector<128x128xi32>
    %20 = arith.extui %19 : vector<128x128xi1> to vector<128x128xi32>
    %21 = arith.sitofp %20 : vector<128x128xi32> to vector<128x128xf32>
    %c0_7 = arith.constant 0 : index
    %c0_8 = arith.constant 0 : index
    %22 = vector.load %arg2[%c0_7, %c0_8] : memref<8x128xf32, #tpu.memory_space<vmem>>, vector<8x128xf32>
    %cst = arith.constant dense<0.000000e+00> : vector<8x128xf32>
    %23 = tpu.matmul %22, %13, %cst {dimension_numbers = #tpu.dot_dimension_numbers<[1], [0], [0], [1], [0, 0, 1, 1], [], []>} : vector<8x128xf32>, vector<128x128xf32>, vector<8x128xf32> -> vector<8x128xf32>
    %c0_9 = arith.constant 0 : index
    %c0_10 = arith.constant 0 : index
    %24 = vector.load %arg3[%c0_9, %c0_10] : memref<8x128xf32, #tpu.memory_space<vmem>>, vector<8x128xf32>
    %cst_11 = arith.constant dense<0.000000e+00> : vector<8x128xf32>
    %25 = tpu.matmul %24, %17, %cst_11 {dimension_numbers = #tpu.dot_dimension_numbers<[1], [0], [0], [1], [0, 0, 1, 1], [], []>} : vector<8x128xf32>, vector<128x128xf32>, vector<8x128xf32> -> vector<8x128xf32>
    %26 = arith.addf %23, %25 : vector<8x128xf32>
    %c0_12 = arith.constant 0 : index
    %c0_13 = arith.constant 0 : index
    %27 = vector.load %arg4[%c0_12, %c0_13] : memref<8x128xf32, #tpu.memory_space<vmem>>, vector<8x128xf32>
    %28 = arith.addf %26, %27 : vector<8x128xf32>
    %cst_14 = arith.constant 0.000000e+00 : f32
    %29 = vector.broadcast %cst_14 : f32 to vector<8x128xf32>
    %30 = arith.cmpf ogt, %28, %29 : vector<8x128xf32>
    %cst_15 = arith.constant 2.000000e-01 : f32
    %31 = vector.broadcast %cst_15 : f32 to vector<8x128xf32>
    %32 = arith.mulf %31, %28 : vector<8x128xf32>
    %33 = arith.select %30, %28, %32 : vector<8x128xi1>, vector<8x128xf32>
    %c0_i32_16 = arith.constant 0 : i32
    %34 = arith.cmpi eq, %arg0, %c0_i32_16 : i32
    %35 = arith.extui %34 : i1 to i32
    %c0_i32_17 = arith.constant 0 : i32
    %36 = arith.cmpi ne, %35, %c0_i32_17 : i32
    scf.if %36 {
      %40 = vector.shape_cast %19 : vector<128x128xi1> to vector<1x128x128xi1>
      %41 = vector.extract_strided_slice %33 {offsets = [0, 0], sizes = [1, 128], strides = [1, 1]} : vector<8x128xf32> to vector<1x128xf32>
      %42 = vector.shape_cast %41 : vector<1x128xf32> to vector<1x128x1xf32>
      %cst_19 = arith.constant -1.000000e+30 : f32
      %43 = vector.shape_cast %42 : vector<1x128x1xf32> to vector<1x128x1xf32>
      %44 = vector.broadcast %43 : vector<1x128x1xf32> to vector<1x128x128xf32>
      %45 = vector.broadcast %cst_19 : f32 to vector<1x128x128xf32>
      %46 = arith.select %40, %44, %45 : vector<1x128x128xi1>, vector<1x128x128xf32>
      %cst_20 = arith.constant dense<0xFF800000> : vector<1x128xf32>
      %47 = vector.multi_reduction <maximumf>, %46, %cst_20 [1] : vector<1x128x128xf32> to vector<1x128xf32>
      %cst_21 = arith.constant 0.000000e+00 : f32
      %48 = vector.broadcast %cst_21 : f32 to vector<7x128xf32>
      %49 = tpu.concatenate %47, %48 in 0 : vector<1x128xf32>, vector<7x128xf32> -> vector<8x128xf32>
      %c0_22 = arith.constant 0 : index
      %c0_23 = arith.constant 0 : index
      %50 = vector.load %arg12[%c0_22, %c0_23] : memref<8x128xf32, #tpu.memory_space<vmem>>, vector<8x128xf32>
      %51 = arith.maximumf %50, %49 : vector<8x128xf32>
      %cst_24 = arith.constant dense<0.000000e+00> : vector<8x128xf32>
      %52 = tpu.matmul %51, %17, %cst_24 {dimension_numbers = #tpu.dot_dimension_numbers<[1], [0], [0], [1], [0, 0, 1, 1], [], []>} : vector<8x128xf32>, vector<128x128xf32>, vector<8x128xf32> -> vector<8x128xf32>
      %53 = arith.subf %33, %52 : vector<8x128xf32>
      %54 = math.exp %53 : vector<8x128xf32>
      %cst_25 = arith.constant dense<0.000000e+00> : vector<8x128xf32>
      %55 = tpu.matmul %54, %21, %cst_25 {dimension_numbers = #tpu.dot_dimension_numbers<[1], [0], [0], [1], [0, 0, 1, 1], [], []>} : vector<8x128xf32>, vector<128x128xf32>, vector<8x128xf32> -> vector<8x128xf32>
      %c0_26 = arith.constant 0 : index
      %c0_27 = arith.constant 0 : index
      %56 = vector.load %arg13[%c0_26, %c0_27] : memref<8x128xf32, #tpu.memory_space<vmem>>, vector<8x128xf32>
      %57 = arith.subf %50, %51 : vector<8x128xf32>
      %58 = math.exp %57 : vector<8x128xf32>
      %59 = arith.mulf %56, %58 : vector<8x128xf32>
      %60 = arith.addf %59, %55 : vector<8x128xf32>
      %c0_28 = arith.constant 0 : index
      %c0_29 = arith.constant 0 : index
      %61 = vector.load %arg13[%c0_28, %c0_29] : memref<8x128xf32, #tpu.memory_space<vmem>>, vector<8x128xf32>
      tpu.vector_store %arg13[%c0_28, %c0_29], %60 {strides = array<i32>} : memref<8x128xf32, #tpu.memory_space<vmem>>, vector<8x128xf32>,
      %c0_30 = arith.constant 0 : index
      %c0_31 = arith.constant 0 : index
      %62 = vector.load %arg12[%c0_30, %c0_31] : memref<8x128xf32, #tpu.memory_space<vmem>>, vector<8x128xf32>
      tpu.vector_store %arg12[%c0_30, %c0_31], %51 {strides = array<i32>} : memref<8x128xf32, #tpu.memory_space<vmem>>, vector<8x128xf32>,
      %c0_32 = arith.constant 0 : index
      %c0_33 = arith.constant 0 : index
      %63 = vector.load %arg10[%c0_32, %c0_33] : memref<8x128xf32, #tpu.memory_space<vmem>>, vector<8x128xf32>
      tpu.vector_store %arg10[%c0_32, %c0_33], %54 {strides = array<i32>} : memref<8x128xf32, #tpu.memory_space<vmem>>, vector<8x128xf32>,
    } else {
    }
    %c1_i32 = arith.constant 1 : i32
    %37 = arith.cmpi eq, %arg0, %c1_i32 : i32
    %38 = arith.extui %37 : i1 to i32
    %c0_i32_18 = arith.constant 0 : i32
    %39 = arith.cmpi ne, %38, %c0_i32_18 : i32
    scf.if %39 {
      %c0_19 = arith.constant 0 : index
      %c0_20 = arith.constant 0 : index
      %40 = vector.load %arg12[%c0_19, %c0_20] : memref<8x128xf32, #tpu.memory_space<vmem>>, vector<8x128xf32>
      %cst_21 = arith.constant dense<0.000000e+00> : vector<8x128xf32>
      %41 = tpu.matmul %40, %17, %cst_21 {dimension_numbers = #tpu.dot_dimension_numbers<[1], [0], [0], [1], [0, 0, 1, 1], [], []>} : vector<8x128xf32>, vector<128x128xf32>, vector<8x128xf32> -> vector<8x128xf32>
      %c0_22 = arith.constant 0 : index
      %c0_23 = arith.constant 0 : index
      %42 = vector.load %arg13[%c0_22, %c0_23] : memref<8x128xf32, #tpu.memory_space<vmem>>, vector<8x128xf32>
      %cst_24 = arith.constant dense<0.000000e+00> : vector<8x128xf32>
      %43 = tpu.matmul %42, %17, %cst_24 {dimension_numbers = #tpu.dot_dimension_numbers<[1], [0], [0], [1], [0, 0, 1, 1], [], []>} : vector<8x128xf32>, vector<128x128xf32>, vector<8x128xf32> -> vector<8x128xf32>
      %44 = arith.subf %33, %41 : vector<8x128xf32>
      %45 = math.exp %44 : vector<8x128xf32>
      %cst_25 = arith.constant 9.99999996E-13 : f32
      %46 = vector.broadcast %cst_25 : f32 to vector<8x128xf32>
      %47 = arith.addf %43, %46 : vector<8x128xf32>
      %48 = tpu.reciprocal %47 {approx = true} : vector<8x128xf32> -> vector<8x128xf32>
      %49 = arith.mulf %45, %48 : vector<8x128xf32>
      %cst_26 = arith.constant 1.000000e+00 : f32
      %50 = vector.broadcast %cst_26 : f32 to vector<8x128xf32>
      %51 = arith.mulf %49, %50 : vector<8x128xf32>
      %c0_27 = arith.constant 0 : index
      %c0_28 = arith.constant 0 : index
      %52 = vector.load %arg9[%c0_27, %c0_28] : memref<8x128xf32, #tpu.memory_space<vmem>>, vector<8x128xf32>
      %cst_29 = arith.constant 0.000000e+00 : f32
      %53 = vector.broadcast %cst_29 : f32 to vector<8x128xf32>
      %54 = arith.mulf %52, %53 : vector<8x128xf32>
      %55 = arith.addf %51, %54 : vector<8x128xf32>
      %c0_30 = arith.constant 0 : index
      %c0_31 = arith.constant 0 : index
      %56 = vector.load %arg10[%c0_30, %c0_31] : memref<8x128xf32, #tpu.memory_space<vmem>>, vector<8x128xf32>
      tpu.vector_store %arg10[%c0_30, %c0_31], %55 {strides = array<i32>} : memref<8x128xf32, #tpu.memory_space<vmem>>, vector<8x128xf32>,
      %57 = vector.broadcast %5 : vector<1x128xi32> to vector<128x128xi32>
      %58 = arith.cmpi eq, %8, %57 : vector<128x128xi32>
      %59 = arith.extui %58 : vector<128x128xi1> to vector<128x128xi32>
      %60 = arith.sitofp %59 : vector<128x128xi32> to vector<128x128xf32>
      %61 = arith.truncf %60 : vector<128x128xf32> to vector<128x128xbf16>
      %62 = arith.extui %19 : vector<128x128xi1> to vector<128x128xi32>
      %63 = arith.sitofp %62 : vector<128x128xi32> to vector<128x128xf32>
      %64 = arith.truncf %63 : vector<128x128xf32> to vector<128x128xbf16>
      %c0_32 = arith.constant 0 : index
      %c0_33 = arith.constant 0 : index
      %65 = vector.load %arg5[%c0_32, %c0_33] : memref<32x128xbf16, #tpu.memory_space<vmem>>, vector<32x128xbf16>
      %cst_34 = arith.constant dense<0.000000e+00> : vector<32x128xf32>
      %66 = tpu.matmul %65, %61, %cst_34 {dimension_numbers = #tpu.dot_dimension_numbers<[1], [0], [0], [1], [0, 0, 1, 1], [], []>} : vector<32x128xbf16>, vector<128x128xbf16>, vector<32x128xf32> -> vector<32x128xf32>
      %67 = vector.extract_strided_slice %55 {offsets = [0, 0], sizes = [1, 128], strides = [1, 1]} : vector<8x128xf32> to vector<1x128xf32>
      %68 = vector.broadcast %67 : vector<1x128xf32> to vector<32x128xf32>
      %69 = arith.mulf %66, %68 : vector<32x128xf32>
      %c0_35 = arith.constant 0 : index
      %c0_36 = arith.constant 0 : index
      %70 = vector.load %arg11[%c0_35, %c0_36] : memref<32x128xf32, #tpu.memory_space<vmem>>, vector<32x128xf32>
      %71 = arith.truncf %69 : vector<32x128xf32> to vector<32x128xbf16>
      %cst_37 = arith.constant dense<0.000000e+00> : vector<32x128xf32>
      %72 = tpu.matmul %71, %64, %cst_37 {dimension_numbers = #tpu.dot_dimension_numbers<[1], [0], [0], [1], [0, 0, 1, 1], [], []>} : vector<32x128xbf16>, vector<128x128xbf16>, vector<32x128xf32> -> vector<32x128xf32>
      %73 = arith.addf %70, %72 : vector<32x128xf32>
      %c0_38 = arith.constant 0 : index
      %c0_39 = arith.constant 0 : index
      %74 = vector.load %arg11[%c0_38, %c0_39] : memref<32x128xf32, #tpu.memory_space<vmem>>, vector<32x128xf32>
      tpu.vector_store %arg11[%c0_38, %c0_39], %73 {strides = array<i32>} : memref<32x128xf32, #tpu.memory_space<vmem>>, vector<32x128xf32>,
    } else {
    }
    return
  }
  func.func @transform_0(%arg0: i32, %arg1: i32) -> (i32, i32) {
    %c0_i32 = arith.constant 0 : i32
    %c0_i32_0 = arith.constant 0 : i32
    %c0_i32_1 = arith.constant 0 : i32
    return %c0_i32, %c0_i32_0 : i32, i32
  }
  func.func @transform_1(%arg0: i32, %arg1: i32) -> (i32, i32) {
    %c0_i32 = arith.constant 0 : i32
    %c0_i32_0 = arith.constant 0 : i32
    %c0_i32_1 = arith.constant 0 : i32
    return %c0_i32, %c0_i32_0 : i32, i32
  }
  func.func @transform_2(%arg0: i32, %arg1: i32) -> (i32, i32) {
    %c0_i32 = arith.constant 0 : i32
    %c0_i32_0 = arith.constant 0 : i32
    return %c0_i32, %arg1 : i32, i32
  }
  func.func @transform_3(%arg0: i32, %arg1: i32) -> (i32, i32) {
    %c0_i32 = arith.constant 0 : i32
    %c0_i32_0 = arith.constant 0 : i32
    %c0_i32_1 = arith.constant 0 : i32
    return %c0_i32, %c0_i32_0 : i32, i32
  }
  func.func @transform_4(%arg0: i32, %arg1: i32) -> (i32, i32) {
    %c0_i32 = arith.constant 0 : i32
    %c0_i32_0 = arith.constant 0 : i32
    return %c0_i32, %arg1 : i32, i32
  }
  func.func @transform_5(%arg0: i32, %arg1: i32) -> (i32, i32) {
    %c0_i32 = arith.constant 0 : i32
    %c0_i32_0 = arith.constant 0 : i32
    return %c0_i32, %arg1 : i32, i32
  }
  func.func @transform_6(%arg0: i32, %arg1: i32) -> (i32, i32) {
    %c0_i32 = arith.constant 0 : i32
    %c0_i32_0 = arith.constant 0 : i32
    return %arg1, %c0_i32 : i32, i32
  }
  func.func @transform_7(%arg0: i32, %arg1: i32) -> (i32, i32) {
    %c0_i32 = arith.constant 0 : i32
    %c0_i32_0 = arith.constant 0 : i32
    return %c0_i32, %arg1 : i32, i32
  }
  func.func @transform_8(%arg0: i32, %arg1: i32) -> (i32, i32) {
    %c0_i32 = arith.constant 0 : i32
    %c0_i32_0 = arith.constant 0 : i32
    return %c0_i32, %arg1 : i32, i32
  }
  func.func @transform_9(%arg0: i32, %arg1: i32) -> (i32, i32) {
    %c0_i32 = arith.constant 0 : i32
    %c0_i32_0 = arith.constant 0 : i32
    %c0_i32_1 = arith.constant 0 : i32
    return %c0_i32, %c0_i32_0 : i32, i32
  }
}

</mosaic_0001>

<bundles_post_ra>
// kernel: fwd.18
= control target key start
LH: loop header
LB: loop body
LE: loop exit
PB: predicated region body
PF: predicated region fallthrough
CT: control target
= control target key end

     0   :  { %s308_s1 = inlined_call_operand.vmem [shape: f32[128,128], index: 1, kind: input, shape index: {}]   ;;  %s309_s0 = inlined_call_operand.vmem [shape: f32[16,128], index: 0, kind: input, shape index: {}]   ;;  %s310_s2 = inlined_call_operand.vmem [shape: f32[1,128], index: 2, kind: input, shape index: {}]   ;;  %s311_s3 = inlined_call_operand.vmem [shape: f32[16,128], index: 3, kind: output, shape index: {}]  }
   0x1   :  { %v24_v0 = vld [vmem:[%s308_s1] sm:$0xff]  ;;  %v25_v1 = vld [vmem:[%s308_s1 + $0x8] sm:$0xff]  ;;  %v26_v2 = vld [vmem:[%s308_s1 + $0x10] sm:$0xff] }
   0x2   :  { %v193_v3 = vpack.c.bf16 %v25_v1, %v24_v0  ;;  %v27_v4 = vld [vmem:[%s308_s1 + $0x18] sm:$0xff]  ;;  %v28_v6 = vld [vmem:[%s308_s1 + $0x20] sm:$0xff]  ;;  %v29_v7 = vld [vmem:[%s308_s1 + $0x28] sm:$0xff] }
   0x3   :  { %v197_v5 = vpack.c.bf16 %v27_v4, %v26_v2  ;;  %v201_v8 = vpack.c.bf16 %v29_v7, %v28_v6  ;;  %v22_v9 = vld [vmem:[%s309_s0] sm:$0xff]  ;;  %v30_v10 = vld [vmem:[%s308_s1 + $0x30] sm:$0xff]  ;;  %v31_v11 = vld [vmem:[%s308_s1 + $0x38] sm:$0xff] }
   0x4   :  { %194 = vmatprep.subr.bf16.mxu0 %v193_v3  ;;  %190 = vmatprep.mubr.f32.mxu0 %v22_v9  ;;  %v205_v12 = vpack.c.bf16 %v31_v11, %v30_v10  ;;  %v32_v13 = vld [vmem:[%s308_s1 + $0x40] sm:$0xff]  ;;  %v33_v14 = vld [vmem:[%s308_s1 + $0x48] sm:$0xff]  ;;  %v34_v16 = vld [vmem:[%s308_s1 + $0x50] sm:$0xff] }
   0x5   :  { %196 = vmatpush3.bf16.msra.mxu0 %v193_v3  ;;  %v209_v15 = vpack.c.bf16 %v33_v14, %v32_v13  ;;  %v35_v17 = vld [vmem:[%s308_s1 + $0x58] sm:$0xff]  ;;  %v36_v19 = vld [vmem:[%s308_s1 + $0x60] sm:$0xff]  ;;  %v37_v20 = vld [vmem:[%s308_s1 + $0x68] sm:$0xff] }
   0x6   :  { %198 = vmatprep.subr.bf16.mxu0 %v197_v5  ;;  %v213_v18 = vpack.c.bf16 %v35_v17, %v34_v16  ;;  %v217_v21 = vpack.c.bf16 %v37_v20, %v36_v19  ;;  %v38_v22 = vld [vmem:[%s308_s1 + $0x70] sm:$0xff]  ;;  %v39_v23 = vld [vmem:[%s308_s1 + $0x78] sm:$0xff]  ;;  %v23_v25 = vld [vmem:[%s309_s0 + $0x8] sm:$0xff] }
   0x7   :  { %v221_v24 = vpack.c.bf16 %v39_v23, %v38_v22  ;;  %v139_v26 = vld [vmem:[%s310_s2] ss:$0 sm:$0xff] }
   0x9   :  { %200 = vmatpush3.bf16.msra.mxu0 %v197_v5 }
   0xa   :  { %202 = vmatprep.subr.bf16.mxu0 %v201_v8 }
   0xd   :  { %204 = vmatpush3.bf16.msra.mxu0 %v201_v8 }
   0xe   :  { %206 = vmatprep.subr.bf16.mxu0 %v205_v12 }
  0x11   :  { %208 = vmatpush3.bf16.msra.mxu0 %v205_v12 }
  0x12   :  { %210 = vmatprep.subr.bf16.mxu0 %v209_v15 }
  0x15   :  { %212 = vmatpush3.bf16.msra.mxu0 %v209_v15 }
  0x16   :  { %214 = vmatprep.subr.bf16.mxu0 %v213_v18 }
  0x19   :  { %216 = vmatpush3.bf16.msra.mxu0 %v213_v18 }
  0x1a   :  { %218 = vmatprep.subr.bf16.mxu0 %v217_v21 }
  0x1d   :  { %220 = vmatpush3.bf16.msra.mxu0 %v217_v21 }
  0x1e   :  { %222 = vmatprep.subr.bf16.mxu0 %v221_v24 }
  0x21   :  { %224 = vmatpush3.bf16.msra.mxu0 %v221_v24 }
  0x24   :  { %191 = vmatmul.mubr.f32.vlgmr.msra.gmra.mrb[0].mxu0 %v23_v25 }
  0xf7   :  { %v192_v27 = vpop.f32.mrb[0].mxu0 }
  0xf8   :  { %v132_v28 = vadd.f32 %v192_v27, %v139_v26  ;;  %v106_v29 = vpop.f32.mrb[1].mxu0 }
  0xf9   :  { %v131_v30 = vadd.f32 %v139_v26, %v106_v29 }
  0xfa   :  { %134 = vst [vmem:[%s311_s3 + $0x8] sm:$0xff] %v132_v28 }
  0xfb   :  { %133 = vst [vmem:[%s311_s3] sm:$0xff] %v131_v30 }

// kernel: fwd.27
= control target key start
LH: loop header
LB: loop body
LE: loop exit
PB: predicated region body
PF: predicated region fallthrough
CT: control target
= control target key end

     0   :  { %v290_v0 = vmov 0.0|0.0   ;;  %vm291_vm0 = vmmov 0   ;;  %v292_v6 = vmov 0.0   ;;  %s404_s1 = inlined_call_operand.vmem [shape: f32[128,128], index: 1, kind: input, shape index: {}]   ;;  %s405_s0 = inlined_call_operand.vmem [shape: f32[40,128], index: 0, kind: input, shape index: {}]   ;;  %s406_s2 = inlined_call_operand.vmem [shape: f32[1,128], index: 2, kind: input, shape index: {}]   ;;  %s407_s3 = inlined_call_operand.vmem [shape: f32[40,128], index: 3, kind: output, shape index: {}]  }
   0x1   :  { %247 = vmatprep.subr.bf16.mxu0 %v290_v0  ;;  %v33_v1 = vld [vmem:[%s404_s1] sm:$0xff]  ;;  %v34_v2 = vld [vmem:[%s404_s1 + $0x8] sm:$0xff]  ;;  %271 = vmatprep.subr.bf16.mxu1 %v290_v0  ;;  %v35_v3 = vld [vmem:[%s404_s1 + $0x10] sm:$0xff] }
   0x2   :  { %v248_v4 = vpack.c.bf16 %v34_v2, %v33_v1  ;;  %v36_v5 = vld [vmem:[%s404_s1 + $0x18] sm:$0xff]  ;;  %232 = vmatprep.mubr.msk.f32.mxu0 %vm291_vm0, %v292_v6  ;;  %241 = vmatprep.mubr.msk.f32.mxu1 %vm291_vm0, %v292_v6  ;;  %v37_v8 = vld [vmem:[%s404_s1 + $0x20] sm:$0xff]  ;;  %v38_v9 = vld [vmem:[%s404_s1 + $0x28] sm:$0xff] }
   0x3   :  { %v251_v7 = vpack.c.bf16 %v36_v5, %v35_v3  ;;  %v254_v10 = vpack.c.bf16 %v38_v9, %v37_v8  ;;  %v39_v11 = vld [vmem:[%s404_s1 + $0x30] sm:$0xff]  ;;  %v40_v12 = vld [vmem:[%s404_s1 + $0x38] sm:$0xff]  ;;  %v41_v14 = vld [vmem:[%s404_s1 + $0x40] sm:$0xff] }
   0x4   :  { %249 = vmatpush3.bf16.msra.mxu0 %v248_v4  ;;  %279 = vmatpush3.bf16.msra.mxu1 %v248_v4  ;;  %v257_v13 = vpack.c.bf16 %v40_v12, %v39_v11  ;;  %v42_v15 = vld [vmem:[%s404_s1 + $0x48] sm:$0xff]  ;;  %v43_v17 = vld [vmem:[%s404_s1 + $0x50] sm:$0xff]  ;;  %v44_v18 = vld [vmem:[%s404_s1 + $0x58] sm:$0xff] }
   0x5   :  { %250 = vmatprep.subr.bf16.mxu0 %v290_v0  ;;  %272 = vmatprep.subr.bf16.mxu1 %v290_v0  ;;  %v260_v16 = vpack.c.bf16 %v42_v15, %v41_v14  ;;  %v263_v19 = vpack.c.bf16 %v44_v18, %v43_v17  ;;  %v45_v20 = vld [vmem:[%s404_s1 + $0x60] sm:$0xff]  ;;  %v46_v21 = vld [vmem:[%s404_s1 + $0x68] sm:$0xff]  ;;  %v47_v23 = vld [vmem:[%s404_s1 + $0x70] sm:$0xff] }
   0x6   :  { %v266_v22 = vpack.c.bf16 %v46_v21, %v45_v20  ;;  %v48_v24 = vld [vmem:[%s404_s1 + $0x78] sm:$0xff]  ;;  %v28_v26 = vld [vmem:[%s405_s0] sm:$0xff]  ;;  %v29_v28 = vld [vmem:[%s405_s0 + $0x8] sm:$0xff] }
   0x7   :  { %v269_v25 = vpack.c.bf16 %v48_v24, %v47_v23  ;;  %v31_v27 = vld [vmem:[%s405_s0 + $0x18] sm:$0xff]  ;;  %v32_v29 = vld [vmem:[%s405_s0 + $0x20] sm:$0xff]  ;;  %v30_v30 = vld [vmem:[%s405_s0 + $0x10] sm:$0xff] }
   0x8   :  { %252 = vmatpush3.bf16.msra.mxu0 %v251_v7  ;;  %280 = vmatpush3.bf16.msra.mxu1 %v251_v7  ;;  %v178_v31 = vld [vmem:[%s406_s2] ss:$0 sm:$0xff] }
   0x9   :  { %253 = vmatprep.subr.bf16.mxu0 %v290_v0  ;;  %273 = vmatprep.subr.bf16.mxu1 %v290_v0 }
   0xc   :  { %255 = vmatpush3.bf16.msra.mxu0 %v254_v10  ;;  %281 = vmatpush3.bf16.msra.mxu1 %v254_v10 }
   0xd   :  { %256 = vmatprep.subr.bf16.mxu0 %v290_v0  ;;  %274 = vmatprep.subr.bf16.mxu1 %v290_v0 }
  0x10   :  { %258 = vmatpush3.bf16.msra.mxu0 %v257_v13  ;;  %282 = vmatpush3.bf16.msra.mxu1 %v257_v13 }
  0x11   :  { %259 = vmatprep.subr.bf16.mxu0 %v290_v0  ;;  %275 = vmatprep.subr.bf16.mxu1 %v290_v0 }
  0x14   :  { %261 = vmatpush3.bf16.msra.mxu0 %v260_v16  ;;  %283 = vmatpush3.bf16.msra.mxu1 %v260_v16 }
  0x15   :  { %262 = vmatprep.subr.bf16.mxu0 %v290_v0  ;;  %276 = vmatprep.subr.bf16.mxu1 %v290_v0 }
  0x18   :  { %264 = vmatpush3.bf16.msra.mxu0 %v263_v19  ;;  %284 = vmatpush3.bf16.msra.mxu1 %v263_v19 }
  0x19   :  { %265 = vmatprep.subr.bf16.mxu0 %v290_v0  ;;  %277 = vmatprep.subr.bf16.mxu1 %v290_v0 }
  0x1c   :  { %267 = vmatpush3.bf16.msra.mxu0 %v266_v22  ;;  %285 = vmatpush3.bf16.msra.mxu1 %v266_v22 }
  0x1d   :  { %268 = vmatprep.subr.bf16.mxu0 %v290_v0  ;;  %278 = vmatprep.subr.bf16.mxu1 %v290_v0 }
  0x20   :  { %270 = vmatpush3.bf16.msra.mxu0 %v269_v25  ;;  %286 = vmatpush3.bf16.msra.mxu1 %v269_v25 }
  0x23   :  { %233 = vmatmul.mubr.f32.vlgmr.msra.gmra.mrb[0].mxu0 %v28_v26  ;;  %242 = vmatmul.mubr.f32.vlgmr.msra.gmra.mrb[0].mxu1 %v31_v27 }
  0x24   :  { %235 = vmatprep.mubr.msk.f32.mxu0 %vm291_vm0, %v292_v6  ;;  %244 = vmatprep.mubr.msk.f32.mxu1 %vm291_vm0, %v292_v6 }
  0x27   :  { %236 = vmatmul.mubr.f32.gmra.mrb[2].mxu0 %v29_v28  ;;  %245 = vmatmul.mubr.f32.gmra.mrb[2].mxu1 %v32_v29 }
  0x28   :  { %238 = vmatprep.mubr.msk.f32.mxu0 %vm291_vm0, %v292_v6 }
  0x2b   :  { %239 = vmatmul.mubr.f32.gmra.mrb[4].mxu0 %v30_v30 }
  0xf6   :  { %v115_v32 = vpop.f32.mrb[0].mxu0  ;;  %v130_v33 = vpop.f32.mrb[0].mxu1 }
  0xf7   :  { %v164_v34 = vadd.f32 %v178_v31, %v115_v32  ;;  %v234_v35 = vpop.f32.mrb[1].mxu0  ;;  %v167_v36 = vadd.f32 %v178_v31, %v130_v33  ;;  %v243_v37 = vpop.f32.mrb[1].mxu1 }
  0xf9   :  { %169 = vst [vmem:[%s407_s3] sm:$0xff] %v164_v34  ;;  %172 = vst [vmem:[%s407_s3 + $0x18] sm:$0xff] %v167_v36 }
  0xfa   :  { %v120_v38 = vpop.f32.mrb[2].mxu0  ;;  %v135_v39 = vpop.f32.mrb[2].mxu1 }
  0xfb   :  { %v165_v40 = vadd.f32 %v178_v31, %v120_v38  ;;  %v237_v41 = vpop.f32.mrb[3].mxu0  ;;  %v168_v42 = vadd.f32 %v178_v31, %v135_v39  ;;  %v246_v43 = vpop.f32.mrb[3].mxu1 }
  0xfd   :  { %170 = vst [vmem:[%s407_s3 + $0x8] sm:$0xff] %v165_v40  ;;  %173 = vst [vmem:[%s407_s3 + $0x20] sm:$0xff] %v168_v42 }
  0xfe   :  { %v125_v44 = vpop.f32.mrb[4].mxu0 }
  0xff   :  { %v166_v45 = vadd.f32 %v178_v31, %v125_v44  ;;  %v240_v46 = vpop.f32.mrb[5].mxu0 }
 0x101   :  { %171 = vst [vmem:[%s407_s3 + $0x10] sm:$0xff] %v166_v45 }

// kernel: fwd.17
= control target key start
LH: loop header
LB: loop body
LE: loop exit
PB: predicated region body
PF: predicated region fallthrough
CT: control target
= control target key end

     0   :  { %8 = vsyncpa [#allocation4], 0  ;;  %s248_s12 = smov [#allocation3]   ;;  %s295_s0 = inlined_call_operand.vmem [shape: f32[8,128], index: 0, kind: input, shape index: {}]   ;;  %s296_s1 = inlined_call_operand.hbm [shape: f32[128,128], index: 1, kind: input, shape index: {}]   ;;  %s297_s2 = inlined_call_operand.vmem [shape: f32[1,128], index: 2, kind: input, shape index: {}]   ;;  %s298_s3 = inlined_call_operand.vmem [shape: f32[8,128], index: 3, kind: output, shape index: {}]  }
   0x1   :  { %s16_s13 = sshll.u32 %s248_s12, 4  ;;  %s224_s16 = scalar_lea.hbm %s296_s1, 2048  ;;  %s17_s13 = int_to_ptr.vmem [resolvable:$true] %s16_s13 }
   0x2   :  { %p225_p0 = scmp.ne.s32.totalorder %s296_s1, %s224_s16  ;;  %p228_p1 = scmp.lt.u32.totalorder %s224_s16, %s296_s1 }
   0x4   :  { %p230_p2 = pnand %p228_p1, %p225_p0 }
   0x6   :  { %233 = shalt.err (!%p230_p2)
}
   0x7   :  { %s234_s21 = scalar_lea.vmem %s17_s13, 2048  ;;  %p239_p4 = scmp.lt.s32.totalorder %s17_s13, %s17_s13 }
   0x8   :  { %p235_p3 = scmp.ne.s32.totalorder %s17_s13, %s234_s21  ;;  %p240_p5 = scmp.lt.s32.totalorder %s234_s21, %s234_s21 }
   0xa   :  { %p241_p6 = por %p240_p5, %p239_p4 }
   0xc   :  { %p242_p7 = pnand %p241_p6, %p235_p3 }
   0xe   :  { %245 = shalt.err (!%p242_p7)
}
   0xf   :  { %s249_s22 = smov 128   ;;  %s250_s23 = smov 8  }
  0x10   :  { %22 = dma.hbm_to_vmem [thread:$0]  %s296_s1, 2048, %s17_s13, [#allocation4], %s249_s22, %s249_s22, %s250_s23  }
  0x11   :  { %246 = dma.done.wait [#allocation4], 2048  }
  0x12   :  { %247 = vsyncadd [#allocation4], 4294965248  ;;  %v251_v0 = vmov 0.0|0.0   ;;  %vm252_vm0 = vmmov 0   ;;  %v253_v1 = vmov 0.0   ;;  %v35_v2 = vld [vmem:[#allocation3] sm:$0xff] }
  0x13   :  { %194 = vmatprep.subr.bf16.mxu0 %v251_v0  ;;  %191 = vmatprep.mubr.msk.f32.mxu0 %vm252_vm0, %v253_v1  ;;  %v36_v3 = vld [vmem:[#allocation3 + $0x8] sm:$0xff]  ;;  %v37_v4 = vld [vmem:[#allocation3 + $0x10] sm:$0xff]  ;;  %v38_v6 = vld [vmem:[#allocation3 + $0x18] sm:$0xff] }
  0x14   :  { %v195_v5 = vpack.c.bf16 %v36_v3, %v35_v2  ;;  %v198_v7 = vpack.c.bf16 %v38_v6, %v37_v4  ;;  %v39_v8 = vld [vmem:[#allocation3 + $0x20] sm:$0xff]  ;;  %v40_v9 = vld [vmem:[#allocation3 + $0x28] sm:$0xff]  ;;  %v41_v11 = vld [vmem:[#allocation3 + $0x30] sm:$0xff] }
  0x15   :  { %v201_v10 = vpack.c.bf16 %v40_v9, %v39_v8  ;;  %v42_v12 = vld [vmem:[#allocation3 + $0x38] sm:$0xff]  ;;  %v43_v14 = vld [vmem:[#allocation3 + $0x40] sm:$0xff]  ;;  %v44_v15 = vld [vmem:[#allocation3 + $0x48] sm:$0xff] }
  0x16   :  { %196 = vmatpush3.bf16.msra.mxu0 %v195_v5  ;;  %v204_v13 = vpack.c.bf16 %v42_v12, %v41_v11  ;;  %v207_v16 = vpack.c.bf16 %v44_v15, %v43_v14  ;;  %v45_v17 = vld [vmem:[#allocation3 + $0x50] sm:$0xff]  ;;  %v46_v18 = vld [vmem:[#allocation3 + $0x58] sm:$0xff]  ;;  %v47_v20 = vld [vmem:[#allocation3 + $0x60] sm:$0xff] }
  0x17   :  { %197 = vmatprep.subr.bf16.mxu0 %v251_v0  ;;  %v210_v19 = vpack.c.bf16 %v46_v18, %v45_v17  ;;  %v48_v21 = vld [vmem:[#allocation3 + $0x68] sm:$0xff]  ;;  %v49_v23 = vld [vmem:[#allocation3 + $0x70] sm:$0xff]  ;;  %v50_v24 = vld [vmem:[#allocation3 + $0x78] sm:$0xff] }
  0x18   :  { %v213_v22 = vpack.c.bf16 %v48_v21, %v47_v20  ;;  %v216_v25 = vpack.c.bf16 %v50_v24, %v49_v23  ;;  %v34_v26 = vld [vmem:[%s295_s0] sm:$0xff] }
  0x19   :  { %v141_v27 = vld [vmem:[%s297_s2] ss:$0 sm:$0xff] }
  0x1a   :  { %199 = vmatpush3.bf16.msra.mxu0 %v198_v7 }
  0x1b   :  { %200 = vmatprep.subr.bf16.mxu0 %v251_v0 }
  0x1e   :  { %202 = vmatpush3.bf16.msra.mxu0 %v201_v10 }
  0x1f   :  { %203 = vmatprep.subr.bf16.mxu0 %v251_v0 }
  0x22   :  { %205 = vmatpush3.bf16.msra.mxu0 %v204_v13 }
  0x23   :  { %206 = vmatprep.subr.bf16.mxu0 %v251_v0 }
  0x26   :  { %208 = vmatpush3.bf16.msra.mxu0 %v207_v16 }
  0x27   :  { %209 = vmatprep.subr.bf16.mxu0 %v251_v0 }
  0x2a   :  { %211 = vmatpush3.bf16.msra.mxu0 %v210_v19 }
  0x2b   :  { %212 = vmatprep.subr.bf16.mxu0 %v251_v0 }
  0x2e   :  { %214 = vmatpush3.bf16.msra.mxu0 %v213_v22 }
  0x2f   :  { %215 = vmatprep.subr.bf16.mxu0 %v251_v0 }
  0x32   :  { %217 = vmatpush3.bf16.msra.mxu0 %v216_v25 }
  0x35   :  { %192 = vmatmul.mubr.f32.vlgmr.msra.gmra.mrb[0].mxu0 %v34_v26 }
 0x108   :  { %v117_v28 = vpop.f32.mrb[0].mxu0 }
 0x109   :  { %v134_v29 = vadd.f32 %v141_v27, %v117_v28  ;;  %v193_v30 = vpop.f32.mrb[1].mxu0 }
 0x10b   :  { %135 = vst [vmem:[%s298_s3] sm:$0xff] %v134_v29 }
 0x10c   :  { %140 = vsyncpa [#allocation4], 1 }

// kernel: fwd.21
= control target key start
LH: loop header
LB: loop body
LE: loop exit
PB: predicated region body
PF: predicated region fallthrough
CT: control target
= control target key end

     0   :  { %s2560_s30 = smov 0   ;;  %s2562_s10 = smov 0   ;;  %s3364_s0 = inlined_call_operand.vmem [shape: f32[8,128], index: 0, kind: input, shape index: {}]   ;;  %s3365_s1 = inlined_call_operand.vmem [shape: f32[8,128], index: 1, kind: input, shape index: {}]   ;;  %s3366_s2 = inlined_call_operand.vmem [shape: f32[8,128], index: 2, kind: input, shape index: {}]   ;;  %s3367_s3 = inlined_call_operand.vmem [shape: bf16[64,128], index: 3, kind: input, shape index: {}]   ;;  %s3368_s4 = inlined_call_operand.vmem [shape: s32[1,128], index: 4, kind: input, shape index: {}]   ;;  %s3369_s5 = inlined_call_operand.vmem [shape: s32[1,128], index: 5, kind: input, shape index: {}]   ;;  %s3370_s6 = inlined_call_operand.vmem [shape: s32[128,1], index: 6, kind: input, shape index: {}]   ;;  %s3371_s7 = inlined_call_operand.vmem [shape: f32[8,128], index: 7, kind: input, shape index: {}]   ;;  %s3372_s8 = inlined_call_operand.vmem [shape: f32[8,128], index: 8, kind: output, shape index: {0}]   ;;  %s3373_s9 = inlined_call_operand.vmem [shape: f32[64,128], index: 9, kind: output, shape index: {1}]  }
   0x1   :  { %s2564_s11 = smov 0  }
   0x2 LB: > { %s32_s12 = sadd.s32 1, %s2489_s10  ;;  %p1700_p0 = scmp.ge.s32.totalorder %s2493_s11, 1  ;;  %s2493_s11 = sphi %s2564_s11, %s20_s11   ;;  %s2489_s10 = sphi %s2562_s10, %s3504_s10   ;;  %s2485_s30 = sphi %s2560_s30, %s3503_s30  }
   0x3   : > { %p34_p1 = scmp.ge.s32.totalorder %s32_s12, 2  ;;  %p332_p2 = scmp.lt.s32.totalorder %s2493_s11, 3 }
   0x5   : > { %s3506_s12 = smov (%p34_p1, %s32_s12), 0  ;;  %p333_p3 = pnand %p1700_p0, %p332_p2 }
   0x7   : > { %336 = sbr.rel (%p333_p3) target bundleno = 1434 (0x59a), region = 52 }
   0xe   : > { %p406_p4 = scmp.eq.s32.totalorder %s2485_s30, 0 }
   0xf   : > { %v2495_v0 = vmov (%p406_p4), -1e+30   ;;  %v2496_v1 = vmov (%p406_p4), 0.0  }
  0x10   : > { %411 = sbr.rel (!%p406_p4) target bundleno = 23 (0x17), region = 56  ;;  %412 = vst [vmem:[#allocation2] sm:$0xff] (%p406_p4), %v2495_v0  ;;  %413 = vst [vmem:[#allocation3] sm:$0xff] (%p406_p4), %v2496_v1 }
  0x11   : > { %414 = vst [vmem:[%s3373_s9] sm:$0xff] (%p406_p4), %v2496_v1  ;;  %415 = vst [vmem:[%s3373_s9 + $0x8] sm:$0xff] (%p406_p4), %v2496_v1 }
  0x12   : > { %416 = vst [vmem:[%s3373_s9 + $0x10] sm:$0xff] (%p406_p4), %v2496_v1  ;;  %417 = vst [vmem:[%s3373_s9 + $0x18] sm:$0xff] (%p406_p4), %v2496_v1 }
  0x13   : > { %418 = vst [vmem:[%s3373_s9 + $0x20] sm:$0xff] (%p406_p4), %v2496_v1  ;;  %419 = vst [vmem:[%s3373_s9 + $0x28] sm:$0xff] (%p406_p4), %v2496_v1 }
  0x14   : > { %420 = vst [vmem:[%s3373_s9 + $0x30] sm:$0xff] (%p406_p4), %v2496_v1  ;;  %421 = vst [vmem:[%s3373_s9 + $0x38] sm:$0xff] (%p406_p4), %v2496_v1 }
  0x17 PF: > { %v440_v2 = vlaneseq  ;;  %v2497_v3 = vmov 0.0|0.0   ;;  %v2610_v4 = vld [vmem:[%s3369_s5] ss:$0 sm:$0xff]  ;;  %vm2498_vm0 = vmmov 0   ;;  %v2499_v7 = vmov 0.0   ;;  %v426_v8 = vld [vmem:[%s3370_s6 + $0x10] sm:$0xff] }
  0x18   : > { %2274 = vmatprep.subr.bf16.mxu0 %v2497_v3  ;;  %2298 = vmatprep.subr.bf16.mxu1 %v2497_v3  ;;  %v2618_v6 = vld [vmem:[%s3368_s4] ss:$0 sm:$0xff]  ;;  %v2500_v10 = vmov 0   ;;  %v427_v15 = vld [vmem:[%s3370_s6 + $0x18] sm:$0xff]  ;;  %v425_v18 = vld [vmem:[%s3370_s6 + $0x8] sm:$0xff]  ;;  %v3401_v20 = vmov 0 }
  0x19   : > { %v2613_v5 = vshrl.u32 %v440_v2, 7  ;;  %2048 = vmatprep.mubr.msk.f32.mxu0 %vm2498_vm0, %v2499_v7  ;;  %2083 = vmatprep.mubr.msk.f32.mxu1 %vm2498_vm0, %v2499_v7  ;;  %v424_v9 = vld [vmem:[%s3370_s6] sm:$0xff]  ;;  %v2501_v19 = vmov 1.0|1.0   ;;  %v3405_v22 = vmov 0  ;;  %v429_v25 = vld [vmem:[%s3370_s6 + $0x28] sm:$0xff] }
  0x1a   : > { %2458 = vset.pattern.permute.xlu1 %v2500_v10  ;;  %2457 = vset.pattern.permute.xlu0 %v2500_v10  ;;  %v428_v26 = vld [vmem:[%s3370_s6 + $0x20] sm:$0xff]  ;;  %v3409_v28 = vmov 0  ;;  %v431_v31 = vld [vmem:[%s3370_s6 + $0x38] sm:$0xff]  ;;  %v430_v32 = vld [vmem:[%s3370_s6 + $0x30] sm:$0xff]  ;;  %v3413_v34 = vmov 0  ;;  %v3417_v40 = vmov 0 }
  0x1b   : > { %3398 = vst [vmem:[#allocation4_spill] sm:$0xff] %v2613_v5  ;;  %v442_v11 = vadd.s32 8, %v2613_v5  ;;  %vm515_vm1 = vcmp.eq.s32.totalorder %v2613_v5, %v2610_v4  ;;  %v443_v12 = vadd.s32 16, %v2613_v5  ;;  %570 = vperm.xlu1 %2458, %v426_v8   ;;  %564 = vperm.xlu0 %2457, %v424_v9   ;;  %vm463_vm2 = vcmp.eq.s32.totalorder %v2613_v5, %v2618_v6  ;;  %v433_v37 = vld [vmem:[%s3370_s6 + $0x48] sm:$0xff]  ;;  %v432_v38 = vld [vmem:[%s3370_s6 + $0x40] sm:$0xff]  ;;  %v435_v43 = vld [vmem:[%s3370_s6 + $0x58] sm:$0xff] }
  0x1c   : > { %v444_v13 = vadd.s32 24, %v2613_v5  ;;  %v445_v14 = vadd.s32 32, %v2613_v5  ;;  %v446_v16 = vadd.s32 40, %v2613_v5  ;;  %v447_v23 = vadd.s32 48, %v2613_v5  ;;  %v434_v44 = vld [vmem:[%s3370_s6 + $0x50] sm:$0xff]  ;;  %v437_v49 = vld [vmem:[%s3370_s6 + $0x68] sm:$0xff] }
  0x1d   : > { %vm516_vm3 = vcmp.eq.s32.totalorder %v442_v11, %v2610_v4  ;;  %vm464_vm4 = vcmp.eq.s32.totalorder %v442_v11, %v2618_v6  ;;  %vm517_vm5 = vcmp.eq.s32.totalorder %v443_v12, %v2610_v4  ;;  %vm465_vm8 = vcmp.eq.s32.totalorder %v443_v12, %v2618_v6  ;;  %v436_v50 = vld [vmem:[%s3370_s6 + $0x60] sm:$0xff]  ;;  %v439_v53 = vld [vmem:[%s3370_s6 + $0x78] sm:$0xff]  ;;  %v438_v54 = vld [vmem:[%s3370_s6 + $0x70] sm:$0xff]  ;;  %p1784_p5 = scmp.ne.s32.totalorder %s2485_s30, 0 }
  0x1e   : > { %vm2641_vm6 = vmpackc.low %vm516_vm3, %vm515_vm1  ;;  %vm518_vm7 = vcmp.eq.s32.totalorder %v444_v13, %v2610_v4  ;;  %vm466_vm9 = vcmp.eq.s32.totalorder %v444_v13, %v2618_v6  ;;  %vm519_vm13 = vcmp.eq.s32.totalorder %v445_v14, %v2610_v4  ;;  %vm520_vm14 = vcmp.eq.s32.totalorder %v446_v16, %v2610_v4  ;;  %v660_v57 = vld [vmem:[%s3365_s1] sm:$0xff] }
  0x1f   : > { %2276 = vmatpush3.bf16.msk.msra.mxu0 %vm2641_vm6, %v2501_v19  ;;  %vm2657_vm10 = vmpackc.low %vm464_vm4, %vm463_vm2  ;;  %573 = vperm.xlu1 %2458, %v427_v15   ;;  %v448_v24 = vadd.s32 56, %v2613_v5  ;;  %vm467_vm15 = vcmp.eq.s32.totalorder %v445_v14, %v2618_v6  ;;  %vm468_vm0 = vcmp.eq.s32.totalorder %v446_v16, %v2618_v6  ;;  %vm521_vm3 = vcmp.eq.s32.totalorder %v447_v23, %v2610_v4  ;;  %v659_v58 = vld [vmem:[%s3364_s0] sm:$0xff] }
  0x20   : > { %v3402_v20 = vsel %vm2657_vm10, 4294967295, %v3401_v20  ;;  %2300 = vmatpush3.bf16.msk.msra.mxu1 %vm2657_vm10, %v2501_v19  ;;  %2277 = vmatprep.subr.bf16.mxu0 %v2497_v3  ;;  %vm2665_vm11 = vmpackc.low %vm518_vm7, %vm517_vm5  ;;  %v449_v29 = vadd.s32 64, %v2613_v5  ;;  %v450_v30 = vadd.s32 72, %v2613_v5  ;;  %vm469_vm5 = vcmp.eq.s32.totalorder %v447_v23, %v2618_v6  ;;  %v801_v15 = vld [vmem:[%s3366_s2] sm:$0xff] }
  0x21   : > { %2301 = vmatprep.subr.bf16.mxu1 %v2497_v3  ;;  %vm2670_vm12 = vmpackc.low %vm466_vm9, %vm465_vm8  ;;  %567 = vperm.xlu0 %2457, %v425_v18   ;;  %vm522_vm4 = vcmp.eq.s32.totalorder %v448_v24, %v2610_v4  ;;  %vm470_vm7 = vcmp.eq.s32.totalorder %v448_v24, %v2618_v6  ;;  %v451_v35 = vadd.s32 80, %v2613_v5  ;;  %v452_v36 = vadd.s32 88, %v2613_v5 }
  0x22   : > { %v3406_v22 = vsel %vm2670_vm12, 4294967295, %v3405_v22  ;;  %vm2693_vm1 = vmpackc.low %vm520_vm14, %vm519_vm13  ;;  %vm523_vm13 = vcmp.eq.s32.totalorder %v449_v29, %v2610_v4  ;;  %vm524_vm14 = vcmp.eq.s32.totalorder %v450_v30, %v2610_v4  ;;  %v453_v41 = vadd.s32 96, %v2613_v5 }
  0x23   : > { %2279 = vmatpush3.bf16.msk.msra.mxu0 %vm2665_vm11, %v2501_v19  ;;  %vm2698_vm2 = vmpackc.low %vm468_vm0, %vm467_vm15  ;;  %579 = vperm.xlu1 %2458, %v429_v25   ;;  %vm471_vm15 = vcmp.eq.s32.totalorder %v449_v29, %v2618_v6  ;;  %vm472_vm0 = vcmp.eq.s32.totalorder %v450_v30, %v2618_v6  ;;  %v454_v42 = vadd.s32 104, %v2613_v5  ;;  %v3421_v46 = vmov 0 }
  0x24   : > { %2303 = vmatpush3.bf16.msk.msra.mxu1 %vm2670_vm12, %v2501_v19  ;;  %2280 = vmatprep.subr.bf16.mxu0 %v2497_v3  ;;  %v3410_v28 = vsel %vm2698_vm2, 4294967295, %v3409_v28  ;;  %vm2721_vm8 = vmpackc.low %vm522_vm4, %vm521_vm3  ;;  %v455_v47 = vadd.s32 112, %v2613_v5  ;;  %v456_v48 = vadd.s32 120, %v2613_v5  ;;  %v3429_v56 = vmov 0 }
  0x25   : > { %2304 = vmatprep.subr.bf16.mxu1 %v2497_v3  ;;  %576 = vperm.xlu0 %2457, %v428_v26   ;;  %vm2726_vm9 = vmpackc.low %vm470_vm7, %vm469_vm5  ;;  %vm525_vm5 = vcmp.eq.s32.totalorder %v451_v35, %v2610_v4  ;;  %vm526_vm7 = vcmp.eq.s32.totalorder %v452_v36, %v2610_v4  ;;  %v2853_v59 = vand.u32 127, %v440_v2  ;;  %v811_v26 = vsub.s32 (!%p1784_p5), 0, %v2613_v5 }
  0x26   : > { %v3414_v34 = vsel %vm2726_vm9, 4294967295, %v3413_v34  ;;  %vm2749_vm3 = vmpackc.low %vm524_vm14, %vm523_vm13  ;;  %vm473_vm13 = vcmp.eq.s32.totalorder %v451_v35, %v2618_v6  ;;  %vm474_vm14 = vcmp.eq.s32.totalorder %v452_v36, %v2618_v6  ;;  %vm530_vm12 = vcmp.eq.s32.totalorder %v456_v48, %v2610_v4 }
  0x27   : > { %2282 = vmatpush3.bf16.msk.msra.mxu0 %vm2693_vm1, %v2501_v19  ;;  %585 = vperm.xlu1 %2458, %v431_v31   ;;  %vm2754_vm4 = vmpackc.low %vm472_vm0, %vm471_vm15  ;;  %vm477_vm10 = vcmp.eq.s32.totalorder %v455_v47, %v2618_v6  ;;  %v878_v30 = vsub.s32 (!%p1784_p5), 1, %v2613_v5  ;;  %v3392_v35 = vmov (!%p1784_p5), 1.0|1.0   ;;  %v2505_v36 = vmov (!%p1784_p5), 0.0  }
  0x28   : > { %2306 = vmatpush3.bf16.msk.msra.mxu1 %vm2698_vm2, %v2501_v19  ;;  %2283 = vmatprep.subr.bf16.mxu0 %v2497_v3  ;;  %v3418_v40 = vsel %vm2754_vm4, 4294967295, %v3417_v40  ;;  %vm2777_vm15 = vmpackc.low %vm526_vm7, %vm525_vm5  ;;  %vm528_vm2 = vcmp.eq.s32.totalorder %v454_v42, %v2610_v4  ;;  %vm475_vm5 = vcmp.eq.s32.totalorder %v453_v41, %v2618_v6  ;;  %vm476_vm7 = vcmp.eq.s32.totalorder %v454_v42, %v2618_v6 }
  0x29   : > { %2307 = vmatprep.subr.bf16.mxu1 %v2497_v3  ;;  %582 = vperm.xlu0 %2457, %v430_v32   ;;  %vm2782_vm0 = vmpackc.low %vm474_vm14, %vm473_vm13  ;;  %v3390_v32 = vmov (!%p1784_p5), 0.0|0.0  }
  0x2a   : > { %v3422_v46 = vsel %vm2782_vm0, 4294967295, %v3421_v46  ;;  %vm2810_vm14 = vmpackc.low %vm476_vm7, %vm475_vm5 }
  0x2b   : > { %2285 = vmatpush3.bf16.msk.msra.mxu0 %vm2721_vm8, %v2501_v19  ;;  %591 = vperm.xlu1 %2458, %v433_v37  }
  0x2c   : > { %2309 = vmatpush3.bf16.msk.msra.mxu1 %vm2726_vm9, %v2501_v19  ;;  %2286 = vmatprep.subr.bf16.mxu0 %v2497_v3  ;;  %vm527_vm9 = vcmp.eq.s32.totalorder %v453_v41, %v2610_v4 }
  0x2d   : > { %2310 = vmatprep.subr.bf16.mxu1 %v2497_v3  ;;  %588 = vperm.xlu0 %2457, %v432_v38   ;;  %vm2805_vm13 = vmpackc.low %vm528_vm2, %vm527_vm9 }
  0x2f   : > { %2288 = vmatpush3.bf16.msk.msra.mxu0 %vm2749_vm3, %v2501_v19  ;;  %597 = vperm.xlu1 %2458, %v435_v43  }
  0x30   : > { %2312 = vmatpush3.bf16.msk.msra.mxu1 %vm2754_vm4, %v2501_v19  ;;  %2289 = vmatprep.subr.bf16.mxu0 %v2497_v3  ;;  %vm529_vm4 = vcmp.eq.s32.totalorder %v455_v47, %v2610_v4 }
  0x31   : > { %2313 = vmatprep.subr.bf16.mxu1 %v2497_v3  ;;  %594 = vperm.xlu0 %2457, %v434_v44   ;;  %vm2831_vm2 = vmpackc.low %vm530_vm12, %vm529_vm4 }
  0x33   : > { %2291 = vmatpush3.bf16.msk.msra.mxu0 %vm2777_vm15, %v2501_v19  ;;  %603 = vperm.xlu1 %2458, %v437_v49  }
  0x34   : > { %2315 = vmatpush3.bf16.msk.msra.mxu1 %vm2782_vm0, %v2501_v19  ;;  %2292 = vmatprep.subr.bf16.mxu0 %v2497_v3  ;;  %vm478_vm0 = vcmp.eq.s32.totalorder %v456_v48, %v2618_v6 }
  0x35   : > { %2316 = vmatprep.subr.bf16.mxu1 %v2497_v3  ;;  %600 = vperm.xlu0 %2457, %v436_v50   ;;  %vm2836_vm9 = vmpackc.low %vm478_vm0, %vm477_vm10 }
  0x36   : > { %v3430_v56 = vsel %vm2836_vm9, 4294967295, %v3429_v56 }
  0x37   : > { %2294 = vmatpush3.bf16.msk.msra.mxu0 %vm2805_vm13, %v2501_v19  ;;  %3431 = vst [vmem:[#allocation5_spill] sm:$0xff] %v3430_v56  ;;  %609 = vperm.xlu1 %2458, %v439_v53  }
  0x38   : > { %2318 = vmatpush3.bf16.msk.msra.mxu1 %vm2810_vm14, %v2501_v19  ;;  %2295 = vmatprep.subr.bf16.mxu0 %v2497_v3 }
  0x39   : > { %2319 = vmatprep.subr.bf16.mxu1 %v2497_v3  ;;  %606 = vperm.xlu0 %2457, %v438_v54  }
  0x3b   : > { %2297 = vmatpush3.bf16.msk.msra.mxu0 %vm2831_vm2, %v2501_v19 }
  0x3c   : > { %2321 = vmatpush3.bf16.msk.msra.mxu1 %vm2836_vm9, %v2501_v19  ;;  %2322 = vmatprep.subr.bf16.mxu0 (!%p1784_p5), %v3390_v32 }
  0x3d   : > { %2346 = vmatprep.subr.bf16.mxu1 (!%p1784_p5), %v3390_v32 }
  0x3e   : > { %2049 = vmatmul.mubr.f32.vlgmr.msra.gmra.mrb[0].mxu0 %v660_v57 }
  0x3f   : > { %2084 = vmatmul.mubr.f32.vlgmr.msra.gmra.mrb[0].mxu1 %v659_v58  ;;  %2324 = vmatpush3.bf16.msk.msra.mxu0 (!%p1784_p5), %vm2641_vm6, %v3392_v35 }
  0x40   : > { %2325 = vmatprep.subr.bf16.mxu0 (!%p1784_p5), %v3390_v32 }
  0x43   : > { %2327 = vmatpush3.bf16.msk.msra.mxu0 (!%p1784_p5), %vm2665_vm11, %v3392_v35 }
  0x44   : > { %2328 = vmatprep.subr.bf16.mxu0 (!%p1784_p5), %v3390_v32 }
  0x47   : > { %2330 = vmatpush3.bf16.msk.msra.mxu0 (!%p1784_p5), %vm2693_vm1, %v3392_v35 }
  0x48   : > { %2331 = vmatprep.subr.bf16.mxu0 (!%p1784_p5), %v3390_v32 }
  0x4b   : > { %2333 = vmatpush3.bf16.msk.msra.mxu0 (!%p1784_p5), %vm2721_vm8, %v3392_v35 }
  0x4c   : > { %2334 = vmatprep.subr.bf16.mxu0 (!%p1784_p5), %v3390_v32 }
  0x4f   : > { %2336 = vmatpush3.bf16.msk.msra.mxu0 (!%p1784_p5), %vm2749_vm3, %v3392_v35 }
  0x50   : > { %2337 = vmatprep.subr.bf16.mxu0 (!%p1784_p5), %v3390_v32 }
  0x53   : > { %2339 = vmatpush3.bf16.msk.msra.mxu0 (!%p1784_p5), %vm2777_vm15, %v3392_v35 }
  0x54   : > { %2340 = vmatprep.subr.bf16.mxu0 (!%p1784_p5), %v3390_v32 }
  0x57   : > { %2342 = vmatpush3.bf16.msk.msra.mxu0 (!%p1784_p5), %vm2805_vm13, %v3392_v35 }
  0x58   : > { %2343 = vmatprep.subr.bf16.mxu0 (!%p1784_p5), %v3390_v32 }
  0x5b   : > { %2345 = vmatpush3.bf16.msk.msra.mxu0 (!%p1784_p5), %vm2831_vm2, %v3392_v35 }
  0x9a   : > { %v2855_v60 = vpop.permute.xlu1 %570  ;;  %v2857_v61 = vpop.permute.xlu0 %564 }
  0x9b   : > { %vm3389_vm12 = vcmp.eq.s32.totalorder %v2853_v59, %v2857_v61  ;;  %vm3432_vm4 = vcmp.eq.s32.totalorder (!%p1784_p5), %v2853_v59, %v2855_v60 }
  0x9e   : > { %v2863_v62 = vpop.permute.xlu1 %573 }
  0xa0   : > { %v2867_v63 = vpop.permute.xlu0 %567 }
  0xa1   : > { %vm3388_vm0 = vcmp.eq.s32.totalorder %v2853_v59, %v2867_v63 }
  0xa2   : > { %v2871_v0 = vpop.permute.xlu1 %579  ;;  %vm2347_vm10 = vmpackc.low (!%p1784_p5), %vm3388_vm0, %vm3389_vm12 }
  0xa3   : > { %2348 = vmatpush3.bf16.msk.msra.mxu1 (!%p1784_p5), %vm2347_vm10, %v3392_v35  ;;  %vm3435_vm0 = vcmp.eq.s32.totalorder (!%p1784_p5), %v2853_v59, %v2871_v0 }
  0xa4   : > { %v2875_v1 = vpop.permute.xlu0 %576  ;;  %2349 = vmatprep.subr.bf16.mxu1 (!%p1784_p5), %v3390_v32 }
  0xa5   : > { %vm3434_vm9 = vcmp.eq.s32.totalorder (!%p1784_p5), %v2853_v59, %v2875_v1 }
  0xa6   : > { %v2879_v2 = vpop.permute.xlu1 %585  ;;  %vm2353_vm10 = vmpackc.low (!%p1784_p5), %vm3435_vm0, %vm3434_vm9  ;;  %vm3438_vm9 = vcmp.eq.s32.totalorder (!%p1784_p5), %v2853_v59, %v2855_v60 }
  0xa8   : > { %v2883_v3 = vpop.permute.xlu0 %582 }
  0xa9   : > { %vm3436_vm12 = vcmp.eq.s32.totalorder (!%p1784_p5), %v2853_v59, %v2883_v3 }
  0xaa   : > { %v2887_v4 = vpop.permute.xlu1 %591 }
  0xac   : > { %v2891_v6 = vpop.permute.xlu0 %588 }
  0xae   : > { %v2895_v7 = vpop.permute.xlu1 %597 }
  0xb0   : > { %v2899_v8 = vpop.permute.xlu0 %594 }
  0xb2   : > { %v2903_v9 = vpop.permute.xlu1 %603 }
  0xb4   : > { %v2907_v10 = vpop.permute.xlu0 %600 }
  0xb6   : > { %v2911_v11 = vpop.permute.xlu1 %609 }
  0xb8   : > { %v2915_v12 = vpop.permute.xlu0 %606 }
 0x111   : > { %v727_v13 = vpop.f32.mrb[0].mxu0 }
 0x112   : > { %v797_v14 = vpop.f32.mrb[0].mxu1  ;;  %v2050_v16 = vpop.f32.mrb[1].mxu0 }
 0x113   : > { %v798_v18 = vadd.f32 %v797_v14, %v727_v13  ;;  %v2085_v19 = vpop.f32.mrb[1].mxu1  ;;  %808 = sbr.rel (%p1784_p5) target bundleno = 922 (0x39a), region = 60 }
 0x115   : > { %v802_v23 = vadd.f32 %v801_v15, %v798_v18 }
 0x117   : > { %vm803_vm7 = vcmp.gt.f32.partialorder %v802_v23, 0.0  ;;  %v804_v24 = vmul.f32 0.2, %v802_v23 }
 0x119   : > { %v2922_v25 = vsel %vm803_vm7, %v802_v23, %v804_v24  ;;  %vm2504_vm7 = vmmov (!%p1784_p5), 0  }
 0x11a   : > { %v812_v29 = vrot.slane %v2922_v25, %v811_v26  ;;  %v879_v31 = vrot.slane %v2922_v25, %v878_v30  ;;  %2118 = vmatprep.mubr.msk.f32.mxu0 %vm2504_vm7, %v2505_v36  ;;  %2153 = vmatprep.mubr.msk.f32.mxu1 %vm2504_vm7, %v2505_v36  ;;  %vm3433_vm7 = vcmp.eq.s32.totalorder %v2853_v59, %v2863_v62 }
 0x11b   : > { %vm2350_vm5 = vmpackc.low %vm3433_vm7, %vm3432_vm4  ;;  %vm3437_vm4 = vcmp.eq.s32.totalorder %v2853_v59, %v2879_v2 }
 0x11c   : > { %822 = vbcast.lane.b32.xlu1 %v812_v29, 272  ;;  %814 = vbcast.lane.b32.xlu0 %v812_v29, 256  ;;  %vm3440_vm0 = vmmov %vm3433_vm7  ;;  %vm3441_vm7 = vcmp.eq.s32.totalorder %v2853_v59, %v2867_v63 }
 0x11d   : > { %2351 = vmatpush3.bf16.msk.msra.mxu1 %vm2350_vm5, %v3392_v35  ;;  %vm2356_vm5 = vmpackc.low %vm3437_vm4, %vm3436_vm12  ;;  %vm3439_vm12 = vcmp.eq.s32.totalorder %v2853_v59, %v2857_v61  ;;  %vm3443_vm4 = vcmp.eq.s32.totalorder %v2853_v59, %v2875_v1 }
 0x11e   : > { %2352 = vmatprep.subr.bf16.mxu1 %v3390_v32 }
 0x120   : > { %826 = vbcast.lane.b32.xlu1 %v812_v29, 280  ;;  %818 = vbcast.lane.b32.xlu0 %v812_v29, 264 }
 0x121   : > { %2354 = vmatpush3.bf16.msk.msra.mxu1 %vm2353_vm10, %v3392_v35  ;;  %vm3442_vm10 = vcmp.eq.s32.totalorder %v2853_v59, %v2871_v0 }
 0x122   : > { %2355 = vmatprep.subr.bf16.mxu1 %v3390_v32 }
 0x124   : > { %885 = vbcast.lane.b32.xlu1 %v879_v31, 264  ;;  %881 = vbcast.lane.b32.xlu0 %v879_v31, 256 }
 0x125   : > { %2357 = vmatpush3.bf16.msk.msra.mxu1 %vm2356_vm5, %v3392_v35  ;;  %vm3444_vm5 = vmmov %vm3441_vm7 }
 0x126   : > { %2358 = vmatprep.subr.bf16.mxu1 %v3390_v32 }
 0x128   : > { %893 = vbcast.lane.b32.xlu1 %v879_v31, 280  ;;  %889 = vbcast.lane.b32.xlu0 %v879_v31, 272 }
 0x12c   : > { %834 = vbcast.lane.b32.xlu1 %v812_v29, 296  ;;  %830 = vbcast.lane.b32.xlu0 %v812_v29, 288 }
 0x130   : > { %901 = vbcast.lane.b32.xlu1 %v879_v31, 296  ;;  %897 = vbcast.lane.b32.xlu0 %v879_v31, 288 }
 0x134   : > { %842 = vbcast.lane.b32.xlu1 %v812_v29, 312  ;;  %838 = vbcast.lane.b32.xlu0 %v812_v29, 304 }
 0x138   : > { %909 = vbcast.lane.b32.xlu1 %v879_v31, 312  ;;  %905 = vbcast.lane.b32.xlu0 %v879_v31, 304 }
 0x13c   : > { %850 = vbcast.lane.b32.xlu1 %v812_v29, 328  ;;  %846 = vbcast.lane.b32.xlu0 %v812_v29, 320 }
 0x140   : > { %917 = vbcast.lane.b32.xlu1 %v879_v31, 328  ;;  %913 = vbcast.lane.b32.xlu0 %v879_v31, 320 }
 0x144   : > { %858 = vbcast.lane.b32.xlu1 %v812_v29, 344  ;;  %854 = vbcast.lane.b32.xlu0 %v812_v29, 336 }
 0x148   : > { %925 = vbcast.lane.b32.xlu1 %v879_v31, 344  ;;  %921 = vbcast.lane.b32.xlu0 %v879_v31, 336 }
 0x14c   : > { %866 = vbcast.lane.b32.xlu1 %v812_v29, 360  ;;  %862 = vbcast.lane.b32.xlu0 %v812_v29, 352 }
 0x150   : > { %933 = vbcast.lane.b32.xlu1 %v879_v31, 360  ;;  %929 = vbcast.lane.b32.xlu0 %v879_v31, 352 }
 0x154   : > { %874 = vbcast.lane.b32.xlu1 %v812_v29, 376  ;;  %870 = vbcast.lane.b32.xlu0 %v812_v29, 368 }
 0x158   : > { %941 = vbcast.lane.b32.xlu1 %v879_v31, 376  ;;  %937 = vbcast.lane.b32.xlu0 %v879_v31, 368 }
 0x18e   : > { %v823_v37 = vpop.permute.xlu1 %822  ;;  %v815_v38 = vpop.permute.xlu0 %814 }
 0x18f   : > { %v961_v26 = vsel %vm3438_vm9, %v823_v37, -1e+30  ;;  %v959_v29 = vsel %vm3439_vm12, %v815_v38, -1e+30  ;;  %vm3445_vm9 = vmmov %vm3440_vm0  ;;  %vm3446_vm12 = vcmp.eq.s32.totalorder %v2853_v59, %v2855_v60 }
 0x190   : > { %v991_v5 = vmax.f32 %v959_v29, %v961_v26 }
 0x192   : > { %v827_v41 = vpop.permute.xlu1 %826  ;;  %v819_v42 = vpop.permute.xlu0 %818 }
 0x193   : > { %v962_v30 = vsel %vm3440_vm0, %v827_v41, -1e+30  ;;  %v960_v31 = vsel %vm3441_vm7, %v819_v42, -1e+30  ;;  %vm3447_vm0 = vcmp.eq.s32.totalorder %v2853_v59, %v2879_v2  ;;  %vm3448_vm7 = vcmp.eq.s32.totalorder %v2853_v59, %v2883_v3 }
 0x194   : > { %v992_v38 = vmax.f32 %v960_v31, %v962_v30 }
 0x196   : > { %v886_v43 = vpop.permute.xlu1 %885  ;;  %v882_v44 = vpop.permute.xlu0 %881 }
 0x197   : > { %v976_v41 = vsel %vm3444_vm5, %v886_v43, -1e+30  ;;  %vm3451_vm5 = vcmp.eq.s32.totalorder %v2853_v59, %v2875_v1 }
 0x19a   : > { %v894_v47 = vpop.permute.xlu1 %893  ;;  %v890_v48 = vpop.permute.xlu0 %889 }
 0x19b   : > { %v978_v42 = vsel %vm3445_vm9, %v894_v47, -1e+30  ;;  %v977_v56 = vsel %vm3446_vm12, %v890_v48, -1e+30  ;;  %vm3452_vm9 = vcmp.eq.s32.totalorder %v2853_v59, %v2887_v4  ;;  %vm3453_vm12 = vcmp.eq.s32.totalorder %v2853_v59, %v2891_v6 }
 0x19c   : > { %v1013_v31 = vmax.f32 %v976_v41, %v978_v42 }
 0x19e   : > { %v835_v49 = vpop.permute.xlu1 %834  ;;  %v831_v50 = vpop.permute.xlu0 %830 }
 0x19f   : > { %v964_v35 = vsel %vm3442_vm10, %v835_v49, -1e+30  ;;  %v963_v37 = vsel %vm3443_vm4, %v831_v50, -1e+30  ;;  %vm3449_vm10 = vcmp.eq.s32.totalorder %v2853_v59, %v2857_v61  ;;  %vm3450_vm4 = vcmp.eq.s32.totalorder %v2853_v59, %v2871_v0 }
 0x1a0   : > { %v975_v43 = vsel %vm3449_vm10, %v882_v44, -1e+30  ;;  %v994_v26 = vmax.f32 %v992_v38, %v964_v35  ;;  %v993_v29 = vmax.f32 %v991_v5, %v963_v37  ;;  %vm3454_vm10 = vcmp.eq.s32.totalorder %v2853_v59, %v2895_v7 }
 0x1a1   : > { %v1012_v5 = vmax.f32 %v975_v43, %v977_v56 }
 0x1a2   : > { %v902_v53 = vpop.permute.xlu1 %901  ;;  %v898_v54 = vpop.permute.xlu0 %897 }
 0x1a3   : > { %v980_v47 = vsel %vm3450_vm4, %v902_v53, -1e+30  ;;  %vm3455_vm4 = vcmp.eq.s32.totalorder %v2853_v59, %v2899_v8 }
 0x1a4   : > { %v1015_v38 = vmax.f32 %v1013_v31, %v980_v47 }
 0x1a6   : > { %v843_v57 = vpop.permute.xlu1 %842  ;;  %v839_v58 = vpop.permute.xlu0 %838 }
 0x1a7   : > { %v966_v49 = vsel %vm3447_vm0, %v843_v57, -1e+30  ;;  %v965_v50 = vsel %vm3448_vm7, %v839_v58, -1e+30  ;;  %v979_v57 = vsel %vm3451_vm5, %v898_v54, -1e+30  ;;  %vm3456_vm5 = vmmov %vm3452_vm9 }
 0x1a8   : > { %v996_v44 = vmax.f32 %v994_v26, %v966_v49  ;;  %v995_v37 = vmax.f32 %v993_v29, %v965_v50  ;;  %v1014_v56 = vmax.f32 %v1012_v5, %v979_v57 }
 0x1aa   : > { %v910_v13 = vpop.permute.xlu1 %909  ;;  %v906_v14 = vpop.permute.xlu0 %905 }
 0x1ab   : > { %v982_v53 = vsel %vm3447_vm0, %v910_v13, -1e+30  ;;  %v981_v54 = vsel %vm3448_vm7, %v906_v14, -1e+30  ;;  %vm3459_vm0 = vcmp.eq.s32.totalorder %v2853_v59, %v2907_v10  ;;  %vm3460_vm7 = vmmov %vm3454_vm10 }
 0x1ac   : > { %v1017_v43 = vmax.f32 %v1015_v38, %v982_v53  ;;  %v1016_v26 = vmax.f32 %v1014_v56, %v981_v54 }
 0x1ae   : > { %v851_v15 = vpop.permute.xlu1 %850  ;;  %v847_v16 = vpop.permute.xlu0 %846 }
 0x1af   : > { %v968_v58 = vsel %vm3452_vm9, %v851_v15, -1e+30  ;;  %v967_v35 = vsel %vm3453_vm12, %v847_v16, -1e+30  ;;  %vm3457_vm9 = vmmov %vm3453_vm12  ;;  %vm3458_vm12 = vcmp.eq.s32.totalorder %v2853_v59, %v2903_v9 }
 0x1b0   : > { %v998_v41 = vmax.f32 %v996_v44, %v968_v58  ;;  %v997_v42 = vmax.f32 %v995_v37, %v967_v35 }
 0x1b2   : > { %v918_v18 = vpop.permute.xlu1 %917  ;;  %v914_v19 = vpop.permute.xlu0 %913 }
 0x1b3   : > { %v984_v13 = vsel %vm3456_vm5, %v918_v18, -1e+30  ;;  %v983_v14 = vsel %vm3457_vm9, %v914_v19, -1e+30  ;;  %vm3463_vm5 = vmmov %vm3459_vm0  ;;  %vm3464_vm9 = vcmp.eq.s32.totalorder %v2853_v59, %v2911_v11 }
 0x1b4   : > { %v1019_v31 = vmax.f32 %v1017_v43, %v984_v13  ;;  %v1018_v57 = vmax.f32 %v1016_v26, %v983_v14 }
 0x1b6   : > { %v859_v23 = vpop.permute.xlu1 %858  ;;  %v855_v24 = vpop.permute.xlu0 %854 }
 0x1b7   : > { %v970_v15 = vsel %vm3454_vm10, %v859_v23, -1e+30  ;;  %v969_v16 = vsel %vm3455_vm4, %v855_v24, -1e+30  ;;  %vm3461_vm10 = vmmov %vm3455_vm4 }
 0x1b8   : > { %v1000_v29 = vmax.f32 %v998_v41, %v970_v15  ;;  %v999_v47 = vmax.f32 %v997_v42, %v969_v16  ;;  %vm3462_vm4 = vmmov %vm3458_vm12 }
 0x1ba   : > { %v926_v36 = vpop.permute.xlu1 %925  ;;  %v922_v32 = vpop.permute.xlu0 %921 }
 0x1bb   : > { %v986_v18 = vsel %vm3460_vm7, %v926_v36, -1e+30  ;;  %v985_v19 = vsel %vm3461_vm10, %v922_v32, -1e+30  ;;  %vm1035_vm10 = vcmask 1041409  }
 0x1bc   : > { %v1021_v37 = vmax.f32 %v1019_v31, %v986_v18  ;;  %v1020_v53 = vmax.f32 %v1018_v57, %v985_v19 }
 0x1be   : > { %v867_v30 = vpop.permute.xlu1 %866  ;;  %v863_v48 = vpop.permute.xlu0 %862 }
 0x1bf   : > { %v972_v23 = vsel %vm3458_vm12, %v867_v30, -1e+30  ;;  %v971_v24 = vsel %vm3459_vm0, %v863_v48, -1e+30  ;;  %vm3465_vm12 = vcmp.eq.s32.totalorder %v2853_v59, %v2915_v12  ;;  %vm3466_vm0 = vmmov %vm3464_vm9 }
 0x1c0   : > { %v1002_v58 = vmax.f32 %v1000_v29, %v972_v23  ;;  %v1001_v35 = vmax.f32 %v999_v47, %v971_v24  ;;  %vm3467_vm7 = vmmov %vm3465_vm12 }
 0x1c2   : > { %v934_v49 = vpop.permute.xlu1 %933  ;;  %v930_v50 = vpop.permute.xlu0 %929 }
 0x1c3   : > { %v988_v30 = vsel %vm3462_vm4, %v934_v49, -1e+30  ;;  %v987_v44 = vsel %vm3463_vm5, %v930_v50, -1e+30  ;;  %vm1038_vm4 = vcmask 1041408   ;;  %vm3468_vm5 = vcmp.eq.s32.totalorder %v2853_v59, %v2891_v6 }
 0x1c4   : > { %v1023_v15 = vmax.f32 %v1021_v37, %v988_v30  ;;  %v1022_v16 = vmax.f32 %v1020_v53, %v987_v44  ;;  %v3470_v37 = vmov 1.0|1.0   ;;  %v3471_v53 = vmov 0.0|0.0  }
 0x1c6   : > { %v875_v48 = vpop.permute.xlu1 %874  ;;  %v871_v5 = vpop.permute.xlu0 %870 }
 0x1c7   : > { %v974_v36 = vsel %vm3464_vm9, %v875_v48, -1e+30  ;;  %v973_v32 = vsel %vm3465_vm12, %v871_v5, -1e+30  ;;  %v1040_v48 = vld [vmem:[#allocation2] sm:$0xff]  ;;  %vm3469_vm9 = vcmp.eq.s32.totalorder %v2853_v59, %v2887_v4 }
 0x1c8   : > { %v1004_v38 = vmax.f32 %v1002_v58, %v974_v36  ;;  %v1003_v54 = vmax.f32 %v1001_v35, %v973_v32  ;;  %vm2359_vm12 = vmpackc.low %vm3469_vm9, %vm3468_vm5  ;;  %vm3475_vm5 = vcmp.eq.s32.totalorder %v2853_v59, %v2903_v9 }
 0x1c9   : > { %2360 = vmatpush3.bf16.msk.msra.mxu1 %vm2359_vm12, %v3470_v37  ;;  %vm3476_vm12 = vcmp.eq.s32.totalorder %v2853_v59, %v2915_v12 }
 0x1ca   : > { %v1005_v56 = vmax.f32 %v1003_v54, %v1004_v38  ;;  %v942_v41 = vpop.permute.xlu1 %941  ;;  %v938_v42 = vpop.permute.xlu0 %937  ;;  %2361 = vmatprep.subr.bf16.mxu1 %v3471_v53 }
 0x1cb   : > { %v990_v13 = vsel %vm3466_vm0, %v942_v41, -1e+30  ;;  %v989_v49 = vsel %vm3467_vm7, %v938_v42, -1e+30  ;;  %vm3472_vm0 = vcmp.eq.s32.totalorder %v2853_v59, %v2899_v8  ;;  %vm3473_vm7 = vcmp.eq.s32.totalorder %v2853_v59, %v2895_v7 }
 0x1cc   : > { %v1006_v50 = vrot.slane %v1005_v56, 4  ;;  %v1025_v43 = vmax.f32 %v1023_v15, %v990_v13  ;;  %v1024_v14 = vmax.f32 %v1022_v16, %v989_v49  ;;  %v1185_v13 = vld [vmem:[#allocation3] sm:$0xff] }
 0x1ce   : > { %v1007_v23 = vmax.f32 %v1005_v56, %v1006_v50  ;;  %v1026_v24 = vmax.f32 %v1024_v14, %v1025_v43 }
 0x1d0   : > { %v1008_v26 = vrot.slane %v1007_v23, 2  ;;  %v1027_v29 = vrot.slane %v1026_v24, 4 }
 0x1d2   : > { %v1009_v47 = vmax.f32 %v1007_v23, %v1008_v26  ;;  %v1028_v31 = vmax.f32 %v1026_v24, %v1027_v29 }
 0x1d4   : > { %v1029_v18 = vrot.slane %v1028_v31, 2  ;;  %v1010_v19 = vrot.slane %v1009_v47, 1 }
 0x1d6   : > { %v1030_v57 = vmax.f32 %v1028_v31, %v1029_v18  ;;  %v1011_v35 = vmax.f32 %v1009_v47, %v1010_v19 }
 0x1d8   : > { %v1031_v58 = vrot.slane %v1030_v57, 1 }
 0x1da   : > { %v1032_v30 = vmax.f32 %v1030_v57, %v1031_v58 }
 0x1dc   : > { %v1036_v5 = vsel %vm1035_vm10, %v1032_v30, %v1011_v35  ;;  %vm2362_vm10 = vmpackc.low %vm3473_vm7, %vm3472_vm0  ;;  %vm3477_vm0 = vcmp.eq.s32.totalorder %v2853_v59, %v2911_v11 }
 0x1dd   : > { %v1039_v44 = vsel %vm1038_vm4, %v1036_v5, 0.0  ;;  %2363 = vmatpush3.bf16.msk.msra.mxu1 %vm2362_vm10, %v3470_v37  ;;  %vm3474_vm4 = vcmp.eq.s32.totalorder %v2853_v59, %v2907_v10  ;;  %vm2368_vm7 = vmpackc.low %vm3477_vm0, %vm3476_vm12 }
 0x1de   : > { %v1041_v36 = vmax.f32 %v1040_v48, %v1039_v44  ;;  %2364 = vmatprep.subr.bf16.mxu1 %v3471_v53  ;;  %vm2365_vm9 = vmpackc.low %vm3475_vm5, %vm3474_vm4 }
 0x1e0   : > { %2119 = vmatmul.mubr.f32.vlgmr.msra.gmra.mrb[0].mxu0 %v1041_v36  ;;  %v1186_v32 = vsub.f32 %v1040_v48, %v1041_v36  ;;  %1192 = vst [vmem:[#allocation2] sm:$0xff] %v1041_v36 }
 0x1e1   : > { %2366 = vmatpush3.bf16.msk.msra.mxu1 %vm2365_vm9, %v3470_v37 }
 0x1e2   : > { %2367 = vmatprep.subr.bf16.mxu1 %v3471_v53  ;;  %v1187_v41 = vmul.f32 1.442695, %v1186_v32 }
 0x1e5   : > { %2369 = vmatpush3.bf16.msk.msra.mxu1 %vm2368_vm7, %v3470_v37 }
 0x2b3   : > { %v1108_v38 = vpop.f32.mrb[0].mxu0 }
 0x2b4   : > { %v1112_v54 = vsub.f32 %v2922_v25, %v1108_v38  ;;  %v2120_v15 = vpop.f32.mrb[1].mxu0 }
 0x2b6   : > { %v1113_v16 = vmul.f32 1.442695, %v1112_v54 }
 0x2b8   : > { %2459 = vpow2.f32 %v1113_v16 }
 0x2b9   : > { %2461 = vpow2.f32 %v1187_v41 }
 0x2c2   : > { %v2460_v56 = vpop.eup %2459 }
 0x2c3   : > { %1193 = vst [vmem:[%s3372_s8] sm:$0xff] %v2460_v56  ;;  %2154 = vmatmul.mubr.f32.vlgmr.msra.gmra.mrb[0].mxu1 %v2460_v56  ;;  %v2462_v42 = vpop.eup %2461 }
 0x2c4   : > { %v1189_v49 = vmul.f32 %v2462_v42, %v1185_v13 }
 0x396   : > { %v1181_v50 = vpop.f32.mrb[0].mxu1 }
 0x397   : > { %v1190_v43 = vadd.f32 %v1189_v49, %v1181_v50  ;;  %v2155_v14 = vpop.f32.mrb[1].mxu1 }
 0x399   : > { %1191 = vst [vmem:[#allocation3] sm:$0xff] %v1190_v43 }
 0x39a PF: > { %p1817_p6 = scmp.ne.s32.totalorder %s2485_s30, 1 }
 0x39b   : > { %v2506_v23 = vmov (!%p1817_p6), 0.0|0.0   ;;  %v2507_v24 = vmov (!%p1817_p6), 1.0|1.0   ;;  %vm2508_vm10 = vmmov (!%p1817_p6), 0   ;;  %v2509_v26 = vmov (!%p1817_p6), 0.0   ;;  %v1198_v17 = vld [vmem:[#allocation2] sm:$0xff] (!%p1817_p6) }
 0x39c   : > { %1197 = sbr.rel (%p1817_p6) target bundleno = 1434 (0x59a), region = 64  ;;  %2370 = vmatprep.subr.bf16.mxu0 (!%p1817_p6), %v2506_v23  ;;  %2394 = vmatprep.subr.bf16.mxu1 (!%p1817_p6), %v2506_v23  ;;  %v2463_v27 = vld [vmem:[%s3367_s3] sm:$0xff] (!%p1817_p6)   ;;  %v2466_v33 = vld [vmem:[%s3367_s3 + $0x18] sm:$0xff] (!%p1817_p6)   ;;  %vm3488_vm5 = vcmp.eq.s32.totalorder (!%p1817_p6), %v2853_v59, %v2855_v60  ;;  %vm3489_vm9 = vcmp.eq.s32.totalorder (!%p1817_p6), %v2853_v59, %v2863_v62  ;;  %vm3490_vm0 = vcmp.eq.s32.totalorder (!%p1817_p6), %v2853_v59, %v2875_v1  ;;  %v1480_v36 = vld [vmem:[%s3373_s9 + $0x10] sm:$0xff] (!%p1817_p6) }
 0x39d   : > { %2372 = vmatpush3.bf16.msk.msra.mxu0 (!%p1817_p6), %vm2641_vm6, %v2507_v24  ;;  %2396 = vmatpush3.bf16.msk.msra.mxu1 (!%p1817_p6), %vm2641_vm6, %v2507_v24  ;;  %vm3478_vm6 = vnez (!%p1817_p6), %v3402_v20  ;;  %v3484_v20 = vld [vmem:[#allocation5_spill] sm:$0xff] (!%p1817_p6)  ;;  %vm1872_vm12 = vmpackc.low (!%p1817_p6), %vm3489_vm9, %vm3488_vm5  ;;  %vm3491_vm7 = vcmp.eq.s32.totalorder (!%p1817_p6), %v2853_v59, %v2871_v0  ;;  %vm3499_vm5 = vcmp.eq.s32.totalorder (!%p1817_p6), %v2853_v59, %v2903_v9  ;;  %v1345_v55 = vld [vmem:[%s3371_s7] sm:$0xff] (!%p1817_p6) }
 0x39e   : > { %2373 = vmatprep.subr.bf16.mxu0 (!%p1817_p6), %v2506_v23  ;;  %2397 = vmatprep.subr.bf16.mxu1 (!%p1817_p6), %v2506_v23  ;;  %v1346_v60 = vmul.f32 (!%p1817_p6), 0.0, %v1345_v55  ;;  %v3502_v0 = vld [vmem:[#allocation4_spill] sm:$0xff] (!%p1817_p6)  ;;  %v1478_v32 = vld [vmem:[%s3373_s9] sm:$0xff] (!%p1817_p6)  ;;  %v1481_v53 = vld [vmem:[%s3373_s9 + $0x18] sm:$0xff] (!%p1817_p6) }
 0x39f   : > { %2188 = vmatprep.mubr.msk.f32.mxu0 (!%p1817_p6), %vm2508_vm10, %v2509_v26  ;;  %2223 = vmatprep.mubr.msk.f32.mxu1 (!%p1817_p6), %vm2508_vm10, %v2509_v26  ;;  %vm1874_vm10 = vmpackc.low (!%p1817_p6), %vm3491_vm7, %vm3490_vm0  ;;  %vm3501_vm0 = vcmp.eq.s32.totalorder (!%p1817_p6), %v2853_v59, %v2911_v11  ;;  %v1464_v1 = vsub.s32 (!%p1817_p6), 0, %v3502_v0  ;;  %v1472_v11 = vsub.s32 (!%p1817_p6), 1, %v3502_v0  ;;  %v1479_v15 = vld [vmem:[%s3373_s9 + $0x8] sm:$0xff] (!%p1817_p6)  ;;  %v1484_v49 = vld [vmem:[%s3373_s9 + $0x30] sm:$0xff] (!%p1817_p6) }
 0x3a0   : > { %v1269_v21 = vld [vmem:[#allocation3] sm:$0xff] (!%p1817_p6)  ;;  %v1482_v50 = vld [vmem:[%s3373_s9 + $0x20] sm:$0xff] (!%p1817_p6)  ;;  %v1485_v14 = vld [vmem:[%s3373_s9 + $0x38] sm:$0xff] (!%p1817_p6) }
 0x3a1   : > { %2375 = vmatpush3.bf16.msk.msra.mxu0 (!%p1817_p6), %vm2665_vm11, %v2507_v24  ;;  %2399 = vmatpush3.bf16.msk.msra.mxu1 (!%p1817_p6), %vm2665_vm11, %v2507_v24  ;;  %vm3479_vm11 = vnez (!%p1817_p6), %v3406_v22  ;;  %v2464_v22 = vld [vmem:[%s3367_s3 + $0x8] sm:$0xff] (!%p1817_p6)  }
 0x3a2   : > { %2376 = vmatprep.subr.bf16.mxu0 (!%p1817_p6), %v2506_v23  ;;  %2400 = vmatprep.subr.bf16.mxu1 (!%p1817_p6), %v2506_v23  ;;  %v1483_v26 = vld [vmem:[%s3373_s9 + $0x28] sm:$0xff] (!%p1817_p6) }
 0x3a5   : > { %2378 = vmatpush3.bf16.msk.msra.mxu0 %vm2693_vm1, %v2507_v24  ;;  %2402 = vmatpush3.bf16.msk.msra.mxu1 %vm2693_vm1, %v2507_v24  ;;  %vm3480_vm1 = vnez %v3410_v28  ;;  %v2465_v28 = vld [vmem:[%s3367_s3 + $0x10] sm:$0xff]  }
 0x3a6   : > { %2379 = vmatprep.subr.bf16.mxu0 %v2506_v23  ;;  %2403 = vmatprep.subr.bf16.mxu1 %v2506_v23 }
 0x3a9   : > { %2381 = vmatpush3.bf16.msk.msra.mxu0 %vm2721_vm8, %v2507_v24  ;;  %2405 = vmatpush3.bf16.msk.msra.mxu1 %vm2721_vm8, %v2507_v24  ;;  %vm3481_vm8 = vnez %v3414_v34 }
 0x3aa   : > { %2382 = vmatprep.subr.bf16.mxu0 %v2506_v23  ;;  %2406 = vmatprep.subr.bf16.mxu1 %v2506_v23 }
 0x3ad   : > { %2384 = vmatpush3.bf16.msk.msra.mxu0 %vm2749_vm3, %v2507_v24  ;;  %2408 = vmatpush3.bf16.msk.msra.mxu1 %vm2749_vm3, %v2507_v24  ;;  %vm3482_vm3 = vnez %v3418_v40 }
 0x3ae   : > { %2385 = vmatprep.subr.bf16.mxu0 %v2506_v23  ;;  %2409 = vmatprep.subr.bf16.mxu1 %v2506_v23 }
 0x3b1   : > { %2387 = vmatpush3.bf16.msk.msra.mxu0 %vm2777_vm15, %v2507_v24  ;;  %2411 = vmatpush3.bf16.msk.msra.mxu1 %vm2777_vm15, %v2507_v24  ;;  %vm3483_vm15 = vnez %v3422_v46 }
 0x3b2   : > { %2388 = vmatprep.subr.bf16.mxu0 %v2506_v23  ;;  %2412 = vmatprep.subr.bf16.mxu1 %v2506_v23 }
 0x3b5   : > { %2390 = vmatpush3.bf16.msk.msra.mxu0 %vm2805_vm13, %v2507_v24  ;;  %2414 = vmatpush3.bf16.msk.msra.mxu1 %vm2805_vm13, %v2507_v24  ;;  %vm3485_vm13 = vnez %v3484_v20 }
 0x3b6   : > { %2391 = vmatprep.subr.bf16.mxu0 %v2506_v23  ;;  %2415 = vmatprep.subr.bf16.mxu1 %v2506_v23 }
 0x3b9   : > { %2393 = vmatpush3.bf16.msk.msra.mxu0 %vm2831_vm2, %v2507_v24  ;;  %2417 = vmatpush3.bf16.msk.msra.mxu1 %vm2831_vm2, %v2507_v24  ;;  %vm3487_vm2 = vcmp.eq.s32.totalorder %v2853_v59, %v2867_v63 }
 0x3ba   : > { %2226 = vmatprep.subr.msk.bf16.mxu0 %vm3478_vm6, %v2507_v24 }
 0x3bc   : > { %2189 = vmatmul.mubr.f32.vlgmr.msra.gmra.mrb[0].mxu0 %v1198_v17  ;;  %2224 = vmatmul.mubr.f32.vlgmr.msra.gmra.mrb[0].mxu1 %v1269_v21 }
 0x3bd   : > { %2227 = vmatpush3.bf16.msk.msra.mxu0 %vm3478_vm6, %v2507_v24  ;;  %2242 = vmatprep.mubr.bf16.mxu0 %v2463_v27  ;;  %vm3492_vm6 = vcmp.eq.s32.totalorder %v2853_v59, %v2883_v3 }
 0x3be   : > { %2228 = vmatprep.subr.msk.bf16.mxu0 %vm3479_vm11, %v2507_v24 }
 0x3c1   : > { %2229 = vmatpush3.bf16.msk.msra.mxu0 %vm3479_vm11, %v2507_v24  ;;  %vm3493_vm11 = vcmp.eq.s32.totalorder %v2853_v59, %v2879_v2 }
 0x3c2   : > { %2230 = vmatprep.subr.msk.bf16.mxu0 %vm3480_vm1, %v2507_v24 }
 0x3c5   : > { %2231 = vmatpush3.bf16.msk.msra.mxu0 %vm3480_vm1, %v2507_v24  ;;  %vm1876_vm1 = vmpackc.low %vm3493_vm11, %vm3492_vm6 }
 0x3c6   : > { %2232 = vmatprep.subr.msk.bf16.mxu0 %vm3481_vm8, %v2507_v24 }
 0x3c9   : > { %2233 = vmatpush3.bf16.msk.msra.mxu0 %vm3481_vm8, %v2507_v24  ;;  %vm3494_vm8 = vcmp.eq.s32.totalorder %v2853_v59, %v2891_v6 }
 0x3ca   : > { %2234 = vmatprep.subr.msk.bf16.mxu0 %vm3482_vm3, %v2507_v24 }
 0x3cd   : > { %2235 = vmatpush3.bf16.msk.msra.mxu0 %vm3482_vm3, %v2507_v24  ;;  %vm3495_vm3 = vcmp.eq.s32.totalorder %v2853_v59, %v2887_v4 }
 0x3ce   : > { %2236 = vmatprep.subr.msk.bf16.mxu0 %vm3483_vm15, %v2507_v24 }
 0x3d1   : > { %2237 = vmatpush3.bf16.msk.msra.mxu0 %vm3483_vm15, %v2507_v24  ;;  %vm1878_vm15 = vmpackc.low %vm3495_vm3, %vm3494_vm8 }
 0x3d2   : > { %2238 = vmatprep.subr.msk.bf16.mxu0 %vm2810_vm14, %v2507_v24 }
 0x3d5   : > { %2239 = vmatpush3.bf16.msk.msra.mxu0 %vm2810_vm14, %v2507_v24  ;;  %vm3486_vm14 = vcmp.eq.s32.totalorder %v2853_v59, %v2857_v61 }
 0x3d6   : > { %2240 = vmatprep.subr.msk.bf16.mxu0 %vm3485_vm13, %v2507_v24  ;;  %vm1870_vm4 = vmpackc.low %vm3487_vm2, %vm3486_vm14  ;;  %vm3497_vm14 = vcmp.eq.s32.totalorder %v2853_v59, %v2895_v7 }
 0x3d7   : > { %2250 = vmatprep.subr.msk.bf16.mxu1 %vm1870_vm4, %v2507_v24 }
 0x3d8   : > { %2251 = vmatpush3.bf16.msk.msra.mxu1 %vm1870_vm4, %v2507_v24  ;;  %vm3498_vm4 = vcmp.eq.s32.totalorder %v2853_v59, %v2907_v10 }
 0x3d9   : > { %2241 = vmatpush3.bf16.msk.msra.mxu0 %vm3485_vm13, %v2507_v24  ;;  %2252 = vmatprep.subr.msk.bf16.mxu1 %vm1872_vm12, %v2507_v24  ;;  %vm3496_vm13 = vcmp.eq.s32.totalorder %v2853_v59, %v2899_v8  ;;  %vm1882_vm9 = vmpackc.low %vm3499_vm5, %vm3498_vm4 }
 0x3da   : > { %vm1880_vm2 = vmpackc.low %vm3497_vm14, %vm3496_vm13 }
 0x3dc   : > { %2243 = vmatmul.mubr.bf16.vlgmr.msra.gmra.mrb[4].mxu0 %v2464_v22  ;;  %2253 = vmatpush3.bf16.msk.msra.mxu1 %vm1872_vm12, %v2507_v24  ;;  %vm3500_vm12 = vcmp.eq.s32.totalorder %v2853_v59, %v2915_v12 }
 0x3dd   : > { %2246 = vmatprep.mubr.bf16.mxu0 %v2465_v28  ;;  %2254 = vmatprep.subr.msk.bf16.mxu1 %vm1874_vm10, %v2507_v24  ;;  %vm1884_vm7 = vmpackc.low %vm3501_vm0, %vm3500_vm12 }
 0x3e0   : > { %2255 = vmatpush3.bf16.msk.msra.mxu1 %vm1874_vm10, %v2507_v24 }
 0x3e1   : > { %2256 = vmatprep.subr.msk.bf16.mxu1 %vm1876_vm1, %v2507_v24 }
 0x3e4   : > { %2247 = vmatmul.mubr.bf16.gmra.mrb[8].mxu0 %v2466_v33  ;;  %2257 = vmatpush3.bf16.msk.msra.mxu1 %vm1876_vm1, %v2507_v24 }
 0x3e5   : > { %2258 = vmatprep.subr.msk.bf16.mxu1 %vm1878_vm15, %v2507_v24 }
 0x3e8   : > { %2259 = vmatpush3.bf16.msk.msra.mxu1 %vm1878_vm15, %v2507_v24 }
 0x3e9   : > { %2260 = vmatprep.subr.msk.bf16.mxu1 %vm1880_vm2, %v2507_v24 }
 0x3ec   : > { %2261 = vmatpush3.bf16.msk.msra.mxu1 %vm1880_vm2, %v2507_v24 }
 0x3ed   : > { %2262 = vmatprep.subr.msk.bf16.mxu1 %vm1882_vm9, %v2507_v24 }
 0x3f0   : > { %2263 = vmatpush3.bf16.msk.msra.mxu1 %vm1882_vm9, %v2507_v24 }
 0x3f1   : > { %2264 = vmatprep.subr.msk.bf16.mxu1 %vm1884_vm7, %v2507_v24 }
 0x3f4   : > { %2265 = vmatpush3.bf16.msk.msra.mxu1 %vm1884_vm7, %v2507_v24 }
 0x48f   : > { %v1265_v34 = vpop.f32.mrb[0].mxu0  ;;  %v1339_v39 = vpop.f32.mrb[0].mxu1 }
 0x490   : > { %v1270_v40 = vsub.f32 %v2922_v25, %v1265_v34  ;;  %v2190_v45 = vpop.f32.mrb[1].mxu0  ;;  %v1340_v46 = vadd.f32 1e-12, %v1339_v39  ;;  %v2225_v51 = vpop.f32.mrb[1].mxu1 }
 0x492   : > { %v1271_v52 = vmul.f32 1.442695, %v1270_v40  ;;  %2467 = vrcp.f32 %v1340_v46 }
 0x494   : > { %2469 = vpow2.f32 %v1271_v52 }
 0x49c   : > { %v2468_v59 = vpop.eup %2467 }
 0x49e   : > { %v2470_v61 = vpop.eup %2469 }
 0x49f   : > { %v1344_v62 = vmul.f32 %v2470_v61, %v2468_v59 }
 0x4a1   : > { %v1347_v63 = vadd.f32 %v1346_v60, %v1344_v62 }
 0x4a3   : > { %1348 = vst [vmem:[%s3372_s8] sm:$0xff] %v1347_v63  ;;  %v1465_v2 = vrot.slane %v1347_v63, %v1464_v1  ;;  %v1473_v47 = vrot.slane %v1347_v63, %v1472_v11 }
 0x4af   : > { %v2244_v3 = vpop.f32.mrb[4].mxu0 }
 0x4b0   : > { %v1468_v4 = vmul.f32 %v2244_v3, %v1465_v2  ;;  %v1431_v6 = vpop.f32.mrb[5].mxu0 }
 0x4b1   : > { %v1466_v7 = vmul.f32 %v1465_v2, %v1431_v6  ;;  %v2245_v8 = vpop.f32.mrb[6].mxu0 }
 0x4b2   : > { %v1469_v9 = vmul.f32 %v2245_v8, %v1465_v2  ;;  %v1434_v10 = vpop.f32.mrb[7].mxu0 }
 0x4b3   : > { %v1467_v12 = vmul.f32 %v1465_v2, %v1434_v10 }
 0x4b4   : > { %v1487_v25 = vpack.c.bf16 %v1469_v9, %v1468_v4 }
 0x4b5   : > { %v1486_v29 = vpack.c.bf16 %v1467_v12, %v1466_v7 }
 0x4b7   : > { %v2248_v31 = vpop.f32.mrb[8].mxu0  ;;  %2266 = vmatprep.mubr.bf16.mxu1 %v1486_v29 }
 0x4b8   : > { %v1476_v18 = vmul.f32 %v2248_v31, %v1473_v47  ;;  %v1447_v19 = vpop.f32.mrb[9].mxu0  ;;  %2267 = vmatmul.mubr.bf16.vlgmr.msra.gmra.mrb[4].mxu1 %v1487_v25 }
 0x4b9   : > { %v1474_v57 = vmul.f32 %v1473_v47, %v1447_v19  ;;  %v2249_v58 = vpop.f32.mrb[10].mxu0 }
 0x4ba   : > { %v1477_v35 = vmul.f32 %v2249_v58, %v1473_v47  ;;  %v1450_v30 = vpop.f32.mrb[11].mxu0 }
 0x4bb   : > { %v1475_v48 = vmul.f32 %v1473_v47, %v1450_v30 }
 0x4bc   : > { %v1489_v5 = vpack.c.bf16 %v1477_v35, %v1476_v18 }
 0x4bd   : > { %v1488_v44 = vpack.c.bf16 %v1475_v48, %v1474_v57 }
 0x4bf   : > { %2270 = vmatprep.mubr.bf16.mxu1 %v1488_v44 }
 0x4c0   : > { %2271 = vmatmul.mubr.bf16.gmra.mrb[8].mxu1 %v1489_v5 }
 0x58b   : > { %v2268_v37 = vpop.f32.mrb[4].mxu1 }
 0x58c   : > { %v1557_v38 = vadd.f32 %v2268_v37, %v1480_v36  ;;  %v1524_v54 = vpop.f32.mrb[5].mxu1 }
 0x58d   : > { %v1555_v16 = vadd.f32 %v1524_v54, %v1478_v32  ;;  %v2269_v56 = vpop.f32.mrb[6].mxu1 }
 0x58e   : > { %1565 = vst [vmem:[%s3373_s9 + $0x10] sm:$0xff] %v1557_v38  ;;  %v1558_v41 = vadd.f32 %v2269_v56, %v1481_v53  ;;  %v1527_v42 = vpop.f32.mrb[7].mxu1 }
 0x58f   : > { %1563 = vst [vmem:[%s3373_s9] sm:$0xff] %v1555_v16  ;;  %v1556_v13 = vadd.f32 %v1527_v42, %v1479_v15 }
 0x590   : > { %1566 = vst [vmem:[%s3373_s9 + $0x18] sm:$0xff] %v1558_v41 }
 0x591   : > { %1564 = vst [vmem:[%s3373_s9 + $0x8] sm:$0xff] %v1556_v13 }
 0x593   : > { %v2272_v43 = vpop.f32.mrb[8].mxu1 }
 0x594   : > { %v1561_v23 = vadd.f32 %v2272_v43, %v1484_v49  ;;  %v1540_v24 = vpop.f32.mrb[9].mxu1 }
 0x595   : > { %v1559_v17 = vadd.f32 %v1540_v24, %v1482_v50  ;;  %v2273_v21 = vpop.f32.mrb[10].mxu1 }
 0x596   : > { %1569 = vst [vmem:[%s3373_s9 + $0x30] sm:$0xff] %v1561_v23  ;;  %v1562_v27 = vadd.f32 %v2273_v21, %v1485_v14  ;;  %v1543_v20 = vpop.f32.mrb[11].mxu1 }
 0x597   : > { %1567 = vst [vmem:[%s3373_s9 + $0x20] sm:$0xff] %v1559_v17  ;;  %v1560_v22 = vadd.f32 %v1543_v20, %v1483_v26 }
 0x598   : > { %1570 = vst [vmem:[%s3373_s9 + $0x38] sm:$0xff] %v1562_v27 }
 0x599   : > { %1568 = vst [vmem:[%s3373_s9 + $0x28] sm:$0xff] %v1560_v22 }
 0x59a PF: > { %s20_s11 = sadd.s32 1, %s2493_s11   ;;  %s3503_s30 = smov %s2489_s10 }
 0x59b   : > { %p17_p7 = scmp.ge.s32.totalorder %s20_s11, 4   ;;  %s3504_s10 = smov %s3506_s12 }
 0x59d   :  { %19 = sbr.rel (!%p17_p7) target bundleno = 2 (0x2), region = 114 }

// kernel: fwd.24
= control target key start
LH: loop header
LB: loop body
LE: loop exit
PB: predicated region body
PF: predicated region fallthrough
CT: control target
= control target key end

     0   :  { %s2561_s30 = smov 0   ;;  %s2563_s10 = smov 0   ;;  %s3365_s0 = inlined_call_operand.vmem [shape: f32[8,128], index: 0, kind: input, shape index: {}]   ;;  %s3366_s1 = inlined_call_operand.vmem [shape: f32[8,128], index: 1, kind: input, shape index: {}]   ;;  %s3367_s2 = inlined_call_operand.vmem [shape: f32[8,128], index: 2, kind: input, shape index: {}]   ;;  %s3368_s3 = inlined_call_operand.vmem [shape: bf16[64,128], index: 3, kind: input, shape index: {}]   ;;  %s3369_s4 = inlined_call_operand.vmem [shape: s32[1,128], index: 4, kind: input, shape index: {}]   ;;  %s3370_s5 = inlined_call_operand.vmem [shape: s32[1,128], index: 5, kind: input, shape index: {}]   ;;  %s3371_s6 = inlined_call_operand.vmem [shape: s32[128,1], index: 6, kind: input, shape index: {}]   ;;  %s3372_s7 = inlined_call_operand.vmem [shape: f32[8,128], index: 7, kind: input, shape index: {}]   ;;  %s3373_s8 = inlined_call_operand.vmem [shape: f32[8,128], index: 8, kind: output, shape index: {0}]   ;;  %s3374_s9 = inlined_call_operand.vmem [shape: f32[64,128], index: 9, kind: output, shape index: {1}]  }
   0x1   :  { %s2565_s11 = smov 0  }
   0x2 LB: > { %s32_s12 = sadd.s32 1, %s2490_s10  ;;  %p1701_p0 = scmp.ge.s32.totalorder %s2494_s11, 1  ;;  %s2494_s11 = sphi %s2565_s11, %s20_s11   ;;  %s2490_s10 = sphi %s2563_s10, %s3505_s10   ;;  %s2486_s30 = sphi %s2561_s30, %s3504_s30  }
   0x3   : > { %p34_p1 = scmp.ge.s32.totalorder %s32_s12, 2  ;;  %p332_p2 = scmp.lt.s32.totalorder %s2494_s11, 3 }
   0x5   : > { %s3507_s12 = smov (%p34_p1, %s32_s12), 0  ;;  %p333_p3 = pnand %p1701_p0, %p332_p2 }
   0x7   : > { %336 = sbr.rel (%p333_p3) target bundleno = 1434 (0x59a), region = 52 }
   0xe   : > { %p406_p4 = scmp.eq.s32.totalorder %s2486_s30, 0 }
   0xf   : > { %v2496_v0 = vmov (%p406_p4), -1e+30   ;;  %v2497_v1 = vmov (%p406_p4), 0.0  }
  0x10   : > { %411 = sbr.rel (!%p406_p4) target bundleno = 23 (0x17), region = 56  ;;  %412 = vst [vmem:[#allocation2] sm:$0xff] (%p406_p4), %v2496_v0  ;;  %413 = vst [vmem:[#allocation3] sm:$0xff] (%p406_p4), %v2497_v1 }
  0x11   : > { %414 = vst [vmem:[%s3374_s9] sm:$0xff] (%p406_p4), %v2497_v1  ;;  %415 = vst [vmem:[%s3374_s9 + $0x8] sm:$0xff] (%p406_p4), %v2497_v1 }
  0x12   : > { %416 = vst [vmem:[%s3374_s9 + $0x10] sm:$0xff] (%p406_p4), %v2497_v1  ;;  %417 = vst [vmem:[%s3374_s9 + $0x18] sm:$0xff] (%p406_p4), %v2497_v1 }
  0x13   : > { %418 = vst [vmem:[%s3374_s9 + $0x20] sm:$0xff] (%p406_p4), %v2497_v1  ;;  %419 = vst [vmem:[%s3374_s9 + $0x28] sm:$0xff] (%p406_p4), %v2497_v1 }
  0x14   : > { %420 = vst [vmem:[%s3374_s9 + $0x30] sm:$0xff] (%p406_p4), %v2497_v1  ;;  %421 = vst [vmem:[%s3374_s9 + $0x38] sm:$0xff] (%p406_p4), %v2497_v1 }
  0x17 PF: > { %v440_v2 = vlaneseq  ;;  %v2498_v3 = vmov 0.0|0.0   ;;  %v2611_v4 = vld [vmem:[%s3370_s5] ss:$0 sm:$0xff]  ;;  %vm2499_vm0 = vmmov 0   ;;  %v2500_v7 = vmov 0.0   ;;  %v426_v8 = vld [vmem:[%s3371_s6 + $0x10] sm:$0xff] }
  0x18   : > { %2275 = vmatprep.subr.bf16.mxu0 %v2498_v3  ;;  %2299 = vmatprep.subr.bf16.mxu1 %v2498_v3  ;;  %v2619_v6 = vld [vmem:[%s3369_s4] ss:$0 sm:$0xff]  ;;  %v2501_v10 = vmov 0   ;;  %v427_v15 = vld [vmem:[%s3371_s6 + $0x18] sm:$0xff]  ;;  %v425_v18 = vld [vmem:[%s3371_s6 + $0x8] sm:$0xff]  ;;  %v3402_v20 = vmov 0 }
  0x19   : > { %v2614_v5 = vshrl.u32 %v440_v2, 7  ;;  %2049 = vmatprep.mubr.msk.f32.mxu0 %vm2499_vm0, %v2500_v7  ;;  %2084 = vmatprep.mubr.msk.f32.mxu1 %vm2499_vm0, %v2500_v7  ;;  %v424_v9 = vld [vmem:[%s3371_s6] sm:$0xff]  ;;  %v2502_v19 = vmov 1.0|1.0   ;;  %v3406_v22 = vmov 0  ;;  %v429_v25 = vld [vmem:[%s3371_s6 + $0x28] sm:$0xff] }
  0x1a   : > { %2459 = vset.pattern.permute.xlu1 %v2501_v10  ;;  %2458 = vset.pattern.permute.xlu0 %v2501_v10  ;;  %v428_v26 = vld [vmem:[%s3371_s6 + $0x20] sm:$0xff]  ;;  %v3410_v28 = vmov 0  ;;  %v431_v31 = vld [vmem:[%s3371_s6 + $0x38] sm:$0xff]  ;;  %v430_v32 = vld [vmem:[%s3371_s6 + $0x30] sm:$0xff]  ;;  %v3414_v34 = vmov 0  ;;  %v3418_v40 = vmov 0 }
  0x1b   : > { %3399 = vst [vmem:[#allocation4_spill] sm:$0xff] %v2614_v5  ;;  %v442_v11 = vadd.s32 8, %v2614_v5  ;;  %vm515_vm1 = vcmp.eq.s32.totalorder %v2614_v5, %v2611_v4  ;;  %v443_v12 = vadd.s32 16, %v2614_v5  ;;  %570 = vperm.xlu1 %2459, %v426_v8   ;;  %564 = vperm.xlu0 %2458, %v424_v9   ;;  %vm463_vm2 = vcmp.eq.s32.totalorder %v2614_v5, %v2619_v6  ;;  %v433_v37 = vld [vmem:[%s3371_s6 + $0x48] sm:$0xff]  ;;  %v432_v38 = vld [vmem:[%s3371_s6 + $0x40] sm:$0xff]  ;;  %v435_v43 = vld [vmem:[%s3371_s6 + $0x58] sm:$0xff] }
  0x1c   : > { %v444_v13 = vadd.s32 24, %v2614_v5  ;;  %v445_v14 = vadd.s32 32, %v2614_v5  ;;  %v446_v16 = vadd.s32 40, %v2614_v5  ;;  %v447_v23 = vadd.s32 48, %v2614_v5  ;;  %v434_v44 = vld [vmem:[%s3371_s6 + $0x50] sm:$0xff]  ;;  %v437_v49 = vld [vmem:[%s3371_s6 + $0x68] sm:$0xff] }
  0x1d   : > { %vm516_vm3 = vcmp.eq.s32.totalorder %v442_v11, %v2611_v4  ;;  %vm464_vm4 = vcmp.eq.s32.totalorder %v442_v11, %v2619_v6  ;;  %vm517_vm5 = vcmp.eq.s32.totalorder %v443_v12, %v2611_v4  ;;  %vm465_vm8 = vcmp.eq.s32.totalorder %v443_v12, %v2619_v6  ;;  %v436_v50 = vld [vmem:[%s3371_s6 + $0x60] sm:$0xff]  ;;  %v439_v53 = vld [vmem:[%s3371_s6 + $0x78] sm:$0xff]  ;;  %v438_v54 = vld [vmem:[%s3371_s6 + $0x70] sm:$0xff]  ;;  %p1785_p5 = scmp.ne.s32.totalorder %s2486_s30, 0 }
  0x1e   : > { %vm2642_vm6 = vmpackc.low %vm516_vm3, %vm515_vm1  ;;  %vm518_vm7 = vcmp.eq.s32.totalorder %v444_v13, %v2611_v4  ;;  %vm466_vm9 = vcmp.eq.s32.totalorder %v444_v13, %v2619_v6  ;;  %vm519_vm13 = vcmp.eq.s32.totalorder %v445_v14, %v2611_v4  ;;  %vm520_vm14 = vcmp.eq.s32.totalorder %v446_v16, %v2611_v4  ;;  %v660_v57 = vld [vmem:[%s3366_s1] sm:$0xff] }
  0x1f   : > { %2277 = vmatpush3.bf16.msk.msra.mxu0 %vm2642_vm6, %v2502_v19  ;;  %vm2658_vm10 = vmpackc.low %vm464_vm4, %vm463_vm2  ;;  %573 = vperm.xlu1 %2459, %v427_v15   ;;  %v448_v24 = vadd.s32 56, %v2614_v5  ;;  %vm467_vm15 = vcmp.eq.s32.totalorder %v445_v14, %v2619_v6  ;;  %vm468_vm0 = vcmp.eq.s32.totalorder %v446_v16, %v2619_v6  ;;  %vm521_vm3 = vcmp.eq.s32.totalorder %v447_v23, %v2611_v4  ;;  %v659_v58 = vld [vmem:[%s3365_s0] sm:$0xff] }
  0x20   : > { %v3403_v20 = vsel %vm2658_vm10, 4294967295, %v3402_v20  ;;  %2301 = vmatpush3.bf16.msk.msra.mxu1 %vm2658_vm10, %v2502_v19  ;;  %2278 = vmatprep.subr.bf16.mxu0 %v2498_v3  ;;  %vm2666_vm11 = vmpackc.low %vm518_vm7, %vm517_vm5  ;;  %v449_v29 = vadd.s32 64, %v2614_v5  ;;  %v450_v30 = vadd.s32 72, %v2614_v5  ;;  %vm469_vm5 = vcmp.eq.s32.totalorder %v447_v23, %v2619_v6  ;;  %v801_v15 = vld [vmem:[%s3367_s2] sm:$0xff] }
  0x21   : > { %2302 = vmatprep.subr.bf16.mxu1 %v2498_v3  ;;  %vm2671_vm12 = vmpackc.low %vm466_vm9, %vm465_vm8  ;;  %567 = vperm.xlu0 %2458, %v425_v18   ;;  %vm522_vm4 = vcmp.eq.s32.totalorder %v448_v24, %v2611_v4  ;;  %vm470_vm7 = vcmp.eq.s32.totalorder %v448_v24, %v2619_v6  ;;  %v451_v35 = vadd.s32 80, %v2614_v5  ;;  %v452_v36 = vadd.s32 88, %v2614_v5 }
  0x22   : > { %v3407_v22 = vsel %vm2671_vm12, 4294967295, %v3406_v22  ;;  %vm2694_vm1 = vmpackc.low %vm520_vm14, %vm519_vm13  ;;  %vm523_vm13 = vcmp.eq.s32.totalorder %v449_v29, %v2611_v4  ;;  %vm524_vm14 = vcmp.eq.s32.totalorder %v450_v30, %v2611_v4  ;;  %v453_v41 = vadd.s32 96, %v2614_v5 }
  0x23   : > { %2280 = vmatpush3.bf16.msk.msra.mxu0 %vm2666_vm11, %v2502_v19  ;;  %vm2699_vm2 = vmpackc.low %vm468_vm0, %vm467_vm15  ;;  %579 = vperm.xlu1 %2459, %v429_v25   ;;  %vm471_vm15 = vcmp.eq.s32.totalorder %v449_v29, %v2619_v6  ;;  %vm472_vm0 = vcmp.eq.s32.totalorder %v450_v30, %v2619_v6  ;;  %v454_v42 = vadd.s32 104, %v2614_v5  ;;  %v3422_v46 = vmov 0 }
  0x24   : > { %2304 = vmatpush3.bf16.msk.msra.mxu1 %vm2671_vm12, %v2502_v19  ;;  %2281 = vmatprep.subr.bf16.mxu0 %v2498_v3  ;;  %v3411_v28 = vsel %vm2699_vm2, 4294967295, %v3410_v28  ;;  %vm2722_vm8 = vmpackc.low %vm522_vm4, %vm521_vm3  ;;  %v455_v47 = vadd.s32 112, %v2614_v5  ;;  %v456_v48 = vadd.s32 120, %v2614_v5  ;;  %v3430_v56 = vmov 0 }
  0x25   : > { %2305 = vmatprep.subr.bf16.mxu1 %v2498_v3  ;;  %576 = vperm.xlu0 %2458, %v428_v26   ;;  %vm2727_vm9 = vmpackc.low %vm470_vm7, %vm469_vm5  ;;  %vm525_vm5 = vcmp.eq.s32.totalorder %v451_v35, %v2611_v4  ;;  %vm526_vm7 = vcmp.eq.s32.totalorder %v452_v36, %v2611_v4  ;;  %v2854_v59 = vand.u32 127, %v440_v2  ;;  %v811_v26 = vsub.s32 (!%p1785_p5), 0, %v2614_v5 }
  0x26   : > { %v3415_v34 = vsel %vm2727_vm9, 4294967295, %v3414_v34  ;;  %vm2750_vm3 = vmpackc.low %vm524_vm14, %vm523_vm13  ;;  %vm473_vm13 = vcmp.eq.s32.totalorder %v451_v35, %v2619_v6  ;;  %vm474_vm14 = vcmp.eq.s32.totalorder %v452_v36, %v2619_v6  ;;  %vm530_vm12 = vcmp.eq.s32.totalorder %v456_v48, %v2611_v4 }
  0x27   : > { %2283 = vmatpush3.bf16.msk.msra.mxu0 %vm2694_vm1, %v2502_v19  ;;  %585 = vperm.xlu1 %2459, %v431_v31   ;;  %vm2755_vm4 = vmpackc.low %vm472_vm0, %vm471_vm15  ;;  %vm477_vm10 = vcmp.eq.s32.totalorder %v455_v47, %v2619_v6  ;;  %v878_v30 = vsub.s32 (!%p1785_p5), 1, %v2614_v5  ;;  %v3393_v35 = vmov (!%p1785_p5), 1.0|1.0   ;;  %v2506_v36 = vmov (!%p1785_p5), 0.0  }
  0x28   : > { %2307 = vmatpush3.bf16.msk.msra.mxu1 %vm2699_vm2, %v2502_v19  ;;  %2284 = vmatprep.subr.bf16.mxu0 %v2498_v3  ;;  %v3419_v40 = vsel %vm2755_vm4, 4294967295, %v3418_v40  ;;  %vm2778_vm15 = vmpackc.low %vm526_vm7, %vm525_vm5  ;;  %vm528_vm2 = vcmp.eq.s32.totalorder %v454_v42, %v2611_v4  ;;  %vm475_vm5 = vcmp.eq.s32.totalorder %v453_v41, %v2619_v6  ;;  %vm476_vm7 = vcmp.eq.s32.totalorder %v454_v42, %v2619_v6 }
  0x29   : > { %2308 = vmatprep.subr.bf16.mxu1 %v2498_v3  ;;  %582 = vperm.xlu0 %2458, %v430_v32   ;;  %vm2783_vm0 = vmpackc.low %vm474_vm14, %vm473_vm13  ;;  %v3391_v32 = vmov (!%p1785_p5), 0.0|0.0  }
  0x2a   : > { %v3423_v46 = vsel %vm2783_vm0, 4294967295, %v3422_v46  ;;  %vm2811_vm14 = vmpackc.low %vm476_vm7, %vm475_vm5 }
  0x2b   : > { %2286 = vmatpush3.bf16.msk.msra.mxu0 %vm2722_vm8, %v2502_v19  ;;  %591 = vperm.xlu1 %2459, %v433_v37  }
  0x2c   : > { %2310 = vmatpush3.bf16.msk.msra.mxu1 %vm2727_vm9, %v2502_v19  ;;  %2287 = vmatprep.subr.bf16.mxu0 %v2498_v3  ;;  %vm527_vm9 = vcmp.eq.s32.totalorder %v453_v41, %v2611_v4 }
  0x2d   : > { %2311 = vmatprep.subr.bf16.mxu1 %v2498_v3  ;;  %588 = vperm.xlu0 %2458, %v432_v38   ;;  %vm2806_vm13 = vmpackc.low %vm528_vm2, %vm527_vm9 }
  0x2f   : > { %2289 = vmatpush3.bf16.msk.msra.mxu0 %vm2750_vm3, %v2502_v19  ;;  %597 = vperm.xlu1 %2459, %v435_v43  }
  0x30   : > { %2313 = vmatpush3.bf16.msk.msra.mxu1 %vm2755_vm4, %v2502_v19  ;;  %2290 = vmatprep.subr.bf16.mxu0 %v2498_v3  ;;  %vm529_vm4 = vcmp.eq.s32.totalorder %v455_v47, %v2611_v4 }
  0x31   : > { %2314 = vmatprep.subr.bf16.mxu1 %v2498_v3  ;;  %594 = vperm.xlu0 %2458, %v434_v44   ;;  %vm2832_vm2 = vmpackc.low %vm530_vm12, %vm529_vm4 }
  0x33   : > { %2292 = vmatpush3.bf16.msk.msra.mxu0 %vm2778_vm15, %v2502_v19  ;;  %603 = vperm.xlu1 %2459, %v437_v49  }
  0x34   : > { %2316 = vmatpush3.bf16.msk.msra.mxu1 %vm2783_vm0, %v2502_v19  ;;  %2293 = vmatprep.subr.bf16.mxu0 %v2498_v3  ;;  %vm478_vm0 = vcmp.eq.s32.totalorder %v456_v48, %v2619_v6 }
  0x35   : > { %2317 = vmatprep.subr.bf16.mxu1 %v2498_v3  ;;  %600 = vperm.xlu0 %2458, %v436_v50   ;;  %vm2837_vm9 = vmpackc.low %vm478_vm0, %vm477_vm10 }
  0x36   : > { %v3431_v56 = vsel %vm2837_vm9, 4294967295, %v3430_v56 }
  0x37   : > { %2295 = vmatpush3.bf16.msk.msra.mxu0 %vm2806_vm13, %v2502_v19  ;;  %3432 = vst [vmem:[#allocation5_spill] sm:$0xff] %v3431_v56  ;;  %609 = vperm.xlu1 %2459, %v439_v53  }
  0x38   : > { %2319 = vmatpush3.bf16.msk.msra.mxu1 %vm2811_vm14, %v2502_v19  ;;  %2296 = vmatprep.subr.bf16.mxu0 %v2498_v3 }
  0x39   : > { %2320 = vmatprep.subr.bf16.mxu1 %v2498_v3  ;;  %606 = vperm.xlu0 %2458, %v438_v54  }
  0x3b   : > { %2298 = vmatpush3.bf16.msk.msra.mxu0 %vm2832_vm2, %v2502_v19 }
  0x3c   : > { %2322 = vmatpush3.bf16.msk.msra.mxu1 %vm2837_vm9, %v2502_v19  ;;  %2323 = vmatprep.subr.bf16.mxu0 (!%p1785_p5), %v3391_v32 }
  0x3d   : > { %2347 = vmatprep.subr.bf16.mxu1 (!%p1785_p5), %v3391_v32 }
  0x3e   : > { %2050 = vmatmul.mubr.f32.vlgmr.msra.gmra.mrb[0].mxu0 %v660_v57 }
  0x3f   : > { %2085 = vmatmul.mubr.f32.vlgmr.msra.gmra.mrb[0].mxu1 %v659_v58  ;;  %2325 = vmatpush3.bf16.msk.msra.mxu0 (!%p1785_p5), %vm2642_vm6, %v3393_v35 }
  0x40   : > { %2326 = vmatprep.subr.bf16.mxu0 (!%p1785_p5), %v3391_v32 }
  0x43   : > { %2328 = vmatpush3.bf16.msk.msra.mxu0 (!%p1785_p5), %vm2666_vm11, %v3393_v35 }
  0x44   : > { %2329 = vmatprep.subr.bf16.mxu0 (!%p1785_p5), %v3391_v32 }
  0x47   : > { %2331 = vmatpush3.bf16.msk.msra.mxu0 (!%p1785_p5), %vm2694_vm1, %v3393_v35 }
  0x48   : > { %2332 = vmatprep.subr.bf16.mxu0 (!%p1785_p5), %v3391_v32 }
  0x4b   : > { %2334 = vmatpush3.bf16.msk.msra.mxu0 (!%p1785_p5), %vm2722_vm8, %v3393_v35 }
  0x4c   : > { %2335 = vmatprep.subr.bf16.mxu0 (!%p1785_p5), %v3391_v32 }
  0x4f   : > { %2337 = vmatpush3.bf16.msk.msra.mxu0 (!%p1785_p5), %vm2750_vm3, %v3393_v35 }
  0x50   : > { %2338 = vmatprep.subr.bf16.mxu0 (!%p1785_p5), %v3391_v32 }
  0x53   : > { %2340 = vmatpush3.bf16.msk.msra.mxu0 (!%p1785_p5), %vm2778_vm15, %v3393_v35 }
  0x54   : > { %2341 = vmatprep.subr.bf16.mxu0 (!%p1785_p5), %v3391_v32 }
  0x57   : > { %2343 = vmatpush3.bf16.msk.msra.mxu0 (!%p1785_p5), %vm2806_vm13, %v3393_v35 }
  0x58   : > { %2344 = vmatprep.subr.bf16.mxu0 (!%p1785_p5), %v3391_v32 }
  0x5b   : > { %2346 = vmatpush3.bf16.msk.msra.mxu0 (!%p1785_p5), %vm2832_vm2, %v3393_v35 }
  0x9a   : > { %v2856_v60 = vpop.permute.xlu1 %570  ;;  %v2858_v61 = vpop.permute.xlu0 %564 }
  0x9b   : > { %vm3390_vm12 = vcmp.eq.s32.totalorder %v2854_v59, %v2858_v61  ;;  %vm3433_vm4 = vcmp.eq.s32.totalorder (!%p1785_p5), %v2854_v59, %v2856_v60 }
  0x9e   : > { %v2864_v62 = vpop.permute.xlu1 %573 }
  0xa0   : > { %v2868_v63 = vpop.permute.xlu0 %567 }
  0xa1   : > { %vm3389_vm0 = vcmp.eq.s32.totalorder %v2854_v59, %v2868_v63 }
  0xa2   : > { %v2872_v0 = vpop.permute.xlu1 %579  ;;  %vm2348_vm10 = vmpackc.low (!%p1785_p5), %vm3389_vm0, %vm3390_vm12 }
  0xa3   : > { %2349 = vmatpush3.bf16.msk.msra.mxu1 (!%p1785_p5), %vm2348_vm10, %v3393_v35  ;;  %vm3436_vm0 = vcmp.eq.s32.totalorder (!%p1785_p5), %v2854_v59, %v2872_v0 }
  0xa4   : > { %v2876_v1 = vpop.permute.xlu0 %576  ;;  %2350 = vmatprep.subr.bf16.mxu1 (!%p1785_p5), %v3391_v32 }
  0xa5   : > { %vm3435_vm9 = vcmp.eq.s32.totalorder (!%p1785_p5), %v2854_v59, %v2876_v1 }
  0xa6   : > { %v2880_v2 = vpop.permute.xlu1 %585  ;;  %vm2354_vm10 = vmpackc.low (!%p1785_p5), %vm3436_vm0, %vm3435_vm9  ;;  %vm3439_vm9 = vcmp.eq.s32.totalorder (!%p1785_p5), %v2854_v59, %v2856_v60 }
  0xa8   : > { %v2884_v3 = vpop.permute.xlu0 %582 }
  0xa9   : > { %vm3437_vm12 = vcmp.eq.s32.totalorder (!%p1785_p5), %v2854_v59, %v2884_v3 }
  0xaa   : > { %v2888_v4 = vpop.permute.xlu1 %591 }
  0xac   : > { %v2892_v6 = vpop.permute.xlu0 %588 }
  0xae   : > { %v2896_v7 = vpop.permute.xlu1 %597 }
  0xb0   : > { %v2900_v8 = vpop.permute.xlu0 %594 }
  0xb2   : > { %v2904_v9 = vpop.permute.xlu1 %603 }
  0xb4   : > { %v2908_v10 = vpop.permute.xlu0 %600 }
  0xb6   : > { %v2912_v11 = vpop.permute.xlu1 %609 }
  0xb8   : > { %v2916_v12 = vpop.permute.xlu0 %606 }
 0x111   : > { %v727_v13 = vpop.f32.mrb[0].mxu0 }
 0x112   : > { %v797_v14 = vpop.f32.mrb[0].mxu1  ;;  %v2051_v16 = vpop.f32.mrb[1].mxu0 }
 0x113   : > { %v798_v18 = vadd.f32 %v797_v14, %v727_v13  ;;  %v2086_v19 = vpop.f32.mrb[1].mxu1  ;;  %808 = sbr.rel (%p1785_p5) target bundleno = 922 (0x39a), region = 60 }
 0x115   : > { %v802_v23 = vadd.f32 %v801_v15, %v798_v18 }
 0x117   : > { %vm803_vm7 = vcmp.gt.f32.partialorder %v802_v23, 0.0  ;;  %v804_v24 = vmul.f32 0.2, %v802_v23 }
 0x119   : > { %v2923_v25 = vsel %vm803_vm7, %v802_v23, %v804_v24  ;;  %vm2505_vm7 = vmmov (!%p1785_p5), 0  }
 0x11a   : > { %v812_v29 = vrot.slane %v2923_v25, %v811_v26  ;;  %v879_v31 = vrot.slane %v2923_v25, %v878_v30  ;;  %2119 = vmatprep.mubr.msk.f32.mxu0 %vm2505_vm7, %v2506_v36  ;;  %2154 = vmatprep.mubr.msk.f32.mxu1 %vm2505_vm7, %v2506_v36  ;;  %vm3434_vm7 = vcmp.eq.s32.totalorder %v2854_v59, %v2864_v62 }
 0x11b   : > { %vm2351_vm5 = vmpackc.low %vm3434_vm7, %vm3433_vm4  ;;  %vm3438_vm4 = vcmp.eq.s32.totalorder %v2854_v59, %v2880_v2 }
 0x11c   : > { %822 = vbcast.lane.b32.xlu1 %v812_v29, 272  ;;  %814 = vbcast.lane.b32.xlu0 %v812_v29, 256  ;;  %vm3441_vm0 = vmmov %vm3434_vm7  ;;  %vm3442_vm7 = vcmp.eq.s32.totalorder %v2854_v59, %v2868_v63 }
 0x11d   : > { %2352 = vmatpush3.bf16.msk.msra.mxu1 %vm2351_vm5, %v3393_v35  ;;  %vm2357_vm5 = vmpackc.low %vm3438_vm4, %vm3437_vm12  ;;  %vm3440_vm12 = vcmp.eq.s32.totalorder %v2854_v59, %v2858_v61  ;;  %vm3444_vm4 = vcmp.eq.s32.totalorder %v2854_v59, %v2876_v1 }
 0x11e   : > { %2353 = vmatprep.subr.bf16.mxu1 %v3391_v32 }
 0x120   : > { %826 = vbcast.lane.b32.xlu1 %v812_v29, 280  ;;  %818 = vbcast.lane.b32.xlu0 %v812_v29, 264 }
 0x121   : > { %2355 = vmatpush3.bf16.msk.msra.mxu1 %vm2354_vm10, %v3393_v35  ;;  %vm3443_vm10 = vcmp.eq.s32.totalorder %v2854_v59, %v2872_v0 }
 0x122   : > { %2356 = vmatprep.subr.bf16.mxu1 %v3391_v32 }
 0x124   : > { %885 = vbcast.lane.b32.xlu1 %v879_v31, 264  ;;  %881 = vbcast.lane.b32.xlu0 %v879_v31, 256 }
 0x125   : > { %2358 = vmatpush3.bf16.msk.msra.mxu1 %vm2357_vm5, %v3393_v35  ;;  %vm3445_vm5 = vmmov %vm3442_vm7 }
 0x126   : > { %2359 = vmatprep.subr.bf16.mxu1 %v3391_v32 }
 0x128   : > { %893 = vbcast.lane.b32.xlu1 %v879_v31, 280  ;;  %889 = vbcast.lane.b32.xlu0 %v879_v31, 272 }
 0x12c   : > { %834 = vbcast.lane.b32.xlu1 %v812_v29, 296  ;;  %830 = vbcast.lane.b32.xlu0 %v812_v29, 288 }
 0x130   : > { %901 = vbcast.lane.b32.xlu1 %v879_v31, 296  ;;  %897 = vbcast.lane.b32.xlu0 %v879_v31, 288 }
 0x134   : > { %842 = vbcast.lane.b32.xlu1 %v812_v29, 312  ;;  %838 = vbcast.lane.b32.xlu0 %v812_v29, 304 }
 0x138   : > { %909 = vbcast.lane.b32.xlu1 %v879_v31, 312  ;;  %905 = vbcast.lane.b32.xlu0 %v879_v31, 304 }
 0x13c   : > { %850 = vbcast.lane.b32.xlu1 %v812_v29, 328  ;;  %846 = vbcast.lane.b32.xlu0 %v812_v29, 320 }
 0x140   : > { %917 = vbcast.lane.b32.xlu1 %v879_v31, 328  ;;  %913 = vbcast.lane.b32.xlu0 %v879_v31, 320 }
 0x144   : > { %858 = vbcast.lane.b32.xlu1 %v812_v29, 344  ;;  %854 = vbcast.lane.b32.xlu0 %v812_v29, 336 }
 0x148   : > { %925 = vbcast.lane.b32.xlu1 %v879_v31, 344  ;;  %921 = vbcast.lane.b32.xlu0 %v879_v31, 336 }
 0x14c   : > { %866 = vbcast.lane.b32.xlu1 %v812_v29, 360  ;;  %862 = vbcast.lane.b32.xlu0 %v812_v29, 352 }
 0x150   : > { %933 = vbcast.lane.b32.xlu1 %v879_v31, 360  ;;  %929 = vbcast.lane.b32.xlu0 %v879_v31, 352 }
 0x154   : > { %874 = vbcast.lane.b32.xlu1 %v812_v29, 376  ;;  %870 = vbcast.lane.b32.xlu0 %v812_v29, 368 }
 0x158   : > { %941 = vbcast.lane.b32.xlu1 %v879_v31, 376  ;;  %937 = vbcast.lane.b32.xlu0 %v879_v31, 368 }
 0x18e   : > { %v823_v37 = vpop.permute.xlu1 %822  ;;  %v815_v38 = vpop.permute.xlu0 %814 }
 0x18f   : > { %v961_v26 = vsel %vm3439_vm9, %v823_v37, -1e+30  ;;  %v959_v29 = vsel %vm3440_vm12, %v815_v38, -1e+30  ;;  %vm3446_vm9 = vmmov %vm3441_vm0  ;;  %vm3447_vm12 = vcmp.eq.s32.totalorder %v2854_v59, %v2856_v60 }
 0x190   : > { %v991_v5 = vmax.f32 %v959_v29, %v961_v26 }
 0x192   : > { %v827_v41 = vpop.permute.xlu1 %826  ;;  %v819_v42 = vpop.permute.xlu0 %818 }
 0x193   : > { %v962_v30 = vsel %vm3441_vm0, %v827_v41, -1e+30  ;;  %v960_v31 = vsel %vm3442_vm7, %v819_v42, -1e+30  ;;  %vm3448_vm0 = vcmp.eq.s32.totalorder %v2854_v59, %v2880_v2  ;;  %vm3449_vm7 = vcmp.eq.s32.totalorder %v2854_v59, %v2884_v3 }
 0x194   : > { %v992_v38 = vmax.f32 %v960_v31, %v962_v30 }
 0x196   : > { %v886_v43 = vpop.permute.xlu1 %885  ;;  %v882_v44 = vpop.permute.xlu0 %881 }
 0x197   : > { %v976_v41 = vsel %vm3445_vm5, %v886_v43, -1e+30  ;;  %vm3452_vm5 = vcmp.eq.s32.totalorder %v2854_v59, %v2876_v1 }
 0x19a   : > { %v894_v47 = vpop.permute.xlu1 %893  ;;  %v890_v48 = vpop.permute.xlu0 %889 }
 0x19b   : > { %v978_v42 = vsel %vm3446_vm9, %v894_v47, -1e+30  ;;  %v977_v56 = vsel %vm3447_vm12, %v890_v48, -1e+30  ;;  %vm3453_vm9 = vcmp.eq.s32.totalorder %v2854_v59, %v2888_v4  ;;  %vm3454_vm12 = vcmp.eq.s32.totalorder %v2854_v59, %v2892_v6 }
 0x19c   : > { %v1013_v31 = vmax.f32 %v976_v41, %v978_v42 }
 0x19e   : > { %v835_v49 = vpop.permute.xlu1 %834  ;;  %v831_v50 = vpop.permute.xlu0 %830 }
 0x19f   : > { %v964_v35 = vsel %vm3443_vm10, %v835_v49, -1e+30  ;;  %v963_v37 = vsel %vm3444_vm4, %v831_v50, -1e+30  ;;  %vm3450_vm10 = vcmp.eq.s32.totalorder %v2854_v59, %v2858_v61  ;;  %vm3451_vm4 = vcmp.eq.s32.totalorder %v2854_v59, %v2872_v0 }
 0x1a0   : > { %v975_v43 = vsel %vm3450_vm10, %v882_v44, -1e+30  ;;  %v994_v26 = vmax.f32 %v992_v38, %v964_v35  ;;  %v993_v29 = vmax.f32 %v991_v5, %v963_v37  ;;  %vm3455_vm10 = vcmp.eq.s32.totalorder %v2854_v59, %v2896_v7 }
 0x1a1   : > { %v1012_v5 = vmax.f32 %v975_v43, %v977_v56 }
 0x1a2   : > { %v902_v53 = vpop.permute.xlu1 %901  ;;  %v898_v54 = vpop.permute.xlu0 %897 }
 0x1a3   : > { %v980_v47 = vsel %vm3451_vm4, %v902_v53, -1e+30  ;;  %vm3456_vm4 = vcmp.eq.s32.totalorder %v2854_v59, %v2900_v8 }
 0x1a4   : > { %v1015_v38 = vmax.f32 %v1013_v31, %v980_v47 }
 0x1a6   : > { %v843_v57 = vpop.permute.xlu1 %842  ;;  %v839_v58 = vpop.permute.xlu0 %838 }
 0x1a7   : > { %v966_v49 = vsel %vm3448_vm0, %v843_v57, -1e+30  ;;  %v965_v50 = vsel %vm3449_vm7, %v839_v58, -1e+30  ;;  %v979_v57 = vsel %vm3452_vm5, %v898_v54, -1e+30  ;;  %vm3457_vm5 = vmmov %vm3453_vm9 }
 0x1a8   : > { %v996_v44 = vmax.f32 %v994_v26, %v966_v49  ;;  %v995_v37 = vmax.f32 %v993_v29, %v965_v50  ;;  %v1014_v56 = vmax.f32 %v1012_v5, %v979_v57 }
 0x1aa   : > { %v910_v13 = vpop.permute.xlu1 %909  ;;  %v906_v14 = vpop.permute.xlu0 %905 }
 0x1ab   : > { %v982_v53 = vsel %vm3448_vm0, %v910_v13, -1e+30  ;;  %v981_v54 = vsel %vm3449_vm7, %v906_v14, -1e+30  ;;  %vm3460_vm0 = vcmp.eq.s32.totalorder %v2854_v59, %v2908_v10  ;;  %vm3461_vm7 = vmmov %vm3455_vm10 }
 0x1ac   : > { %v1017_v43 = vmax.f32 %v1015_v38, %v982_v53  ;;  %v1016_v26 = vmax.f32 %v1014_v56, %v981_v54 }
 0x1ae   : > { %v851_v15 = vpop.permute.xlu1 %850  ;;  %v847_v16 = vpop.permute.xlu0 %846 }
 0x1af   : > { %v968_v58 = vsel %vm3453_vm9, %v851_v15, -1e+30  ;;  %v967_v35 = vsel %vm3454_vm12, %v847_v16, -1e+30  ;;  %vm3458_vm9 = vmmov %vm3454_vm12  ;;  %vm3459_vm12 = vcmp.eq.s32.totalorder %v2854_v59, %v2904_v9 }
 0x1b0   : > { %v998_v41 = vmax.f32 %v996_v44, %v968_v58  ;;  %v997_v42 = vmax.f32 %v995_v37, %v967_v35 }
 0x1b2   : > { %v918_v18 = vpop.permute.xlu1 %917  ;;  %v914_v19 = vpop.permute.xlu0 %913 }
 0x1b3   : > { %v984_v13 = vsel %vm3457_vm5, %v918_v18, -1e+30  ;;  %v983_v14 = vsel %vm3458_vm9, %v914_v19, -1e+30  ;;  %vm3464_vm5 = vmmov %vm3460_vm0  ;;  %vm3465_vm9 = vcmp.eq.s32.totalorder %v2854_v59, %v2912_v11 }
 0x1b4   : > { %v1019_v31 = vmax.f32 %v1017_v43, %v984_v13  ;;  %v1018_v57 = vmax.f32 %v1016_v26, %v983_v14 }
 0x1b6   : > { %v859_v23 = vpop.permute.xlu1 %858  ;;  %v855_v24 = vpop.permute.xlu0 %854 }
 0x1b7   : > { %v970_v15 = vsel %vm3455_vm10, %v859_v23, -1e+30  ;;  %v969_v16 = vsel %vm3456_vm4, %v855_v24, -1e+30  ;;  %vm3462_vm10 = vmmov %vm3456_vm4 }
 0x1b8   : > { %v1000_v29 = vmax.f32 %v998_v41, %v970_v15  ;;  %v999_v47 = vmax.f32 %v997_v42, %v969_v16  ;;  %vm3463_vm4 = vmmov %vm3459_vm12 }
 0x1ba   : > { %v926_v36 = vpop.permute.xlu1 %925  ;;  %v922_v32 = vpop.permute.xlu0 %921 }
 0x1bb   : > { %v986_v18 = vsel %vm3461_vm7, %v926_v36, -1e+30  ;;  %v985_v19 = vsel %vm3462_vm10, %v922_v32, -1e+30  ;;  %vm1035_vm10 = vcmask 1041409  }
 0x1bc   : > { %v1021_v37 = vmax.f32 %v1019_v31, %v986_v18  ;;  %v1020_v53 = vmax.f32 %v1018_v57, %v985_v19 }
 0x1be   : > { %v867_v30 = vpop.permute.xlu1 %866  ;;  %v863_v48 = vpop.permute.xlu0 %862 }
 0x1bf   : > { %v972_v23 = vsel %vm3459_vm12, %v867_v30, -1e+30  ;;  %v971_v24 = vsel %vm3460_vm0, %v863_v48, -1e+30  ;;  %vm3466_vm12 = vcmp.eq.s32.totalorder %v2854_v59, %v2916_v12  ;;  %vm3467_vm0 = vmmov %vm3465_vm9 }
 0x1c0   : > { %v1002_v58 = vmax.f32 %v1000_v29, %v972_v23  ;;  %v1001_v35 = vmax.f32 %v999_v47, %v971_v24  ;;  %vm3468_vm7 = vmmov %vm3466_vm12 }
 0x1c2   : > { %v934_v49 = vpop.permute.xlu1 %933  ;;  %v930_v50 = vpop.permute.xlu0 %929 }
 0x1c3   : > { %v988_v30 = vsel %vm3463_vm4, %v934_v49, -1e+30  ;;  %v987_v44 = vsel %vm3464_vm5, %v930_v50, -1e+30  ;;  %vm1038_vm4 = vcmask 1041408   ;;  %vm3469_vm5 = vcmp.eq.s32.totalorder %v2854_v59, %v2892_v6 }
 0x1c4   : > { %v1023_v15 = vmax.f32 %v1021_v37, %v988_v30  ;;  %v1022_v16 = vmax.f32 %v1020_v53, %v987_v44  ;;  %v3471_v37 = vmov 1.0|1.0   ;;  %v3472_v53 = vmov 0.0|0.0  }
 0x1c6   : > { %v875_v48 = vpop.permute.xlu1 %874  ;;  %v871_v5 = vpop.permute.xlu0 %870 }
 0x1c7   : > { %v974_v36 = vsel %vm3465_vm9, %v875_v48, -1e+30  ;;  %v973_v32 = vsel %vm3466_vm12, %v871_v5, -1e+30  ;;  %v1040_v48 = vld [vmem:[#allocation2] sm:$0xff]  ;;  %vm3470_vm9 = vcmp.eq.s32.totalorder %v2854_v59, %v2888_v4 }
 0x1c8   : > { %v1004_v38 = vmax.f32 %v1002_v58, %v974_v36  ;;  %v1003_v54 = vmax.f32 %v1001_v35, %v973_v32  ;;  %vm2360_vm12 = vmpackc.low %vm3470_vm9, %vm3469_vm5  ;;  %vm3476_vm5 = vcmp.eq.s32.totalorder %v2854_v59, %v2904_v9 }
 0x1c9   : > { %2361 = vmatpush3.bf16.msk.msra.mxu1 %vm2360_vm12, %v3471_v37  ;;  %vm3477_vm12 = vcmp.eq.s32.totalorder %v2854_v59, %v2916_v12 }
 0x1ca   : > { %v1005_v56 = vmax.f32 %v1003_v54, %v1004_v38  ;;  %v942_v41 = vpop.permute.xlu1 %941  ;;  %v938_v42 = vpop.permute.xlu0 %937  ;;  %2362 = vmatprep.subr.bf16.mxu1 %v3472_v53 }
 0x1cb   : > { %v990_v13 = vsel %vm3467_vm0, %v942_v41, -1e+30  ;;  %v989_v49 = vsel %vm3468_vm7, %v938_v42, -1e+30  ;;  %vm3473_vm0 = vcmp.eq.s32.totalorder %v2854_v59, %v2900_v8  ;;  %vm3474_vm7 = vcmp.eq.s32.totalorder %v2854_v59, %v2896_v7 }
 0x1cc   : > { %v1006_v50 = vrot.slane %v1005_v56, 4  ;;  %v1025_v43 = vmax.f32 %v1023_v15, %v990_v13  ;;  %v1024_v14 = vmax.f32 %v1022_v16, %v989_v49  ;;  %v1185_v13 = vld [vmem:[#allocation3] sm:$0xff] }
 0x1ce   : > { %v1007_v23 = vmax.f32 %v1005_v56, %v1006_v50  ;;  %v1026_v24 = vmax.f32 %v1024_v14, %v1025_v43 }
 0x1d0   : > { %v1008_v26 = vrot.slane %v1007_v23, 2  ;;  %v1027_v29 = vrot.slane %v1026_v24, 4 }
 0x1d2   : > { %v1009_v47 = vmax.f32 %v1007_v23, %v1008_v26  ;;  %v1028_v31 = vmax.f32 %v1026_v24, %v1027_v29 }
 0x1d4   : > { %v1029_v18 = vrot.slane %v1028_v31, 2  ;;  %v1010_v19 = vrot.slane %v1009_v47, 1 }
 0x1d6   : > { %v1030_v57 = vmax.f32 %v1028_v31, %v1029_v18  ;;  %v1011_v35 = vmax.f32 %v1009_v47, %v1010_v19 }
 0x1d8   : > { %v1031_v58 = vrot.slane %v1030_v57, 1 }
 0x1da   : > { %v1032_v30 = vmax.f32 %v1030_v57, %v1031_v58 }
 0x1dc   : > { %v1036_v5 = vsel %vm1035_vm10, %v1032_v30, %v1011_v35  ;;  %vm2363_vm10 = vmpackc.low %vm3474_vm7, %vm3473_vm0  ;;  %vm3478_vm0 = vcmp.eq.s32.totalorder %v2854_v59, %v2912_v11 }
 0x1dd   : > { %v1039_v44 = vsel %vm1038_vm4, %v1036_v5, 0.0  ;;  %2364 = vmatpush3.bf16.msk.msra.mxu1 %vm2363_vm10, %v3471_v37  ;;  %vm3475_vm4 = vcmp.eq.s32.totalorder %v2854_v59, %v2908_v10  ;;  %vm2369_vm7 = vmpackc.low %vm3478_vm0, %vm3477_vm12 }
 0x1de   : > { %v1041_v36 = vmax.f32 %v1040_v48, %v1039_v44  ;;  %2365 = vmatprep.subr.bf16.mxu1 %v3472_v53  ;;  %vm2366_vm9 = vmpackc.low %vm3476_vm5, %vm3475_vm4 }
 0x1e0   : > { %2120 = vmatmul.mubr.f32.vlgmr.msra.gmra.mrb[0].mxu0 %v1041_v36  ;;  %v1186_v32 = vsub.f32 %v1040_v48, %v1041_v36  ;;  %1192 = vst [vmem:[#allocation2] sm:$0xff] %v1041_v36 }
 0x1e1   : > { %2367 = vmatpush3.bf16.msk.msra.mxu1 %vm2366_vm9, %v3471_v37 }
 0x1e2   : > { %2368 = vmatprep.subr.bf16.mxu1 %v3472_v53  ;;  %v1187_v41 = vmul.f32 1.442695, %v1186_v32 }
 0x1e5   : > { %2370 = vmatpush3.bf16.msk.msra.mxu1 %vm2369_vm7, %v3471_v37 }
 0x2b3   : > { %v1108_v38 = vpop.f32.mrb[0].mxu0 }
 0x2b4   : > { %v1112_v54 = vsub.f32 %v2923_v25, %v1108_v38  ;;  %v2121_v15 = vpop.f32.mrb[1].mxu0 }
 0x2b6   : > { %v1113_v16 = vmul.f32 1.442695, %v1112_v54 }
 0x2b8   : > { %2460 = vpow2.f32 %v1113_v16 }
 0x2b9   : > { %2462 = vpow2.f32 %v1187_v41 }
 0x2c2   : > { %v2461_v56 = vpop.eup %2460 }
 0x2c3   : > { %1193 = vst [vmem:[%s3373_s8] sm:$0xff] %v2461_v56  ;;  %2155 = vmatmul.mubr.f32.vlgmr.msra.gmra.mrb[0].mxu1 %v2461_v56  ;;  %v2463_v42 = vpop.eup %2462 }
 0x2c4   : > { %v1189_v49 = vmul.f32 %v2463_v42, %v1185_v13 }
 0x396   : > { %v1181_v50 = vpop.f32.mrb[0].mxu1 }
 0x397   : > { %v1190_v43 = vadd.f32 %v1189_v49, %v1181_v50  ;;  %v2156_v14 = vpop.f32.mrb[1].mxu1 }
 0x399   : > { %1191 = vst [vmem:[#allocation3] sm:$0xff] %v1190_v43 }
 0x39a PF: > { %p1818_p6 = scmp.ne.s32.totalorder %s2486_s30, 1 }
 0x39b   : > { %v2507_v23 = vmov (!%p1818_p6), 0.0|0.0   ;;  %v2508_v24 = vmov (!%p1818_p6), 1.0|1.0   ;;  %vm2509_vm10 = vmmov (!%p1818_p6), 0   ;;  %v2510_v26 = vmov (!%p1818_p6), 0.0   ;;  %v1198_v17 = vld [vmem:[#allocation2] sm:$0xff] (!%p1818_p6) }
 0x39c   : > { %1197 = sbr.rel (%p1818_p6) target bundleno = 1434 (0x59a), region = 64  ;;  %2371 = vmatprep.subr.bf16.mxu0 (!%p1818_p6), %v2507_v23  ;;  %2395 = vmatprep.subr.bf16.mxu1 (!%p1818_p6), %v2507_v23  ;;  %v2464_v27 = vld [vmem:[%s3368_s3] sm:$0xff] (!%p1818_p6)   ;;  %v2467_v33 = vld [vmem:[%s3368_s3 + $0x18] sm:$0xff] (!%p1818_p6)   ;;  %vm3489_vm5 = vcmp.eq.s32.totalorder (!%p1818_p6), %v2854_v59, %v2856_v60  ;;  %vm3490_vm9 = vcmp.eq.s32.totalorder (!%p1818_p6), %v2854_v59, %v2864_v62  ;;  %vm3491_vm0 = vcmp.eq.s32.totalorder (!%p1818_p6), %v2854_v59, %v2876_v1  ;;  %v3503_v1 = vld [vmem:[#allocation4_spill] sm:$0xff] (!%p1818_p6) }
 0x39d   : > { %2373 = vmatpush3.bf16.msk.msra.mxu0 (!%p1818_p6), %vm2642_vm6, %v2508_v24  ;;  %2397 = vmatpush3.bf16.msk.msra.mxu1 (!%p1818_p6), %vm2642_vm6, %v2508_v24  ;;  %vm3479_vm6 = vnez (!%p1818_p6), %v3403_v20  ;;  %v3485_v20 = vld [vmem:[#allocation5_spill] sm:$0xff] (!%p1818_p6)  ;;  %vm1873_vm12 = vmpackc.low (!%p1818_p6), %vm3490_vm9, %vm3489_vm5  ;;  %vm3492_vm7 = vcmp.eq.s32.totalorder (!%p1818_p6), %v2854_v59, %v2872_v0  ;;  %vm3500_vm5 = vcmp.eq.s32.totalorder (!%p1818_p6), %v2854_v59, %v2904_v9  ;;  %v1481_v32 = vld [vmem:[%s3374_s9 + $0x10] sm:$0xff] (!%p1818_p6) }
 0x39e   : > { %2374 = vmatprep.subr.bf16.mxu0 (!%p1818_p6), %v2507_v23  ;;  %2398 = vmatprep.subr.bf16.mxu1 (!%p1818_p6), %v2507_v23  ;;  %v1479_v37 = vld [vmem:[%s3374_s9] sm:$0xff] (!%p1818_p6)  ;;  %v1482_v38 = vld [vmem:[%s3374_s9 + $0x18] sm:$0xff] (!%p1818_p6)  ;;  %v1480_v16 = vld [vmem:[%s3374_s9 + $0x8] sm:$0xff] (!%p1818_p6) }
 0x39f   : > { %2189 = vmatprep.mubr.msk.f32.mxu0 (!%p1818_p6), %vm2509_vm10, %v2510_v26  ;;  %2224 = vmatprep.mubr.msk.f32.mxu1 (!%p1818_p6), %vm2509_vm10, %v2510_v26  ;;  %vm1875_vm10 = vmpackc.low (!%p1818_p6), %vm3492_vm7, %vm3491_vm0  ;;  %vm3502_vm0 = vcmp.eq.s32.totalorder (!%p1818_p6), %v2854_v59, %v2912_v11  ;;  %v1485_v50 = vld [vmem:[%s3374_s9 + $0x30] sm:$0xff] (!%p1818_p6)  ;;  %v1483_v43 = vld [vmem:[%s3374_s9 + $0x20] sm:$0xff] (!%p1818_p6) }
 0x3a0   : > { %v1269_v21 = vld [vmem:[#allocation3] sm:$0xff] (!%p1818_p6) }
 0x3a1   : > { %2376 = vmatpush3.bf16.msk.msra.mxu0 (!%p1818_p6), %vm2666_vm11, %v2508_v24  ;;  %2400 = vmatpush3.bf16.msk.msra.mxu1 (!%p1818_p6), %vm2666_vm11, %v2508_v24  ;;  %vm3480_vm11 = vnez (!%p1818_p6), %v3407_v22  ;;  %v2465_v22 = vld [vmem:[%s3368_s3 + $0x8] sm:$0xff] (!%p1818_p6)  }
 0x3a2   : > { %2377 = vmatprep.subr.bf16.mxu0 (!%p1818_p6), %v2507_v23  ;;  %2401 = vmatprep.subr.bf16.mxu1 (!%p1818_p6), %v2507_v23 }
 0x3a5   : > { %2379 = vmatpush3.bf16.msk.msra.mxu0 %vm2694_vm1, %v2508_v24  ;;  %2403 = vmatpush3.bf16.msk.msra.mxu1 %vm2694_vm1, %v2508_v24  ;;  %vm3481_vm1 = vnez %v3411_v28  ;;  %v2466_v28 = vld [vmem:[%s3368_s3 + $0x10] sm:$0xff]  }
 0x3a6   : > { %2380 = vmatprep.subr.bf16.mxu0 %v2507_v23  ;;  %2404 = vmatprep.subr.bf16.mxu1 %v2507_v23 }
 0x3a9   : > { %2382 = vmatpush3.bf16.msk.msra.mxu0 %vm2722_vm8, %v2508_v24  ;;  %2406 = vmatpush3.bf16.msk.msra.mxu1 %vm2722_vm8, %v2508_v24  ;;  %vm3482_vm8 = vnez %v3415_v34 }
 0x3aa   : > { %2383 = vmatprep.subr.bf16.mxu0 %v2507_v23  ;;  %2407 = vmatprep.subr.bf16.mxu1 %v2507_v23 }
 0x3ad   : > { %2385 = vmatpush3.bf16.msk.msra.mxu0 %vm2750_vm3, %v2508_v24  ;;  %2409 = vmatpush3.bf16.msk.msra.mxu1 %vm2750_vm3, %v2508_v24  ;;  %vm3483_vm3 = vnez %v3419_v40 }
 0x3ae   : > { %2386 = vmatprep.subr.bf16.mxu0 %v2507_v23  ;;  %2410 = vmatprep.subr.bf16.mxu1 %v2507_v23 }
 0x3b1   : > { %2388 = vmatpush3.bf16.msk.msra.mxu0 %vm2778_vm15, %v2508_v24  ;;  %2412 = vmatpush3.bf16.msk.msra.mxu1 %vm2778_vm15, %v2508_v24  ;;  %vm3484_vm15 = vnez %v3423_v46 }
 0x3b2   : > { %2389 = vmatprep.subr.bf16.mxu0 %v2507_v23  ;;  %2413 = vmatprep.subr.bf16.mxu1 %v2507_v23 }
 0x3b5   : > { %2391 = vmatpush3.bf16.msk.msra.mxu0 %vm2806_vm13, %v2508_v24  ;;  %2415 = vmatpush3.bf16.msk.msra.mxu1 %vm2806_vm13, %v2508_v24  ;;  %vm3486_vm13 = vnez %v3485_v20 }
 0x3b6   : > { %2392 = vmatprep.subr.bf16.mxu0 %v2507_v23  ;;  %2416 = vmatprep.subr.bf16.mxu1 %v2507_v23  ;;  %v1486_v23 = vld [vmem:[%s3374_s9 + $0x38] sm:$0xff] }
 0x3b9   : > { %2394 = vmatpush3.bf16.msk.msra.mxu0 %vm2832_vm2, %v2508_v24  ;;  %2418 = vmatpush3.bf16.msk.msra.mxu1 %vm2832_vm2, %v2508_v24  ;;  %vm3488_vm2 = vcmp.eq.s32.totalorder %v2854_v59, %v2868_v63 }
 0x3ba   : > { %2227 = vmatprep.subr.msk.bf16.mxu0 %vm3479_vm6, %v2508_v24 }
 0x3bc   : > { %2190 = vmatmul.mubr.f32.vlgmr.msra.gmra.mrb[0].mxu0 %v1198_v17  ;;  %2225 = vmatmul.mubr.f32.vlgmr.msra.gmra.mrb[0].mxu1 %v1269_v21  ;;  %v1484_v17 = vld [vmem:[%s3374_s9 + $0x28] sm:$0xff] }
 0x3bd   : > { %2228 = vmatpush3.bf16.msk.msra.mxu0 %vm3479_vm6, %v2508_v24  ;;  %2243 = vmatprep.mubr.bf16.mxu0 %v2464_v27  ;;  %vm3493_vm6 = vcmp.eq.s32.totalorder %v2854_v59, %v2884_v3 }
 0x3be   : > { %2229 = vmatprep.subr.msk.bf16.mxu0 %vm3480_vm11, %v2508_v24 }
 0x3c1   : > { %2230 = vmatpush3.bf16.msk.msra.mxu0 %vm3480_vm11, %v2508_v24  ;;  %vm3494_vm11 = vcmp.eq.s32.totalorder %v2854_v59, %v2880_v2  ;;  %v1465_v2 = vsub.s32 0, %v3503_v1 }
 0x3c2   : > { %2231 = vmatprep.subr.msk.bf16.mxu0 %vm3481_vm1, %v2508_v24 }
 0x3c5   : > { %2232 = vmatpush3.bf16.msk.msra.mxu0 %vm3481_vm1, %v2508_v24  ;;  %vm1877_vm1 = vmpackc.low %vm3494_vm11, %vm3493_vm6 }
 0x3c6   : > { %2233 = vmatprep.subr.msk.bf16.mxu0 %vm3482_vm8, %v2508_v24 }
 0x3c9   : > { %2234 = vmatpush3.bf16.msk.msra.mxu0 %vm3482_vm8, %v2508_v24  ;;  %vm3495_vm8 = vcmp.eq.s32.totalorder %v2854_v59, %v2892_v6 }
 0x3ca   : > { %2235 = vmatprep.subr.msk.bf16.mxu0 %vm3483_vm3, %v2508_v24 }
 0x3cd   : > { %2236 = vmatpush3.bf16.msk.msra.mxu0 %vm3483_vm3, %v2508_v24  ;;  %vm3496_vm3 = vcmp.eq.s32.totalorder %v2854_v59, %v2888_v4 }
 0x3ce   : > { %2237 = vmatprep.subr.msk.bf16.mxu0 %vm3484_vm15, %v2508_v24 }
 0x3d1   : > { %2238 = vmatpush3.bf16.msk.msra.mxu0 %vm3484_vm15, %v2508_v24  ;;  %vm1879_vm15 = vmpackc.low %vm3496_vm3, %vm3495_vm8 }
 0x3d2   : > { %2239 = vmatprep.subr.msk.bf16.mxu0 %vm2811_vm14, %v2508_v24 }
 0x3d5   : > { %2240 = vmatpush3.bf16.msk.msra.mxu0 %vm2811_vm14, %v2508_v24  ;;  %vm3487_vm14 = vcmp.eq.s32.totalorder %v2854_v59, %v2858_v61 }
 0x3d6   : > { %2241 = vmatprep.subr.msk.bf16.mxu0 %vm3486_vm13, %v2508_v24  ;;  %vm1871_vm4 = vmpackc.low %vm3488_vm2, %vm3487_vm14  ;;  %vm3498_vm14 = vcmp.eq.s32.totalorder %v2854_v59, %v2896_v7 }
 0x3d7   : > { %2251 = vmatprep.subr.msk.bf16.mxu1 %vm1871_vm4, %v2508_v24 }
 0x3d8   : > { %2252 = vmatpush3.bf16.msk.msra.mxu1 %vm1871_vm4, %v2508_v24  ;;  %vm3499_vm4 = vcmp.eq.s32.totalorder %v2854_v59, %v2908_v10 }
 0x3d9   : > { %2242 = vmatpush3.bf16.msk.msra.mxu0 %vm3486_vm13, %v2508_v24  ;;  %2253 = vmatprep.subr.msk.bf16.mxu1 %vm1873_vm12, %v2508_v24  ;;  %vm3497_vm13 = vcmp.eq.s32.totalorder %v2854_v59, %v2900_v8  ;;  %vm1883_vm9 = vmpackc.low %vm3500_vm5, %vm3499_vm4 }
 0x3da   : > { %vm1881_vm2 = vmpackc.low %vm3498_vm14, %vm3497_vm13 }
 0x3dc   : > { %2244 = vmatmul.mubr.bf16.vlgmr.msra.gmra.mrb[4].mxu0 %v2465_v22  ;;  %2254 = vmatpush3.bf16.msk.msra.mxu1 %vm1873_vm12, %v2508_v24  ;;  %vm3501_vm12 = vcmp.eq.s32.totalorder %v2854_v59, %v2916_v12  ;;  %v1346_v59 = vld [vmem:[%s3372_s7] sm:$0xff]  ;;  %v1473_v12 = vsub.s32 1, %v3503_v1 }
 0x3dd   : > { %2247 = vmatprep.mubr.bf16.mxu0 %v2466_v28  ;;  %2255 = vmatprep.subr.msk.bf16.mxu1 %vm1875_vm10, %v2508_v24  ;;  %vm1885_vm7 = vmpackc.low %vm3502_vm0, %vm3501_vm12  ;;  %v1347_v62 = vmul.f32 0.05, %v1346_v59 }
 0x3e0   : > { %2256 = vmatpush3.bf16.msk.msra.mxu1 %vm1875_vm10, %v2508_v24 }
 0x3e1   : > { %2257 = vmatprep.subr.msk.bf16.mxu1 %vm1877_vm1, %v2508_v24 }
 0x3e4   : > { %2248 = vmatmul.mubr.bf16.gmra.mrb[8].mxu0 %v2467_v33  ;;  %2258 = vmatpush3.bf16.msk.msra.mxu1 %vm1877_vm1, %v2508_v24 }
 0x3e5   : > { %2259 = vmatprep.subr.msk.bf16.mxu1 %vm1879_vm15, %v2508_v24 }
 0x3e8   : > { %2260 = vmatpush3.bf16.msk.msra.mxu1 %vm1879_vm15, %v2508_v24 }
 0x3e9   : > { %2261 = vmatprep.subr.msk.bf16.mxu1 %vm1881_vm2, %v2508_v24 }
 0x3ec   : > { %2262 = vmatpush3.bf16.msk.msra.mxu1 %vm1881_vm2, %v2508_v24 }
 0x3ed   : > { %2263 = vmatprep.subr.msk.bf16.mxu1 %vm1883_vm9, %v2508_v24 }
 0x3f0   : > { %2264 = vmatpush3.bf16.msk.msra.mxu1 %vm1883_vm9, %v2508_v24 }
 0x3f1   : > { %2265 = vmatprep.subr.msk.bf16.mxu1 %vm1885_vm7, %v2508_v24 }
 0x3f4   : > { %2266 = vmatpush3.bf16.msk.msra.mxu1 %vm1885_vm7, %v2508_v24 }
 0x48f   : > { %v1265_v34 = vpop.f32.mrb[0].mxu0  ;;  %v1339_v39 = vpop.f32.mrb[0].mxu1 }
 0x490   : > { %v1270_v40 = vsub.f32 %v2923_v25, %v1265_v34  ;;  %v2191_v45 = vpop.f32.mrb[1].mxu0  ;;  %v1340_v46 = vadd.f32 1e-12, %v1339_v39  ;;  %v2226_v51 = vpop.f32.mrb[1].mxu1 }
 0x492   : > { %v1271_v52 = vmul.f32 1.442695, %v1270_v40  ;;  %2468 = vrcp.f32 %v1340_v46 }
 0x494   : > { %2470 = vpow2.f32 %v1271_v52 }
 0x49c   : > { %v2469_v55 = vpop.eup %2468 }
 0x49e   : > { %v2471_v60 = vpop.eup %2470 }
 0x49f   : > { %v1344_v61 = vmul.f32 %v2471_v60, %v2469_v55 }
 0x4a1   : > { %v1345_v63 = vmul.f32 0.95, %v1344_v61 }
 0x4a3   : > { %v1348_v0 = vadd.f32 %v1347_v62, %v1345_v63 }
 0x4a5   : > { %1349 = vst [vmem:[%s3373_s8] sm:$0xff] %v1348_v0  ;;  %v1466_v3 = vrot.slane %v1348_v0, %v1465_v2  ;;  %v1474_v31 = vrot.slane %v1348_v0, %v1473_v12 }
 0x4af   : > { %v2245_v4 = vpop.f32.mrb[4].mxu0 }
 0x4b0   : > { %v1469_v6 = vmul.f32 %v2245_v4, %v1466_v3  ;;  %v1432_v7 = vpop.f32.mrb[5].mxu0 }
 0x4b1   : > { %v1467_v8 = vmul.f32 %v1466_v3, %v1432_v7  ;;  %v2246_v9 = vpop.f32.mrb[6].mxu0 }
 0x4b2   : > { %v1470_v10 = vmul.f32 %v2246_v9, %v1466_v3  ;;  %v1435_v11 = vpop.f32.mrb[7].mxu0 }
 0x4b3   : > { %v1468_v25 = vmul.f32 %v1466_v3, %v1435_v11 }
 0x4b4   : > { %v1488_v29 = vpack.c.bf16 %v1470_v10, %v1469_v6 }
 0x4b5   : > { %v1487_v47 = vpack.c.bf16 %v1468_v25, %v1467_v8 }
 0x4b7   : > { %v2249_v18 = vpop.f32.mrb[8].mxu0  ;;  %2267 = vmatprep.mubr.bf16.mxu1 %v1487_v47 }
 0x4b8   : > { %v1477_v19 = vmul.f32 %v2249_v18, %v1474_v31  ;;  %v1448_v57 = vpop.f32.mrb[9].mxu0  ;;  %2268 = vmatmul.mubr.bf16.vlgmr.msra.gmra.mrb[4].mxu1 %v1488_v29 }
 0x4b9   : > { %v1475_v58 = vmul.f32 %v1474_v31, %v1448_v57  ;;  %v2250_v35 = vpop.f32.mrb[10].mxu0 }
 0x4ba   : > { %v1478_v30 = vmul.f32 %v2250_v35, %v1474_v31  ;;  %v1451_v48 = vpop.f32.mrb[11].mxu0 }
 0x4bb   : > { %v1476_v5 = vmul.f32 %v1474_v31, %v1451_v48 }
 0x4bc   : > { %v1490_v44 = vpack.c.bf16 %v1478_v30, %v1477_v19 }
 0x4bd   : > { %v1489_v36 = vpack.c.bf16 %v1476_v5, %v1475_v58 }
 0x4bf   : > { %2271 = vmatprep.mubr.bf16.mxu1 %v1489_v36 }
 0x4c0   : > { %2272 = vmatmul.mubr.bf16.gmra.mrb[8].mxu1 %v1490_v44 }
 0x58b   : > { %v2269_v53 = vpop.f32.mrb[4].mxu1 }
 0x58c   : > { %v1558_v54 = vadd.f32 %v2269_v53, %v1481_v32  ;;  %v1525_v15 = vpop.f32.mrb[5].mxu1 }
 0x58d   : > { %v1556_v56 = vadd.f32 %v1525_v15, %v1479_v37  ;;  %v2270_v41 = vpop.f32.mrb[6].mxu1 }
 0x58e   : > { %1566 = vst [vmem:[%s3374_s9 + $0x10] sm:$0xff] %v1558_v54  ;;  %v1559_v42 = vadd.f32 %v2270_v41, %v1482_v38  ;;  %v1528_v13 = vpop.f32.mrb[7].mxu1 }
 0x58f   : > { %1564 = vst [vmem:[%s3374_s9] sm:$0xff] %v1556_v56  ;;  %v1557_v49 = vadd.f32 %v1528_v13, %v1480_v16 }
 0x590   : > { %1567 = vst [vmem:[%s3374_s9 + $0x18] sm:$0xff] %v1559_v42 }
 0x591   : > { %1565 = vst [vmem:[%s3374_s9 + $0x8] sm:$0xff] %v1557_v49 }
 0x593   : > { %v2273_v14 = vpop.f32.mrb[8].mxu1 }
 0x594   : > { %v1562_v24 = vadd.f32 %v2273_v14, %v1485_v50  ;;  %v1541_v26 = vpop.f32.mrb[9].mxu1 }
 0x595   : > { %v1560_v21 = vadd.f32 %v1541_v26, %v1483_v43  ;;  %v2274_v27 = vpop.f32.mrb[10].mxu1 }
 0x596   : > { %1570 = vst [vmem:[%s3374_s9 + $0x30] sm:$0xff] %v1562_v24  ;;  %v1563_v20 = vadd.f32 %v2274_v27, %v1486_v23  ;;  %v1544_v22 = vpop.f32.mrb[11].mxu1 }
 0x597   : > { %1568 = vst [vmem:[%s3374_s9 + $0x20] sm:$0xff] %v1560_v21  ;;  %v1561_v28 = vadd.f32 %v1544_v22, %v1484_v17 }
 0x598   : > { %1571 = vst [vmem:[%s3374_s9 + $0x38] sm:$0xff] %v1563_v20 }
 0x599   : > { %1569 = vst [vmem:[%s3374_s9 + $0x28] sm:$0xff] %v1561_v28 }
 0x59a PF: > { %s20_s11 = sadd.s32 1, %s2494_s11   ;;  %s3504_s30 = smov %s2490_s10 }
 0x59b   : > { %p17_p7 = scmp.ge.s32.totalorder %s20_s11, 4   ;;  %s3505_s10 = smov %s3507_s12 }
 0x59d   :  { %19 = sbr.rel (!%p17_p7) target bundleno = 2 (0x2), region = 114 }

// kernel: fwd.28
= control target key start
LH: loop header
LB: loop body
LE: loop exit
PB: predicated region body
PF: predicated region fallthrough
CT: control target
= control target key end

     0   :  { %15 = vsyncpa [#allocation5], 0  ;;  %s2433_s30 = smov 0   ;;  %s2435_s10 = smov 0   ;;  %s3204_s0 = inlined_call_operand.vmem [shape: f32[8,128], index: 0, kind: input, shape index: {}]   ;;  %s3205_s1 = inlined_call_operand.vmem [shape: f32[8,128], index: 1, kind: input, shape index: {}]   ;;  %s3206_s2 = inlined_call_operand.vmem [shape: f32[8,128], index: 2, kind: input, shape index: {}]   ;;  %s3207_s3 = inlined_call_operand.vmem [shape: bf16[32,128], index: 3, kind: input, shape index: {}]   ;;  %s3208_s4 = inlined_call_operand.vmem [shape: s32[1,128], index: 4, kind: input, shape index: {}]   ;;  %s3209_s5 = inlined_call_operand.vmem [shape: s32[1,128], index: 5, kind: input, shape index: {}]   ;;  %s3210_s6 = inlined_call_operand.vmem [shape: s32[128,1], index: 6, kind: input, shape index: {}]   ;;  %s3211_s7 = inlined_call_operand.vmem [shape: f32[8,128], index: 7, kind: input, shape index: {}]   ;;  %s3212_s8 = inlined_call_operand.hbm [shape: f32[8,128], index: 8, kind: output, shape index: {0}]   ;;  %s3213_s9 = inlined_call_operand.vmem [shape: f32[64,128], index: 9, kind: output, shape index: {1}]  }
   0x1   :  { %s2437_s11 = smov 0  }
   0x2 LB: > { %s1537_s12 = sadd.s32 4294967295, %s2365_s11   ;;  %s33_s13 = sadd.s32 1, %s2361_s10  ;;  %s2365_s11 = sphi %s2437_s11, %s21_s11   ;;  %s2361_s10 = sphi %s2435_s10, %s3316_s10   ;;  %s2357_s30 = sphi %s2433_s30, %s3315_s30  }
   0x3   : > { %p35_p0 = scmp.ge.s32.totalorder %s33_s13, 2  ;;  %p1544_p1 = scmp.ge.s32.totalorder %s2365_s11, 1 }
   0x4   : > { %p333_p2 = scmp.lt.s32.totalorder %s2365_s11, 3 }
   0x5   : > { %s3318_s13 = smov (%p35_p0, %s33_s13), 0 }
   0x6   : > { %p334_p3 = pnand %p1544_p1, %p333_p2 }
   0x7   : > { %p399_p4 = scmp.eq.s32.totalorder (!%p334_p3), %s2357_s30, 0 }
   0x8   : > { %337 = sbr.rel (%p334_p3) target bundleno = 1427 (0x593), region = 52 }
   0xf   : > { %404 = sbr.rel (!%p399_p4) target bundleno = 22 (0x16), region = 56  ;;  %v2367_v0 = vmov (%p399_p4), -1e+30   ;;  %v2368_v1 = vmov (%p399_p4), 0.0  }
  0x10   : > { %405 = vst [vmem:[#allocation2] sm:$0xff] (%p399_p4), %v2367_v0  ;;  %406 = vst [vmem:[#allocation3] sm:$0xff] (%p399_p4), %v2368_v1 }
  0x11   : > { %407 = vst [vmem:[%s3213_s9] sm:$0xff] (%p399_p4), %v2368_v1  ;;  %408 = vst [vmem:[%s3213_s9 + $0x8] sm:$0xff] (%p399_p4), %v2368_v1 }
  0x12   : > { %409 = vst [vmem:[%s3213_s9 + $0x10] sm:$0xff] (%p399_p4), %v2368_v1  ;;  %410 = vst [vmem:[%s3213_s9 + $0x18] sm:$0xff] (%p399_p4), %v2368_v1 }
  0x13   : > { %411 = vst [vmem:[%s3213_s9 + $0x20] sm:$0xff] (%p399_p4), %v2368_v1  ;;  %412 = vst [vmem:[%s3213_s9 + $0x28] sm:$0xff] (%p399_p4), %v2368_v1 }
  0x14   : > { %413 = vst [vmem:[%s3213_s9 + $0x30] sm:$0xff] (%p399_p4), %v2368_v1  ;;  %414 = vst [vmem:[%s3213_s9 + $0x38] sm:$0xff] (%p399_p4), %v2368_v1 }
  0x16 PF: > { %v433_v2 = vlaneseq  ;;  %v2369_v3 = vmov 0.0|0.0   ;;  %v2484_v4 = vld [vmem:[%s3209_s5] ss:$0 sm:$0xff]  ;;  %vm2370_vm0 = vmmov 0   ;;  %v2371_v7 = vmov 0.0   ;;  %v419_v8 = vld [vmem:[%s3210_s6 + $0x10] sm:$0xff] }
  0x17   : > { %2111 = vmatprep.subr.bf16.mxu0 %v2369_v3  ;;  %2135 = vmatprep.subr.bf16.mxu1 %v2369_v3  ;;  %v2492_v6 = vld [vmem:[%s3208_s4] ss:$0 sm:$0xff]  ;;  %v2372_v10 = vmov 0   ;;  %v420_v15 = vld [vmem:[%s3210_s6 + $0x18] sm:$0xff]  ;;  %v418_v18 = vld [vmem:[%s3210_s6 + $0x8] sm:$0xff]  ;;  %v3232_v20 = vmov 0 }
  0x18   : > { %v2487_v5 = vshrl.u32 %v433_v2, 7  ;;  %1889 = vmatprep.mubr.msk.f32.mxu0 %vm2370_vm0, %v2371_v7  ;;  %1924 = vmatprep.mubr.msk.f32.mxu1 %vm2370_vm0, %v2371_v7  ;;  %v417_v9 = vld [vmem:[%s3210_s6] sm:$0xff]  ;;  %v2373_v19 = vmov 1.0|1.0   ;;  %v3236_v22 = vmov 0  ;;  %v422_v25 = vld [vmem:[%s3210_s6 + $0x28] sm:$0xff] }
  0x19   : > { %2302 = vset.pattern.permute.xlu1 %v2372_v10  ;;  %2301 = vset.pattern.permute.xlu0 %v2372_v10  ;;  %v421_v26 = vld [vmem:[%s3210_s6 + $0x20] sm:$0xff]  ;;  %v3240_v28 = vmov 0  ;;  %v424_v31 = vld [vmem:[%s3210_s6 + $0x38] sm:$0xff]  ;;  %v423_v32 = vld [vmem:[%s3210_s6 + $0x30] sm:$0xff]  ;;  %v3244_v34 = vmov 0  ;;  %v3248_v40 = vmov 0 }
  0x1a   : > { %v435_v11 = vadd.s32 8, %v2487_v5  ;;  %vm508_vm1 = vcmp.eq.s32.totalorder %v2487_v5, %v2484_v4  ;;  %v436_v12 = vadd.s32 16, %v2487_v5  ;;  %563 = vperm.xlu1 %2302, %v419_v8   ;;  %557 = vperm.xlu0 %2301, %v417_v9   ;;  %vm456_vm2 = vcmp.eq.s32.totalorder %v2487_v5, %v2492_v6  ;;  %v426_v37 = vld [vmem:[%s3210_s6 + $0x48] sm:$0xff]  ;;  %v425_v38 = vld [vmem:[%s3210_s6 + $0x40] sm:$0xff]  ;;  %v428_v43 = vld [vmem:[%s3210_s6 + $0x58] sm:$0xff]  ;;  %p1628_p5 = scmp.ne.s32.totalorder %s2357_s30, 0 }
  0x1b   : > { %v437_v13 = vadd.s32 24, %v2487_v5  ;;  %v438_v14 = vadd.s32 32, %v2487_v5  ;;  %v439_v16 = vadd.s32 40, %v2487_v5  ;;  %v440_v23 = vadd.s32 48, %v2487_v5  ;;  %v427_v44 = vld [vmem:[%s3210_s6 + $0x50] sm:$0xff]  ;;  %v430_v49 = vld [vmem:[%s3210_s6 + $0x68] sm:$0xff] }
  0x1c   : > { %vm509_vm3 = vcmp.eq.s32.totalorder %v435_v11, %v2484_v4  ;;  %vm457_vm4 = vcmp.eq.s32.totalorder %v435_v11, %v2492_v6  ;;  %vm510_vm5 = vcmp.eq.s32.totalorder %v436_v12, %v2484_v4  ;;  %vm458_vm8 = vcmp.eq.s32.totalorder %v436_v12, %v2492_v6  ;;  %v429_v50 = vld [vmem:[%s3210_s6 + $0x60] sm:$0xff]  ;;  %v432_v53 = vld [vmem:[%s3210_s6 + $0x78] sm:$0xff]  ;;  %v431_v54 = vld [vmem:[%s3210_s6 + $0x70] sm:$0xff] }
  0x1d   : > { %vm2515_vm6 = vmpackc.low %vm509_vm3, %vm508_vm1  ;;  %vm511_vm7 = vcmp.eq.s32.totalorder %v437_v13, %v2484_v4  ;;  %vm459_vm9 = vcmp.eq.s32.totalorder %v437_v13, %v2492_v6  ;;  %vm512_vm13 = vcmp.eq.s32.totalorder %v438_v14, %v2484_v4  ;;  %vm513_vm14 = vcmp.eq.s32.totalorder %v439_v16, %v2484_v4  ;;  %v653_v57 = vld [vmem:[%s3205_s1] sm:$0xff] }
  0x1e   : > { %2113 = vmatpush3.bf16.msk.msra.mxu0 %vm2515_vm6, %v2373_v19  ;;  %vm2531_vm10 = vmpackc.low %vm457_vm4, %vm456_vm2  ;;  %566 = vperm.xlu1 %2302, %v420_v15   ;;  %v441_v24 = vadd.s32 56, %v2487_v5  ;;  %vm460_vm15 = vcmp.eq.s32.totalorder %v438_v14, %v2492_v6  ;;  %vm461_vm0 = vcmp.eq.s32.totalorder %v439_v16, %v2492_v6  ;;  %vm514_vm3 = vcmp.eq.s32.totalorder %v440_v23, %v2484_v4  ;;  %v652_v58 = vld [vmem:[%s3204_s0] sm:$0xff] }
  0x1f   : > { %v3233_v20 = vsel %vm2531_vm10, 4294967295, %v3232_v20  ;;  %2137 = vmatpush3.bf16.msk.msra.mxu1 %vm2531_vm10, %v2373_v19  ;;  %2114 = vmatprep.subr.bf16.mxu0 %v2369_v3  ;;  %vm2539_vm11 = vmpackc.low %vm511_vm7, %vm510_vm5  ;;  %v442_v29 = vadd.s32 64, %v2487_v5  ;;  %v443_v30 = vadd.s32 72, %v2487_v5  ;;  %vm462_vm5 = vcmp.eq.s32.totalorder %v440_v23, %v2492_v6  ;;  %v794_v15 = vld [vmem:[%s3206_s2] sm:$0xff] }
  0x20   : > { %2138 = vmatprep.subr.bf16.mxu1 %v2369_v3  ;;  %vm2544_vm12 = vmpackc.low %vm459_vm9, %vm458_vm8  ;;  %560 = vperm.xlu0 %2301, %v418_v18   ;;  %vm515_vm4 = vcmp.eq.s32.totalorder %v441_v24, %v2484_v4  ;;  %vm463_vm7 = vcmp.eq.s32.totalorder %v441_v24, %v2492_v6  ;;  %v444_v35 = vadd.s32 80, %v2487_v5  ;;  %v445_v36 = vadd.s32 88, %v2487_v5 }
  0x21   : > { %v3237_v22 = vsel %vm2544_vm12, 4294967295, %v3236_v22  ;;  %vm2567_vm1 = vmpackc.low %vm513_vm14, %vm512_vm13  ;;  %vm516_vm13 = vcmp.eq.s32.totalorder %v442_v29, %v2484_v4  ;;  %vm517_vm14 = vcmp.eq.s32.totalorder %v443_v30, %v2484_v4  ;;  %v446_v41 = vadd.s32 96, %v2487_v5 }
  0x22   : > { %2116 = vmatpush3.bf16.msk.msra.mxu0 %vm2539_vm11, %v2373_v19  ;;  %vm2572_vm2 = vmpackc.low %vm461_vm0, %vm460_vm15  ;;  %572 = vperm.xlu1 %2302, %v422_v25   ;;  %vm464_vm15 = vcmp.eq.s32.totalorder %v442_v29, %v2492_v6  ;;  %vm465_vm0 = vcmp.eq.s32.totalorder %v443_v30, %v2492_v6  ;;  %v447_v42 = vadd.s32 104, %v2487_v5  ;;  %v3252_v46 = vmov 0 }
  0x23   : > { %2140 = vmatpush3.bf16.msk.msra.mxu1 %vm2544_vm12, %v2373_v19  ;;  %2117 = vmatprep.subr.bf16.mxu0 %v2369_v3  ;;  %v3241_v28 = vsel %vm2572_vm2, 4294967295, %v3240_v28  ;;  %vm2595_vm8 = vmpackc.low %vm515_vm4, %vm514_vm3  ;;  %v448_v47 = vadd.s32 112, %v2487_v5  ;;  %v449_v48 = vadd.s32 120, %v2487_v5  ;;  %v3260_v56 = vmov 0 }
  0x24   : > { %2141 = vmatprep.subr.bf16.mxu1 %v2369_v3  ;;  %569 = vperm.xlu0 %2301, %v421_v26   ;;  %vm2600_vm9 = vmpackc.low %vm463_vm7, %vm462_vm5  ;;  %vm518_vm5 = vcmp.eq.s32.totalorder %v444_v35, %v2484_v4  ;;  %vm519_vm7 = vcmp.eq.s32.totalorder %v445_v36, %v2484_v4  ;;  %v2727_v59 = vand.u32 127, %v433_v2  ;;  %v804_v26 = vsub.s32 (!%p1628_p5), 0, %v2487_v5 }
  0x25   : > { %v3245_v34 = vsel %vm2600_vm9, 4294967295, %v3244_v34  ;;  %vm2623_vm3 = vmpackc.low %vm517_vm14, %vm516_vm13  ;;  %vm466_vm13 = vcmp.eq.s32.totalorder %v444_v35, %v2492_v6  ;;  %vm467_vm14 = vcmp.eq.s32.totalorder %v445_v36, %v2492_v6  ;;  %vm523_vm12 = vcmp.eq.s32.totalorder %v449_v48, %v2484_v4 }
  0x26   : > { %2119 = vmatpush3.bf16.msk.msra.mxu0 %vm2567_vm1, %v2373_v19  ;;  %578 = vperm.xlu1 %2302, %v424_v31   ;;  %vm2628_vm4 = vmpackc.low %vm465_vm0, %vm464_vm15  ;;  %vm470_vm10 = vcmp.eq.s32.totalorder %v448_v47, %v2492_v6  ;;  %v2374_v30 = vmov (!%p1628_p5), 0.0|0.0   ;;  %v2375_v31 = vmov (!%p1628_p5), 1.0|1.0  }
  0x27   : > { %2143 = vmatpush3.bf16.msk.msra.mxu1 %vm2572_vm2, %v2373_v19  ;;  %2120 = vmatprep.subr.bf16.mxu0 %v2369_v3  ;;  %v3249_v40 = vsel %vm2628_vm4, 4294967295, %v3248_v40  ;;  %vm2651_vm15 = vmpackc.low %vm519_vm7, %vm518_vm5  ;;  %vm521_vm2 = vcmp.eq.s32.totalorder %v447_v42, %v2484_v4  ;;  %vm468_vm5 = vcmp.eq.s32.totalorder %v446_v41, %v2492_v6  ;;  %vm469_vm7 = vcmp.eq.s32.totalorder %v447_v42, %v2492_v6 }
  0x28   : > { %2144 = vmatprep.subr.bf16.mxu1 %v2369_v3  ;;  %575 = vperm.xlu0 %2301, %v423_v32   ;;  %vm2656_vm0 = vmpackc.low %vm467_vm14, %vm466_vm13  ;;  %v2377_v32 = vmov (!%p1628_p5), 0.0  }
  0x29   : > { %v3253_v46 = vsel %vm2656_vm0, 4294967295, %v3252_v46  ;;  %vm2684_vm14 = vmpackc.low %vm469_vm7, %vm468_vm5 }
  0x2a   : > { %2122 = vmatpush3.bf16.msk.msra.mxu0 %vm2595_vm8, %v2373_v19  ;;  %584 = vperm.xlu1 %2302, %v426_v37  }
  0x2b   : > { %2146 = vmatpush3.bf16.msk.msra.mxu1 %vm2600_vm9, %v2373_v19  ;;  %2123 = vmatprep.subr.bf16.mxu0 %v2369_v3  ;;  %vm520_vm9 = vcmp.eq.s32.totalorder %v446_v41, %v2484_v4 }
  0x2c   : > { %2147 = vmatprep.subr.bf16.mxu1 %v2369_v3  ;;  %581 = vperm.xlu0 %2301, %v425_v38   ;;  %vm2679_vm13 = vmpackc.low %vm521_vm2, %vm520_vm9 }
  0x2e   : > { %2125 = vmatpush3.bf16.msk.msra.mxu0 %vm2623_vm3, %v2373_v19  ;;  %590 = vperm.xlu1 %2302, %v428_v43  }
  0x2f   : > { %2149 = vmatpush3.bf16.msk.msra.mxu1 %vm2628_vm4, %v2373_v19  ;;  %2126 = vmatprep.subr.bf16.mxu0 %v2369_v3  ;;  %vm522_vm4 = vcmp.eq.s32.totalorder %v448_v47, %v2484_v4 }
  0x30   : > { %2150 = vmatprep.subr.bf16.mxu1 %v2369_v3  ;;  %587 = vperm.xlu0 %2301, %v427_v44   ;;  %vm2705_vm2 = vmpackc.low %vm523_vm12, %vm522_vm4 }
  0x32   : > { %2128 = vmatpush3.bf16.msk.msra.mxu0 %vm2651_vm15, %v2373_v19  ;;  %596 = vperm.xlu1 %2302, %v430_v49  }
  0x33   : > { %2152 = vmatpush3.bf16.msk.msra.mxu1 %vm2656_vm0, %v2373_v19  ;;  %2129 = vmatprep.subr.bf16.mxu0 %v2369_v3  ;;  %vm471_vm0 = vcmp.eq.s32.totalorder %v449_v48, %v2492_v6 }
  0x34   : > { %2153 = vmatprep.subr.bf16.mxu1 %v2369_v3  ;;  %593 = vperm.xlu0 %2301, %v429_v50   ;;  %vm2710_vm9 = vmpackc.low %vm471_vm0, %vm470_vm10 }
  0x35   : > { %v3261_v56 = vsel %vm2710_vm9, 4294967295, %v3260_v56 }
  0x36   : > { %2131 = vmatpush3.bf16.msk.msra.mxu0 %vm2679_vm13, %v2373_v19  ;;  %602 = vperm.xlu1 %2302, %v432_v53  }
  0x37   : > { %2155 = vmatpush3.bf16.msk.msra.mxu1 %vm2684_vm14, %v2373_v19  ;;  %2132 = vmatprep.subr.bf16.mxu0 %v2369_v3 }
  0x38   : > { %2156 = vmatprep.subr.bf16.mxu1 %v2369_v3  ;;  %599 = vperm.xlu0 %2301, %v431_v54  }
  0x3a   : > { %2134 = vmatpush3.bf16.msk.msra.mxu0 %vm2705_vm2, %v2373_v19 }
  0x3b   : > { %2158 = vmatpush3.bf16.msk.msra.mxu1 %vm2710_vm9, %v2373_v19  ;;  %2159 = vmatprep.subr.bf16.mxu0 (!%p1628_p5), %v2374_v30 }
  0x3c   : > { %2183 = vmatprep.subr.bf16.mxu1 (!%p1628_p5), %v2374_v30 }
  0x3d   : > { %1890 = vmatmul.mubr.f32.vlgmr.msra.gmra.mrb[0].mxu0 %v653_v57 }
  0x3e   : > { %1925 = vmatmul.mubr.f32.vlgmr.msra.gmra.mrb[0].mxu1 %v652_v58  ;;  %2161 = vmatpush3.bf16.msk.msra.mxu0 (!%p1628_p5), %vm2515_vm6, %v2375_v31 }
  0x3f   : > { %2162 = vmatprep.subr.bf16.mxu0 (!%p1628_p5), %v2374_v30 }
  0x42   : > { %2164 = vmatpush3.bf16.msk.msra.mxu0 (!%p1628_p5), %vm2539_vm11, %v2375_v31 }
  0x43   : > { %2165 = vmatprep.subr.bf16.mxu0 (!%p1628_p5), %v2374_v30 }
  0x46   : > { %2167 = vmatpush3.bf16.msk.msra.mxu0 (!%p1628_p5), %vm2567_vm1, %v2375_v31 }
  0x47   : > { %2168 = vmatprep.subr.bf16.mxu0 (!%p1628_p5), %v2374_v30 }
  0x4a   : > { %2170 = vmatpush3.bf16.msk.msra.mxu0 (!%p1628_p5), %vm2595_vm8, %v2375_v31 }
  0x4b   : > { %2171 = vmatprep.subr.bf16.mxu0 (!%p1628_p5), %v2374_v30 }
  0x4e   : > { %2173 = vmatpush3.bf16.msk.msra.mxu0 (!%p1628_p5), %vm2623_vm3, %v2375_v31 }
  0x4f   : > { %2174 = vmatprep.subr.bf16.mxu0 (!%p1628_p5), %v2374_v30 }
  0x52   : > { %2176 = vmatpush3.bf16.msk.msra.mxu0 (!%p1628_p5), %vm2651_vm15, %v2375_v31 }
  0x53   : > { %2177 = vmatprep.subr.bf16.mxu0 (!%p1628_p5), %v2374_v30 }
  0x56   : > { %2179 = vmatpush3.bf16.msk.msra.mxu0 (!%p1628_p5), %vm2679_vm13, %v2375_v31 }
  0x57   : > { %2180 = vmatprep.subr.bf16.mxu0 (!%p1628_p5), %v2374_v30 }
  0x5a   : > { %2182 = vmatpush3.bf16.msk.msra.mxu0 (!%p1628_p5), %vm2705_vm2, %v2375_v31 }
  0x99   : > { %v2729_v60 = vpop.permute.xlu1 %563  ;;  %v2731_v61 = vpop.permute.xlu0 %557 }
  0x9a   : > { %vm3229_vm12 = vcmp.eq.s32.totalorder %v2727_v59, %v2731_v61 }
  0x9d   : > { %v2737_v62 = vpop.permute.xlu1 %566 }
  0x9e   : > { %vm3263_vm4 = vcmp.eq.s32.totalorder (!%p1628_p5), %v2727_v59, %v2737_v62 }
  0x9f   : > { %v2741_v63 = vpop.permute.xlu0 %560 }
  0xa0   : > { %vm3228_vm0 = vcmp.eq.s32.totalorder %v2727_v59, %v2741_v63 }
  0xa1   : > { %v2745_v0 = vpop.permute.xlu1 %572  ;;  %vm2184_vm10 = vmpackc.low (!%p1628_p5), %vm3228_vm0, %vm3229_vm12 }
  0xa2   : > { %2185 = vmatpush3.bf16.msk.msra.mxu1 (!%p1628_p5), %vm2184_vm10, %v2375_v31  ;;  %vm3265_vm0 = vcmp.eq.s32.totalorder (!%p1628_p5), %v2727_v59, %v2745_v0 }
  0xa3   : > { %v2749_v1 = vpop.permute.xlu0 %569  ;;  %2186 = vmatprep.subr.bf16.mxu1 (!%p1628_p5), %v2374_v30 }
  0xa4   : > { %vm3264_vm9 = vcmp.eq.s32.totalorder (!%p1628_p5), %v2727_v59, %v2749_v1 }
  0xa5   : > { %v2753_v2 = vpop.permute.xlu1 %578  ;;  %vm2190_vm10 = vmpackc.low (!%p1628_p5), %vm3265_vm0, %vm3264_vm9 }
  0xa7   : > { %v2757_v3 = vpop.permute.xlu0 %575 }
  0xa8   : > { %vm3266_vm12 = vcmp.eq.s32.totalorder (!%p1628_p5), %v2727_v59, %v2757_v3 }
  0xa9   : > { %v2761_v4 = vpop.permute.xlu1 %584 }
  0xab   : > { %v2765_v6 = vpop.permute.xlu0 %581 }
  0xad   : > { %v2769_v7 = vpop.permute.xlu1 %590 }
  0xaf   : > { %v2773_v8 = vpop.permute.xlu0 %587 }
  0xb1   : > { %v2777_v9 = vpop.permute.xlu1 %596 }
  0xb3   : > { %v2781_v10 = vpop.permute.xlu0 %593 }
  0xb5   : > { %v2785_v11 = vpop.permute.xlu1 %602 }
  0xb7   : > { %v2789_v12 = vpop.permute.xlu0 %599 }
 0x110   : > { %v720_v13 = vpop.f32.mrb[0].mxu0 }
 0x111   : > { %v790_v14 = vpop.f32.mrb[0].mxu1  ;;  %v1891_v16 = vpop.f32.mrb[1].mxu0 }
 0x112   : > { %v791_v18 = vadd.f32 %v790_v14, %v720_v13  ;;  %v1926_v19 = vpop.f32.mrb[1].mxu1  ;;  %801 = sbr.rel (%p1628_p5) target bundleno = 890 (0x37a), region = 60 }
 0x114   : > { %v795_v23 = vadd.f32 %v794_v15, %v791_v18 }
 0x116   : > { %vm796_vm7 = vcmp.gt.f32.partialorder %v795_v23, 0.0  ;;  %v797_v24 = vmul.f32 0.2, %v795_v23 }
 0x118   : > { %v2796_v25 = vsel %vm796_vm7, %v795_v23, %v797_v24  ;;  %vm2376_vm7 = vmmov (!%p1628_p5), 0  }
 0x119   : > { %v805_v29 = vrot.slane %v2796_v25, %v804_v26  ;;  %1959 = vmatprep.mubr.msk.f32.mxu0 %vm2376_vm7, %v2377_v32  ;;  %1994 = vmatprep.mubr.msk.f32.mxu1 %vm2376_vm7, %v2377_v32  ;;  %vm3262_vm7 = vcmp.eq.s32.totalorder %v2727_v59, %v2729_v60 }
 0x11a   : > { %vm2187_vm5 = vmpackc.low %vm3263_vm4, %vm3262_vm7  ;;  %vm3267_vm4 = vcmp.eq.s32.totalorder %v2727_v59, %v2753_v2 }
 0x11b   : > { %815 = vbcast.lane.b32.xlu1 %v805_v29, 272  ;;  %807 = vbcast.lane.b32.xlu0 %v805_v29, 256  ;;  %vm3268_vm9 = vmmov %vm3262_vm7  ;;  %vm3271_vm7 = vcmp.eq.s32.totalorder %v2727_v59, %v2731_v61 }
 0x11c   : > { %2188 = vmatpush3.bf16.msk.msra.mxu1 %vm2187_vm5, %v2375_v31  ;;  %vm2193_vm5 = vmpackc.low %vm3267_vm4, %vm3266_vm12 }
 0x11d   : > { %2189 = vmatprep.subr.bf16.mxu1 %v2374_v30  ;;  %vm3269_vm12 = vmmov %vm3265_vm0  ;;  %vm3270_vm0 = vcmp.eq.s32.totalorder %v2727_v59, %v2749_v1 }
 0x11f   : > { %819 = vbcast.lane.b32.xlu1 %v805_v29, 280  ;;  %811 = vbcast.lane.b32.xlu0 %v805_v29, 264 }
 0x120   : > { %2191 = vmatpush3.bf16.msk.msra.mxu1 %vm2190_vm10, %v2375_v31  ;;  %vm3272_vm10 = vcmp.eq.s32.totalorder %v2727_v59, %v2741_v63 }
 0x121   : > { %2192 = vmatprep.subr.bf16.mxu1 %v2374_v30 }
 0x123   : > { %827 = vbcast.lane.b32.xlu1 %v805_v29, 296  ;;  %823 = vbcast.lane.b32.xlu0 %v805_v29, 288 }
 0x124   : > { %2194 = vmatpush3.bf16.msk.msra.mxu1 %vm2193_vm5, %v2375_v31  ;;  %vm3273_vm5 = vcmp.eq.s32.totalorder %v2727_v59, %v2757_v3 }
 0x125   : > { %2195 = vmatprep.subr.bf16.mxu1 %v2374_v30 }
 0x127   : > { %835 = vbcast.lane.b32.xlu1 %v805_v29, 312  ;;  %831 = vbcast.lane.b32.xlu0 %v805_v29, 304 }
 0x12b   : > { %843 = vbcast.lane.b32.xlu1 %v805_v29, 328  ;;  %839 = vbcast.lane.b32.xlu0 %v805_v29, 320 }
 0x12f   : > { %851 = vbcast.lane.b32.xlu1 %v805_v29, 344  ;;  %847 = vbcast.lane.b32.xlu0 %v805_v29, 336 }
 0x133   : > { %859 = vbcast.lane.b32.xlu1 %v805_v29, 360  ;;  %855 = vbcast.lane.b32.xlu0 %v805_v29, 352 }
 0x137   : > { %867 = vbcast.lane.b32.xlu1 %v805_v29, 376  ;;  %863 = vbcast.lane.b32.xlu0 %v805_v29, 368 }
 0x18d   : > { %v816_v35 = vpop.permute.xlu1 %815  ;;  %v808_v36 = vpop.permute.xlu0 %807 }
 0x18e   : > { %v871_v53 = vsel %vm3268_vm9, %v816_v35, -1e+30  ;;  %v869_v58 = vsel %vm3271_vm7, %v808_v36, -1e+30  ;;  %vm3274_vm9 = vcmp.eq.s32.totalorder %v2727_v59, %v2761_v4  ;;  %vm3277_vm7 = vcmp.eq.s32.totalorder %v2727_v59, %v2769_v7 }
 0x191   : > { %v820_v37 = vpop.permute.xlu1 %819  ;;  %v812_v38 = vpop.permute.xlu0 %811 }
 0x192   : > { %v870_v13 = vsel %vm3272_vm10, %v812_v38, -1e+30  ;;  %vm3278_vm10 = vcmp.eq.s32.totalorder %v2727_v59, %v2773_v8 }
 0x195   : > { %v828_v41 = vpop.permute.xlu1 %827  ;;  %v824_v42 = vpop.permute.xlu0 %823 }
 0x196   : > { %v874_v54 = vsel %vm3269_vm12, %v828_v41, -1e+30  ;;  %v873_v57 = vsel %vm3270_vm0, %v824_v42, -1e+30  ;;  %vm3275_vm12 = vcmp.eq.s32.totalorder %v2727_v59, %v2765_v6  ;;  %vm3276_vm0 = vcmp.eq.s32.totalorder %v2727_v59, %v2737_v62 }
 0x197   : > { %v872_v19 = vsel %vm3276_vm0, %v820_v37, -1e+30  ;;  %v886_v23 = vmax.f32 %v870_v13, %v874_v54  ;;  %v885_v24 = vmax.f32 %v869_v58, %v873_v57  ;;  %vm906_vm0 = vcmask 1040384  }
 0x199   : > { %v836_v43 = vpop.permute.xlu1 %835  ;;  %v832_v44 = vpop.permute.xlu0 %831 }
 0x19a   : > { %v876_v14 = vsel %vm3267_vm4, %v836_v43, -1e+30  ;;  %v875_v15 = vsel %vm3273_vm5, %v832_v44, -1e+30  ;;  %vm3279_vm4 = vcmp.eq.s32.totalorder %v2727_v59, %v2777_v9  ;;  %vm3280_vm5 = vcmp.eq.s32.totalorder %v2727_v59, %v2781_v10 }
 0x19b   : > { %v888_v38 = vmax.f32 %v872_v19, %v876_v14  ;;  %v887_v41 = vmax.f32 %v871_v53, %v875_v15 }
 0x19d   : > { %v844_v47 = vpop.permute.xlu1 %843  ;;  %v840_v48 = vpop.permute.xlu0 %839 }
 0x19e   : > { %v878_v16 = vsel %vm3274_vm9, %v844_v47, -1e+30  ;;  %v877_v18 = vsel %vm3275_vm12, %v840_v48, -1e+30  ;;  %vm3281_vm9 = vcmp.eq.s32.totalorder %v2727_v59, %v2785_v11  ;;  %vm3282_vm12 = vcmp.eq.s32.totalorder %v2727_v59, %v2789_v12 }
 0x19f   : > { %v890_v42 = vmax.f32 %v886_v23, %v878_v16  ;;  %v889_v43 = vmax.f32 %v885_v24, %v877_v18 }
 0x1a1   : > { %v852_v49 = vpop.permute.xlu1 %851  ;;  %v848_v50 = vpop.permute.xlu0 %847 }
 0x1a2   : > { %v880_v26 = vsel %vm3277_vm7, %v852_v49, -1e+30  ;;  %v879_v35 = vsel %vm3278_vm10, %v848_v50, -1e+30  ;;  %vm3283_vm7 = vcmp.eq.s32.totalorder %v2727_v59, %v2765_v6  ;;  %vm3284_vm10 = vcmp.eq.s32.totalorder %v2727_v59, %v2761_v4 }
 0x1a3   : > { %v892_v44 = vmax.f32 %v888_v38, %v880_v26  ;;  %v891_v47 = vmax.f32 %v887_v41, %v879_v35 }
 0x1a5   : > { %v860_v29 = vpop.permute.xlu1 %859  ;;  %v856_v32 = vpop.permute.xlu0 %855 }
 0x1a6   : > { %v882_v36 = vsel %vm3279_vm4, %v860_v29, -1e+30  ;;  %v881_v37 = vsel %vm3280_vm5, %v856_v32, -1e+30  ;;  %v908_v32 = vld [vmem:[#allocation2] sm:$0xff]  ;;  %vm2196_vm4 = vmpackc.low %vm3284_vm10, %vm3283_vm7  ;;  %vm3285_vm5 = vcmp.eq.s32.totalorder %v2727_v59, %v2773_v8  ;;  %vm3288_vm7 = vcmp.eq.s32.totalorder %v2727_v59, %v2777_v9 }
 0x1a7   : > { %v894_v48 = vmax.f32 %v890_v42, %v882_v36  ;;  %v893_v49 = vmax.f32 %v889_v43, %v881_v37  ;;  %2197 = vmatpush3.bf16.msk.msra.mxu1 %vm2196_vm4, %v2375_v31  ;;  %vm3289_vm4 = vcmp.eq.s32.totalorder %v2727_v59, %v2789_v12 }
 0x1a8   : > { %2198 = vmatprep.subr.bf16.mxu1 %v2374_v30 }
 0x1a9   : > { %v868_v54 = vpop.permute.xlu1 %867  ;;  %v864_v57 = vpop.permute.xlu0 %863  ;;  %v897_v14 = vmax.f32 %v893_v49, %v894_v48  ;;  %v1053_v48 = vld [vmem:[#allocation3] sm:$0xff] }
 0x1aa   : > { %v884_v50 = vsel %vm3281_vm9, %v868_v54, -1e+30  ;;  %v883_v58 = vsel %vm3282_vm12, %v864_v57, -1e+30  ;;  %vm3286_vm9 = vcmp.eq.s32.totalorder %v2727_v59, %v2769_v7 }
 0x1ab   : > { %v896_v13 = vmax.f32 %v892_v44, %v884_v50  ;;  %v895_v29 = vmax.f32 %v891_v47, %v883_v58  ;;  %vm2199_vm12 = vmpackc.low %vm3286_vm9, %vm3285_vm5  ;;  %vm3290_vm5 = vcmp.eq.s32.totalorder %v2727_v59, %v2785_v11 }
 0x1ac   : > { %2200 = vmatpush3.bf16.msk.msra.mxu1 %vm2199_vm12, %v2375_v31  ;;  %vm2205_vm9 = vmpackc.low %vm3290_vm5, %vm3289_vm4 }
 0x1ad   : > { %v898_v53 = vmax.f32 %v895_v29, %v896_v13  ;;  %2201 = vmatprep.subr.bf16.mxu1 %v2374_v30 }
 0x1af   : > { %v899_v15 = vmax.f32 %v897_v14, %v898_v53 }
 0x1b1   : > { %v900_v16 = vrot.slane %v899_v15, 4 }
 0x1b3   : > { %v901_v18 = vmax.f32 %v899_v15, %v900_v16 }
 0x1b5   : > { %v902_v19 = vrot.slane %v901_v18, 2 }
 0x1b7   : > { %v903_v23 = vmax.f32 %v901_v18, %v902_v19 }
 0x1b9   : > { %v904_v24 = vrot.slane %v903_v23, 1 }
 0x1bb   : > { %v905_v26 = vmax.f32 %v903_v23, %v904_v24 }
 0x1bd   : > { %v907_v35 = vsel %vm906_vm0, %v905_v26, 0.0  ;;  %vm3287_vm0 = vcmp.eq.s32.totalorder %v2727_v59, %v2781_v10 }
 0x1be   : > { %v909_v36 = vmax.f32 %v908_v32, %v907_v35  ;;  %vm2202_vm10 = vmpackc.low %vm3288_vm7, %vm3287_vm0 }
 0x1bf   : > { %2203 = vmatpush3.bf16.msk.msra.mxu1 %vm2202_vm10, %v2375_v31 }
 0x1c0   : > { %1960 = vmatmul.mubr.f32.vlgmr.msra.gmra.mrb[0].mxu0 %v909_v36  ;;  %v1054_v37 = vsub.f32 %v908_v32, %v909_v36  ;;  %1060 = vst [vmem:[#allocation2] sm:$0xff] %v909_v36  ;;  %2204 = vmatprep.subr.bf16.mxu1 %v2374_v30 }
 0x1c2   : > { %v1055_v47 = vmul.f32 1.442695, %v1054_v37 }
 0x1c3   : > { %2206 = vmatpush3.bf16.msk.msra.mxu1 %vm2205_vm9, %v2375_v31 }
 0x293   : > { %v976_v38 = vpop.f32.mrb[0].mxu0 }
 0x294   : > { %v980_v41 = vsub.f32 %v2796_v25, %v976_v38  ;;  %v1961_v42 = vpop.f32.mrb[1].mxu0 }
 0x296   : > { %v981_v43 = vmul.f32 1.442695, %v980_v41 }
 0x298   : > { %2303 = vpow2.f32 %v981_v43 }
 0x299   : > { %2305 = vpow2.f32 %v1055_v47 }
 0x2a2   : > { %v2304_v44 = vpop.eup %2303 }
 0x2a3   : > { %1061 = vst [vmem:[#allocation4] sm:$0xff] %v2304_v44  ;;  %1995 = vmatmul.mubr.f32.vlgmr.msra.gmra.mrb[0].mxu1 %v2304_v44  ;;  %v2306_v30 = vpop.eup %2305 }
 0x2a4   : > { %v1057_v49 = vmul.f32 %v2306_v30, %v1053_v48 }
 0x376   : > { %v1049_v54 = vpop.f32.mrb[0].mxu1 }
 0x377   : > { %v1058_v57 = vadd.f32 %v1057_v49, %v1049_v54  ;;  %v1996_v50 = vpop.f32.mrb[1].mxu1 }
 0x379   : > { %1059 = vst [vmem:[#allocation3] sm:$0xff] %v1058_v57 }
 0x37a PF: > { %p1661_p6 = scmp.ne.s32.totalorder %s2357_s30, 1 }
 0x37b   : > { %v2378_v31 = vmov (!%p1661_p6), 0.0|0.0   ;;  %v2379_v58 = vmov (!%p1661_p6), 1.0|1.0   ;;  %vm2380_vm12 = vmmov (!%p1661_p6), 0   ;;  %v2381_v13 = vmov (!%p1661_p6), 0.0   ;;  %v1066_v17 = vld [vmem:[#allocation2] sm:$0xff] (!%p1661_p6) }
 0x37c   : > { %1065 = sbr.rel (%p1661_p6) target bundleno = 1402 (0x57a), region = 64  ;;  %2207 = vmatprep.subr.bf16.mxu0 (!%p1661_p6), %v2378_v31  ;;  %2231 = vmatprep.subr.bf16.mxu1 (!%p1661_p6), %v2378_v31  ;;  %v2307_v27 = vld [vmem:[%s3207_s3] sm:$0xff] (!%p1661_p6)   ;;  %vm3299_vm0 = vcmp.eq.s32.totalorder (!%p1661_p6), %v2727_v59, %v2741_v63  ;;  %vm3300_vm7 = vcmp.eq.s32.totalorder (!%p1661_p6), %v2727_v59, %v2729_v60  ;;  %vm3301_vm10 = vcmp.eq.s32.totalorder (!%p1661_p6), %v2727_v59, %v2737_v62  ;;  %v1325_v26 = vld [vmem:[%s3213_s9 + $0x18] sm:$0xff] (!%p1661_p6)  ;;  %v1323_v36 = vld [vmem:[%s3213_s9 + $0x8] sm:$0xff] (!%p1661_p6) }
 0x37d   : > { %2209 = vmatpush3.bf16.msk.msra.mxu0 (!%p1661_p6), %vm2515_vm6, %v2379_v58  ;;  %2233 = vmatpush3.bf16.msk.msra.mxu1 (!%p1661_p6), %vm2515_vm6, %v2379_v58  ;;  %vm3291_vm6 = vnez (!%p1661_p6), %v3233_v20  ;;  %v2308_v20 = vld [vmem:[%s3207_s3 + $0x8] sm:$0xff] (!%p1661_p6)   ;;  %vm1714_vm4 = vmpackc.low (!%p1661_p6), %vm3301_vm10, %vm3300_vm7  ;;  %vm3302_vm5 = vcmp.eq.s32.totalorder (!%p1661_p6), %v2727_v59, %v2749_v1  ;;  %vm3303_vm9 = vcmp.eq.s32.totalorder (!%p1661_p6), %v2727_v59, %v2745_v0  ;;  %vm3311_vm7 = vcmp.eq.s32.totalorder (!%p1661_p6), %v2727_v59, %v2777_v9  ;;  %v1221_v55 = vld [vmem:[%s3211_s7] sm:$0xff] (!%p1661_p6) }
 0x37e   : > { %2210 = vmatprep.subr.bf16.mxu0 (!%p1661_p6), %v2378_v31  ;;  %2234 = vmatprep.subr.bf16.mxu1 (!%p1661_p6), %v2378_v31  ;;  %v1222_v60 = vmul.f32 (!%p1661_p6), 0.05, %v1221_v55  ;;  %v1308_v0 = vsub.s32 (!%p1661_p6), 0, %v2487_v5  ;;  %v1316_v1 = vsub.s32 (!%p1661_p6), 1, %v2487_v5  ;;  %v1324_v5 = vld [vmem:[%s3213_s9 + $0x10] sm:$0xff] (!%p1661_p6)  ;;  %v1322_v23 = vld [vmem:[%s3213_s9] sm:$0xff] (!%p1661_p6) }
 0x37f   : > { %2029 = vmatprep.mubr.msk.f32.mxu0 (!%p1661_p6), %vm2380_vm12, %v2381_v13  ;;  %2064 = vmatprep.mubr.msk.f32.mxu1 (!%p1661_p6), %vm2380_vm12, %v2381_v13  ;;  %vm1716_vm12 = vmpackc.low (!%p1661_p6), %vm3303_vm9, %vm3302_vm5  ;;  %vm3313_vm5 = vcmp.eq.s32.totalorder (!%p1661_p6), %v2727_v59, %v2785_v11  ;;  %v1328_v44 = vld [vmem:[%s3213_s9 + $0x30] sm:$0xff] (!%p1661_p6)  ;;  %v1326_v47 = vld [vmem:[%s3213_s9 + $0x20] sm:$0xff] (!%p1661_p6) }
 0x380   : > { %v1137_v21 = vld [vmem:[#allocation3] sm:$0xff] (!%p1661_p6)  ;;  %v1329_v48 = vld [vmem:[%s3213_s9 + $0x38] sm:$0xff] (!%p1661_p6) }
 0x381   : > { %2212 = vmatpush3.bf16.msk.msra.mxu0 (!%p1661_p6), %vm2539_vm11, %v2379_v58  ;;  %2236 = vmatpush3.bf16.msk.msra.mxu1 (!%p1661_p6), %vm2539_vm11, %v2379_v58  ;;  %vm3292_vm11 = vnez (!%p1661_p6), %v3237_v22  ;;  %v1327_v57 = vld [vmem:[%s3213_s9 + $0x28] sm:$0xff] (!%p1661_p6) }
 0x382   : > { %2213 = vmatprep.subr.bf16.mxu0 (!%p1661_p6), %v2378_v31  ;;  %2237 = vmatprep.subr.bf16.mxu1 (!%p1661_p6), %v2378_v31 }
 0x385   : > { %2215 = vmatpush3.bf16.msk.msra.mxu0 %vm2567_vm1, %v2379_v58  ;;  %2239 = vmatpush3.bf16.msk.msra.mxu1 %vm2567_vm1, %v2379_v58  ;;  %vm3293_vm1 = vnez %v3241_v28 }
 0x386   : > { %2216 = vmatprep.subr.bf16.mxu0 %v2378_v31  ;;  %2240 = vmatprep.subr.bf16.mxu1 %v2378_v31 }
 0x389   : > { %2218 = vmatpush3.bf16.msk.msra.mxu0 %vm2595_vm8, %v2379_v58  ;;  %2242 = vmatpush3.bf16.msk.msra.mxu1 %vm2595_vm8, %v2379_v58  ;;  %vm3294_vm8 = vnez %v3245_v34 }
 0x38a   : > { %2219 = vmatprep.subr.bf16.mxu0 %v2378_v31  ;;  %2243 = vmatprep.subr.bf16.mxu1 %v2378_v31 }
 0x38d   : > { %2221 = vmatpush3.bf16.msk.msra.mxu0 %vm2623_vm3, %v2379_v58  ;;  %2245 = vmatpush3.bf16.msk.msra.mxu1 %vm2623_vm3, %v2379_v58  ;;  %vm3295_vm3 = vnez %v3249_v40 }
 0x38e   : > { %2222 = vmatprep.subr.bf16.mxu0 %v2378_v31  ;;  %2246 = vmatprep.subr.bf16.mxu1 %v2378_v31 }
 0x391   : > { %2224 = vmatpush3.bf16.msk.msra.mxu0 %vm2651_vm15, %v2379_v58  ;;  %2248 = vmatpush3.bf16.msk.msra.mxu1 %vm2651_vm15, %v2379_v58  ;;  %vm3296_vm15 = vnez %v3253_v46 }
 0x392   : > { %2225 = vmatprep.subr.bf16.mxu0 %v2378_v31  ;;  %2249 = vmatprep.subr.bf16.mxu1 %v2378_v31 }
 0x395   : > { %2227 = vmatpush3.bf16.msk.msra.mxu0 %vm2679_vm13, %v2379_v58  ;;  %2251 = vmatpush3.bf16.msk.msra.mxu1 %vm2679_vm13, %v2379_v58  ;;  %vm3297_vm13 = vnez %v3261_v56 }
 0x396   : > { %2228 = vmatprep.subr.bf16.mxu0 %v2378_v31  ;;  %2252 = vmatprep.subr.bf16.mxu1 %v2378_v31 }
 0x399   : > { %2230 = vmatpush3.bf16.msk.msra.mxu0 %vm2705_vm2, %v2379_v58  ;;  %2254 = vmatpush3.bf16.msk.msra.mxu1 %vm2705_vm2, %v2379_v58  ;;  %vm3298_vm2 = vcmp.eq.s32.totalorder %v2727_v59, %v2731_v61 }
 0x39a   : > { %2067 = vmatprep.subr.msk.bf16.mxu0 %vm3291_vm6, %v2379_v58 }
 0x39c   : > { %2030 = vmatmul.mubr.f32.vlgmr.msra.gmra.mrb[0].mxu0 %v1066_v17  ;;  %2065 = vmatmul.mubr.f32.vlgmr.msra.gmra.mrb[0].mxu1 %v1137_v21 }
 0x39d   : > { %2068 = vmatpush3.bf16.msk.msra.mxu0 %vm3291_vm6, %v2379_v58  ;;  %2083 = vmatprep.mubr.bf16.mxu0 %v2307_v27  ;;  %vm3304_vm6 = vcmp.eq.s32.totalorder %v2727_v59, %v2757_v3 }
 0x39e   : > { %2069 = vmatprep.subr.msk.bf16.mxu0 %vm3292_vm11, %v2379_v58 }
 0x3a1   : > { %2070 = vmatpush3.bf16.msk.msra.mxu0 %vm3292_vm11, %v2379_v58  ;;  %vm3305_vm11 = vcmp.eq.s32.totalorder %v2727_v59, %v2753_v2 }
 0x3a2   : > { %2071 = vmatprep.subr.msk.bf16.mxu0 %vm3293_vm1, %v2379_v58 }
 0x3a5   : > { %2072 = vmatpush3.bf16.msk.msra.mxu0 %vm3293_vm1, %v2379_v58  ;;  %vm1718_vm1 = vmpackc.low %vm3305_vm11, %vm3304_vm6  ;;  %vm1218_vm6 = vcmask 1041408  }
 0x3a6   : > { %2073 = vmatprep.subr.msk.bf16.mxu0 %vm3294_vm8, %v2379_v58 }
 0x3a9   : > { %2074 = vmatpush3.bf16.msk.msra.mxu0 %vm3294_vm8, %v2379_v58  ;;  %vm3306_vm8 = vcmp.eq.s32.totalorder %v2727_v59, %v2765_v6 }
 0x3aa   : > { %2075 = vmatprep.subr.msk.bf16.mxu0 %vm3295_vm3, %v2379_v58 }
 0x3ad   : > { %2076 = vmatpush3.bf16.msk.msra.mxu0 %vm3295_vm3, %v2379_v58  ;;  %vm3307_vm3 = vcmp.eq.s32.totalorder %v2727_v59, %v2761_v4 }
 0x3ae   : > { %2077 = vmatprep.subr.msk.bf16.mxu0 %vm3296_vm15, %v2379_v58 }
 0x3b1   : > { %2078 = vmatpush3.bf16.msk.msra.mxu0 %vm3296_vm15, %v2379_v58  ;;  %vm1720_vm15 = vmpackc.low %vm3307_vm3, %vm3306_vm8 }
 0x3b2   : > { %2079 = vmatprep.subr.msk.bf16.mxu0 %vm2684_vm14, %v2379_v58 }
 0x3b5   : > { %2080 = vmatpush3.bf16.msk.msra.mxu0 %vm2684_vm14, %v2379_v58  ;;  %vm1712_vm14 = vmpackc.low %vm3299_vm0, %vm3298_vm2  ;;  %vm3309_vm2 = vcmp.eq.s32.totalorder %v2727_v59, %v2769_v7 }
 0x3b6   : > { %2081 = vmatprep.subr.msk.bf16.mxu0 %vm3297_vm13, %v2379_v58  ;;  %2087 = vmatprep.subr.msk.bf16.mxu1 %vm1712_vm14, %v2379_v58 }
 0x3b7   : > { %2088 = vmatpush3.bf16.msk.msra.mxu1 %vm1712_vm14, %v2379_v58  ;;  %vm3310_vm14 = vcmp.eq.s32.totalorder %v2727_v59, %v2781_v10 }
 0x3b8   : > { %2089 = vmatprep.subr.msk.bf16.mxu1 %vm1714_vm4, %v2379_v58  ;;  %vm1724_vm10 = vmpackc.low %vm3311_vm7, %vm3310_vm14 }
 0x3b9   : > { %2082 = vmatpush3.bf16.msk.msra.mxu0 %vm3297_vm13, %v2379_v58  ;;  %vm3308_vm13 = vcmp.eq.s32.totalorder %v2727_v59, %v2773_v8 }
 0x3ba   : > { %vm1722_vm0 = vmpackc.low %vm3309_vm2, %vm3308_vm13 }
 0x3bb   : > { %2090 = vmatpush3.bf16.msk.msra.mxu1 %vm1714_vm4, %v2379_v58  ;;  %vm3312_vm4 = vcmp.eq.s32.totalorder %v2727_v59, %v2789_v12 }
 0x3bc   : > { %2084 = vmatmul.mubr.bf16.vlgmr.msra.gmra.mrb[4].mxu0 %v2308_v20  ;;  %2091 = vmatprep.subr.msk.bf16.mxu1 %vm1716_vm12, %v2379_v58  ;;  %vm1726_vm9 = vmpackc.low %vm3313_vm5, %vm3312_vm4 }
 0x3bf   : > { %2092 = vmatpush3.bf16.msk.msra.mxu1 %vm1716_vm12, %v2379_v58  ;;  %vm1216_vm12 = vcmask 1040384  }
 0x3c0   : > { %2093 = vmatprep.subr.msk.bf16.mxu1 %vm1718_vm1, %v2379_v58 }
 0x3c3   : > { %2094 = vmatpush3.bf16.msk.msra.mxu1 %vm1718_vm1, %v2379_v58 }
 0x3c4   : > { %2095 = vmatprep.subr.msk.bf16.mxu1 %vm1720_vm15, %v2379_v58 }
 0x3c7   : > { %2096 = vmatpush3.bf16.msk.msra.mxu1 %vm1720_vm15, %v2379_v58 }
 0x3c8   : > { %2097 = vmatprep.subr.msk.bf16.mxu1 %vm1722_vm0, %v2379_v58 }
 0x3cb   : > { %2098 = vmatpush3.bf16.msk.msra.mxu1 %vm1722_vm0, %v2379_v58 }
 0x3cc   : > { %2099 = vmatprep.subr.msk.bf16.mxu1 %vm1724_vm10, %v2379_v58 }
 0x3cf   : > { %2100 = vmatpush3.bf16.msk.msra.mxu1 %vm1724_vm10, %v2379_v58 }
 0x3d0   : > { %2101 = vmatprep.subr.msk.bf16.mxu1 %vm1726_vm9, %v2379_v58 }
 0x3d3   : > { %2102 = vmatpush3.bf16.msk.msra.mxu1 %vm1726_vm9, %v2379_v58 }
 0x46f   : > { %v1133_v22 = vpop.f32.mrb[0].mxu0  ;;  %v1207_v28 = vpop.f32.mrb[0].mxu1 }
 0x470   : > { %v1138_v33 = vsub.f32 %v2796_v25, %v1133_v22  ;;  %v2031_v34 = vpop.f32.mrb[1].mxu0  ;;  %v1208_v39 = vadd.f32 1e-12, %v1207_v28  ;;  %v2066_v40 = vpop.f32.mrb[1].mxu1 }
 0x472   : > { %v1139_v45 = vmul.f32 1.442695, %v1138_v33  ;;  %2309 = vrcp.f32 %v1208_v39 }
 0x474   : > { %2311 = vpow2.f32 %v1139_v45 }
 0x47c   : > { %v2310_v46 = vpop.eup %2309 }
 0x47e   : > { %v2312_v51 = vpop.eup %2311 }
 0x47f   : > { %v1212_v52 = vmul.f32 %v2312_v51, %v2310_v46 }
 0x481   : > { %v1214_v56 = vrot.slane %v1212_v52, 7 }
 0x483   : > { %v1217_v59 = vsel %vm1216_vm12, %v1212_v52, %v1214_v56 }
 0x484   : > { %v1219_v61 = vsel %vm1218_vm6, %v1217_v59, %v1212_v52 }
 0x485   : > { %v1220_v62 = vmul.f32 0.95, %v1219_v61 }
 0x487   : > { %v1223_v63 = vadd.f32 %v1222_v60, %v1220_v62 }
 0x489   : > { %1224 = vst [vmem:[#allocation4] sm:$0xff] %v1223_v63  ;;  %v1309_v2 = vrot.slane %v1223_v63, %v1308_v0  ;;  %v1317_v3 = vrot.slane %v1223_v63, %v1316_v1 }
 0x48f   : > { %v2085_v4 = vpop.f32.mrb[4].mxu0 }
 0x490   : > { %v1312_v6 = vmul.f32 %v2085_v4, %v1309_v2  ;;  %v1320_v7 = vmul.f32 %v2085_v4, %v1317_v3  ;;  %v1291_v8 = vpop.f32.mrb[5].mxu0 }
 0x491   : > { %v1310_v9 = vmul.f32 %v1309_v2, %v1291_v8  ;;  %v1318_v10 = vmul.f32 %v1317_v3, %v1291_v8  ;;  %v2086_v11 = vpop.f32.mrb[6].mxu0 }
 0x492   : > { %v1313_v12 = vmul.f32 %v2086_v11, %v1309_v2  ;;  %v1321_v25 = vmul.f32 %v2086_v11, %v1317_v3  ;;  %v1294_v29 = vpop.f32.mrb[7].mxu0 }
 0x493   : > { %v1311_v14 = vmul.f32 %v1309_v2, %v1294_v29  ;;  %v1319_v53 = vmul.f32 %v1317_v3, %v1294_v29 }
 0x494   : > { %v1331_v15 = vpack.c.bf16 %v1313_v12, %v1312_v6  ;;  %v1333_v16 = vpack.c.bf16 %v1321_v25, %v1320_v7 }
 0x495   : > { %v1330_v18 = vpack.c.bf16 %v1311_v14, %v1310_v9  ;;  %v1332_v19 = vpack.c.bf16 %v1319_v53, %v1318_v10 }
 0x497   : > { %2103 = vmatprep.mubr.bf16.mxu1 %v1330_v18 }
 0x498   : > { %2104 = vmatmul.mubr.bf16.vlgmr.msra.gmra.mrb[4].mxu1 %v1331_v15 }
 0x499   : > { %2107 = vmatprep.mubr.bf16.mxu1 %v1332_v19 }
 0x4a0   : > { %2108 = vmatmul.mubr.bf16.gmra.mrb[8].mxu1 %v1333_v16 }
 0x56b   : > { %v2105_v24 = vpop.f32.mrb[4].mxu1 }
 0x56c   : > { %v1401_v32 = vadd.f32 %v2105_v24, %v1324_v5  ;;  %v1368_v35 = vpop.f32.mrb[5].mxu1 }
 0x56d   : > { %v1399_v37 = vadd.f32 %v1368_v35, %v1322_v23  ;;  %v2106_v38 = vpop.f32.mrb[6].mxu1 }
 0x56e   : > { %1409 = vst [vmem:[%s3213_s9 + $0x10] sm:$0xff] %v1401_v32  ;;  %v1402_v41 = vadd.f32 %v2106_v38, %v1325_v26  ;;  %v1371_v42 = vpop.f32.mrb[7].mxu1 }
 0x56f   : > { %1407 = vst [vmem:[%s3213_s9] sm:$0xff] %v1399_v37  ;;  %v1400_v43 = vadd.f32 %v1371_v42, %v1323_v36 }
 0x570   : > { %1410 = vst [vmem:[%s3213_s9 + $0x18] sm:$0xff] %v1402_v41 }
 0x571   : > { %1408 = vst [vmem:[%s3213_s9 + $0x8] sm:$0xff] %v1400_v43 }
 0x573   : > { %v2109_v30 = vpop.f32.mrb[8].mxu1 }
 0x574   : > { %v1405_v49 = vadd.f32 %v2109_v30, %v1328_v44  ;;  %v1384_v54 = vpop.f32.mrb[9].mxu1 }
 0x575   : > { %v1403_v50 = vadd.f32 %v1384_v54, %v1326_v47  ;;  %v2110_v31 = vpop.f32.mrb[10].mxu1 }
 0x576   : > { %1413 = vst [vmem:[%s3213_s9 + $0x30] sm:$0xff] %v1405_v49  ;;  %v1406_v58 = vadd.f32 %v2110_v31, %v1329_v48  ;;  %v1387_v13 = vpop.f32.mrb[11].mxu1 }
 0x577   : > { %1411 = vst [vmem:[%s3213_s9 + $0x20] sm:$0xff] %v1403_v50  ;;  %v1404_v17 = vadd.f32 %v1387_v13, %v1327_v57 }
 0x578   : > { %1414 = vst [vmem:[%s3213_s9 + $0x38] sm:$0xff] %v1406_v58 }
 0x579   : > { %1412 = vst [vmem:[%s3213_s9 + $0x28] sm:$0xff] %v1404_v17 }
 0x57a PF: > { %p3169_p7 = scmp.eq.s32.totalorder %s1537_s12, 1  ;;  %s2382_s28 = smov [#allocation4]  }
 0x57b   : > { %s1424_s29 = sshll.u32 %s2382_s28, 4  ;;  %s1425_s29 = int_to_ptr.vmem [resolvable:$true] %s1424_s29 }
 0x57c   : > { %s2313_s14 = scalar_lea.vmem %s1425_s29, 128  ;;  %p2320_p11 = scmp.lt.s32.totalorder %s1425_s29, %s1425_s29 }
 0x57d   : > { %p2314_p8 = scmp.ne.s32.totalorder %s1425_s29, %s2313_s14  ;;  %p2321_p12 = scmp.lt.s32.totalorder %s2313_s14, %s2313_s14 }
 0x57f   : > { %p2315_p9 = pnand %p2314_p8, %p3169_p7  ;;  %p2322_p13 = por %p2321_p12, %p2320_p11 }
 0x581   : > { %p2316_p10 = pneg %p2315_p9 }
 0x583   : > { %p2323_p0 = pnand %p2322_p13, %p2316_p10 }
 0x585   : > { %2326 = shalt.err (!%p2323_p0)
}
 0x586   : > { %s2327_s12 = scalar_lea.hbm %s3212_s8, 128 }
 0x587   : > { %p2328_p1 = scmp.ne.s32.totalorder %s3212_s8, %s2327_s12  ;;  %p2333_p4 = scmp.lt.u32.totalorder %s2327_s12, %s3212_s8 }
 0x589   : > { %p2329_p2 = pnand %p2328_p1, %p3169_p7 }
 0x58b   : > { %p2330_p3 = pneg %p2329_p2 }
 0x58d   : > { %p2335_p5 = pnand %p2333_p4, %p2330_p3 }
 0x58f   : > { %2338 = shalt.err (!%p2335_p5)
}
 0x590   : > { %2256 = dma.vmem_to_hbm [thread:$0]  (%p3169_p7), %s1425_s29, 128, %s3212_s8, [#allocation5]  }
 0x591   : > { %2352 = dma.done.wait (%p3169_p7), [#allocation5], 128  }
 0x592   : > { %2354 = vsyncadd (%p3169_p7), [#allocation5], 4294967168 }
 0x593 PF: > { %s21_s11 = sadd.s32 1, %s2365_s11   ;;  %s3315_s30 = smov %s2361_s10 }
 0x594   : > { %p18_p6 = scmp.ge.s32.totalorder %s21_s11, 4   ;;  %s3316_s10 = smov %s3318_s13 }
 0x596   :  { %20 = sbr.rel (!%p18_p6) target bundleno = 2 (0x2), region = 112 }
 0x59d   :  { %1443 = vsyncpa [#allocation5], 1 }
 0x59e   :  { %1445 = vsyncpa [#allocation5 + $0x1], 1 }

// kernel: fwd.31
= control target key start
LH: loop header
LB: loop body
LE: loop exit
PB: predicated region body
PF: predicated region fallthrough
CT: control target
= control target key end

     0   :  { %s2345_s30 = smov 0   ;;  %s2347_s10 = smov 0   ;;  %s3056_s0 = inlined_call_operand.vmem [shape: f32[8,128], index: 0, kind: input, shape index: {}]   ;;  %s3057_s1 = inlined_call_operand.vmem [shape: f32[8,128], index: 1, kind: input, shape index: {}]   ;;  %s3058_s2 = inlined_call_operand.vmem [shape: f32[8,128], index: 2, kind: input, shape index: {}]   ;;  %s3059_s3 = inlined_call_operand.vmem [shape: bf16[32,128], index: 3, kind: input, shape index: {}]   ;;  %s3060_s4 = inlined_call_operand.vmem [shape: s32[1,128], index: 4, kind: input, shape index: {}]   ;;  %s3061_s5 = inlined_call_operand.vmem [shape: s32[1,128], index: 5, kind: input, shape index: {}]   ;;  %s3062_s6 = inlined_call_operand.vmem [shape: s32[128,1], index: 6, kind: input, shape index: {}]   ;;  %s3063_s7 = inlined_call_operand.vmem [shape: f32[8,128], index: 7, kind: input, shape index: {}]   ;;  %s3064_s8 = inlined_call_operand.vmem [shape: f32[8,128], index: 8, kind: output, shape index: {0}]   ;;  %s3065_s9 = inlined_call_operand.vmem [shape: f32[32,128], index: 9, kind: output, shape index: {1}]  }
   0x1   :  { %s2349_s11 = smov 0  }
   0x2 LB: > { %s32_s12 = sadd.s32 1, %s2274_s10  ;;  %p1501_p0 = scmp.ge.s32.totalorder %s2278_s11, 1  ;;  %s2278_s11 = sphi %s2349_s11, %s20_s11   ;;  %s2274_s10 = sphi %s2347_s10, %s3167_s10   ;;  %s2270_s30 = sphi %s2345_s30, %s3166_s30  }
   0x3   : > { %p34_p1 = scmp.ge.s32.totalorder %s32_s12, 2  ;;  %p332_p2 = scmp.lt.s32.totalorder %s2278_s11, 3 }
   0x5   : > { %s3169_s12 = smov (%p34_p1, %s32_s12), 0  ;;  %p333_p3 = pnand %p1501_p0, %p332_p2 }
   0x6   : > { %p406_p4 = scmp.eq.s32.totalorder (!%p333_p3), %s2270_s30, 0 }
   0x7   : > { %336 = sbr.rel (%p333_p3) target bundleno = 1393 (0x571), region = 52 }
   0xe   : > { %411 = sbr.rel (!%p406_p4) target bundleno = 21 (0x15), region = 56  ;;  %v2280_v0 = vmov (%p406_p4), -1e+30   ;;  %v2281_v1 = vmov (%p406_p4), 0.0  }
   0xf   : > { %412 = vst [vmem:[#allocation2] sm:$0xff] (%p406_p4), %v2280_v0  ;;  %413 = vst [vmem:[#allocation3] sm:$0xff] (%p406_p4), %v2281_v1 }
  0x10   : > { %414 = vst [vmem:[%s3065_s9] sm:$0xff] (%p406_p4), %v2281_v1  ;;  %415 = vst [vmem:[%s3065_s9 + $0x8] sm:$0xff] (%p406_p4), %v2281_v1 }
  0x11   : > { %416 = vst [vmem:[%s3065_s9 + $0x10] sm:$0xff] (%p406_p4), %v2281_v1  ;;  %417 = vst [vmem:[%s3065_s9 + $0x18] sm:$0xff] (%p406_p4), %v2281_v1 }
  0x15 PF: > { %v436_v2 = vlaneseq  ;;  %v2282_v3 = vmov 0.0|0.0   ;;  %v2383_v4 = vld [vmem:[%s3061_s5] ss:$0 sm:$0xff]  ;;  %vm2283_vm0 = vmmov 0   ;;  %v2284_v7 = vmov 0.0   ;;  %v422_v8 = vld [vmem:[%s3062_s6 + $0x10] sm:$0xff] }
  0x16   : > { %2061 = vmatprep.subr.bf16.mxu0 %v2282_v3  ;;  %2085 = vmatprep.subr.bf16.mxu1 %v2282_v3  ;;  %v2391_v6 = vld [vmem:[%s3060_s4] ss:$0 sm:$0xff]  ;;  %v2285_v10 = vmov 0   ;;  %v423_v15 = vld [vmem:[%s3062_s6 + $0x18] sm:$0xff]  ;;  %v421_v18 = vld [vmem:[%s3062_s6 + $0x8] sm:$0xff]  ;;  %v3084_v20 = vmov 0 }
  0x17   : > { %v2386_v5 = vshrl.u32 %v436_v2, 7  ;;  %1843 = vmatprep.mubr.msk.f32.mxu0 %vm2283_vm0, %v2284_v7  ;;  %1878 = vmatprep.mubr.msk.f32.mxu1 %vm2283_vm0, %v2284_v7  ;;  %v420_v9 = vld [vmem:[%s3062_s6] sm:$0xff]  ;;  %v2286_v19 = vmov 1.0|1.0   ;;  %v3088_v22 = vmov 0  ;;  %v425_v25 = vld [vmem:[%s3062_s6 + $0x28] sm:$0xff] }
  0x18   : > { %2245 = vset.pattern.permute.xlu1 %v2285_v10  ;;  %2244 = vset.pattern.permute.xlu0 %v2285_v10  ;;  %v424_v26 = vld [vmem:[%s3062_s6 + $0x20] sm:$0xff]  ;;  %v3092_v28 = vmov 0  ;;  %v427_v31 = vld [vmem:[%s3062_s6 + $0x38] sm:$0xff]  ;;  %v426_v32 = vld [vmem:[%s3062_s6 + $0x30] sm:$0xff]  ;;  %v3096_v34 = vmov 0  ;;  %v3100_v40 = vmov 0 }
  0x19   : > { %v438_v11 = vadd.s32 8, %v2386_v5  ;;  %vm511_vm1 = vcmp.eq.s32.totalorder %v2386_v5, %v2383_v4  ;;  %v439_v12 = vadd.s32 16, %v2386_v5  ;;  %566 = vperm.xlu1 %2245, %v422_v8   ;;  %560 = vperm.xlu0 %2244, %v420_v9   ;;  %vm459_vm2 = vcmp.eq.s32.totalorder %v2386_v5, %v2391_v6  ;;  %v429_v37 = vld [vmem:[%s3062_s6 + $0x48] sm:$0xff]  ;;  %v428_v38 = vld [vmem:[%s3062_s6 + $0x40] sm:$0xff]  ;;  %v431_v43 = vld [vmem:[%s3062_s6 + $0x58] sm:$0xff]  ;;  %p1585_p5 = scmp.ne.s32.totalorder %s2270_s30, 0 }
  0x1a   : > { %v440_v13 = vadd.s32 24, %v2386_v5  ;;  %v441_v14 = vadd.s32 32, %v2386_v5  ;;  %v442_v16 = vadd.s32 40, %v2386_v5  ;;  %v443_v23 = vadd.s32 48, %v2386_v5  ;;  %v430_v44 = vld [vmem:[%s3062_s6 + $0x50] sm:$0xff]  ;;  %v433_v49 = vld [vmem:[%s3062_s6 + $0x68] sm:$0xff] }
  0x1b   : > { %vm512_vm3 = vcmp.eq.s32.totalorder %v438_v11, %v2383_v4  ;;  %vm460_vm4 = vcmp.eq.s32.totalorder %v438_v11, %v2391_v6  ;;  %vm513_vm5 = vcmp.eq.s32.totalorder %v439_v12, %v2383_v4  ;;  %vm461_vm8 = vcmp.eq.s32.totalorder %v439_v12, %v2391_v6  ;;  %v432_v50 = vld [vmem:[%s3062_s6 + $0x60] sm:$0xff]  ;;  %v435_v53 = vld [vmem:[%s3062_s6 + $0x78] sm:$0xff]  ;;  %v434_v54 = vld [vmem:[%s3062_s6 + $0x70] sm:$0xff] }
  0x1c   : > { %vm2414_vm6 = vmpackc.low %vm512_vm3, %vm511_vm1  ;;  %vm514_vm7 = vcmp.eq.s32.totalorder %v440_v13, %v2383_v4  ;;  %vm462_vm9 = vcmp.eq.s32.totalorder %v440_v13, %v2391_v6  ;;  %vm515_vm13 = vcmp.eq.s32.totalorder %v441_v14, %v2383_v4  ;;  %vm516_vm14 = vcmp.eq.s32.totalorder %v442_v16, %v2383_v4  ;;  %v656_v57 = vld [vmem:[%s3057_s1] sm:$0xff] }
  0x1d   : > { %2063 = vmatpush3.bf16.msk.msra.mxu0 %vm2414_vm6, %v2286_v19  ;;  %vm2430_vm10 = vmpackc.low %vm460_vm4, %vm459_vm2  ;;  %569 = vperm.xlu1 %2245, %v423_v15   ;;  %v444_v24 = vadd.s32 56, %v2386_v5  ;;  %vm463_vm15 = vcmp.eq.s32.totalorder %v441_v14, %v2391_v6  ;;  %vm464_vm0 = vcmp.eq.s32.totalorder %v442_v16, %v2391_v6  ;;  %vm517_vm3 = vcmp.eq.s32.totalorder %v443_v23, %v2383_v4  ;;  %v655_v58 = vld [vmem:[%s3056_s0] sm:$0xff] }
  0x1e   : > { %v3085_v20 = vsel %vm2430_vm10, 4294967295, %v3084_v20  ;;  %2087 = vmatpush3.bf16.msk.msra.mxu1 %vm2430_vm10, %v2286_v19  ;;  %2064 = vmatprep.subr.bf16.mxu0 %v2282_v3  ;;  %vm2438_vm11 = vmpackc.low %vm514_vm7, %vm513_vm5  ;;  %v445_v29 = vadd.s32 64, %v2386_v5  ;;  %v446_v30 = vadd.s32 72, %v2386_v5  ;;  %vm465_vm5 = vcmp.eq.s32.totalorder %v443_v23, %v2391_v6  ;;  %v797_v15 = vld [vmem:[%s3058_s2] sm:$0xff] }
  0x1f   : > { %2088 = vmatprep.subr.bf16.mxu1 %v2282_v3  ;;  %vm2443_vm12 = vmpackc.low %vm462_vm9, %vm461_vm8  ;;  %563 = vperm.xlu0 %2244, %v421_v18   ;;  %vm518_vm4 = vcmp.eq.s32.totalorder %v444_v24, %v2383_v4  ;;  %vm466_vm7 = vcmp.eq.s32.totalorder %v444_v24, %v2391_v6  ;;  %v447_v35 = vadd.s32 80, %v2386_v5  ;;  %v448_v36 = vadd.s32 88, %v2386_v5 }
  0x20   : > { %v3089_v22 = vsel %vm2443_vm12, 4294967295, %v3088_v22  ;;  %vm2466_vm1 = vmpackc.low %vm516_vm14, %vm515_vm13  ;;  %vm519_vm13 = vcmp.eq.s32.totalorder %v445_v29, %v2383_v4  ;;  %vm520_vm14 = vcmp.eq.s32.totalorder %v446_v30, %v2383_v4  ;;  %v449_v41 = vadd.s32 96, %v2386_v5 }
  0x21   : > { %2066 = vmatpush3.bf16.msk.msra.mxu0 %vm2438_vm11, %v2286_v19  ;;  %vm2471_vm2 = vmpackc.low %vm464_vm0, %vm463_vm15  ;;  %575 = vperm.xlu1 %2245, %v425_v25   ;;  %vm467_vm15 = vcmp.eq.s32.totalorder %v445_v29, %v2391_v6  ;;  %vm468_vm0 = vcmp.eq.s32.totalorder %v446_v30, %v2391_v6  ;;  %v450_v42 = vadd.s32 104, %v2386_v5  ;;  %v3104_v46 = vmov 0 }
  0x22   : > { %2090 = vmatpush3.bf16.msk.msra.mxu1 %vm2443_vm12, %v2286_v19  ;;  %2067 = vmatprep.subr.bf16.mxu0 %v2282_v3  ;;  %v3093_v28 = vsel %vm2471_vm2, 4294967295, %v3092_v28  ;;  %vm2494_vm8 = vmpackc.low %vm518_vm4, %vm517_vm3  ;;  %v451_v47 = vadd.s32 112, %v2386_v5  ;;  %v452_v48 = vadd.s32 120, %v2386_v5  ;;  %v3112_v56 = vmov 0 }
  0x23   : > { %2091 = vmatprep.subr.bf16.mxu1 %v2282_v3  ;;  %572 = vperm.xlu0 %2244, %v424_v26   ;;  %vm2499_vm9 = vmpackc.low %vm466_vm7, %vm465_vm5  ;;  %vm521_vm5 = vcmp.eq.s32.totalorder %v447_v35, %v2383_v4  ;;  %vm522_vm7 = vcmp.eq.s32.totalorder %v448_v36, %v2383_v4  ;;  %v2626_v59 = vand.u32 127, %v436_v2  ;;  %v807_v26 = vsub.s32 (!%p1585_p5), 0, %v2386_v5 }
  0x24   : > { %v3097_v34 = vsel %vm2499_vm9, 4294967295, %v3096_v34  ;;  %vm2522_vm3 = vmpackc.low %vm520_vm14, %vm519_vm13  ;;  %vm469_vm13 = vcmp.eq.s32.totalorder %v447_v35, %v2391_v6  ;;  %vm470_vm14 = vcmp.eq.s32.totalorder %v448_v36, %v2391_v6  ;;  %vm526_vm12 = vcmp.eq.s32.totalorder %v452_v48, %v2383_v4 }
  0x25   : > { %2069 = vmatpush3.bf16.msk.msra.mxu0 %vm2466_vm1, %v2286_v19  ;;  %581 = vperm.xlu1 %2245, %v427_v31   ;;  %vm2527_vm4 = vmpackc.low %vm468_vm0, %vm467_vm15  ;;  %vm473_vm10 = vcmp.eq.s32.totalorder %v451_v47, %v2391_v6  ;;  %v2287_v30 = vmov (!%p1585_p5), 0.0|0.0   ;;  %v2288_v31 = vmov (!%p1585_p5), 1.0|1.0  }
  0x26   : > { %2093 = vmatpush3.bf16.msk.msra.mxu1 %vm2471_vm2, %v2286_v19  ;;  %2070 = vmatprep.subr.bf16.mxu0 %v2282_v3  ;;  %v3101_v40 = vsel %vm2527_vm4, 4294967295, %v3100_v40  ;;  %vm2550_vm15 = vmpackc.low %vm522_vm7, %vm521_vm5  ;;  %vm524_vm2 = vcmp.eq.s32.totalorder %v450_v42, %v2383_v4  ;;  %vm471_vm5 = vcmp.eq.s32.totalorder %v449_v41, %v2391_v6  ;;  %vm472_vm7 = vcmp.eq.s32.totalorder %v450_v42, %v2391_v6 }
  0x27   : > { %2094 = vmatprep.subr.bf16.mxu1 %v2282_v3  ;;  %578 = vperm.xlu0 %2244, %v426_v32   ;;  %vm2555_vm0 = vmpackc.low %vm470_vm14, %vm469_vm13  ;;  %v2290_v32 = vmov (!%p1585_p5), 0.0  }
  0x28   : > { %v3105_v46 = vsel %vm2555_vm0, 4294967295, %v3104_v46  ;;  %vm2583_vm14 = vmpackc.low %vm472_vm7, %vm471_vm5 }
  0x29   : > { %2072 = vmatpush3.bf16.msk.msra.mxu0 %vm2494_vm8, %v2286_v19  ;;  %587 = vperm.xlu1 %2245, %v429_v37  }
  0x2a   : > { %2096 = vmatpush3.bf16.msk.msra.mxu1 %vm2499_vm9, %v2286_v19  ;;  %2073 = vmatprep.subr.bf16.mxu0 %v2282_v3  ;;  %vm523_vm9 = vcmp.eq.s32.totalorder %v449_v41, %v2383_v4 }
  0x2b   : > { %2097 = vmatprep.subr.bf16.mxu1 %v2282_v3  ;;  %584 = vperm.xlu0 %2244, %v428_v38   ;;  %vm2578_vm13 = vmpackc.low %vm524_vm2, %vm523_vm9 }
  0x2d   : > { %2075 = vmatpush3.bf16.msk.msra.mxu0 %vm2522_vm3, %v2286_v19  ;;  %593 = vperm.xlu1 %2245, %v431_v43  }
  0x2e   : > { %2099 = vmatpush3.bf16.msk.msra.mxu1 %vm2527_vm4, %v2286_v19  ;;  %2076 = vmatprep.subr.bf16.mxu0 %v2282_v3  ;;  %vm525_vm4 = vcmp.eq.s32.totalorder %v451_v47, %v2383_v4 }
  0x2f   : > { %2100 = vmatprep.subr.bf16.mxu1 %v2282_v3  ;;  %590 = vperm.xlu0 %2244, %v430_v44   ;;  %vm2604_vm2 = vmpackc.low %vm526_vm12, %vm525_vm4 }
  0x31   : > { %2078 = vmatpush3.bf16.msk.msra.mxu0 %vm2550_vm15, %v2286_v19  ;;  %599 = vperm.xlu1 %2245, %v433_v49  }
  0x32   : > { %2102 = vmatpush3.bf16.msk.msra.mxu1 %vm2555_vm0, %v2286_v19  ;;  %2079 = vmatprep.subr.bf16.mxu0 %v2282_v3  ;;  %vm474_vm0 = vcmp.eq.s32.totalorder %v452_v48, %v2391_v6 }
  0x33   : > { %2103 = vmatprep.subr.bf16.mxu1 %v2282_v3  ;;  %596 = vperm.xlu0 %2244, %v432_v50   ;;  %vm2609_vm9 = vmpackc.low %vm474_vm0, %vm473_vm10 }
  0x34   : > { %v3113_v56 = vsel %vm2609_vm9, 4294967295, %v3112_v56 }
  0x35   : > { %2081 = vmatpush3.bf16.msk.msra.mxu0 %vm2578_vm13, %v2286_v19  ;;  %605 = vperm.xlu1 %2245, %v435_v53  }
  0x36   : > { %2105 = vmatpush3.bf16.msk.msra.mxu1 %vm2583_vm14, %v2286_v19  ;;  %2082 = vmatprep.subr.bf16.mxu0 %v2282_v3 }
  0x37   : > { %2106 = vmatprep.subr.bf16.mxu1 %v2282_v3  ;;  %602 = vperm.xlu0 %2244, %v434_v54  }
  0x39   : > { %2084 = vmatpush3.bf16.msk.msra.mxu0 %vm2604_vm2, %v2286_v19 }
  0x3a   : > { %2108 = vmatpush3.bf16.msk.msra.mxu1 %vm2609_vm9, %v2286_v19  ;;  %2109 = vmatprep.subr.bf16.mxu0 (!%p1585_p5), %v2287_v30 }
  0x3b   : > { %2133 = vmatprep.subr.bf16.mxu1 (!%p1585_p5), %v2287_v30 }
  0x3c   : > { %1844 = vmatmul.mubr.f32.vlgmr.msra.gmra.mrb[0].mxu0 %v656_v57 }
  0x3d   : > { %1879 = vmatmul.mubr.f32.vlgmr.msra.gmra.mrb[0].mxu1 %v655_v58  ;;  %2111 = vmatpush3.bf16.msk.msra.mxu0 (!%p1585_p5), %vm2414_vm6, %v2288_v31 }
  0x3e   : > { %2112 = vmatprep.subr.bf16.mxu0 (!%p1585_p5), %v2287_v30 }
  0x41   : > { %2114 = vmatpush3.bf16.msk.msra.mxu0 (!%p1585_p5), %vm2438_vm11, %v2288_v31 }
  0x42   : > { %2115 = vmatprep.subr.bf16.mxu0 (!%p1585_p5), %v2287_v30 }
  0x45   : > { %2117 = vmatpush3.bf16.msk.msra.mxu0 (!%p1585_p5), %vm2466_vm1, %v2288_v31 }
  0x46   : > { %2118 = vmatprep.subr.bf16.mxu0 (!%p1585_p5), %v2287_v30 }
  0x49   : > { %2120 = vmatpush3.bf16.msk.msra.mxu0 (!%p1585_p5), %vm2494_vm8, %v2288_v31 }
  0x4a   : > { %2121 = vmatprep.subr.bf16.mxu0 (!%p1585_p5), %v2287_v30 }
  0x4d   : > { %2123 = vmatpush3.bf16.msk.msra.mxu0 (!%p1585_p5), %vm2522_vm3, %v2288_v31 }
  0x4e   : > { %2124 = vmatprep.subr.bf16.mxu0 (!%p1585_p5), %v2287_v30 }
  0x51   : > { %2126 = vmatpush3.bf16.msk.msra.mxu0 (!%p1585_p5), %vm2550_vm15, %v2288_v31 }
  0x52   : > { %2127 = vmatprep.subr.bf16.mxu0 (!%p1585_p5), %v2287_v30 }
  0x55   : > { %2129 = vmatpush3.bf16.msk.msra.mxu0 (!%p1585_p5), %vm2578_vm13, %v2288_v31 }
  0x56   : > { %2130 = vmatprep.subr.bf16.mxu0 (!%p1585_p5), %v2287_v30 }
  0x59   : > { %2132 = vmatpush3.bf16.msk.msra.mxu0 (!%p1585_p5), %vm2604_vm2, %v2288_v31 }
  0x98   : > { %v2628_v60 = vpop.permute.xlu1 %566  ;;  %v2630_v61 = vpop.permute.xlu0 %560 }
  0x99   : > { %vm3081_vm12 = vcmp.eq.s32.totalorder %v2626_v59, %v2630_v61 }
  0x9c   : > { %v2636_v62 = vpop.permute.xlu1 %569 }
  0x9d   : > { %vm3115_vm4 = vcmp.eq.s32.totalorder (!%p1585_p5), %v2626_v59, %v2636_v62 }
  0x9e   : > { %v2640_v63 = vpop.permute.xlu0 %563 }
  0x9f   : > { %vm3080_vm0 = vcmp.eq.s32.totalorder %v2626_v59, %v2640_v63 }
  0xa0   : > { %v2644_v0 = vpop.permute.xlu1 %575  ;;  %vm2134_vm10 = vmpackc.low (!%p1585_p5), %vm3080_vm0, %vm3081_vm12 }
  0xa1   : > { %2135 = vmatpush3.bf16.msk.msra.mxu1 (!%p1585_p5), %vm2134_vm10, %v2288_v31  ;;  %vm3117_vm0 = vcmp.eq.s32.totalorder (!%p1585_p5), %v2626_v59, %v2644_v0 }
  0xa2   : > { %v2648_v1 = vpop.permute.xlu0 %572  ;;  %2136 = vmatprep.subr.bf16.mxu1 (!%p1585_p5), %v2287_v30 }
  0xa3   : > { %vm3116_vm9 = vcmp.eq.s32.totalorder (!%p1585_p5), %v2626_v59, %v2648_v1 }
  0xa4   : > { %v2652_v2 = vpop.permute.xlu1 %581  ;;  %vm2140_vm10 = vmpackc.low (!%p1585_p5), %vm3117_vm0, %vm3116_vm9 }
  0xa6   : > { %v2656_v3 = vpop.permute.xlu0 %578 }
  0xa7   : > { %vm3118_vm12 = vcmp.eq.s32.totalorder (!%p1585_p5), %v2626_v59, %v2656_v3 }
  0xa8   : > { %v2660_v4 = vpop.permute.xlu1 %587 }
  0xaa   : > { %v2664_v6 = vpop.permute.xlu0 %584 }
  0xac   : > { %v2668_v7 = vpop.permute.xlu1 %593 }
  0xae   : > { %v2672_v8 = vpop.permute.xlu0 %590 }
  0xb0   : > { %v2676_v9 = vpop.permute.xlu1 %599 }
  0xb2   : > { %v2680_v10 = vpop.permute.xlu0 %596 }
  0xb4   : > { %v2684_v11 = vpop.permute.xlu1 %605 }
  0xb6   : > { %v2688_v12 = vpop.permute.xlu0 %602 }
 0x10f   : > { %v723_v13 = vpop.f32.mrb[0].mxu0 }
 0x110   : > { %v793_v14 = vpop.f32.mrb[0].mxu1  ;;  %v1845_v16 = vpop.f32.mrb[1].mxu0 }
 0x111   : > { %v794_v18 = vadd.f32 %v793_v14, %v723_v13  ;;  %v1880_v19 = vpop.f32.mrb[1].mxu1  ;;  %804 = sbr.rel (%p1585_p5) target bundleno = 889 (0x379), region = 60 }
 0x113   : > { %v798_v23 = vadd.f32 %v797_v15, %v794_v18 }
 0x115   : > { %vm799_vm7 = vcmp.gt.f32.partialorder %v798_v23, 0.0  ;;  %v800_v24 = vmul.f32 0.2, %v798_v23 }
 0x117   : > { %v2695_v25 = vsel %vm799_vm7, %v798_v23, %v800_v24  ;;  %vm2289_vm7 = vmmov (!%p1585_p5), 0  }
 0x118   : > { %v808_v29 = vrot.slane %v2695_v25, %v807_v26  ;;  %1913 = vmatprep.mubr.msk.f32.mxu0 %vm2289_vm7, %v2290_v32  ;;  %1948 = vmatprep.mubr.msk.f32.mxu1 %vm2289_vm7, %v2290_v32  ;;  %vm3114_vm7 = vcmp.eq.s32.totalorder %v2626_v59, %v2628_v60 }
 0x119   : > { %vm2137_vm5 = vmpackc.low %vm3115_vm4, %vm3114_vm7  ;;  %vm3119_vm4 = vcmp.eq.s32.totalorder %v2626_v59, %v2652_v2 }
 0x11a   : > { %818 = vbcast.lane.b32.xlu1 %v808_v29, 272  ;;  %810 = vbcast.lane.b32.xlu0 %v808_v29, 256  ;;  %vm3120_vm9 = vmmov %vm3114_vm7  ;;  %vm3123_vm7 = vcmp.eq.s32.totalorder %v2626_v59, %v2630_v61 }
 0x11b   : > { %2138 = vmatpush3.bf16.msk.msra.mxu1 %vm2137_vm5, %v2288_v31  ;;  %vm2143_vm5 = vmpackc.low %vm3119_vm4, %vm3118_vm12 }
 0x11c   : > { %2139 = vmatprep.subr.bf16.mxu1 %v2287_v30  ;;  %vm3121_vm12 = vmmov %vm3117_vm0  ;;  %vm3122_vm0 = vcmp.eq.s32.totalorder %v2626_v59, %v2648_v1 }
 0x11e   : > { %822 = vbcast.lane.b32.xlu1 %v808_v29, 280  ;;  %814 = vbcast.lane.b32.xlu0 %v808_v29, 264 }
 0x11f   : > { %2141 = vmatpush3.bf16.msk.msra.mxu1 %vm2140_vm10, %v2288_v31  ;;  %vm3124_vm10 = vcmp.eq.s32.totalorder %v2626_v59, %v2640_v63 }
 0x120   : > { %2142 = vmatprep.subr.bf16.mxu1 %v2287_v30 }
 0x122   : > { %830 = vbcast.lane.b32.xlu1 %v808_v29, 296  ;;  %826 = vbcast.lane.b32.xlu0 %v808_v29, 288 }
 0x123   : > { %2144 = vmatpush3.bf16.msk.msra.mxu1 %vm2143_vm5, %v2288_v31  ;;  %vm3125_vm5 = vcmp.eq.s32.totalorder %v2626_v59, %v2656_v3 }
 0x124   : > { %2145 = vmatprep.subr.bf16.mxu1 %v2287_v30 }
 0x126   : > { %838 = vbcast.lane.b32.xlu1 %v808_v29, 312  ;;  %834 = vbcast.lane.b32.xlu0 %v808_v29, 304 }
 0x12a   : > { %846 = vbcast.lane.b32.xlu1 %v808_v29, 328  ;;  %842 = vbcast.lane.b32.xlu0 %v808_v29, 320 }
 0x12e   : > { %854 = vbcast.lane.b32.xlu1 %v808_v29, 344  ;;  %850 = vbcast.lane.b32.xlu0 %v808_v29, 336 }
 0x132   : > { %862 = vbcast.lane.b32.xlu1 %v808_v29, 360  ;;  %858 = vbcast.lane.b32.xlu0 %v808_v29, 352 }
 0x136   : > { %870 = vbcast.lane.b32.xlu1 %v808_v29, 376  ;;  %866 = vbcast.lane.b32.xlu0 %v808_v29, 368 }
 0x18c   : > { %v819_v35 = vpop.permute.xlu1 %818  ;;  %v811_v36 = vpop.permute.xlu0 %810 }
 0x18d   : > { %v874_v53 = vsel %vm3120_vm9, %v819_v35, -1e+30  ;;  %v872_v58 = vsel %vm3123_vm7, %v811_v36, -1e+30  ;;  %vm3126_vm9 = vcmp.eq.s32.totalorder %v2626_v59, %v2660_v4  ;;  %vm3129_vm7 = vcmp.eq.s32.totalorder %v2626_v59, %v2668_v7 }
 0x190   : > { %v823_v37 = vpop.permute.xlu1 %822  ;;  %v815_v38 = vpop.permute.xlu0 %814 }
 0x191   : > { %v873_v13 = vsel %vm3124_vm10, %v815_v38, -1e+30  ;;  %vm3130_vm10 = vcmp.eq.s32.totalorder %v2626_v59, %v2672_v8 }
 0x194   : > { %v831_v41 = vpop.permute.xlu1 %830  ;;  %v827_v42 = vpop.permute.xlu0 %826 }
 0x195   : > { %v877_v54 = vsel %vm3121_vm12, %v831_v41, -1e+30  ;;  %v876_v57 = vsel %vm3122_vm0, %v827_v42, -1e+30  ;;  %vm3127_vm12 = vcmp.eq.s32.totalorder %v2626_v59, %v2664_v6  ;;  %vm3128_vm0 = vcmp.eq.s32.totalorder %v2626_v59, %v2636_v62 }
 0x196   : > { %v875_v19 = vsel %vm3128_vm0, %v823_v37, -1e+30  ;;  %v889_v23 = vmax.f32 %v873_v13, %v877_v54  ;;  %v888_v24 = vmax.f32 %v872_v58, %v876_v57  ;;  %vm909_vm0 = vcmask 1040384  }
 0x198   : > { %v839_v43 = vpop.permute.xlu1 %838  ;;  %v835_v44 = vpop.permute.xlu0 %834 }
 0x199   : > { %v879_v14 = vsel %vm3119_vm4, %v839_v43, -1e+30  ;;  %v878_v15 = vsel %vm3125_vm5, %v835_v44, -1e+30  ;;  %vm3131_vm4 = vcmp.eq.s32.totalorder %v2626_v59, %v2676_v9  ;;  %vm3132_vm5 = vcmp.eq.s32.totalorder %v2626_v59, %v2680_v10 }
 0x19a   : > { %v891_v38 = vmax.f32 %v875_v19, %v879_v14  ;;  %v890_v41 = vmax.f32 %v874_v53, %v878_v15 }
 0x19c   : > { %v847_v47 = vpop.permute.xlu1 %846  ;;  %v843_v48 = vpop.permute.xlu0 %842 }
 0x19d   : > { %v881_v16 = vsel %vm3126_vm9, %v847_v47, -1e+30  ;;  %v880_v18 = vsel %vm3127_vm12, %v843_v48, -1e+30  ;;  %vm3133_vm9 = vcmp.eq.s32.totalorder %v2626_v59, %v2684_v11  ;;  %vm3134_vm12 = vcmp.eq.s32.totalorder %v2626_v59, %v2688_v12 }
 0x19e   : > { %v893_v42 = vmax.f32 %v889_v23, %v881_v16  ;;  %v892_v43 = vmax.f32 %v888_v24, %v880_v18 }
 0x1a0   : > { %v855_v49 = vpop.permute.xlu1 %854  ;;  %v851_v50 = vpop.permute.xlu0 %850 }
 0x1a1   : > { %v883_v26 = vsel %vm3129_vm7, %v855_v49, -1e+30  ;;  %v882_v35 = vsel %vm3130_vm10, %v851_v50, -1e+30  ;;  %vm3135_vm7 = vcmp.eq.s32.totalorder %v2626_v59, %v2664_v6  ;;  %vm3136_vm10 = vcmp.eq.s32.totalorder %v2626_v59, %v2660_v4 }
 0x1a2   : > { %v895_v44 = vmax.f32 %v891_v38, %v883_v26  ;;  %v894_v47 = vmax.f32 %v890_v41, %v882_v35 }
 0x1a4   : > { %v863_v29 = vpop.permute.xlu1 %862  ;;  %v859_v32 = vpop.permute.xlu0 %858 }
 0x1a5   : > { %v885_v36 = vsel %vm3131_vm4, %v863_v29, -1e+30  ;;  %v884_v37 = vsel %vm3132_vm5, %v859_v32, -1e+30  ;;  %v911_v32 = vld [vmem:[#allocation2] sm:$0xff]  ;;  %vm2146_vm4 = vmpackc.low %vm3136_vm10, %vm3135_vm7  ;;  %vm3137_vm5 = vcmp.eq.s32.totalorder %v2626_v59, %v2672_v8  ;;  %vm3140_vm7 = vcmp.eq.s32.totalorder %v2626_v59, %v2676_v9 }
 0x1a6   : > { %v897_v48 = vmax.f32 %v893_v42, %v885_v36  ;;  %v896_v49 = vmax.f32 %v892_v43, %v884_v37  ;;  %2147 = vmatpush3.bf16.msk.msra.mxu1 %vm2146_vm4, %v2288_v31  ;;  %vm3141_vm4 = vcmp.eq.s32.totalorder %v2626_v59, %v2688_v12 }
 0x1a7   : > { %2148 = vmatprep.subr.bf16.mxu1 %v2287_v30 }
 0x1a8   : > { %v871_v54 = vpop.permute.xlu1 %870  ;;  %v867_v57 = vpop.permute.xlu0 %866  ;;  %v900_v14 = vmax.f32 %v896_v49, %v897_v48  ;;  %v1056_v48 = vld [vmem:[#allocation3] sm:$0xff] }
 0x1a9   : > { %v887_v50 = vsel %vm3133_vm9, %v871_v54, -1e+30  ;;  %v886_v58 = vsel %vm3134_vm12, %v867_v57, -1e+30  ;;  %vm3138_vm9 = vcmp.eq.s32.totalorder %v2626_v59, %v2668_v7 }
 0x1aa   : > { %v899_v13 = vmax.f32 %v895_v44, %v887_v50  ;;  %v898_v29 = vmax.f32 %v894_v47, %v886_v58  ;;  %vm2149_vm12 = vmpackc.low %vm3138_vm9, %vm3137_vm5  ;;  %vm3142_vm5 = vcmp.eq.s32.totalorder %v2626_v59, %v2684_v11 }
 0x1ab   : > { %2150 = vmatpush3.bf16.msk.msra.mxu1 %vm2149_vm12, %v2288_v31  ;;  %vm2155_vm9 = vmpackc.low %vm3142_vm5, %vm3141_vm4 }
 0x1ac   : > { %v901_v53 = vmax.f32 %v898_v29, %v899_v13  ;;  %2151 = vmatprep.subr.bf16.mxu1 %v2287_v30 }
 0x1ae   : > { %v902_v15 = vmax.f32 %v900_v14, %v901_v53 }
 0x1b0   : > { %v903_v16 = vrot.slane %v902_v15, 4 }
 0x1b2   : > { %v904_v18 = vmax.f32 %v902_v15, %v903_v16 }
 0x1b4   : > { %v905_v19 = vrot.slane %v904_v18, 2 }
 0x1b6   : > { %v906_v23 = vmax.f32 %v904_v18, %v905_v19 }
 0x1b8   : > { %v907_v24 = vrot.slane %v906_v23, 1 }
 0x1ba   : > { %v908_v26 = vmax.f32 %v906_v23, %v907_v24 }
 0x1bc   : > { %v910_v35 = vsel %vm909_vm0, %v908_v26, 0.0  ;;  %vm3139_vm0 = vcmp.eq.s32.totalorder %v2626_v59, %v2680_v10 }
 0x1bd   : > { %v912_v36 = vmax.f32 %v911_v32, %v910_v35  ;;  %vm2152_vm10 = vmpackc.low %vm3140_vm7, %vm3139_vm0 }
 0x1be   : > { %2153 = vmatpush3.bf16.msk.msra.mxu1 %vm2152_vm10, %v2288_v31 }
 0x1bf   : > { %1914 = vmatmul.mubr.f32.vlgmr.msra.gmra.mrb[0].mxu0 %v912_v36  ;;  %v1057_v37 = vsub.f32 %v911_v32, %v912_v36  ;;  %1063 = vst [vmem:[#allocation2] sm:$0xff] %v912_v36  ;;  %2154 = vmatprep.subr.bf16.mxu1 %v2287_v30 }
 0x1c1   : > { %v1058_v30 = vmul.f32 1.442695, %v1057_v37 }
 0x1c2   : > { %2156 = vmatpush3.bf16.msk.msra.mxu1 %vm2155_vm9, %v2288_v31 }
 0x292   : > { %v979_v38 = vpop.f32.mrb[0].mxu0 }
 0x293   : > { %v983_v41 = vsub.f32 %v2695_v25, %v979_v38  ;;  %v1915_v42 = vpop.f32.mrb[1].mxu0 }
 0x295   : > { %v984_v43 = vmul.f32 1.442695, %v983_v41 }
 0x297   : > { %2246 = vpow2.f32 %v984_v43 }
 0x298   : > { %2248 = vpow2.f32 %v1058_v30 }
 0x2a1   : > { %v2247_v44 = vpop.eup %2246 }
 0x2a2   : > { %1064 = vst [vmem:[%s3064_s8] sm:$0xff] %v2247_v44  ;;  %1949 = vmatmul.mubr.f32.vlgmr.msra.gmra.mrb[0].mxu1 %v2247_v44  ;;  %v2249_v47 = vpop.eup %2248 }
 0x2a3   : > { %v1060_v49 = vmul.f32 %v2249_v47, %v1056_v48 }
 0x375   : > { %v1052_v54 = vpop.f32.mrb[0].mxu1 }
 0x376   : > { %v1061_v57 = vadd.f32 %v1060_v49, %v1052_v54  ;;  %v1950_v31 = vpop.f32.mrb[1].mxu1 }
 0x378   : > { %1062 = vst [vmem:[#allocation3] sm:$0xff] %v1061_v57 }
 0x379 PF: > { %p1618_p6 = scmp.ne.s32.totalorder %s2270_s30, 1 }
 0x37a   : > { %v2291_v50 = vmov (!%p1618_p6), 0.0|0.0   ;;  %v2292_v58 = vmov (!%p1618_p6), 1.0|1.0   ;;  %vm2293_vm12 = vmmov (!%p1618_p6), 0   ;;  %v2294_v13 = vmov (!%p1618_p6), 0.0   ;;  %v1069_v17 = vld [vmem:[#allocation2] sm:$0xff] (!%p1618_p6) }
 0x37b   : > { %1068 = sbr.rel (%p1618_p6) target bundleno = 1393 (0x571), region = 64  ;;  %2157 = vmatprep.subr.bf16.mxu0 (!%p1618_p6), %v2291_v50  ;;  %2181 = vmatprep.subr.bf16.mxu1 (!%p1618_p6), %v2291_v50  ;;  %v2250_v27 = vld [vmem:[%s3059_s3] sm:$0xff] (!%p1618_p6)   ;;  %vm3151_vm0 = vcmp.eq.s32.totalorder (!%p1618_p6), %v2626_v59, %v2640_v63  ;;  %vm3152_vm7 = vcmp.eq.s32.totalorder (!%p1618_p6), %v2626_v59, %v2628_v60  ;;  %vm3153_vm10 = vcmp.eq.s32.totalorder (!%p1618_p6), %v2626_v59, %v2636_v62  ;;  %v1303_v60 = vsub.s32 (!%p1618_p6), 0, %v2386_v5  ;;  %v1310_v29 = vld [vmem:[%s3065_s9 + $0x8] sm:$0xff] (!%p1618_p6) }
 0x37c   : > { %2159 = vmatpush3.bf16.msk.msra.mxu0 (!%p1618_p6), %vm2414_vm6, %v2292_v58  ;;  %2183 = vmatpush3.bf16.msk.msra.mxu1 (!%p1618_p6), %vm2414_vm6, %v2292_v58  ;;  %vm3143_vm6 = vnez (!%p1618_p6), %v3085_v20  ;;  %v2251_v20 = vld [vmem:[%s3059_s3 + $0x8] sm:$0xff] (!%p1618_p6)   ;;  %vm1671_vm4 = vmpackc.low (!%p1618_p6), %vm3153_vm10, %vm3152_vm7  ;;  %vm3154_vm5 = vcmp.eq.s32.totalorder (!%p1618_p6), %v2626_v59, %v2648_v1  ;;  %vm3155_vm9 = vcmp.eq.s32.totalorder (!%p1618_p6), %v2626_v59, %v2644_v0  ;;  %vm3163_vm7 = vcmp.eq.s32.totalorder (!%p1618_p6), %v2626_v59, %v2676_v9  ;;  %v1311_v9 = vld [vmem:[%s3065_s9 + $0x10] sm:$0xff] (!%p1618_p6) }
 0x37d   : > { %2160 = vmatprep.subr.bf16.mxu0 (!%p1618_p6), %v2291_v50  ;;  %2184 = vmatprep.subr.bf16.mxu1 (!%p1618_p6), %v2291_v50  ;;  %v1309_v5 = vld [vmem:[%s3065_s9] sm:$0xff] (!%p1618_p6) }
 0x37e   : > { %1983 = vmatprep.mubr.msk.f32.mxu0 (!%p1618_p6), %vm2293_vm12, %v2294_v13  ;;  %2018 = vmatprep.mubr.msk.f32.mxu1 (!%p1618_p6), %vm2293_vm12, %v2294_v13  ;;  %vm1673_vm12 = vmpackc.low (!%p1618_p6), %vm3155_vm9, %vm3154_vm5  ;;  %vm3165_vm5 = vcmp.eq.s32.totalorder (!%p1618_p6), %v2626_v59, %v2684_v11  ;;  %v1312_v11 = vld [vmem:[%s3065_s9 + $0x18] sm:$0xff] (!%p1618_p6) }
 0x37f   : > { %v1140_v21 = vld [vmem:[#allocation3] sm:$0xff] (!%p1618_p6) }
 0x380   : > { %2162 = vmatpush3.bf16.msk.msra.mxu0 (!%p1618_p6), %vm2438_vm11, %v2292_v58  ;;  %2186 = vmatpush3.bf16.msk.msra.mxu1 (!%p1618_p6), %vm2438_vm11, %v2292_v58  ;;  %vm3144_vm11 = vnez (!%p1618_p6), %v3089_v22 }
 0x381   : > { %2163 = vmatprep.subr.bf16.mxu0 (!%p1618_p6), %v2291_v50  ;;  %2187 = vmatprep.subr.bf16.mxu1 (!%p1618_p6), %v2291_v50 }
 0x384   : > { %2165 = vmatpush3.bf16.msk.msra.mxu0 %vm2466_vm1, %v2292_v58  ;;  %2189 = vmatpush3.bf16.msk.msra.mxu1 %vm2466_vm1, %v2292_v58  ;;  %vm3145_vm1 = vnez %v3093_v28 }
 0x385   : > { %2166 = vmatprep.subr.bf16.mxu0 %v2291_v50  ;;  %2190 = vmatprep.subr.bf16.mxu1 %v2291_v50 }
 0x388   : > { %2168 = vmatpush3.bf16.msk.msra.mxu0 %vm2494_vm8, %v2292_v58  ;;  %2192 = vmatpush3.bf16.msk.msra.mxu1 %vm2494_vm8, %v2292_v58  ;;  %vm3146_vm8 = vnez %v3097_v34 }
 0x389   : > { %2169 = vmatprep.subr.bf16.mxu0 %v2291_v50  ;;  %2193 = vmatprep.subr.bf16.mxu1 %v2291_v50 }
 0x38c   : > { %2171 = vmatpush3.bf16.msk.msra.mxu0 %vm2522_vm3, %v2292_v58  ;;  %2195 = vmatpush3.bf16.msk.msra.mxu1 %vm2522_vm3, %v2292_v58  ;;  %vm3147_vm3 = vnez %v3101_v40 }
 0x38d   : > { %2172 = vmatprep.subr.bf16.mxu0 %v2291_v50  ;;  %2196 = vmatprep.subr.bf16.mxu1 %v2291_v50 }
 0x390   : > { %2174 = vmatpush3.bf16.msk.msra.mxu0 %vm2550_vm15, %v2292_v58  ;;  %2198 = vmatpush3.bf16.msk.msra.mxu1 %vm2550_vm15, %v2292_v58  ;;  %vm3148_vm15 = vnez %v3105_v46  ;;  %v1216_v46 = vld [vmem:[%s3063_s7] sm:$0xff] }
 0x391   : > { %2175 = vmatprep.subr.bf16.mxu0 %v2291_v50  ;;  %2199 = vmatprep.subr.bf16.mxu1 %v2291_v50  ;;  %v1217_v52 = vmul.f32 0.0, %v1216_v46 }
 0x394   : > { %2177 = vmatpush3.bf16.msk.msra.mxu0 %vm2578_vm13, %v2292_v58  ;;  %2201 = vmatpush3.bf16.msk.msra.mxu1 %vm2578_vm13, %v2292_v58  ;;  %vm3149_vm13 = vnez %v3113_v56 }
 0x395   : > { %2178 = vmatprep.subr.bf16.mxu0 %v2291_v50  ;;  %2202 = vmatprep.subr.bf16.mxu1 %v2291_v50 }
 0x398   : > { %2180 = vmatpush3.bf16.msk.msra.mxu0 %vm2604_vm2, %v2292_v58  ;;  %2204 = vmatpush3.bf16.msk.msra.mxu1 %vm2604_vm2, %v2292_v58  ;;  %vm3150_vm2 = vcmp.eq.s32.totalorder %v2626_v59, %v2630_v61 }
 0x399   : > { %2021 = vmatprep.subr.msk.bf16.mxu0 %vm3143_vm6, %v2292_v58 }
 0x39b   : > { %1984 = vmatmul.mubr.f32.vlgmr.msra.gmra.mrb[0].mxu0 %v1069_v17  ;;  %2019 = vmatmul.mubr.f32.vlgmr.msra.gmra.mrb[0].mxu1 %v1140_v21 }
 0x39c   : > { %2022 = vmatpush3.bf16.msk.msra.mxu0 %vm3143_vm6, %v2292_v58  ;;  %2037 = vmatprep.mubr.bf16.mxu0 %v2250_v27  ;;  %vm3156_vm6 = vcmp.eq.s32.totalorder %v2626_v59, %v2656_v3 }
 0x39d   : > { %2023 = vmatprep.subr.msk.bf16.mxu0 %vm3144_vm11, %v2292_v58 }
 0x3a0   : > { %2024 = vmatpush3.bf16.msk.msra.mxu0 %vm3144_vm11, %v2292_v58  ;;  %vm3157_vm11 = vcmp.eq.s32.totalorder %v2626_v59, %v2652_v2 }
 0x3a1   : > { %2025 = vmatprep.subr.msk.bf16.mxu0 %vm3145_vm1, %v2292_v58 }
 0x3a4   : > { %2026 = vmatpush3.bf16.msk.msra.mxu0 %vm3145_vm1, %v2292_v58  ;;  %vm1675_vm1 = vmpackc.low %vm3157_vm11, %vm3156_vm6 }
 0x3a5   : > { %2027 = vmatprep.subr.msk.bf16.mxu0 %vm3146_vm8, %v2292_v58 }
 0x3a8   : > { %2028 = vmatpush3.bf16.msk.msra.mxu0 %vm3146_vm8, %v2292_v58  ;;  %vm3158_vm8 = vcmp.eq.s32.totalorder %v2626_v59, %v2664_v6 }
 0x3a9   : > { %2029 = vmatprep.subr.msk.bf16.mxu0 %vm3147_vm3, %v2292_v58 }
 0x3ac   : > { %2030 = vmatpush3.bf16.msk.msra.mxu0 %vm3147_vm3, %v2292_v58  ;;  %vm3159_vm3 = vcmp.eq.s32.totalorder %v2626_v59, %v2660_v4 }
 0x3ad   : > { %2031 = vmatprep.subr.msk.bf16.mxu0 %vm3148_vm15, %v2292_v58 }
 0x3b0   : > { %2032 = vmatpush3.bf16.msk.msra.mxu0 %vm3148_vm15, %v2292_v58  ;;  %vm1677_vm15 = vmpackc.low %vm3159_vm3, %vm3158_vm8 }
 0x3b1   : > { %2033 = vmatprep.subr.msk.bf16.mxu0 %vm2583_vm14, %v2292_v58 }
 0x3b4   : > { %2034 = vmatpush3.bf16.msk.msra.mxu0 %vm2583_vm14, %v2292_v58  ;;  %vm1669_vm14 = vmpackc.low %vm3151_vm0, %vm3150_vm2  ;;  %vm3161_vm2 = vcmp.eq.s32.totalorder %v2626_v59, %v2668_v7 }
 0x3b5   : > { %2035 = vmatprep.subr.msk.bf16.mxu0 %vm3149_vm13, %v2292_v58  ;;  %2041 = vmatprep.subr.msk.bf16.mxu1 %vm1669_vm14, %v2292_v58 }
 0x3b6   : > { %2042 = vmatpush3.bf16.msk.msra.mxu1 %vm1669_vm14, %v2292_v58  ;;  %vm3162_vm14 = vcmp.eq.s32.totalorder %v2626_v59, %v2680_v10 }
 0x3b7   : > { %2043 = vmatprep.subr.msk.bf16.mxu1 %vm1671_vm4, %v2292_v58  ;;  %vm1681_vm10 = vmpackc.low %vm3163_vm7, %vm3162_vm14 }
 0x3b8   : > { %2036 = vmatpush3.bf16.msk.msra.mxu0 %vm3149_vm13, %v2292_v58  ;;  %vm3160_vm13 = vcmp.eq.s32.totalorder %v2626_v59, %v2672_v8 }
 0x3b9   : > { %vm1679_vm0 = vmpackc.low %vm3161_vm2, %vm3160_vm13 }
 0x3ba   : > { %2044 = vmatpush3.bf16.msk.msra.mxu1 %vm1671_vm4, %v2292_v58  ;;  %vm3164_vm4 = vcmp.eq.s32.totalorder %v2626_v59, %v2688_v12 }
 0x3bb   : > { %2038 = vmatmul.mubr.bf16.vlgmr.msra.gmra.mrb[4].mxu0 %v2251_v20  ;;  %2045 = vmatprep.subr.msk.bf16.mxu1 %vm1673_vm12, %v2292_v58  ;;  %vm1683_vm9 = vmpackc.low %vm3165_vm5, %vm3164_vm4 }
 0x3be   : > { %2046 = vmatpush3.bf16.msk.msra.mxu1 %vm1673_vm12, %v2292_v58 }
 0x3bf   : > { %2047 = vmatprep.subr.msk.bf16.mxu1 %vm1675_vm1, %v2292_v58 }
 0x3c2   : > { %2048 = vmatpush3.bf16.msk.msra.mxu1 %vm1675_vm1, %v2292_v58 }
 0x3c3   : > { %2049 = vmatprep.subr.msk.bf16.mxu1 %vm1677_vm15, %v2292_v58 }
 0x3c6   : > { %2050 = vmatpush3.bf16.msk.msra.mxu1 %vm1677_vm15, %v2292_v58 }
 0x3c7   : > { %2051 = vmatprep.subr.msk.bf16.mxu1 %vm1679_vm0, %v2292_v58 }
 0x3ca   : > { %2052 = vmatpush3.bf16.msk.msra.mxu1 %vm1679_vm0, %v2292_v58 }
 0x3cb   : > { %2053 = vmatprep.subr.msk.bf16.mxu1 %vm1681_vm10, %v2292_v58 }
 0x3ce   : > { %2054 = vmatpush3.bf16.msk.msra.mxu1 %vm1681_vm10, %v2292_v58 }
 0x3cf   : > { %2055 = vmatprep.subr.msk.bf16.mxu1 %vm1683_vm9, %v2292_v58 }
 0x3d2   : > { %2056 = vmatpush3.bf16.msk.msra.mxu1 %vm1683_vm9, %v2292_v58 }
 0x46e   : > { %v1136_v22 = vpop.f32.mrb[0].mxu0  ;;  %v1210_v28 = vpop.f32.mrb[0].mxu1 }
 0x46f   : > { %v1141_v33 = vsub.f32 %v2695_v25, %v1136_v22  ;;  %v1985_v34 = vpop.f32.mrb[1].mxu0  ;;  %v1211_v39 = vadd.f32 1e-12, %v1210_v28  ;;  %v2020_v40 = vpop.f32.mrb[1].mxu1 }
 0x471   : > { %v1142_v45 = vmul.f32 1.442695, %v1141_v33  ;;  %2252 = vrcp.f32 %v1211_v39 }
 0x473   : > { %2254 = vpow2.f32 %v1142_v45 }
 0x47b   : > { %v2253_v51 = vpop.eup %2252 }
 0x47d   : > { %v2255_v55 = vpop.eup %2254 }
 0x47e   : > { %v1215_v56 = vmul.f32 %v2255_v55, %v2253_v51 }
 0x480   : > { %v1218_v59 = vadd.f32 %v1217_v52, %v1215_v56 }
 0x482   : > { %1219 = vst [vmem:[%s3064_s8] sm:$0xff] %v1218_v59  ;;  %v1304_v61 = vrot.slane %v1218_v59, %v1303_v60 }
 0x48e   : > { %v2039_v62 = vpop.f32.mrb[4].mxu0 }
 0x48f   : > { %v1307_v63 = vmul.f32 %v2039_v62, %v1304_v61  ;;  %v1286_v0 = vpop.f32.mrb[5].mxu0 }
 0x490   : > { %v1305_v1 = vmul.f32 %v1304_v61, %v1286_v0  ;;  %v2040_v2 = vpop.f32.mrb[6].mxu0 }
 0x491   : > { %v1308_v3 = vmul.f32 %v2040_v2, %v1304_v61  ;;  %v1289_v4 = vpop.f32.mrb[7].mxu0 }
 0x492   : > { %v1306_v6 = vmul.f32 %v1304_v61, %v1289_v4 }
 0x493   : > { %v1314_v7 = vpack.c.bf16 %v1308_v3, %v1307_v63 }
 0x494   : > { %v1313_v8 = vpack.c.bf16 %v1306_v6, %v1305_v1 }
 0x496   : > { %2057 = vmatprep.mubr.bf16.mxu1 %v1313_v8 }
 0x497   : > { %2058 = vmatmul.mubr.bf16.vlgmr.msra.gmra.mrb[4].mxu1 %v1314_v7 }
 0x56a   : > { %v2059_v10 = vpop.f32.mrb[4].mxu1 }
 0x56b   : > { %v1366_v12 = vadd.f32 %v2059_v10, %v1311_v9  ;;  %v1349_v25 = vpop.f32.mrb[5].mxu1 }
 0x56c   : > { %v1364_v14 = vadd.f32 %v1349_v25, %v1309_v5  ;;  %v2060_v53 = vpop.f32.mrb[6].mxu1 }
 0x56d   : > { %1370 = vst [vmem:[%s3065_s9 + $0x10] sm:$0xff] %v1366_v12  ;;  %v1367_v15 = vadd.f32 %v2060_v53, %v1312_v11  ;;  %v1352_v16 = vpop.f32.mrb[7].mxu1 }
 0x56e   : > { %1368 = vst [vmem:[%s3065_s9] sm:$0xff] %v1364_v14  ;;  %v1365_v18 = vadd.f32 %v1352_v16, %v1310_v29 }
 0x56f   : > { %1371 = vst [vmem:[%s3065_s9 + $0x18] sm:$0xff] %v1367_v15 }
 0x570   : > { %1369 = vst [vmem:[%s3065_s9 + $0x8] sm:$0xff] %v1365_v18 }
 0x571 PF: > { %s20_s11 = sadd.s32 1, %s2278_s11   ;;  %s3166_s30 = smov %s2274_s10 }
 0x572   : > { %p17_p7 = scmp.ge.s32.totalorder %s20_s11, 4   ;;  %s3167_s10 = smov %s3169_s12 }
 0x574   :  { %19 = sbr.rel (!%p17_p7) target bundleno = 2 (0x2), region = 114 }

</bundles_post_ra>
